<compile_context>
chip_gen: v7x
topology: tpu7x:2x2x1
jax: 0.10.0
libtpu: 0.0.40
codegen_flags: <defaults>
</compile_context>

<pallas_src>
import numpy as np
import jax
import jax.numpy as jnp
from jax import lax
from jax.experimental import pallas as pl
from jax.experimental.pallas import tpu as pltpu

ENCODE_LAYER = 12
FILTER_SIZES = [2, 2, 2]
HIDDEN = 768
N_CLASS = 4
NUM_FILTERS = 3
NUM_FILTER_TOTAL = NUM_FILTERS * len(FILTER_SIZES)  # 9
OUT_LANES = 128                                     # lane-dense output width


def _round_up(n, m):
    return ((n + m - 1) // m) * m


def textcnn_kernel(x_ref, w01_ref, bconv_ref, wlin_ref, blin_ref, out_ref):
    # x_ref:    [TB*L, H]   batch tile, flattened batch-major (row = b*L + t)
    # w01_ref:  [H, 2F]     fused conv weights: lanes [0:F) = tap 0, [F:2F) = tap 1
    # bconv_ref:[1, F]      conv biases (f32)
    # wlin_ref: [F, 128]    final linear weight, zero-padded to 128 lanes (f32)
    # blin_ref: [1, 128]    final bias, zero-padded to 128 lanes (f32)
    # out_ref:  [TB, 128]   logits in lanes [0:n_class), garbage elsewhere / in padded rows
    TBL, _ = x_ref.shape
    F = bconv_ref.shape[1]
    TB = out_ref.shape[0]
    L = TBL // TB

    # f32 inputs get a true-f32 matmul (we are HBM-bound, extra MXU passes are
    # free); bf16 inputs use the native bf16 path with f32 accumulation.
    prec = lax.Precision.HIGHEST if x_ref.dtype == jnp.float32 else None

    # One fused MXU pass over the whole activation slab: [TB*L, H] @ [H, 2F].
    s = jnp.dot(x_ref[...], w01_ref[...],
                preferred_element_type=jnp.float32, precision=prec)

    # conv[b, t] = s0[r] + s1[r + 1] + bias  with r = b*L + t.
    # A circular sublane roll by TBL-1 (== shift -1) aligns row r+1's tap-1
    # scores with row r while staying in the flat 2D [TBL, lanes] layout
    # (no 3D relayouts of the two tap halves).
    s_next = pltpu.roll(s, shift=TBL - 1, axis=0)
    scores = s[:, :F] + s_next[:, F:2 * F] + bconv_ref[...]
    h = jnp.maximum(scores, 0.0)                     # ReLU

    # Per-batch max over the L rows of each group.  Rows with t == L-1 have no
    # valid tap-1 partner (the roll wrapped into the next batch / stale data,
    # possibly NaN for the clipped last tile); zero them AFTER ReLU, which is
    # exact because all surviving values are >= 0.
    h3 = h.reshape(TB, L, F)
    t3 = lax.broadcasted_iota(jnp.int32, (TB, L, F), 1)
    feat = jnp.max(jnp.where(t3 == L - 1, 0.0, h3), axis=1)      # [TB, F]

    # Final linear (lane-padded so the store is a full-width, unmasked vst).
    out = jnp.dot(feat, wlin_ref[...], preferred_element_type=jnp.float32,
                  precision=lax.Precision.HIGHEST) + blin_ref[...]
    out_ref[...] = out.astype(out_ref.dtype)


def textcnn_forward(x, conv_w, conv_b, lin_w, lin_b, *, tb=256, vmem_limit_bytes=None):
    """TextCNN forward.

    x: [B, 12, 768] (f32 or bf16 -- used as-is, never cast here)
    conv_w: [9, 2, 768]; conv_b: [9]; lin_w: [4, 9]; lin_b: [4].

    tb: batch rows per grid step.  Default 256 targets v6e/v7x (with the
    explicit vmem_limit_bytes below); pass tb=128 on v5e to stay inside the
    default scoped-VMEM budget.
    """
    assert all(s == 2 for s in FILTER_SIZES)
    B, L, H = x.shape
    F, taps, Hw = conv_w.shape
    C = lin_w.shape[0]
    assert (L, H) == (ENCODE_LAYER, HIDDEN) and taps == 2 and Hw == H
    assert C <= OUT_LANES

    # Fused conv weight: [H, 2F] = [tap0 | tap1], in x's dtype (weights are tiny;
    # the big x slab is never converted).
    w01 = jnp.concatenate(
        [jnp.transpose(conv_w[:, 0, :]), jnp.transpose(conv_w[:, 1, :])],
        axis=1).astype(x.dtype)
    bconv = conv_b.reshape(1, F).astype(jnp.float32)
    # Lane-dense final linear: pad [9, 4] -> [9, 128] and [4] -> [1, 128].
    wlin = jnp.zeros((F, OUT_LANES), jnp.float32).at[:, :C].set(
        jnp.transpose(lin_w).astype(jnp.float32))
    blin = jnp.zeros((1, OUT_LANES), jnp.float32).at[0, :C].set(
        lin_b.astype(jnp.float32))

    # Batch tiling.  TB is a multiple of 16 (clean sublanes for f32 and bf16 x)
    # and is capped at ~ceil(B/2) so the "parallel" grid axis has at least two
    # tiles when B allows it (lets v7x shard batch tiles across both TCs).
    TB = _round_up(min(tb, _round_up(pl.cdiv(B, 2), 16)), 16)
    num_tiles = pl.cdiv(B, TB)
    B_pad = num_tiles * TB

    # NO padding of x: the last x block may read past the end of x2 (stale /
    # unspecified rows).  Invariant making this safe: every output row depends
    # only on its own batch's 12 input rows, the in-kernel t==L-1 mask kills the
    # one cross-row term, and output rows >= B are sliced off below.
    x2 = x.reshape(B * L, H)            # free row-major reshape; rows = b*L + t

    if vmem_limit_bytes is None:
        x_tile_bytes = TB * L * H * x.dtype.itemsize       # one x buffer
        interm_bytes = 4 * TB * L * OUT_LANES * 4           # lane-padded f32 temps
        vmem_limit_bytes = int(min(max(2 * x_tile_bytes + interm_bytes + (8 << 20),
                                       32 << 20),
                                   48 << 20))               # fits v7x's 64 MiB VMEM

    out = pl.pallas_call(
        textcnn_kernel,
        out_shape=jax.ShapeDtypeStruct((B_pad, OUT_LANES), jnp.float32),
        grid_spec=pltpu.PrefetchScalarGridSpec(
            num_scalar_prefetch=0,
            grid=(num_tiles,),
            in_specs=[
                pl.BlockSpec((TB * L, H), lambda i: (i, 0)),      # x batch tile
                pl.BlockSpec((H, 2 * F), lambda i: (0, 0)),       # fused conv W (resident)
                pl.BlockSpec((1, F), lambda i: (0, 0)),           # conv bias
                pl.BlockSpec((F, OUT_LANES), lambda i: (0, 0)),   # linear W (lane-padded)
                pl.BlockSpec((1, OUT_LANES), lambda i: (0, 0)),   # linear bias (lane-padded)
            ],
            out_specs=pl.BlockSpec((TB, OUT_LANES), lambda i: (i, 0)),
        ),
        compiler_params=pltpu.CompilerParams(
            dimension_semantics=("parallel",),
            vmem_limit_bytes=vmem_limit_bytes,
        ),
    )(x2, w01, bconv, wlin, blin)

    return out[:B, :C]


def textcnn_ref(x, conv_w, conv_b, lin_w, lin_b):
    """Plain-JAX reference matching the PyTorch forward semantics (f32, exact matmuls)."""
    B, L, H = x.shape
    xf = x.astype(jnp.float32)
    feats = []
    for c, size in enumerate(FILTER_SIZES):
        w = conv_w[c * NUM_FILTERS:(c + 1) * NUM_FILTERS]   # [3, size, H]
        b = conv_b[c * NUM_FILTERS:(c + 1) * NUM_FILTERS]   # [3]
        T = L - size + 1
        s = jnp.zeros((B, T, NUM_FILTERS), jnp.float32)
        for dt in range(size):
            s = s + jnp.einsum('blh,fh->blf', xf[:, dt:dt + T, :], w[:, dt, :],
                               precision=lax.Precision.HIGHEST)
        s = s + b[None, None, :]
        feats.append(jnp.max(jax.nn.relu(s), axis=1))        # [B, 3]
    feat = jnp.concatenate(feats, axis=1)                     # [B, 9]
    return jnp.dot(feat, lin_w.T, precision=lax.Precision.HIGHEST) + lin_b


if __name__ == "__main__":
    key = jax.random.PRNGKey(0)
    k1, k2, k3, k4, k5 = jax.random.split(key, 5)

    # Deterministic synthetic parameters (shapes implied by the module __init__):
    #   Conv2d(1, 3, (2, 768)) x 3  -> stacked [9, 2, 768] weight, [9] bias
    #   Linear(9, 4, bias=False)    -> [4, 9] weight; self.bias = ones([4])
    conv_w = jax.random.normal(k2, (NUM_FILTER_TOTAL, FILTER_SIZES[0], HIDDEN), jnp.float32) * 0.02
    conv_b = jax.random.normal(k3, (NUM_FILTER_TOTAL,), jnp.float32) * 0.02
    lin_w = jax.random.normal(k4, (N_CLASS, NUM_FILTER_TOTAL), jnp.float32) * 0.1
    lin_b = jnp.ones((N_CLASS,), jnp.float32)

    # Test 1: tiny batch, f32, single (partial) tile.
    B = 2
    x = jax.random.normal(k1, (B, ENCODE_LAYER, HIDDEN), jnp.float32)
    out = jax.block_until_ready(textcnn_forward(x, conv_w, conv_b, lin_w, lin_b))
    assert out.shape == (B, N_CLASS)
    ref = textcnn_ref(x, conv_w, conv_b, lin_w, lin_b)
    np.testing.assert_allclose(np.asarray(out), np.asarray(ref), rtol=1e-4, atol=1e-4)

    # Test 2: ragged batch -> 2-tile "parallel" grid with a clipped (un-padded) last tile.
    B2 = 37
    xb = jax.random.normal(k5, (B2, ENCODE_LAYER, HIDDEN), jnp.float32)
    out2 = jax.block_until_ready(textcnn_forward(xb, conv_w, conv_b, lin_w, lin_b))
    ref2 = textcnn_ref(xb, conv_w, conv_b, lin_w, lin_b)
    np.testing.assert_allclose(np.asarray(out2), np.asarray(ref2), rtol=1e-4, atol=1e-4)

    # Test 3: upstream producer emits bf16 activations -> kernel consumes bf16 as-is
    # (f32 accumulation inside), halving the HBM read of the x stream.
    xb16 = xb.astype(jnp.bfloat16)
    out3 = jax.block_until_ready(textcnn_forward(xb16, conv_w, conv_b, lin_w, lin_b))
    np.testing.assert_allclose(np.asarray(out3), np.asarray(ref2), rtol=5e-2, atol=5e-2)

    print("KERNEL_OK")
</pallas_src>

<mosaic_0001>
module attributes {stable_mosaic.version = 11 : i64} {
  func.func @textcnn_kernel(%arg0: i32, %arg1: memref<192x768xf32, #tpu.memory_space<vmem>>, %arg2: memref<768x18xf32, #tpu.memory_space<vmem>>, %arg3: memref<1x9xf32, #tpu.memory_space<vmem>>, %arg4: memref<9x128xf32, #tpu.memory_space<vmem>>, %arg5: memref<1x128xf32, #tpu.memory_space<vmem>>, %arg6: memref<16x128xf32, #tpu.memory_space<vmem>>) attributes {dimension_semantics = [#tpu.dimension_semantics<parallel>], iteration_bounds = array<i64: 1>, scalar_prefetch = 0 : i64, scratch_operands = 0 : i64, tpu.core_type = #tpu.core_type<tc>, window_params = [{transform_indices = @transform_0, window_bounds = array<i64: 192, 768>}, {pipeline_mode = #tpu.pipeline_mode<synchronous>, transform_indices = @transform_1, window_bounds = array<i64: 768, 18>}, {pipeline_mode = #tpu.pipeline_mode<synchronous>, transform_indices = @transform_2, window_bounds = array<i64: 1, 9>}, {pipeline_mode = #tpu.pipeline_mode<synchronous>, transform_indices = @transform_3, window_bounds = array<i64: 9, 128>}, {pipeline_mode = #tpu.pipeline_mode<synchronous>, transform_indices = @transform_4, window_bounds = array<i64: 1, 128>}, {transform_indices = @transform_5, window_bounds = array<i64: 16, 128>}]} {
    %c0 = arith.constant 0 : index
    %c0_0 = arith.constant 0 : index
    %0 = vector.load %arg1[%c0, %c0_0] : memref<192x768xf32, #tpu.memory_space<vmem>>, vector<192x768xf32>
    %c0_1 = arith.constant 0 : index
    %c0_2 = arith.constant 0 : index
    %1 = vector.load %arg2[%c0_1, %c0_2] : memref<768x18xf32, #tpu.memory_space<vmem>>, vector<768x18xf32>
    %cst = arith.constant dense<0.000000e+00> : vector<192x18xf32>
    %2 = tpu.matmul %0, %1, %cst {dimension_numbers = #tpu.dot_dimension_numbers<[1], [0], [0], [1], [0, 0, 1, 1], [], []>, precision = #tpu.contract_precision<fp32>} : vector<192x768xf32>, vector<768x18xf32>, vector<192x18xf32> -> vector<192x18xf32>
    %c191_i32 = arith.constant 191 : i32
    %3 = tpu.dynamic_rotate %2 by %c191_i32 dim 0 : vector<192x18xf32>, i32 -> vector<192x18xf32>
    %4 = vector.extract_strided_slice %2 {offsets = [0, 0], sizes = [192, 9], strides = [1, 1]} : vector<192x18xf32> to vector<192x9xf32>
    %5 = vector.extract_strided_slice %3 {offsets = [0, 9], sizes = [192, 9], strides = [1, 1]} : vector<192x18xf32> to vector<192x9xf32>
    %6 = arith.addf %4, %5 : vector<192x9xf32>
    %c0_3 = arith.constant 0 : index
    %c0_4 = arith.constant 0 : index
    %7 = vector.load %arg3[%c0_3, %c0_4] : memref<1x9xf32, #tpu.memory_space<vmem>>, vector<1x9xf32>
    %8 = vector.broadcast %7 : vector<1x9xf32> to vector<192x9xf32>
    %9 = arith.addf %6, %8 : vector<192x9xf32>
    %cst_5 = arith.constant 0.000000e+00 : f32
    %10 = vector.broadcast %cst_5 : f32 to vector<192x9xf32>
    %11 = arith.maximumf %9, %10 : vector<192x9xf32>
    %12 = vector.shape_cast %11 : vector<192x9xf32> to vector<16x12x9xf32>
    %13 = tpu.iota {dimensions = array<i32: 1>} : vector<16x12x9xi32>
    %c11_i32 = arith.constant 11 : i32
    %14 = vector.broadcast %c11_i32 : i32 to vector<16x12x9xi32>
    %15 = arith.cmpi eq, %13, %14 : vector<16x12x9xi32>
    %cst_6 = arith.constant 0.000000e+00 : f32
    %16 = vector.broadcast %cst_6 : f32 to vector<16x12x9xf32>
    %17 = arith.select %15, %16, %12 : vector<16x12x9xi1>, vector<16x12x9xf32>
    %cst_7 = arith.constant dense<0xFF800000> : vector<16x9xf32>
    %18 = vector.multi_reduction <maximumf>, %17, %cst_7 [1] : vector<16x12x9xf32> to vector<16x9xf32>
    %c0_8 = arith.constant 0 : index
    %c0_9 = arith.constant 0 : index
    %19 = vector.load %arg4[%c0_8, %c0_9] : memref<9x128xf32, #tpu.memory_space<vmem>>, vector<9x128xf32>
    %cst_10 = arith.constant dense<0.000000e+00> : vector<16x128xf32>
    %20 = tpu.matmul %18, %19, %cst_10 {dimension_numbers = #tpu.dot_dimension_numbers<[1], [0], [0], [1], [0, 0, 1, 1], [], []>, precision = #tpu.contract_precision<fp32>} : vector<16x9xf32>, vector<9x128xf32>, vector<16x128xf32> -> vector<16x128xf32>
    %c0_11 = arith.constant 0 : index
    %c0_12 = arith.constant 0 : index
    %21 = vector.load %arg5[%c0_11, %c0_12] : memref<1x128xf32, #tpu.memory_space<vmem>>, vector<1x128xf32>
    %22 = vector.broadcast %21 : vector<1x128xf32> to vector<16x128xf32>
    %23 = arith.addf %20, %22 : vector<16x128xf32>
    %c0_13 = arith.constant 0 : index
    %c0_14 = arith.constant 0 : index
    %24 = vector.load %arg6[%c0_13, %c0_14] : memref<16x128xf32, #tpu.memory_space<vmem>>, vector<16x128xf32>
    tpu.vector_store %arg6[%c0_13, %c0_14], %23 {strides = array<i32>} : memref<16x128xf32, #tpu.memory_space<vmem>>, vector<16x128xf32>,
    return
  }
  func.func @transform_0(%arg0: i32) -> (i32, i32) {
    %c0_i32 = arith.constant 0 : i32
    %c0_i32_0 = arith.constant 0 : i32
    return %arg0, %c0_i32 : i32, i32
  }
  func.func @transform_1(%arg0: i32) -> (i32, i32) {
    %c0_i32 = arith.constant 0 : i32
    %c0_i32_0 = arith.constant 0 : i32
    %c0_i32_1 = arith.constant 0 : i32
    return %c0_i32, %c0_i32_0 : i32, i32
  }
  func.func @transform_2(%arg0: i32) -> (i32, i32) {
    %c0_i32 = arith.constant 0 : i32
    %c0_i32_0 = arith.constant 0 : i32
    %c0_i32_1 = arith.constant 0 : i32
    return %c0_i32, %c0_i32_0 : i32, i32
  }
  func.func @transform_3(%arg0: i32) -> (i32, i32) {
    %c0_i32 = arith.constant 0 : i32
    %c0_i32_0 = arith.constant 0 : i32
    %c0_i32_1 = arith.constant 0 : i32
    return %c0_i32, %c0_i32_0 : i32, i32
  }
  func.func @transform_4(%arg0: i32) -> (i32, i32) {
    %c0_i32 = arith.constant 0 : i32
    %c0_i32_0 = arith.constant 0 : i32
    %c0_i32_1 = arith.constant 0 : i32
    return %c0_i32, %c0_i32_0 : i32, i32
  }
  func.func @transform_5(%arg0: i32) -> (i32, i32) {
    %c0_i32 = arith.constant 0 : i32
    %c0_i32_0 = arith.constant 0 : i32
    return %arg0, %c0_i32 : i32, i32
  }
}

</mosaic_0001>

<bundles_post_ra>
// kernel: tpu_custom_call.1
= control target key start
LH: loop header
LB: loop body
LE: loop exit
PB: predicated region body
PF: predicated region fallthrough
CT: control target
= control target key end

     0   :  { %v15206_v3 = vmov 0.0|0.0   ;;  %s15190_s0 = inlined_call_operand.vmem [shape: f32[24,768], index: 0, kind: input, shape index: {}]   ;;  %s15191_s1 = inlined_call_operand.vmem [shape: f32[768,18], index: 1, kind: input, shape index: {}]   ;;  %s15192_s2 = inlined_call_operand.vmem [shape: f32[1,9], index: 2, kind: input, shape index: {}]   ;;  %s15193_s3 = inlined_call_operand.vmem [shape: f32[9,128], index: 3, kind: input, shape index: {}]   ;;  %s15194_s4 = inlined_call_operand.vmem [shape: f32[1,128], index: 4, kind: input, shape index: {}]   ;;  %s15195_s5 = inlined_call_operand.hbm [shape: f32[16,128], index: 5, kind: output, shape index: {}]  }
   0x1   :  { %v165_v0 = vld [vmem:[%s15191_s1] sm:$0xff]  ;;  %v166_v1 = vld [vmem:[%s15191_s1 + $0x8] sm:$0xff]  ;;  %7848 = vmatprep.subr.bf16.mxu1 %v15206_v3  ;;  %8232 = vmatprep.subr.bf16.mxu0 %v15206_v3  ;;  %v167_v8 = vld [vmem:[%s15191_s1 + $0x10] sm:$0xff] }
   0x2   :  { %v9624_v2 = vld [vmem:[%s15191_s1 + $0x100] sm:$0xff]  ;;  %v262_v4 = vand.u32 4294901760, %v165_v0  ;;  %v265_v5 = vand.u32 4294901760, %v166_v1  ;;  %v9631_v6 = vld [vmem:[%s15191_s1 + $0x108] sm:$0xff]  ;;  %v168_v9 = vld [vmem:[%s15191_s1 + $0x18] sm:$0xff]  ;;  %v268_v11 = vand.u32 4294901760, %v167_v8 }
   0x3   :  { %v15205_v7 = vand.u32 4294901760, %v9624_v2  ;;  %v15204_v10 = vand.u32 4294901760, %v9631_v6  ;;  %v271_v12 = vand.u32 4294901760, %v168_v9  ;;  %v9644_v13 = vld [vmem:[%s15191_s1 + $0x110] sm:$0xff]  ;;  %v9649_v14 = vld [vmem:[%s15191_s1 + $0x118] sm:$0xff]  ;;  %v169_v15 = vld [vmem:[%s15191_s1 + $0x20] sm:$0xff] }
   0x4   :  { %v9654_v16 = vpack.c.bf16 %v265_v5, %v262_v4  ;;  %v9656_v17 = vsub.f32 %v165_v0, %v262_v4  ;;  %v9658_v18 = vsub.f32 %v166_v1, %v265_v5  ;;  %v170_v20 = vld [vmem:[%s15191_s1 + $0x28] sm:$0xff]  ;;  %v9671_v21 = vld [vmem:[%s15191_s1 + $0x120] sm:$0xff]  ;;  %v9685_v25 = vsub.f32 %v167_v8, %v268_v11  ;;  %v171_v27 = vld [vmem:[%s15191_s1 + $0x30] sm:$0xff] }
   0x5   :  { %v9663_v19 = vsub.f32 %v9624_v2, %v15205_v7  ;;  %v9676_v22 = vld [vmem:[%s15191_s1 + $0x128] sm:$0xff]  ;;  %v9681_v23 = vsub.f32 %v9631_v6, %v15204_v10  ;;  %v9683_v24 = vpack.c.bf16 %v271_v12, %v268_v11  ;;  %v9687_v26 = vsub.f32 %v168_v9, %v271_v12  ;;  %v172_v32 = vld [vmem:[%s15191_s1 + $0x38] sm:$0xff]  ;;  %v9706_v37 = vld [vmem:[%s15191_s1 + $0x130] sm:$0xff] }
   0x6   :  { %16233 = vst [vmem:[#allocation5_spill] sm:$0xff] %v9654_v16  ;;  %7850 = vmatpush1.bf16.msra.mxu1 %v9654_v16  ;;  %v15203_v28 = vand.u32 4294901760, %v9644_v13  ;;  %v15202_v29 = vand.u32 4294901760, %v9649_v14  ;;  %v274_v30 = vand.u32 4294901760, %v169_v15  ;;  %v277_v31 = vand.u32 4294901760, %v170_v20  ;;  %v9711_v38 = vld [vmem:[%s15191_s1 + $0x138] sm:$0xff] }
   0x7   :  { %16234 = vst [vmem:[#allocation6_spill] sm:$0xff] %v9663_v19  ;;  %16235 = vst [vmem:[#allocation7_spill] sm:$0xff] %v9681_v23  ;;  %v8233_v33 = vpack.c.bf16 %v9681_v23, %v9663_v19  ;;  %7851 = vmatprep.subr.bf16.mxu1 %v15206_v3  ;;  %v15201_v34 = vand.u32 4294901760, %v9671_v21  ;;  %v15200_v35 = vand.u32 4294901760, %v9676_v22  ;;  %v280_v36 = vand.u32 4294901760, %v171_v27  ;;  %v173_v43 = vld [vmem:[%s15191_s1 + $0x40] sm:$0xff] }
   0x8   :  { %16236 = vst [vmem:[#allocation8_spill] sm:$0xff] %v9683_v24  ;;  %v9716_v39 = vsub.f32 %v9644_v13, %v15203_v28  ;;  %v9721_v40 = vsub.f32 %v9649_v14, %v15202_v29  ;;  %v9723_v41 = vpack.c.bf16 %v277_v31, %v274_v30  ;;  %v9725_v42 = vsub.f32 %v169_v15, %v274_v30  ;;  %v174_v48 = vld [vmem:[%s15191_s1 + $0x48] sm:$0xff]  ;;  %v9748_v49 = vld [vmem:[%s15191_s1 + $0x140] sm:$0xff]  ;;  %v175_v55 = vld [vmem:[%s15191_s1 + $0x50] sm:$0xff] }
   0x9   :  { %8234 = vmatpush1.bf16.msra.mxu0 %v8233_v33  ;;  %v9730_v44 = vsub.f32 %v170_v20, %v277_v31  ;;  %v9735_v45 = vsub.f32 %v9671_v21, %v15201_v34  ;;  %v9740_v46 = vsub.f32 %v9676_v22, %v15200_v35  ;;  %v283_v47 = vand.u32 4294901760, %v172_v32  ;;  %v9761_v54 = vld [vmem:[%s15191_s1 + $0x148] sm:$0xff]  ;;  %v176_v58 = vld [vmem:[%s15191_s1 + $0x58] sm:$0xff]  ;;  %v9786_v63 = vld [vmem:[%s15191_s1 + $0x150] sm:$0xff] }
   0xa   :  { %16237 = vst [vmem:[#allocation9_spill] sm:$0xff] %v9716_v39  ;;  %16238 = vst [vmem:[#allocation10_spill] sm:$0xff] %v9721_v40  ;;  %7853 = vmatpush1.bf16.msra.mxu1 %v9683_v24  ;;  %8235 = vmatprep.subr.bf16.mxu0 %v15206_v3  ;;  %v8236_v50 = vpack.c.bf16 %v9721_v40, %v9716_v39  ;;  %v9754_v51 = vsub.f32 %v171_v27, %v280_v36  ;;  %v15199_v52 = vand.u32 4294901760, %v9706_v37  ;;  %v9796_v8 = vld [vmem:[%s15191_s1 + $0x158] sm:$0xff]  ;;  %v177_v9 = vld [vmem:[%s15191_s1 + $0x60] sm:$0xff] }
   0xb   :  { %16239 = vst [vmem:[#allocation11_spill] sm:$0xff] %v9723_v41  ;;  %16240 = vst [vmem:[#allocation12_spill] sm:$0xff] %v9735_v45  ;;  %v15198_v53 = vand.u32 4294901760, %v9711_v38  ;;  %7854 = vmatprep.subr.bf16.mxu1 %v15206_v3  ;;  %v9767_v56 = vsub.f32 %v172_v32, %v283_v47  ;;  %v286_v57 = vand.u32 4294901760, %v173_v43  ;;  %v289_v61 = vand.u32 4294901760, %v174_v48  ;;  %v178_v20 = vld [vmem:[%s15191_s1 + $0x68] sm:$0xff] }
   0xc   :  { %16241 = vst [vmem:[#allocation13_spill] sm:$0xff] %v9740_v46  ;;  %v9775_v59 = vsub.f32 %v9706_v37, %v15199_v52  ;;  %v15197_v62 = vand.u32 4294901760, %v9748_v49  ;;  %v8239_v0 = vpack.c.bf16 %v9740_v46, %v9735_v45  ;;  %v15196_v4 = vand.u32 4294901760, %v9761_v54  ;;  %v9813_v27 = vld [vmem:[%s15191_s1 + $0x160] sm:$0xff]  ;;  %v9818_v30 = vld [vmem:[%s15191_s1 + $0x168] sm:$0xff]  ;;  %v9852_v34 = vld [vmem:[%s15191_s1 + $0x170] sm:$0xff] }
   0xd   :  { %v9780_v60 = vsub.f32 %v9711_v38, %v15198_v53  ;;  %8237 = vmatpush1.bf16.msra.mxu0 %v8236_v50  ;;  %v9790_v1 = vsub.f32 %v173_v43, %v286_v57  ;;  %v292_v5 = vand.u32 4294901760, %v175_v55  ;;  %v9803_v11 = vpack.c.bf16 %v283_v47, %v280_v36  ;;  %v179_v43 = vld [vmem:[%s15191_s1 + $0x70] sm:$0xff]  ;;  %v180_v47 = vld [vmem:[%s15191_s1 + $0x78] sm:$0xff]  ;;  %v181_v28 = vld [vmem:[%s15191_s1 + $0x80] sm:$0xff] }
   0xe   :  { %16242 = vst [vmem:[#allocation14_spill] sm:$0xff] %v9775_v59  ;;  %7856 = vmatpush1.bf16.msra.mxu1 %v9723_v41  ;;  %8238 = vmatprep.subr.bf16.mxu0 %v15206_v3  ;;  %v9805_v12 = vsub.f32 %v174_v48, %v289_v61  ;;  %v295_v15 = vand.u32 4294901760, %v176_v58  ;;  %v9824_v31 = vsub.f32 %v9748_v49, %v15197_v62  ;;  %v15208_v36 = vand.u32 4294901760, %v9786_v63  ;;  %v182_v10 = vld [vmem:[%s15191_s1 + $0x88] sm:$0xff]  ;;  %v9889_v35 = vld [vmem:[%s15191_s1 + $0x180] sm:$0xff]  ;;  %v9918_v16 = vld [vmem:[%s15191_s1 + $0x98] sm:$0xff] }
   0xf   :  { %16243 = vst [vmem:[#allocation15_spill] sm:$0xff] %v9780_v60  ;;  %16244 = vst [vmem:[#allocation16_spill] sm:$0xff] %v9790_v1  ;;  %7857 = vmatprep.subr.bf16.mxu1 %v15206_v3  ;;  %v9829_v32 = vsub.f32 %v9761_v54, %v15196_v4  ;;  %v9831_v33 = vsub.f32 %v175_v55, %v292_v5  ;;  %v8242_v48 = vpack.c.bf16 %v9780_v60, %v9775_v59  ;;  %v9946_v59 = vld [vmem:[%s15191_s1 + $0x190] sm:$0xff]  ;;  %v186_v39 = vld [vmem:[%s15191_s1 + $0xa8] sm:$0xff] }
  0x10   :  { %16245 = vst [vmem:[#allocation17_spill] sm:$0xff] %v9803_v11  ;;  %16246 = vst [vmem:[#allocation18_spill] sm:$0xff] %v9805_v12  ;;  %v9842_v50 = vsub.f32 %v176_v58, %v295_v15  ;;  %v15209_v4 = vand.u32 4294901760, %v9796_v8  ;;  %v298_v62 = vand.u32 4294901760, %v177_v9  ;;  %v9845_v55 = vpack.c.bf16 %v289_v61, %v286_v57  ;;  %v9970_v23 = vld [vmem:[%s15191_s1 + $0x1a0] sm:$0xff]  ;;  %v10186_v12 = vld [vmem:[%s15191_s1 + $0x1f8] sm:$0xff] }
  0x11   :  { %16247 = vst [vmem:[#allocation19_spill] sm:$0xff] %v9824_v31  ;;  %16248 = vst [vmem:[#allocation20_spill] sm:$0xff] %v9829_v32  ;;  %8240 = vmatpush1.bf16.msra.mxu0 %v8239_v0  ;;  %v301_v53 = vand.u32 4294901760, %v178_v20  ;;  %v15220_v52 = vand.u32 4294901760, %v9813_v27  ;;  %v9856_v58 = vpack.c.bf16 %v295_v15, %v292_v5  ;;  %v304_v57 = vand.u32 4294901760, %v179_v43  ;;  %v9863_v0 = vld [vmem:[%s15191_s1 + $0x178] sm:$0xff] }
  0x12   :  { %16249 = vst [vmem:[#allocation21_spill] sm:$0xff] %v9831_v33  ;;  %16250 = vst [vmem:[#allocation22_spill] sm:$0xff] %v9842_v50  ;;  %7859 = vmatpush1.bf16.msra.mxu1 %v9803_v11  ;;  %8241 = vmatprep.subr.bf16.mxu0 %v15206_v3  ;;  %v9858_v29 = vsub.f32 %v177_v9, %v298_v62  ;;  %v307_v61 = vand.u32 4294901760, %v180_v47  ;;  %v8245_v5 = vpack.c.bf16 %v9829_v32, %v9824_v31 }
  0x13   :  { %16251 = vst [vmem:[#allocation23_spill] sm:$0xff] %v9845_v55  ;;  %16252 = vst [vmem:[#allocation24_spill] sm:$0xff] %v9856_v58  ;;  %7860 = vmatprep.subr.bf16.mxu1 %v15206_v3  ;;  %v9877_v9 = vsub.f32 %v9786_v63, %v15208_v36  ;;  %v9882_v15 = vsub.f32 %v9796_v8, %v15209_v4  ;;  %v9884_v7 = vsub.f32 %v178_v20, %v301_v53  ;;  %v9894_v3 = vld [vmem:[%s15191_s1 + $0x188] sm:$0xff]  ;;  %v9899_v36 = vld [vmem:[%s15191_s1 + $0x90] sm:$0xff] }
  0x14   :  { %16253 = vst [vmem:[#allocation25_spill] sm:$0xff] %v9858_v29  ;;  %16254 = vst [vmem:[#allocation26_spill] sm:$0xff] %v9863_v0  ;;  %v9904_v20 = vsub.f32 %v9813_v27, %v15220_v52  ;;  %v16261_v4 = vand.u32 4294901760, %v9818_v30  ;;  %v9911_v41 = vsub.f32 %v179_v43, %v304_v57  ;;  %v9913_v24 = vsub.f32 %v180_v47, %v307_v61 }
  0x15   :  { %16255 = vst [vmem:[#allocation27_spill] sm:$0xff] %v9877_v9  ;;  %16256 = vst [vmem:[#allocation28_spill] sm:$0xff] %v9882_v15  ;;  %8243 = vmatpush1.bf16.msra.mxu0 %v8242_v48  ;;  %v9920_v32 = vpack.c.bf16 %v301_v53, %v298_v62  ;;  %v15231_v52 = vand.u32 4294901760, %v9852_v34  ;;  %v15232_v31 = vand.u32 4294901760, %v9863_v0  ;;  %v310_v60 = vand.u32 4294901760, %v181_v28 }
  0x16   :  { %16257 = vst [vmem:[#allocation29_spill] sm:$0xff] %v9884_v7  ;;  %16258 = vst [vmem:[#allocation30_spill] sm:$0xff] %v9889_v35  ;;  %v9909_v11 = vsub.f32 %v9818_v30, %v16261_v4  ;;  %7862 = vmatpush1.bf16.msra.mxu1 %v9845_v55  ;;  %v16266_v4 = vmov 0.0|0.0   ;;  %v313_v43 = vand.u32 4294901760, %v182_v10  ;;  %v316_v46 = vand.u32 4294901760, %v9899_v36  ;;  %v9951_v55 = vld [vmem:[%s15191_s1 + $0x198] sm:$0xff] }
  0x17   :  { %16259 = vst [vmem:[#allocation31_spill] sm:$0xff] %v9894_v3  ;;  %16260 = vst [vmem:[#allocation32_spill] sm:$0xff] %v9904_v20  ;;  %8244 = vmatprep.subr.bf16.mxu0 %v16266_v4  ;;  %7863 = vmatprep.subr.bf16.mxu1 %v16266_v4  ;;  %v9933_v53 = vsub.f32 %v9852_v34, %v15231_v52  ;;  %v9938_v62 = vsub.f32 %v9863_v0, %v15232_v31  ;;  %v319_v47 = vand.u32 4294901760, %v9918_v16  ;;  %v185_v52 = vld [vmem:[%s15191_s1 + $0xa0] sm:$0xff] }
  0x18   :  { %16262 = vst [vmem:[#allocation33_spill] sm:$0xff] %v9909_v11  ;;  %16263 = vst [vmem:[#allocation34_spill] sm:$0xff] %v9911_v41  ;;  %v9940_v48 = vsub.f32 %v181_v28, %v310_v60  ;;  %v8248_v28 = vpack.c.bf16 %v9882_v15, %v9877_v9  ;;  %v8251_v31 = vpack.c.bf16 %v9909_v11, %v9904_v20  ;;  %v9975_v15 = vld [vmem:[%s15191_s1 + $0x1a8] sm:$0xff]  ;;  %v187_v9 = vld [vmem:[%s15191_s1 + $0xb0] sm:$0xff]  ;;  %v325_v19 = vand.u32 4294901760, %v186_v39 }
  0x19   :  { %16264 = vst [vmem:[#allocation35_spill] sm:$0xff] %v9913_v24  ;;  %16265 = vst [vmem:[#allocation36_spill] sm:$0xff] %v9920_v32  ;;  %v9960_v45 = vpack.c.bf16 %v307_v61, %v304_v57  ;;  %v9962_v40 = vsub.f32 %v182_v10, %v313_v43  ;;  %8246 = vmatpush1.bf16.msra.mxu0 %v8245_v5  ;;  %v9977_v11 = vpack.c.bf16 %v313_v43, %v310_v60  ;;  %v10013_v43 = vld [vmem:[%s15191_s1 + $0x1b0] sm:$0xff]  ;;  %v189_v24 = vld [vmem:[%s15191_s1 + $0xc0] sm:$0xff] }
  0x1a   :  { %16267 = vst [vmem:[#allocation37_spill] sm:$0xff] %v9933_v53  ;;  %16268 = vst [vmem:[#allocation38_spill] sm:$0xff] %v9938_v62  ;;  %v16277_v10 = vand.u32 4294901760, %v9889_v35  ;;  %v9985_v61 = vsub.f32 %v9899_v36, %v316_v46  ;;  %v9988_v20 = vsub.f32 %v9918_v16, %v319_v47  ;;  %7865 = vmatpush1.bf16.msra.mxu1 %v9856_v58  ;;  %8247 = vmatprep.subr.bf16.mxu0 %v16266_v4  ;;  %v188_v16 = vld [vmem:[%s15191_s1 + $0xb8] sm:$0xff]  ;;  %v29_v0 = vld [vmem:[%s15190_s0 + $0x40] sm:$0xff] }
  0x1b   :  { %16269 = vst [vmem:[#allocation39_spill] sm:$0xff] %v9940_v48  ;;  %16270 = vst [vmem:[#allocation40_spill] sm:$0xff] %v9946_v59  ;;  %v16281_v60 = vand.u32 4294901760, %v9894_v3  ;;  %7866 = vmatprep.subr.bf16.mxu1 %v16266_v4  ;;  %v16284_v36 = vand.u32 4294901760, %v9946_v59  ;;  %v16291_v41 = vand.u32 4294901760, %v9970_v23  ;;  %v334_v50 = vand.u32 4294901760, %v189_v24 }
  0x1c   :  { %16271 = vst [vmem:[#allocation41_spill] sm:$0xff] %v9951_v55  ;;  %16272 = vst [vmem:[#allocation42_spill] sm:$0xff] %v9960_v45  ;;  %v9982_v57 = vsub.f32 %v9889_v35, %v16277_v10  ;;  %v322_v10 = vand.u32 4294901760, %v185_v52 }
  0x1d   :  { %16273 = vst [vmem:[#allocation43_spill] sm:$0xff] %v9962_v40  ;;  %16274 = vst [vmem:[#allocation44_spill] sm:$0xff] %v9970_v23  ;;  %v9998_v5 = vsub.f32 %v9894_v3, %v16281_v60  ;;  %v16286_v40 = vand.u32 4294901760, %v9951_v55  ;;  %v10030_v60 = vld [vmem:[%s15191_s1 + $0x1b8] sm:$0xff]  ;;  %8249 = vmatpush1.bf16.msra.mxu0 %v8248_v28  ;;  %v195_v3 = vld [vmem:[%s15191_s1 + $0xf0] sm:$0xff] }
  0x1e   :  { %16275 = vst [vmem:[#allocation45_spill] sm:$0xff] %v9975_v15  ;;  %16276 = vst [vmem:[#allocation46_spill] sm:$0xff] %v9977_v11  ;;  %v10025_v58 = vsub.f32 %v185_v52, %v322_v10  ;;  %v16293_v52 = vand.u32 4294901760, %v9975_v15  ;;  %7868 = vmatpush1.bf16.msra.mxu1 %v9920_v32  ;;  %8250 = vmatprep.subr.bf16.mxu0 %v16266_v4  ;;  %v10073_v7 = vpack.c.bf16 %v325_v19, %v322_v10  ;;  %v194_v10 = vld [vmem:[%s15191_s1 + $0xe8] sm:$0xff] }
  0x1f   :  { %16278 = vst [vmem:[#allocation47_spill] sm:$0xff] %v9982_v57  ;;  %16279 = vst [vmem:[#allocation48_spill] sm:$0xff] %v9985_v61  ;;  %v10018_v61 = vsub.f32 %v9946_v59, %v16284_v36  ;;  %v10023_v48 = vsub.f32 %v9951_v55, %v16286_v40  ;;  %v10035_v36 = vsub.f32 %v186_v39, %v325_v19  ;;  %v331_v55 = vand.u32 4294901760, %v188_v16  ;;  %v190_v59 = vld [vmem:[%s15191_s1 + $0xc8] sm:$0xff]  ;;  %v10053_v39 = vld [vmem:[%s15191_s1 + $0x1c0] sm:$0xff] }
  0x20   :  { %16280 = vst [vmem:[#allocation49_spill] sm:$0xff] %v9988_v20  ;;  %16282 = vst [vmem:[#allocation50_spill] sm:$0xff] %v9998_v5  ;;  %v328_v20 = vand.u32 4294901760, %v187_v9  ;;  %v10040_v40 = vsub.f32 %v9970_v23, %v16291_v41  ;;  %v10058_v41 = vld [vmem:[%s15191_s1 + $0x1c8] sm:$0xff]  ;;  %v191_v23 = vld [vmem:[%s15191_s1 + $0xd0] sm:$0xff]  ;;  %7869 = vmatprep.subr.bf16.mxu1 %v16266_v4  ;;  %v337_v28 = vand.u32 4294901760, %v190_v59 }
  0x21   :  { %16283 = vst [vmem:[#allocation51_spill] sm:$0xff] %v10013_v43  ;;  %16285 = vst [vmem:[#allocation52_spill] sm:$0xff] %v10018_v61  ;;  %v10075_v32 = vsub.f32 %v188_v16, %v331_v55  ;;  %8252 = vmatpush1.bf16.msra.mxu0 %v8251_v31  ;;  %v16305_v31 = vand.u32 4294901760, %v10013_v43  ;;  %v10120_v19 = vld [vmem:[%s15191_s1 + $0x1e0] sm:$0xff]  ;;  %v16312_v16 = vand.u32 4294901760, %v10053_v39 }
  0x22   :  { %16287 = vst [vmem:[#allocation53_spill] sm:$0xff] %v10023_v48  ;;  %16288 = vst [vmem:[#allocation54_spill] sm:$0xff] %v10025_v58  ;;  %v10045_v58 = vsub.f32 %v9975_v15, %v16293_v52  ;;  %v10064_v52 = vpack.c.bf16 %v319_v47, %v316_v46  ;;  %v192_v46 = vld [vmem:[%s15191_s1 + $0xd8] sm:$0xff]  ;;  %v10092_v29 = vpack.c.bf16 %v331_v55, %v328_v20  ;;  %v193_v47 = vld [vmem:[%s15191_s1 + $0xe0] sm:$0xff]  ;;  %7871 = vmatpush1.bf16.msra.mxu1 %v9960_v45 }
  0x23   :  { %16289 = vst [vmem:[#allocation55_spill] sm:$0xff] %v10030_v60  ;;  %16290 = vst [vmem:[#allocation56_spill] sm:$0xff] %v10035_v36  ;;  %v10066_v36 = vsub.f32 %v187_v9, %v328_v20  ;;  %v10084_v9 = vld [vmem:[%s15191_s1 + $0x1d0] sm:$0xff]  ;;  %v10094_v15 = vsub.f32 %v189_v24, %v334_v50  ;;  %8253 = vmatprep.subr.bf16.mxu0 %v16266_v4  ;;  %v10109_v55 = vsub.f32 %v10013_v43, %v16305_v31  ;;  %v10125_v45 = vld [vmem:[%s15191_s1 + $0x1e8] sm:$0xff] }
  0x24   :  { %16292 = vst [vmem:[#allocation57_spill] sm:$0xff] %v10040_v40  ;;  %16294 = vst [vmem:[#allocation58_spill] sm:$0xff] %v10045_v58  ;;  %v10111_v24 = vsub.f32 %v190_v59, %v337_v28  ;;  %v343_v20 = vand.u32 4294901760, %v192_v46  ;;  %7872 = vmatprep.subr.bf16.mxu1 %v16266_v4  ;;  %v16310_v59 = vand.u32 4294901760, %v10030_v60 }
  0x25   :  { %16295 = vst [vmem:[#allocation59_spill] sm:$0xff] %v10053_v39  ;;  %16296 = vst [vmem:[#allocation60_spill] sm:$0xff] %v10058_v41 }
  0x26   :  { %16297 = vst [vmem:[#allocation61_spill] sm:$0xff] %v10064_v52  ;;  %16298 = vst [vmem:[#allocation62_spill] sm:$0xff] %v10066_v36  ;;  %v10099_v36 = vld [vmem:[%s15191_s1 + $0x1d8] sm:$0xff]  ;;  %v10131_v31 = vsub.f32 %v10030_v60, %v16310_v59  ;;  %v10151_v60 = vpack.c.bf16 %v337_v28, %v334_v50  ;;  %v10153_v35 = vsub.f32 %v192_v46, %v343_v20  ;;  %7874 = vmatpush1.bf16.msra.mxu1 %v9977_v11  ;;  %v10181_v50 = vld [vmem:[%s15191_s1 + $0x1f0] sm:$0xff] }
  0x27   :  { %16299 = vst [vmem:[#allocation63_spill] sm:$0xff] %v10073_v7  ;;  %16300 = vst [vmem:[#allocation64_spill] sm:$0xff] %v10075_v32  ;;  %v340_v32 = vand.u32 4294901760, %v191_v23  ;;  %v196_v59 = vld [vmem:[%s15191_s1 + $0xf8] sm:$0xff]  ;;  %7875 = vmatprep.subr.bf16.mxu1 %v16266_v4 }
  0x28   :  { %16301 = vst [vmem:[#allocation65_spill] sm:$0xff] %v10084_v9  ;;  %16302 = vst [vmem:[#allocation66_spill] sm:$0xff] %v10092_v29 }
  0x29   :  { %16303 = vst [vmem:[#allocation67_spill] sm:$0xff] %v10094_v15  ;;  %16304 = vst [vmem:[#allocation68_spill] sm:$0xff] %v10099_v36  ;;  %v16314_v15 = vand.u32 4294901760, %v10058_v41  ;;  %v10143_v33 = vsub.f32 %v191_v23, %v340_v32  ;;  %v16320_v23 = vand.u32 4294901760, %v10084_v9  ;;  %v10193_v11 = vpack.c.bf16 %v343_v20, %v340_v32 }
  0x2a   :  { %16306 = vst [vmem:[#allocation69_spill] sm:$0xff] %v10109_v55  ;;  %16307 = vst [vmem:[#allocation70_spill] sm:$0xff] %v10111_v24  ;;  %v10136_v24 = vsub.f32 %v10053_v39, %v16312_v16  ;;  %v15287_v16 = vand.u32 4294901760, %v10099_v36  ;;  %v346_v39 = vand.u32 4294901760, %v193_v47  ;;  %7877 = vmatpush1.bf16.msra.mxu1 %v10064_v52 }
  0x2b   :  { %16308 = vst [vmem:[#allocation71_spill] sm:$0xff] %v10120_v19  ;;  %16309 = vst [vmem:[#allocation72_spill] sm:$0xff] %v10125_v45  ;;  %v10141_v43 = vsub.f32 %v10058_v41, %v16314_v15  ;;  %v16319_v15 = vpack.c.bf16 %v9938_v62, %v9933_v53  ;;  %v349_v41 = vand.u32 4294901760, %v194_v10  ;;  %v355_v62 = vand.u32 4294901760, %v196_v59  ;;  %7878 = vmatprep.subr.bf16.mxu1 %v16266_v4 }
  0x2c   :  { %16311 = vst [vmem:[#allocation73_spill] sm:$0xff] %v10131_v31  ;;  %16313 = vst [vmem:[#allocation74_spill] sm:$0xff] %v10136_v24  ;;  %v10171_v28 = vsub.f32 %v10099_v36, %v15287_v16  ;;  %v10173_v46 = vsub.f32 %v193_v47, %v346_v39  ;;  %v28_v36 = vld [vmem:[%s15190_s0 + $0x38] sm:$0xff]  ;;  %v16329_v16 = vand.u32 4294901760, %v10120_v19 }
  0x2d   :  { %16315 = vst [vmem:[#allocation75_spill] sm:$0xff] %v10141_v43  ;;  %16316 = vst [vmem:[#allocation76_spill] sm:$0xff] %v10143_v33  ;;  %8255 = vmatpush1.bf16.msra.mxu0 %v16319_v15  ;;  %v10162_v33 = vsub.f32 %v10084_v9, %v16320_v23  ;;  %v352_v15 = vand.u32 4294901760, %v195_v3  ;;  %v22_v23 = vld [vmem:[%s15190_s0 + $0x8] sm:$0xff]  ;;  %v10195_v53 = vsub.f32 %v194_v10, %v349_v41 }
  0x2e   :  { %16317 = vst [vmem:[#allocation77_spill] sm:$0xff] %v10151_v60  ;;  %16318 = vst [vmem:[#allocation78_spill] sm:$0xff] %v10153_v35  ;;  %8256 = vmatprep.subr.bf16.mxu0 %v16266_v4  ;;  %v24_v35 = vld [vmem:[%s15190_s0 + $0x18] sm:$0xff]  ;;  %v10206_v47 = vpack.c.bf16 %v349_v41, %v346_v39  ;;  %v10211_v32 = vsub.f32 %v10120_v19, %v16329_v16  ;;  %v10215_v20 = vsub.f32 %v196_v59, %v355_v62  ;;  %v30_v59 = vld [vmem:[%s15190_s0 + $0x48] sm:$0xff] }
  0x2f   :  { %16321 = vst [vmem:[#allocation79_spill] sm:$0xff] %v10162_v33  ;;  %16322 = vst [vmem:[#allocation80_spill] sm:$0xff] %v10171_v28  ;;  %v10213_v10 = vsub.f32 %v195_v3, %v352_v15  ;;  %v16333_v9 = vpack.c.bf16 %v9998_v5, %v9982_v57  ;;  %v16334_v39 = vand.u32 4294901760, %v10125_v45  ;;  %v10228_v1 = vand.u32 4294901760, %v22_v23  ;;  %7880 = vmatpush1.bf16.msra.mxu1 %v10073_v7  ;;  %v36_v7 = vld [vmem:[%s15190_s0 + $0x78] sm:$0xff] }
  0x30   :  { %16323 = vst [vmem:[#allocation81_spill] sm:$0xff] %v10173_v46  ;;  %16324 = vst [vmem:[#allocation82_spill] sm:$0xff] %v10181_v50  ;;  %v21_v46 = vld [vmem:[%s15190_s0] sm:$0xff]  ;;  %v10240_v57 = vand.u32 4294901760, %v28_v36  ;;  %v16341_v16 = vand.u32 4294901760, %v10181_v50  ;;  %7881 = vmatprep.subr.bf16.mxu1 %v16266_v4 }
  0x31   :  { %16325 = vst [vmem:[#allocation83_spill] sm:$0xff] %v10186_v12  ;;  %16326 = vst [vmem:[#allocation84_spill] sm:$0xff] %v10193_v11  ;;  %8258 = vmatpush1.bf16.msra.mxu0 %v16333_v9  ;;  %v10226_v41 = vsub.f32 %v10125_v45, %v16334_v39  ;;  %v10236_v5 = vand.u32 4294901760, %v21_v46  ;;  %v10238_v9 = vand.u32 4294901760, %v24_v35  ;;  %v27_v39 = vld [vmem:[%s15190_s0 + $0x30] sm:$0xff]  ;;  %v10250_v3 = vsub.f32 %v22_v23, %v10228_v1 }
  0x32   :  { %16327 = vst [vmem:[#allocation85_spill] sm:$0xff] %v10195_v53  ;;  %16328 = vst [vmem:[#allocation86_spill] sm:$0xff] %v10206_v47  ;;  %v23_v53 = vld [vmem:[%s15190_s0 + $0x10] sm:$0xff]  ;;  %8259 = vmatprep.subr.bf16.mxu0 %v16266_v4  ;;  %v10255_v52 = vsub.f32 %v10181_v50, %v16341_v16  ;;  %v16345_v45 = vand.u32 4294901760, %v9631_v6  ;;  %v16347_v23 = vand.u32 4294901760, %v10186_v12  ;;  %v34_v6 = vld [vmem:[%s15190_s0 + $0x68] sm:$0xff] }
  0x33   :  { %16330 = vst [vmem:[#allocation87_spill] sm:$0xff] %v10211_v32  ;;  %16331 = vst [vmem:[#allocation88_spill] sm:$0xff] %v10213_v10  ;;  %v16344_v10 = vand.u32 4294901760, %v9624_v2  ;;  %v10274_v16 = vsub.f32 %v21_v46, %v10236_v5  ;;  %v10277_v50 = vsub.f32 %v24_v35, %v10238_v9  ;;  %v10280_v2 = vsub.f32 %v28_v36, %v10240_v57 }
  0x34   :  { %16332 = vst [vmem:[#allocation89_spill] sm:$0xff] %v10215_v20  ;;  %16335 = vst [vmem:[#allocation90_spill] sm:$0xff] %v10226_v41  ;;  %v10257_v20 = vand.u32 4294901760, %v23_v53  ;;  %v10291_v46 = vand.u32 4294901760, %v27_v39  ;;  %7883 = vmatpush1.bf16.msra.mxu1 %v10092_v29 }
  0x35   :  { %16336 = vst [vmem:[#allocation91_spill] sm:$0xff] %v10228_v1  ;;  %16337 = vst [vmem:[#allocation92_spill] sm:$0xff] %v10236_v5  ;;  %v10263_v19 = vpack.c.bf16 %v16345_v45, %v16344_v10  ;;  %v10271_v1 = vsub.f32 %v10186_v12, %v16347_v23  ;;  %v16352_v45 = vpack.c.bf16 %v10023_v48, %v10018_v61  ;;  %v15322_v23 = vand.u32 4294901760, %v10250_v3 }
  0x36   :  { %16338 = vst [vmem:[#allocation93_spill] sm:$0xff] %v10238_v9  ;;  %16339 = vst [vmem:[#allocation94_spill] sm:$0xff] %v10240_v57  ;;  %v10288_v10 = vpack.c.bf16 %v355_v62, %v352_v15  ;;  %v10293_v5 = vand.u32 4294901760, %v30_v59  ;;  %v33_v62 = vld [vmem:[%s15190_s0 + $0x60] sm:$0xff]  ;;  %3391 = vmatprep.mubr.f32.mxu0 %v10277_v50  ;;  %v10312_v35 = vsub.f32 %v23_v53, %v10257_v20  ;;  %v10317_v9 = vand.u32 4294901760, %v34_v6 }
  0x37   :  { %16340 = vst [vmem:[#allocation95_spill] sm:$0xff] %v10250_v3  ;;  %16342 = vst [vmem:[#allocation96_spill] sm:$0xff] %v10255_v52  ;;  %8261 = vmatpush1.bf16.msra.mxu0 %v16352_v45  ;;  %v10301_v45 = vand.u32 4294901760, %v29_v0  ;;  %v360_v15 = vsub.f32 %v10250_v3, %v15322_v23  ;;  %v10315_v36 = vsub.f32 %v27_v39, %v10291_v46  ;;  %v16360_v61 = vand.u32 4294901760, %v10274_v16 }
  0x38   :  { %16343 = vst [vmem:[#allocation97_spill] sm:$0xff] %v10257_v20  ;;  %16346 = vst [vmem:[#allocation98_spill] sm:$0xff] %v10263_v19  ;;  %8262 = vmatprep.subr.bf16.mxu0 %v16266_v4  ;;  %v16361_v53 = vand.u32 4294901760, %v10280_v2  ;;  %v10335_v39 = vsub.f32 %v30_v59, %v10293_v5  ;;  %v16363_v3 = vpack.c.bf16 %v10045_v58, %v10040_v40  ;;  %v40_v59 = vld [vmem:[%s15190_s0 + $0x98] sm:$0xff]  ;;  %7884 = vmatprep.subr.bf16.mxu1 %v16266_v4 }
  0x39   :  { %16348 = vst [vmem:[#allocation99_spill] sm:$0xff] %v10271_v1  ;;  %16349 = vst [vmem:[#allocation100_spill] sm:$0xff] %v10274_v16  ;;  %v10327_v23 = vsub.f32 %v10274_v16, %v16360_v61  ;;  %v10342_v57 = vsub.f32 %v34_v6, %v10317_v9  ;;  %v10344_v61 = vand.u32 4294901760, %v33_v62  ;;  %v10360_v48 = vsub.f32 %v29_v0, %v10301_v45 }
  0x3a   :  { %16350 = vst [vmem:[#allocation101_spill] sm:$0xff] %v10277_v50  ;;  %16351 = vst [vmem:[#allocation102_spill] sm:$0xff] %v10280_v2  ;;  %v10332_v20 = vsub.f32 %v10280_v2, %v16361_v53  ;;  %v35_v53 = vld [vmem:[%s15190_s0 + $0x70] sm:$0xff]  ;;  %v42_v2 = vld [vmem:[%s15190_s0 + $0xa8] sm:$0xff]  ;;  %v16368_v29 = vand.u32 4294901760, %v10315_v36  ;;  %v16370_v0 = vand.u32 4294901760, %v9644_v13  ;;  %7886 = vmatpush1.bf16.msra.mxu1 %v10151_v60 }
  0x3b   :  { %16353 = vst [vmem:[#allocation103_spill] sm:$0xff] %v10288_v10  ;;  %16354 = vst [vmem:[#allocation104_spill] sm:$0xff] %v10291_v46  ;;  %8264 = vmatpush1.bf16.msra.mxu0 %v16363_v3  ;;  %v361_v46 = vand.u32 4294901760, %v360_v15  ;;  %v39_v3 = vld [vmem:[%s15190_s0 + $0x90] sm:$0xff]  ;;  %v10375_v15 = vsub.f32 %v33_v62, %v10344_v61  ;;  %v46_v13 = vld [vmem:[%s15190_s0 + $0xc8] sm:$0xff]  ;;  %v16378_v62 = vand.u32 4294901760, %v10342_v57  ;;  %7887 = vmatprep.subr.bf16.mxu1 %v16266_v4 }
  0x3c   :  { %16355 = vst [vmem:[#allocation105_spill] sm:$0xff] %v10293_v5  ;;  %16356 = vst [vmem:[#allocation106_spill] sm:$0xff] %v10301_v45  ;;  %8265 = vmatprep.subr.bf16.mxu0 %v16266_v4  ;;  %v10362_v5 = vand.u32 4294901760, %v36_v7  ;;  %v10371_v16 = vsub.f32 %v10315_v36, %v16368_v29  ;;  %v16371_v45 = vand.u32 4294901760, %v9649_v14  ;;  %v10389_v29 = vand.u32 4294901760, %v35_v53 }
  0x3d   :  { %16357 = vst [vmem:[#allocation107_spill] sm:$0xff] %v10312_v35  ;;  %16358 = vst [vmem:[#allocation108_spill] sm:$0xff] %v10315_v36  ;;  %362 = vmatprep.mubr.f32.mxu1 %v361_v46  ;;  %v41_v46 = vld [vmem:[%s15190_s0 + $0xa0] sm:$0xff]  ;;  %v10391_v36 = vand.u32 4294901760, %v40_v59  ;;  %v10393_v6 = vand.u32 4294901760, %v39_v3  ;;  %v16377_v14 = vpack.c.bf16 %v10131_v31, %v10109_v55  ;;  %v52_v55 = vld [vmem:[%s15190_s0 + $0xf8] sm:$0xff] }
  0x3e   :  { %16359 = vst [vmem:[#allocation109_spill] sm:$0xff] %v10317_v9  ;;  %16362 = vst [vmem:[#allocation110_spill] sm:$0xff] %v10335_v39  ;;  %v10381_v58 = vpack.c.bf16 %v16371_v45, %v16370_v0  ;;  %v10387_v40 = vsub.f32 %v36_v7, %v10362_v5  ;;  %v10405_v7 = vsub.f32 %v10342_v57, %v16378_v62  ;;  %v10421_v31 = vand.u32 4294901760, %v41_v46  ;;  %v45_v62 = vld [vmem:[%s15190_s0 + $0xc0] sm:$0xff]  ;;  %v48_v0 = vld [vmem:[%s15190_s0 + $0xd8] sm:$0xff] }
  0x3f   :  { %16364 = vst [vmem:[#allocation111_spill] sm:$0xff] %v10342_v57  ;;  %16365 = vst [vmem:[#allocation112_spill] sm:$0xff] %v10344_v61  ;;  %8267 = vmatpush1.bf16.msra.mxu0 %v16377_v14  ;;  %v10413_v61 = vsub.f32 %v35_v53, %v10389_v29  ;;  %v10416_v14 = vsub.f32 %v40_v59, %v10391_v36  ;;  %v10419_v45 = vsub.f32 %v39_v3, %v10393_v6  ;;  %v47_v57 = vld [vmem:[%s15190_s0 + $0xd0] sm:$0xff] }
  0x40   :  { %16366 = vst [vmem:[#allocation113_spill] sm:$0xff] %v10360_v48  ;;  %16367 = vst [vmem:[#allocation114_spill] sm:$0xff] %v10362_v5  ;;  %v10408_v5 = vand.u32 4294901760, %v42_v2  ;;  %8268 = vmatprep.subr.bf16.mxu0 %v16266_v4  ;;  %v16384_v59 = vand.u32 4294901760, %v10375_v15 }
  0x41   :  { %16369 = vst [vmem:[#allocation115_spill] sm:$0xff] %v10375_v15  ;;  %16372 = vst [vmem:[#allocation116_spill] sm:$0xff] %v10381_v58 }
  0x42   :  { %16373 = vst [vmem:[#allocation117_spill] sm:$0xff] %v10387_v40  ;;  %16374 = vst [vmem:[#allocation118_spill] sm:$0xff] %v10389_v29  ;;  %v10434_v60 = vsub.f32 %v10375_v15, %v16384_v59  ;;  %v10437_v3 = vsub.f32 %v42_v2, %v10408_v5  ;;  %v10439_v29 = vand.u32 4294901760, %v46_v13  ;;  %v10450_v59 = vsub.f32 %v41_v46, %v10421_v31 }
  0x43   :  { %16375 = vst [vmem:[#allocation119_spill] sm:$0xff] %v10391_v36  ;;  %16376 = vst [vmem:[#allocation120_spill] sm:$0xff] %v10393_v6  ;;  %v16388_v2 = vand.u32 4294901760, %v9671_v21  ;;  %v51_v36 = vld [vmem:[%s15190_s0 + $0xf0] sm:$0xff] }
  0x44   :  { %16379 = vst [vmem:[#allocation121_spill] sm:$0xff] %v10408_v5  ;;  %16380 = vst [vmem:[#allocation122_spill] sm:$0xff] %v10413_v61  ;;  %v16389_v5 = vand.u32 4294901760, %v9676_v22 }
  0x45   :  { %16381 = vst [vmem:[#allocation123_spill] sm:$0xff] %v10416_v14  ;;  %16382 = vst [vmem:[#allocation124_spill] sm:$0xff] %v10419_v45 }
  0x46   :  { %16383 = vst [vmem:[#allocation125_spill] sm:$0xff] %v10421_v31  ;;  %16385 = vst [vmem:[#allocation126_spill] sm:$0xff] %v10437_v3  ;;  %v10456_v15 = vpack.c.bf16 %v16389_v5, %v16388_v2 }
  0x47   :  { %16386 = vst [vmem:[#allocation127_spill] sm:$0xff] %v10439_v29  ;;  %16387 = vst [vmem:[#allocation128_spill] sm:$0xff] %v10450_v59 }
  0x48   :  { %16390 = vst [vmem:[#allocation129_spill] sm:$0xff] %v10456_v15 }
  0x49   :  { %10 = vsyncpa [#allocation3], 0  ;;  %v16391_v9 = vpack.c.bf16 %v10141_v43, %v10136_v24  ;;  %v10466_v46 = vsub.f32 %v46_v13, %v10439_v29  ;;  %v10468_v53 = vand.u32 4294901760, %v45_v62  ;;  %v10470_v21 = vand.u32 4294901760, %v48_v0  ;;  %7889 = vmatpush1.bf16.msra.mxu1 %v10193_v11  ;;  %v54_v11 = vld [vmem:[%s15190_s0 + $0x108] sm:$0xff]  ;;  %s9582_s25 = smov [#allocation2]  }
  0x4a   :  { %v16395_v22 = vand.u32 4294901760, %v10416_v14  ;;  %v10484_v13 = vand.u32 4294901760, %v47_v57  ;;  %v10486_v6 = vand.u32 4294901760, %v52_v55  ;;  %7890 = vmatprep.subr.bf16.mxu1 %v16266_v4  ;;  %v58_v43 = vld [vmem:[%s15190_s0 + $0x128] sm:$0xff]  ;;  %v10527_v31 = vand.u32 4294901760, %v54_v11  ;;  %s7769_s26 = sshll.u32 %s9582_s25, 4  ;;  %s7770_s26 = int_to_ptr.vmem [resolvable:$true] %s7769_s26 }
  0x4b   :  { %8270 = vmatpush1.bf16.msra.mxu0 %v16391_v9  ;;  %16392 = vst [vmem:[#allocation130_spill] sm:$0xff] %v10466_v46  ;;  %16393 = vst [vmem:[#allocation131_spill] sm:$0xff] %v10468_v53  ;;  %v16396_v9 = vand.u32 4294901760, %v10419_v45  ;;  %vm7256_vm1 = vcmask 1040384   ;;  %vm7060_vm3 = vcmask 72704   ;;  %vm7062_vm4 = vcmask 68608   ;;  %p9561_p1 = scmp.lt.s32.totalorder %s7770_s26, %s7770_s26 }
  0x4c   :  { %16394 = vst [vmem:[#allocation132_spill] sm:$0xff] %v10470_v21  ;;  %8271 = vmatprep.subr.bf16.mxu0 %v16266_v4  ;;  %v10477_v5 = vsub.f32 %v10416_v14, %v16395_v22  ;;  %16397 = vst [vmem:[#allocation133_spill] sm:$0xff] %v10484_v13  ;;  %v10494_v22 = vsub.f32 %v45_v62, %v10468_v53  ;;  %v10497_v14 = vsub.f32 %v48_v0, %v10470_v21  ;;  %vm7231_vm5 = vcmask 1041409  }
  0x4d   :  { %v10482_v2 = vsub.f32 %v10419_v45, %v16396_v9  ;;  %16398 = vst [vmem:[#allocation134_spill] sm:$0xff] %v10486_v6  ;;  %v10499_v9 = vand.u32 4294901760, %v51_v36  ;;  %v53_v45 = vld [vmem:[%s15190_s0 + $0x100] sm:$0xff]  ;;  %v10510_v62 = vsub.f32 %v47_v57, %v10484_v13  ;;  %v10513_v0 = vsub.f32 %v52_v55, %v10486_v6  ;;  %16407 = vst [vmem:[#allocation141_spill] sm:$0xff] %v10527_v31 }
  0x4e   :  { %16399 = vst [vmem:[#allocation135_spill] sm:$0xff] %v10494_v22  ;;  %16400 = vst [vmem:[#allocation136_spill] sm:$0xff] %v10497_v14  ;;  %v16404_v21 = vpack.c.bf16 %v10171_v28, %v10162_v33  ;;  %v16405_v53 = vand.u32 4294901760, %v10466_v46  ;;  %v57_v57 = vld [vmem:[%s15190_s0 + $0x120] sm:$0xff]  ;;  %7892 = vmatpush1.bf16.msra.mxu1 %v10206_v47  ;;  %v10543_v13 = vand.u32 4294901760, %v58_v43  ;;  %v59_v47 = vld [vmem:[%s15190_s0 + $0x130] sm:$0xff]  ;;  %v10560_v55 = vsub.f32 %v54_v11, %v10527_v31 }
  0x4f   :  { %16401 = vst [vmem:[#allocation137_spill] sm:$0xff] %v10499_v9  ;;  %16402 = vst [vmem:[#allocation138_spill] sm:$0xff] %v10510_v62  ;;  %v10525_v24 = vsub.f32 %v51_v36, %v10499_v9  ;;  %v10541_v36 = vand.u32 4294901760, %v53_v45  ;;  %7893 = vmatprep.subr.bf16.mxu1 %v16266_v4  ;;  %v64_v28 = vld [vmem:[%s15190_s0 + $0x158] sm:$0xff]  ;;  %v16415_v33 = vand.u32 4294901760, %v10513_v0  ;;  %v16419_v11 = vpack.c.bf16 %v10226_v41, %v10211_v32  ;;  %v70_v41 = vld [vmem:[%s15190_s0 + $0x188] sm:$0xff] }
  0x50   :  { %16403 = vst [vmem:[#allocation139_spill] sm:$0xff] %v10513_v0  ;;  %8273 = vmatpush1.bf16.msra.mxu0 %v16404_v21  ;;  %v10521_v29 = vsub.f32 %v10466_v46, %v16405_v53  ;;  %v16408_v53 = vand.u32 4294901760, %v9706_v37  ;;  %v16409_v21 = vand.u32 4294901760, %v9711_v38  ;;  %16412 = vst [vmem:[#allocation144_spill] sm:$0xff] %v10543_v13  ;;  %v60_v46 = vld [vmem:[%s15190_s0 + $0x138] sm:$0xff]  ;;  %v16413_v38 = vand.u32 4294901760, %v10494_v22 }
  0x51   :  { %16406 = vst [vmem:[#allocation140_spill] sm:$0xff] %v10525_v24  ;;  %8274 = vmatprep.subr.bf16.mxu0 %v16266_v4  ;;  %16411 = vst [vmem:[#allocation143_spill] sm:$0xff] %v10541_v36  ;;  %v10568_v9 = vsub.f32 %v10513_v0, %v16415_v33  ;;  %v10571_v37 = vsub.f32 %v53_v45, %v10541_v36  ;;  %v16420_v31 = vand.u32 4294901760, %v10525_v24  ;;  %v10587_v33 = vand.u32 4294901760, %v60_v46  ;;  %v66_v36 = vld [vmem:[%s15190_s0 + $0x168] sm:$0xff]  ;;  %v65_v0 = vld [vmem:[%s15190_s0 + $0x160] sm:$0xff] }
  0x52   :  { %v10539_v50 = vpack.c.bf16 %v16409_v21, %v16408_v53  ;;  %v10556_v53 = vsub.f32 %v10494_v22, %v16413_v38  ;;  %16414 = vst [vmem:[#allocation145_spill] sm:$0xff] %v10560_v55  ;;  %v10574_v38 = vsub.f32 %v58_v43, %v10543_v13  ;;  %v10576_v22 = vand.u32 4294901760, %v57_v57  ;;  %v63_v43 = vld [vmem:[%s15190_s0 + $0x150] sm:$0xff]  ;;  %7895 = vmatpush1.bf16.msra.mxu1 %v10288_v10  ;;  %v69_v10 = vld [vmem:[%s15190_s0 + $0x180] sm:$0xff] }
  0x53   :  { %16416 = vst [vmem:[#allocation146_spill] sm:$0xff] %v10571_v37  ;;  %v10585_v6 = vsub.f32 %v10525_v24, %v16420_v31  ;;  %16421 = vst [vmem:[#allocation149_spill] sm:$0xff] %v10587_v33  ;;  %v10589_v45 = vand.u32 4294901760, %v59_v47  ;;  %v10604_v24 = vand.u32 4294901760, %v64_v28  ;;  %v10617_v31 = vsub.f32 %v60_v46, %v10587_v33  ;;  %7896 = vmatprep.subr.bf16.mxu1 %v16266_v4 }
  0x54   :  { %16410 = vst [vmem:[#allocation142_spill] sm:$0xff] %v10539_v50  ;;  %16417 = vst [vmem:[#allocation147_spill] sm:$0xff] %v10574_v38  ;;  %8276 = vmatpush1.bf16.msra.mxu0 %v16419_v11  ;;  %v10602_v21 = vsub.f32 %v57_v57, %v10576_v22  ;;  %v16427_v32 = vand.u32 4294901760, %v9748_v49  ;;  %v16430_v12 = vand.u32 4294901760, %v10574_v38  ;;  %v16433_v49 = vpack.c.bf16 %v10271_v1, %v10255_v52 }
  0x55   :  { %16418 = vst [vmem:[#allocation148_spill] sm:$0xff] %v10576_v22  ;;  %16422 = vst [vmem:[#allocation150_spill] sm:$0xff] %v10589_v45  ;;  %8277 = vmatprep.subr.bf16.mxu0 %v16266_v4  ;;  %v10620_v57 = vsub.f32 %v59_v47, %v10589_v45  ;;  %v16428_v22 = vand.u32 4294901760, %v9761_v54  ;;  %v10636_v46 = vsub.f32 %v64_v28, %v10604_v24  ;;  %v10638_v47 = vand.u32 4294901760, %v63_v43 }
  0x56   :  { %16423 = vst [vmem:[#allocation151_spill] sm:$0xff] %v10602_v21  ;;  %16424 = vst [vmem:[#allocation152_spill] sm:$0xff] %v10604_v24  ;;  %v10632_v37 = vsub.f32 %v10574_v38, %v16430_v12  ;;  %v16434_v54 = vand.u32 4294901760, %v10327_v23  ;;  %v10649_v12 = vand.u32 4294901760, %v70_v41  ;;  %v10651_v45 = vand.u32 4294901760, %v69_v10  ;;  %v72_v38 = vld [vmem:[%s15190_s0 + $0x198] sm:$0xff] }
  0x57   :  { %16425 = vst [vmem:[#allocation153_spill] sm:$0xff] %v10617_v31  ;;  %16426 = vst [vmem:[#allocation154_spill] sm:$0xff] %v10620_v57  ;;  %v10626_v13 = vpack.c.bf16 %v16428_v22, %v16427_v32  ;;  %v10645_v32 = vand.u32 4294901760, %v66_v36  ;;  %v10647_v22 = vand.u32 4294901760, %v65_v0  ;;  %v16439_v28 = vand.u32 4294901760, %v10332_v20 }
  0x58   :  { %16431 = vst [vmem:[#allocation156_spill] sm:$0xff] %v10636_v46  ;;  %16432 = vst [vmem:[#allocation157_spill] sm:$0xff] %v10638_v47  ;;  %8279 = vmatpush1.bf16.msra.mxu0 %v16433_v49  ;;  %368 = vmatmul.mubr.f32.vlgmr.msra.gmra.mrb[0].mxu1 %v16434_v54  ;;  %v16440_v49 = vand.u32 4294901760, %v10602_v21  ;;  %v15439_v54 = vand.u32 4294901760, %v10636_v46  ;;  %v10664_v33 = vsub.f32 %v63_v43, %v10638_v47  ;;  %vm7233_vm6 = vcmask 1042434  }
  0x59   :  { %16429 = vst [vmem:[#allocation155_spill] sm:$0xff] %v10626_v13  ;;  %16435 = vst [vmem:[#allocation158_spill] sm:$0xff] %v10645_v32  ;;  %8280 = vmatprep.subr.bf16.mxu0 %v16266_v4  ;;  %377 = vmatprep.mubr.f32.mxu1 %v16439_v28  ;;  %v10670_v1 = vsub.f32 %v66_v36, %v10645_v32  ;;  %v10673_v20 = vsub.f32 %v65_v0, %v10647_v22  ;;  %v10696_v32 = vand.u32 4294901760, %v72_v38  ;;  %v76_v0 = vld [vmem:[%s15190_s0 + $0x1b8] sm:$0xff]  ;;  %vm7235_vm7 = vcmask 1043459  }
  0x5a   :  { %16436 = vst [vmem:[#allocation159_spill] sm:$0xff] %v10647_v22  ;;  %16437 = vst [vmem:[#allocation160_spill] sm:$0xff] %v10649_v12  ;;  %v10660_v23 = vsub.f32 %v10602_v21, %v16440_v49  ;;  %v10676_v28 = vsub.f32 %v70_v41, %v10649_v12  ;;  %v10679_v49 = vsub.f32 %v69_v10, %v10651_v45  ;;  %v15446_v36 = vand.u32 4294901760, %v10664_v33 }
  0x5b   :  { %16438 = vst [vmem:[#allocation161_spill] sm:$0xff] %v10651_v45  ;;  %16441 = vst [vmem:[#allocation162_spill] sm:$0xff] %v10664_v33  ;;  %3394 = vmatmul.mubr.f32.vlgmr.msra.gmra.mrb[0].mxu0 %v10312_v35  ;;  %v10686_v11 = vsub.f32 %v10636_v46, %v15439_v54  ;;  %v16446_v41 = vand.u32 4294901760, %v10371_v16  ;;  %v71_v54 = vld [vmem:[%s15190_s0 + $0x190] sm:$0xff]  ;;  %v16448_v16 = vand.u32 4294901760, %v10405_v7  ;;  %v16449_v22 = vand.u32 4294901760, %v9656_v17 }
  0x5c   :  { %16442 = vst [vmem:[#allocation163_spill] sm:$0xff] %v10670_v1  ;;  %16443 = vst [vmem:[#allocation164_spill] sm:$0xff] %v10673_v20  ;;  %8282 = vmatpush1.bf16.msra.mxu0 %v10263_v19  ;;  %3400 = vmatprep.mubr.f32.mxu0 %v10335_v39  ;;  %v10711_v43 = vsub.f32 %v10664_v33, %v15446_v36  ;;  %v16450_v46 = vand.u32 4294901760, %v9786_v63  ;;  %v16451_v21 = vand.u32 4294901760, %v9796_v8  ;;  %v75_v7 = vld [vmem:[%s15190_s0 + $0x1b0] sm:$0xff]  ;;  %v16455_v63 = vand.u32 4294901760, %v9658_v18 }
  0x5d   :  { %16444 = vst [vmem:[#allocation165_spill] sm:$0xff] %v10676_v28  ;;  %16445 = vst [vmem:[#allocation166_spill] sm:$0xff] %v10679_v49  ;;  %383 = vmatmul.mubr.f32.gmra.mrb[2].mxu1 %v16446_v41  ;;  %v722_v10 = vsub.f32 %v9656_v17, %v16449_v22  ;;  %8283 = vmatprep.subr.bf16.mxu0 %v16266_v4  ;;  %v16454_v41 = vand.u32 4294901760, %v10679_v49  ;;  %v10744_v52 = vand.u32 4294901760, %v71_v54  ;;  %v16461_v45 = vand.u32 4294901760, %v10477_v5 }
  0x5e   :  { %16447 = vst [vmem:[#allocation167_spill] sm:$0xff] %v10696_v32  ;;  %392 = vmatprep.mubr.f32.mxu1 %v16448_v16  ;;  %v10720_v19 = vpack.c.bf16 %v16451_v21, %v16450_v46  ;;  %v16453_v16 = vand.u32 4294901760, %v10676_v28  ;;  %v729_v8 = vsub.f32 %v9658_v18, %v16455_v63  ;;  %v10740_v21 = vsub.f32 %v72_v38, %v10696_v32  ;;  %v77_v63 = vld [vmem:[%s15190_s0 + $0x1c0] sm:$0xff] }
  0x5f   :  { %v10734_v22 = vsub.f32 %v10679_v49, %v16454_v41  ;;  %3403 = vmatmul.mubr.f32.gmra.mrb[2].mxu0 %v10360_v48  ;;  %v723_v33 = vand.u32 4294901760, %v722_v10  ;;  %16457 = vst [vmem:[#allocation170_spill] sm:$0xff] %v10744_v52  ;;  %v78_v41 = vld [vmem:[%s15190_s0 + $0x1c8] sm:$0xff]  ;;  %v16459_v38 = vand.u32 4294901760, %v10434_v60  ;;  %v10759_v32 = vand.u32 4294901760, %v75_v7 }
  0x60   :  { %16452 = vst [vmem:[#allocation168_spill] sm:$0xff] %v10720_v19  ;;  %v10729_v36 = vsub.f32 %v10676_v28, %v16453_v16  ;;  %16456 = vst [vmem:[#allocation169_spill] sm:$0xff] %v10740_v21  ;;  %v10746_v16 = vand.u32 4294901760, %v76_v0  ;;  %3409 = vmatprep.mubr.f32.mxu0 %v10387_v40  ;;  %v730_v49 = vand.u32 4294901760, %v729_v8  ;;  %v82_v28 = vld [vmem:[%s15190_s0 + $0x1e8] sm:$0xff]  ;;  %8285 = vmatpush1.bf16.msra.mxu0 %v10381_v58  ;;  %v15465_v10 = vand.u32 4294901760, %v9685_v25 }
  0x61   :  { %398 = vmatmul.mubr.f32.gmra.mrb[4].mxu1 %v16459_v38  ;;  %16460 = vst [vmem:[#allocation172_spill] sm:$0xff] %v10759_v32  ;;  %v10768_v60 = vsub.f32 %v71_v54, %v10744_v52  ;;  %v15466_v8 = vand.u32 4294901760, %v9687_v26  ;;  %8286 = vmatprep.subr.bf16.mxu0 %v16266_v4  ;;  %v10777_v12 = vsub.f32 %v75_v7, %v10759_v32  ;;  %v10779_v58 = vand.u32 4294901760, %v78_v41 }
  0x62   :  { %16458 = vst [vmem:[#allocation171_spill] sm:$0xff] %v10746_v16  ;;  %407 = vmatprep.mubr.f32.mxu1 %v16461_v45  ;;  %v10771_v38 = vsub.f32 %v76_v0, %v10746_v16  ;;  %v7897_v46 = vpack.c.bf16 %v730_v49, %v723_v33  ;;  %v10781_v5 = vand.u32 4294901760, %v77_v63  ;;  %v736_v54 = vsub.f32 %v9685_v25, %v15465_v10  ;;  %v81_v49 = vld [vmem:[%s15190_s0 + $0x1e0] sm:$0xff] }
  0x63   :  { %16462 = vst [vmem:[#allocation173_spill] sm:$0xff] %v10768_v60  ;;  %16464 = vst [vmem:[#allocation175_spill] sm:$0xff] %v10777_v12  ;;  %3412 = vmatmul.mubr.f32.gmra.mrb[4].mxu0 %v10413_v61  ;;  %v743_v0 = vsub.f32 %v9687_v26, %v15466_v8  ;;  %v10791_v33 = vand.u32 4294901760, %v82_v28  ;;  %v16468_v7 = vand.u32 4294901760, %v10482_v2  ;;  %v10801_v52 = vsub.f32 %v78_v41, %v10779_v58  ;;  %v84_v2 = vld [vmem:[%s15190_s0 + $0x1f8] sm:$0xff] }
  0x64   :  { %16463 = vst [vmem:[#allocation174_spill] sm:$0xff] %v10771_v38  ;;  %16465 = vst [vmem:[#allocation176_spill] sm:$0xff] %v10779_v58  ;;  %3418 = vmatprep.mubr.f32.mxu0 %v10437_v3  ;;  %v10804_v10 = vsub.f32 %v77_v63, %v10781_v5  ;;  %v16471_v8 = vand.u32 4294901760, %v9813_v27  ;;  %v16472_v32 = vand.u32 4294901760, %v9818_v30  ;;  %8288 = vmatpush1.bf16.msra.mxu0 %v10456_v15  ;;  %v16475_v41 = vand.u32 4294901760, %v10771_v38 }
  0x65   :  { %16466 = vst [vmem:[#allocation177_spill] sm:$0xff] %v10781_v5  ;;  %16467 = vst [vmem:[#allocation178_spill] sm:$0xff] %v10791_v33  ;;  %413 = vmatmul.mubr.f32.gmra.mrb[6].mxu1 %v16468_v7  ;;  %v16474_v7 = vand.u32 4294901760, %v10521_v29  ;;  %v737_v45 = vand.u32 4294901760, %v736_v54  ;;  %v744_v27 = vand.u32 4294901760, %v743_v0  ;;  %v10824_v30 = vsub.f32 %v82_v28, %v10791_v33  ;;  %8289 = vmatprep.subr.bf16.mxu0 %v16266_v4  ;;  %v83_v54 = vld [vmem:[%s15190_s0 + $0x1f0] sm:$0xff] }
  0x66   :  { %16469 = vst [vmem:[#allocation179_spill] sm:$0xff] %v10801_v52  ;;  %16470 = vst [vmem:[#allocation180_spill] sm:$0xff] %v10804_v10  ;;  %v10810_v16 = vpack.c.bf16 %v16472_v32, %v16471_v8  ;;  %v10821_v63 = vsub.f32 %v10771_v38, %v16475_v41  ;;  %7898 = vmatpush1.bf16.msra.mxu1 %v7897_v46  ;;  %v16477_v32 = vand.u32 4294901760, %v10777_v12  ;;  %v10832_v8 = vand.u32 4294901760, %v81_v49  ;;  %v88_v28 = vld [vmem:[%s15190_s0 + $0x218] sm:$0xff]  ;;  %v87_v41 = vld [vmem:[%s15190_s0 + $0x210] sm:$0xff] }
  0x67   :  { %422 = vmatprep.mubr.f32.mxu1 %v16474_v7  ;;  %16476 = vst [vmem:[#allocation182_spill] sm:$0xff] %v10824_v30  ;;  %3421 = vmatmul.mubr.f32.gmra.mrb[6].mxu0 %v10450_v59  ;;  %v7900_v0 = vpack.c.bf16 %v744_v27, %v737_v45  ;;  %v10846_v7 = vand.u32 4294901760, %v84_v2  ;;  %v16480_v5 = vand.u32 4294901760, %v10556_v53  ;;  %v16482_v45 = vand.u32 4294901760, %v9725_v42 }
  0x68   :  { %16473 = vst [vmem:[#allocation181_spill] sm:$0xff] %v10810_v16  ;;  %v10830_v29 = vsub.f32 %v10777_v12, %v16477_v32  ;;  %16478 = vst [vmem:[#allocation183_spill] sm:$0xff] %v10832_v8  ;;  %7899 = vmatprep.subr.bf16.mxu1 %v16266_v4  ;;  %3427 = vmatprep.mubr.f32.mxu0 %v10497_v14  ;;  %v10856_v46 = vsub.f32 %v81_v49, %v10832_v8  ;;  %v16483_v32 = vand.u32 4294901760, %v9730_v44  ;;  %v100_v8 = vld [vmem:[%s15190_s0 + $0x278] sm:$0xff]  ;;  %vm7237_vm8 = vcmask 1044484  }
  0x69   :  { %16479 = vst [vmem:[#allocation184_spill] sm:$0xff] %v10846_v7  ;;  %428 = vmatmul.mubr.f32.gmra.mrb[8].mxu1 %v16480_v5  ;;  %v750_v27 = vsub.f32 %v9725_v42, %v16482_v45  ;;  %v16484_v38 = vand.u32 4294901760, %v10568_v9  ;;  %8291 = vmatpush1.bf16.msra.mxu0 %v10539_v50  ;;  %v16485_v53 = vand.u32 4294901760, %v10824_v30  ;;  %v10873_v49 = vsub.f32 %v84_v2, %v10846_v7 }
  0x6a   :  { %16481 = vst [vmem:[#allocation185_spill] sm:$0xff] %v10856_v46  ;;  %v757_v58 = vsub.f32 %v9730_v44, %v16483_v32  ;;  %v10875_v12 = vand.u32 4294901760, %v83_v54  ;;  %v10877_v45 = vand.u32 4294901760, %v88_v28  ;;  %8292 = vmatprep.subr.bf16.mxu0 %v16266_v4  ;;  %7901 = vmatpush1.bf16.msra.mxu1 %v7900_v0  ;;  %v10881_v50 = vand.u32 4294901760, %v87_v41 }
  0x6b   :  { %437 = vmatprep.mubr.f32.mxu1 %v16484_v38  ;;  %v10870_v5 = vsub.f32 %v10824_v30, %v16485_v53  ;;  %16486 = vst [vmem:[#allocation186_spill] sm:$0xff] %v10873_v49  ;;  %v751_v38 = vand.u32 4294901760, %v750_v27  ;;  %v90_v53 = vld [vmem:[%s15190_s0 + $0x228] sm:$0xff]  ;;  %3430 = vmatmul.mubr.f32.gmra.mrb[8].mxu0 %v10510_v62  ;;  %v89_v27 = vld [vmem:[%s15190_s0 + $0x220] sm:$0xff]  ;;  %v16492_v9 = vand.u32 4294901760, %v10585_v6  ;;  %v16493_v2 = vand.u32 4294901760, %v10856_v46 }
  0x6c   :  { %16487 = vst [vmem:[#allocation187_spill] sm:$0xff] %v10875_v12  ;;  %16488 = vst [vmem:[#allocation188_spill] sm:$0xff] %v10877_v45  ;;  %v758_v32 = vand.u32 4294901760, %v757_v58  ;;  %7902 = vmatprep.subr.bf16.mxu1 %v16266_v4  ;;  %v10890_v7 = vsub.f32 %v83_v54, %v10875_v12  ;;  %v10893_v0 = vsub.f32 %v88_v28, %v10877_v45  ;;  %3436 = vmatprep.mubr.f32.mxu0 %v10560_v55  ;;  %v94_v12 = vld [vmem:[%s15190_s0 + $0x248] sm:$0xff]  ;;  %v16499_v58 = vld [vmem:[#allocation26_spill] sm:$0xff]  ;;  %vm7241_vm9 = vcmask 1046534  }
  0x6d   :  { %16489 = vst [vmem:[#allocation189_spill] sm:$0xff] %v10881_v50  ;;  %443 = vmatmul.mubr.f32.gmra.mrb[10].mxu1 %v16492_v9  ;;  %v10905_v30 = vsub.f32 %v10856_v46, %v16493_v2  ;;  %v10908_v28 = vsub.f32 %v87_v41, %v10881_v50  ;;  %v16495_v6 = vand.u32 4294901760, %v10632_v37  ;;  %8294 = vmatpush1.bf16.msra.mxu0 %v10626_v13  ;;  %v16496_v2 = vand.u32 4294901760, %v9754_v51  ;;  %v93_v37 = vld [vmem:[%s15190_s0 + $0x240] sm:$0xff]  ;;  %v95_v45 = vld [vmem:[%s15190_s0 + $0x250] sm:$0xff] }
  0x6e   :  { %16490 = vst [vmem:[#allocation190_spill] sm:$0xff] %v10890_v7  ;;  %16491 = vst [vmem:[#allocation191_spill] sm:$0xff] %v10893_v0  ;;  %v7903_v54 = vpack.c.bf16 %v758_v32, %v751_v38  ;;  %v10921_v32 = vand.u32 4294901760, %v90_v53  ;;  %v16498_v41 = vand.u32 4294901760, %v9852_v34  ;;  %v16500_v46 = vand.u32 4294901760, %v16499_v58  ;;  %8295 = vmatprep.subr.bf16.mxu0 %v16266_v4  ;;  %v16504_v58 = vld [vmem:[#allocation146_spill] sm:$0xff] }
  0x6f   :  { %16494 = vst [vmem:[#allocation192_spill] sm:$0xff] %v10908_v28  ;;  %452 = vmatprep.mubr.f32.mxu1 %v16495_v6  ;;  %v764_v38 = vsub.f32 %v9754_v51, %v16496_v2  ;;  %v16502_v2 = vand.u32 4294901760, %v9767_v56  ;;  %v10938_v34 = vand.u32 4294901760, %v89_v27  ;;  %3439 = vmatmul.mubr.f32.gmra.mrb[10].mxu0 %v16504_v58  ;;  %v10950_v6 = vand.u32 4294901760, %v94_v12 }
  0x70   :  { %16497 = vst [vmem:[#allocation193_spill] sm:$0xff] %v10921_v32  ;;  %v10927_v15 = vpack.c.bf16 %v16500_v46, %v16498_v41  ;;  %7904 = vmatpush1.bf16.msra.mxu1 %v7903_v54  ;;  %v16505_v46 = vand.u32 4294901760, %v10893_v0  ;;  %v10948_v54 = vsub.f32 %v90_v53, %v10921_v32  ;;  %v16508_v9 = vand.u32 4294901760, %v10660_v23  ;;  %3445 = vmatprep.mubr.f32.mxu0 %v10617_v31 }
  0x71   :  { %v771_v13 = vsub.f32 %v9767_v56, %v16502_v2  ;;  %16503 = vst [vmem:[#allocation194_spill] sm:$0xff] %v10938_v34  ;;  %7905 = vmatprep.subr.bf16.mxu1 %v16266_v4  ;;  %v765_v50 = vand.u32 4294901760, %v764_v38  ;;  %16507 = vst [vmem:[#allocation196_spill] sm:$0xff] %v10950_v6  ;;  %v96_v2 = vld [vmem:[%s15190_s0 + $0x258] sm:$0xff]  ;;  %v10964_v53 = vsub.f32 %v89_v27, %v10938_v34  ;;  %v10966_v32 = vand.u32 4294901760, %v93_v37 }
  0x72   :  { %16501 = vst [vmem:[#allocation26_spill] sm:$0xff] %v10927_v15  ;;  %v10944_v41 = vsub.f32 %v10893_v0, %v16505_v46  ;;  %16506 = vst [vmem:[#allocation195_spill] sm:$0xff] %v10948_v54  ;;  %458 = vmatmul.mubr.f32.gmra.mrb[12].mxu1 %v16508_v9  ;;  %v16509_v46 = vand.u32 4294901760, %v10908_v28  ;;  %v16512_v23 = vand.u32 4294901760, %v10686_v11  ;;  %8297 = vmatpush1.bf16.msra.mxu0 %v10720_v19  ;;  %v16515_v27 = vld [vmem:[#allocation18_spill] sm:$0xff]  ;;  %v10988_v9 = vand.u32 4294901760, %v96_v2 }
  0x73   :  { %v772_v38 = vand.u32 4294901760, %v771_v13  ;;  %16510 = vst [vmem:[#allocation197_spill] sm:$0xff] %v10964_v53  ;;  %16511 = vst [vmem:[#allocation198_spill] sm:$0xff] %v10966_v32  ;;  %v16514_v13 = vld [vmem:[#allocation16_spill] sm:$0xff]  ;;  %8298 = vmatprep.subr.bf16.mxu0 %v16266_v4  ;;  %v10986_v19 = vsub.f32 %v93_v37, %v10966_v32  ;;  %3448 = vmatmul.mubr.f32.gmra.mrb[12].mxu0 %v10620_v57  ;;  %v10998_v47 = vand.u32 4294901760, %v95_v45  ;;  %v16520_v37 = vand.u32 4294901760, %v10711_v43 }
  0x74   :  { %v10961_v0 = vsub.f32 %v10908_v28, %v16509_v46  ;;  %467 = vmatprep.mubr.f32.mxu1 %v16512_v23  ;;  %v10976_v46 = vsub.f32 %v94_v12, %v10950_v6  ;;  %v15515_v28 = vand.u32 4294901760, %v16514_v13  ;;  %16517 = vst [vmem:[#allocation18_spill] sm:$0xff] %v10988_v9  ;;  %v16518_v6 = vand.u32 4294901760, %v16515_v27  ;;  %3454 = vmatprep.mubr.f32.mxu0 %v10670_v1  ;;  %v16523_v12 = vld [vmem:[#allocation30_spill] sm:$0xff]  ;;  %v16525_v32 = vld [vmem:[#allocation31_spill] sm:$0xff]  ;;  %v102_v43 = vld [vmem:[%s15190_s0 + $0x288] sm:$0xff] }
  0x75   :  { %v7906_v23 = vpack.c.bf16 %v772_v38, %v765_v50  ;;  %16516 = vst [vmem:[#allocation16_spill] sm:$0xff] %v10986_v19  ;;  %16519 = vst [vmem:[#allocation200_spill] sm:$0xff] %v10998_v47  ;;  %v99_v50 = vld [vmem:[%s15190_s0 + $0x270] sm:$0xff]  ;;  %v11008_v11 = vsub.f32 %v96_v2, %v10988_v9  ;;  %v16526_v24 = vand.u32 4294901760, %v16525_v32  ;;  %v11030_v32 = vsub.f32 %v95_v45, %v10998_v47  ;;  %v106_v45 = vld [vmem:[%s15190_s0 + $0x2a8] sm:$0xff] }
  0x76   :  { %16513 = vst [vmem:[#allocation199_spill] sm:$0xff] %v10976_v46  ;;  %v778_v34 = vsub.f32 %v16514_v13, %v15515_v28  ;;  %v785_v33 = vsub.f32 %v16515_v27, %v16518_v6  ;;  %473 = vmatmul.mubr.f32.gmra.mrb[14].mxu1 %v16520_v37  ;;  %v11010_v28 = vand.u32 4294901760, %v100_v8  ;;  %v16524_v6 = vand.u32 4294901760, %v16523_v12  ;;  %8300 = vmatpush1.bf16.msra.mxu0 %v10810_v16 }
  0x77   :  { %16521 = vst [vmem:[#allocation201_spill] sm:$0xff] %v11008_v11  ;;  %v16528_v37 = vand.u32 4294901760, %v10729_v36  ;;  %v16529_v2 = vand.u32 4294901760, %v10976_v46  ;;  %16530 = vst [vmem:[#allocation31_spill] sm:$0xff] %v11030_v32  ;;  %8301 = vmatprep.subr.bf16.mxu0 %v16266_v4  ;;  %7907 = vmatpush1.bf16.msra.mxu1 %v7906_v23  ;;  %v16535_v23 = vld [vmem:[#allocation22_spill] sm:$0xff]  ;;  %v11054_v47 = vand.u32 4294901760, %v102_v43 }
  0x78   :  { %16522 = vst [vmem:[#allocation202_spill] sm:$0xff] %v11010_v28  ;;  %v11016_v57 = vpack.c.bf16 %v16526_v24, %v16524_v6  ;;  %v779_v9 = vand.u32 4294901760, %v778_v34  ;;  %v786_v12 = vand.u32 4294901760, %v785_v33  ;;  %v16531_v24 = vand.u32 4294901760, %v10986_v19  ;;  %v101_v33 = vld [vmem:[%s15190_s0 + $0x280] sm:$0xff]  ;;  %3457 = vmatmul.mubr.f32.gmra.mrb[14].mxu0 %v10673_v20  ;;  %7908 = vmatprep.subr.bf16.mxu1 %v16266_v4 }
  0x79   :  { %482 = vmatprep.mubr.f32.mxu1 %v16528_v37  ;;  %v11027_v38 = vsub.f32 %v10976_v46, %v16529_v2  ;;  %v11039_v6 = vsub.f32 %v100_v8, %v11010_v28  ;;  %v11041_v37 = vand.u32 4294901760, %v99_v50  ;;  %v16534_v2 = vld [vmem:[#allocation21_spill] sm:$0xff]  ;;  %v105_v46 = vld [vmem:[%s15190_s0 + $0x2a0] sm:$0xff]  ;;  %3463 = vmatprep.mubr.f32.mxu0 %v10740_v21  ;;  %v11077_v16 = vsub.f32 %v102_v43, %v11054_v47  ;;  %v108_v43 = vld [vmem:[%s15190_s0 + $0x2b8] sm:$0xff] }
  0x7a   :  { %16527 = vst [vmem:[#allocation30_spill] sm:$0xff] %v11016_v57  ;;  %v11036_v36 = vsub.f32 %v10986_v19, %v16531_v24  ;;  %v7909_v8 = vpack.c.bf16 %v786_v12, %v779_v9  ;;  %16536 = vst [vmem:[#allocation21_spill] sm:$0xff] %v11054_v47  ;;  %v16537_v19 = vand.u32 4294901760, %v10734_v22  ;;  %v16539_v9 = vand.u32 4294901760, %v16534_v2  ;;  %8303 = vmatpush1.bf16.msra.mxu0 %v10927_v15  ;;  %v16549_v47 = vld [vmem:[#allocation25_spill] sm:$0xff] }
  0x7b   :  { %16532 = vst [vmem:[#allocation203_spill] sm:$0xff] %v11039_v6  ;;  %16533 = vst [vmem:[#allocation204_spill] sm:$0xff] %v11041_v37  ;;  %v11065_v28 = vsub.f32 %v99_v50, %v11041_v37  ;;  %v16540_v24 = vand.u32 4294901760, %v10821_v63  ;;  %v11079_v34 = vand.u32 4294901760, %v101_v33  ;;  %v11081_v50 = vand.u32 4294901760, %v106_v45  ;;  %8304 = vmatprep.subr.bf16.mxu0 %v16266_v4 }
  0x7c   :  { %488 = vmatmul.mubr.f32.gmra.mrb[16].mxu1 %v16537_v19  ;;  %v792_v12 = vsub.f32 %v16534_v2, %v16539_v9  ;;  %v16541_v19 = vand.u32 4294901760, %v16535_v23  ;;  %16542 = vst [vmem:[#allocation205_spill] sm:$0xff] %v11077_v16  ;;  %v16545_v9 = vand.u32 4294901760, %v11039_v6  ;;  %v11090_v37 = vand.u32 4294901760, %v105_v46  ;;  %3466 = vmatmul.mubr.f32.gmra.mrb[16].mxu0 %v10768_v60 }
  0x7d   :  { %16538 = vst [vmem:[#allocation22_spill] sm:$0xff] %v11065_v28  ;;  %497 = vmatprep.mubr.f32.mxu1 %v16540_v24  ;;  %16543 = vst [vmem:[#allocation206_spill] sm:$0xff] %v11079_v34  ;;  %7910 = vmatpush1.bf16.msra.mxu1 %v7909_v8  ;;  %v16551_v60 = vand.u32 4294901760, %v11065_v28  ;;  %v107_v24 = vld [vmem:[%s15190_s0 + $0x2b0] sm:$0xff]  ;;  %vm7239_vm10 = vcmask 1045509   ;;  %vm7243_vm11 = vcmask 1047559  }
  0x7e   :  { %v799_v22 = vsub.f32 %v16535_v23, %v16541_v19  ;;  %16544 = vst [vmem:[#allocation207_spill] sm:$0xff] %v11081_v50  ;;  %v11087_v63 = vsub.f32 %v11039_v6, %v16545_v9  ;;  %v793_v15 = vand.u32 4294901760, %v792_v12  ;;  %16546 = vst [vmem:[#allocation208_spill] sm:$0xff] %v11090_v37  ;;  %7911 = vmatprep.subr.bf16.mxu1 %v16266_v4  ;;  %v16550_v12 = vand.u32 4294901760, %v10830_v29  ;;  %v16558_v6 = vld [vmem:[#allocation40_spill] sm:$0xff] }
  0x7f   :  { %v11098_v19 = vsub.f32 %v101_v33, %v11079_v34  ;;  %v11101_v9 = vsub.f32 %v106_v45, %v11081_v50  ;;  %3472 = vmatprep.mubr.f32.mxu0 %v10801_v52  ;;  %v11111_v21 = vsub.f32 %v11065_v28, %v16551_v60  ;;  %v11114_v33 = vsub.f32 %v105_v46, %v11090_v37  ;;  %v112_v45 = vld [vmem:[%s15190_s0 + $0x2d8] sm:$0xff] }
  0x80   :  { %v800_v8 = vand.u32 4294901760, %v799_v22  ;;  %503 = vmatmul.mubr.f32.gmra.mrb[18].mxu1 %v16550_v12  ;;  %v16553_v22 = vld [vmem:[#allocation29_spill] sm:$0xff]  ;;  %v16554_v29 = vand.u32 4294901760, %v10870_v5  ;;  %8306 = vmatpush1.bf16.msra.mxu0 %v11016_v57  ;;  %v16555_v60 = vand.u32 4294901760, %v16549_v47  ;;  %v11127_v46 = vand.u32 4294901760, %v108_v43 }
  0x81   :  { %16547 = vst [vmem:[#allocation209_spill] sm:$0xff] %v11098_v19  ;;  %16548 = vst [vmem:[#allocation210_spill] sm:$0xff] %v11101_v9  ;;  %v111_v5 = vld [vmem:[%s15190_s0 + $0x2d0] sm:$0xff]  ;;  %8307 = vmatprep.subr.bf16.mxu0 %v16266_v4  ;;  %v16559_v28 = vand.u32 4294901760, %v16558_v6  ;;  %3475 = vmatmul.mubr.f32.gmra.mrb[18].mxu0 %v10804_v10  ;;  %v16563_v52 = vand.u32 4294901760, %v11101_v9  ;;  %v11156_v1 = vand.u32 4294901760, %v107_v24 }
  0x82   :  { %16552 = vst [vmem:[#allocation211_spill] sm:$0xff] %v11114_v33  ;;  %512 = vmatprep.mubr.f32.mxu1 %v16554_v29  ;;  %v7912_v12 = vpack.c.bf16 %v800_v8, %v793_v15  ;;  %v806_v34 = vsub.f32 %v16549_v47, %v16555_v60  ;;  %16556 = vst [vmem:[#allocation212_spill] sm:$0xff] %v11127_v46  ;;  %v16557_v8 = vand.u32 4294901760, %v16553_v22  ;;  %v16560_v57 = vld [vmem:[#allocation41_spill] sm:$0xff]  ;;  %v16566_v6 = vand.u32 4294901760, %v10905_v30  ;;  %v113_v30 = vld [vmem:[%s15190_s0 + $0x2e0] sm:$0xff] }
  0x83   :  { %v16561_v37 = vand.u32 4294901760, %v16560_v57  ;;  %v11151_v29 = vsub.f32 %v11101_v9, %v16563_v52  ;;  %v11154_v20 = vsub.f32 %v108_v43, %v11127_v46  ;;  %16565 = vst [vmem:[#allocation213_spill] sm:$0xff] %v11156_v1  ;;  %3481 = vmatprep.mubr.f32.mxu0 %v10873_v49  ;;  %v16567_v57 = vand.u32 4294901760, %v11114_v33  ;;  %v118_v9 = vld [vmem:[%s15190_s0 + $0x308] sm:$0xff] }
  0x84   :  { %v813_v60 = vsub.f32 %v16553_v22, %v16557_v8  ;;  %7913 = vmatpush1.bf16.msra.mxu1 %v7912_v12  ;;  %v807_v15 = vand.u32 4294901760, %v806_v34  ;;  %v11166_v12 = vand.u32 4294901760, %v112_v45  ;;  %v11168_v52 = vand.u32 4294901760, %v111_v5  ;;  %v114_v34 = vld [vmem:[%s15190_s0 + $0x2e8] sm:$0xff] }
  0x85   :  { %v11145_v50 = vpack.c.bf16 %v16561_v37, %v16559_v28  ;;  %16564 = vst [vmem:[#allocation41_spill] sm:$0xff] %v11154_v20  ;;  %518 = vmatmul.mubr.f32.gmra.mrb[20].mxu1 %v16566_v6  ;;  %v11164_v28 = vsub.f32 %v11114_v33, %v16567_v57  ;;  %v16570_v43 = vand.u32 4294901760, %v10944_v41  ;;  %7914 = vmatprep.subr.bf16.mxu1 %v16266_v4  ;;  %v16572_v6 = vld [vmem:[#allocation34_spill] sm:$0xff]  ;;  %v16573_v33 = vld [vmem:[#allocation35_spill] sm:$0xff]  ;;  %v11203_v49 = vand.u32 4294901760, %v114_v34 }
  0x86   :  { %v814_v37 = vand.u32 4294901760, %v813_v60  ;;  %16568 = vst [vmem:[#allocation214_spill] sm:$0xff] %v11166_v12  ;;  %16569 = vst [vmem:[#allocation215_spill] sm:$0xff] %v11168_v52  ;;  %v11181_v60 = vsub.f32 %v107_v24, %v11156_v1  ;;  %v15572_v57 = vand.u32 4294901760, %v16572_v6  ;;  %v15573_v46 = vand.u32 4294901760, %v16573_v33  ;;  %3484 = vmatmul.mubr.f32.gmra.mrb[20].mxu0 %v10890_v7  ;;  %v16580_v1 = vld [vmem:[#allocation44_spill] sm:$0xff] }
  0x87   :  { %16562 = vst [vmem:[#allocation40_spill] sm:$0xff] %v11145_v50  ;;  %527 = vmatprep.mubr.f32.mxu1 %v16570_v43  ;;  %8309 = vmatpush1.bf16.msra.mxu0 %v11145_v50  ;;  %v11191_v41 = vsub.f32 %v112_v45, %v11166_v12  ;;  %v11194_v43 = vsub.f32 %v111_v5, %v11168_v52  ;;  %16576 = vst [vmem:[#allocation219_spill] sm:$0xff] %v11203_v49  ;;  %v117_v45 = vld [vmem:[%s15190_s0 + $0x300] sm:$0xff]  ;;  %v16578_v5 = vand.u32 4294901760, %v10961_v0  ;;  %v16582_v52 = vld [vmem:[#allocation45_spill] sm:$0xff] }
  0x88   :  { %16571 = vst [vmem:[#allocation216_spill] sm:$0xff] %v11181_v60  ;;  %v7915_v10 = vpack.c.bf16 %v814_v37, %v807_v15  ;;  %v820_v24 = vsub.f32 %v16572_v6, %v15572_v57  ;;  %v827_v8 = vsub.f32 %v16573_v33, %v15573_v46  ;;  %v11205_v15 = vand.u32 4294901760, %v113_v30  ;;  %8310 = vmatprep.subr.bf16.mxu0 %v16266_v4  ;;  %v120_v33 = vld [vmem:[%s15190_s0 + $0x318] sm:$0xff] }
  0x89   :  { %16574 = vst [vmem:[#allocation217_spill] sm:$0xff] %v11191_v41  ;;  %16575 = vst [vmem:[#allocation218_spill] sm:$0xff] %v11194_v43  ;;  %533 = vmatmul.mubr.f32.gmra.mrb[22].mxu1 %v16578_v5  ;;  %3490 = vmatprep.mubr.f32.mxu0 %v10948_v54  ;;  %v11216_v46 = vand.u32 4294901760, %v118_v9  ;;  %v16581_v50 = vand.u32 4294901760, %v16580_v1  ;;  %v16583_v12 = vand.u32 4294901760, %v16582_v52  ;;  %v16585_v0 = vand.u32 4294901760, %v11027_v38 }
  0x8a   :  { %16577 = vst [vmem:[#allocation220_spill] sm:$0xff] %v11205_v15  ;;  %7916 = vmatpush1.bf16.msra.mxu1 %v7915_v10  ;;  %v821_v5 = vand.u32 4294901760, %v820_v24  ;;  %v828_v37 = vand.u32 4294901760, %v827_v8  ;;  %v11230_v57 = vsub.f32 %v114_v34, %v11203_v49  ;;  %v11233_v54 = vsub.f32 %v113_v30, %v11205_v15  ;;  %v119_v34 = vld [vmem:[%s15190_s0 + $0x310] sm:$0xff]  ;;  %3493 = vmatmul.mubr.f32.gmra.mrb[22].mxu0 %v10964_v53  ;;  %v16592_v8 = vld [vmem:[#allocation39_spill] sm:$0xff] }
  0x8b   :  { %16579 = vst [vmem:[#allocation221_spill] sm:$0xff] %v11216_v46  ;;  %v11222_v7 = vpack.c.bf16 %v16583_v12, %v16581_v50  ;;  %542 = vmatprep.mubr.f32.mxu1 %v16585_v0  ;;  %v16588_v1 = vand.u32 4294901760, %v11191_v41  ;;  %v16589_v12 = vand.u32 4294901760, %v11194_v43  ;;  %7917 = vmatprep.subr.bf16.mxu1 %v16266_v4  ;;  %v11247_v10 = vsub.f32 %v118_v9, %v11216_v46  ;;  %v16593_v0 = vld [vmem:[#allocation43_spill] sm:$0xff]  ;;  %v124_v9 = vld [vmem:[%s15190_s0 + $0x338] sm:$0xff]  ;;  %v123_v15 = vld [vmem:[%s15190_s0 + $0x330] sm:$0xff] }
  0x8c   :  { %16586 = vst [vmem:[#allocation45_spill] sm:$0xff] %v11230_v57  ;;  %16587 = vst [vmem:[#allocation222_spill] sm:$0xff] %v11233_v54  ;;  %v11250_v38 = vand.u32 4294901760, %v117_v45  ;;  %v7918_v30 = vpack.c.bf16 %v828_v37, %v821_v5  ;;  %3499 = vmatprep.mubr.f32.mxu0 %v11008_v11  ;;  %v16597_v49 = vand.u32 4294901760, %v11087_v63  ;;  %v11287_v5 = vand.u32 4294901760, %v119_v34 }
  0x8d   :  { %16584 = vst [vmem:[#allocation44_spill] sm:$0xff] %v11222_v7  ;;  %v11238_v50 = vsub.f32 %v11191_v41, %v16588_v1  ;;  %v11243_v52 = vsub.f32 %v11194_v43, %v16589_v12  ;;  %16590 = vst [vmem:[#allocation223_spill] sm:$0xff] %v11247_v10  ;;  %8312 = vmatpush1.bf16.msra.mxu0 %v11222_v7  ;;  %v11258_v12 = vand.u32 4294901760, %v120_v33  ;;  %v16595_v43 = vand.u32 4294901760, %v11036_v36 }
  0x8e   :  { %16591 = vst [vmem:[#allocation224_spill] sm:$0xff] %v11250_v38  ;;  %8313 = vmatprep.subr.bf16.mxu0 %v16266_v4  ;;  %v15599_v1 = vand.u32 4294901760, %v11247_v10  ;;  %v11274_v24 = vsub.f32 %v117_v45, %v11250_v38  ;;  %7919 = vmatpush1.bf16.msra.mxu1 %v7918_v30  ;;  %v16598_v41 = vand.u32 4294901760, %v16592_v8  ;;  %16601 = vst [vmem:[#allocation228_spill] sm:$0xff] %v11287_v5  ;;  %v11296_v63 = vand.u32 4294901760, %v124_v9 }
  0x8f   :  { %16594 = vst [vmem:[#allocation225_spill] sm:$0xff] %v11258_v12  ;;  %548 = vmatmul.mubr.f32.gmra.mrb[24].mxu1 %v16595_v43  ;;  %v586_v37 = vand.u32 4294901760, %v11238_v50  ;;  %v16599_v43 = vand.u32 4294901760, %v16593_v0  ;;  %v11285_v50 = vsub.f32 %v120_v33, %v11258_v12  ;;  %7920 = vmatprep.subr.bf16.mxu1 %v16266_v4  ;;  %v126_v33 = vld [vmem:[%s15190_s0 + $0x348] sm:$0xff]  ;;  %v11305_v12 = vsub.f32 %v119_v34, %v11287_v5 }
  0x90   :  { %16596 = vst [vmem:[#allocation226_spill] sm:$0xff] %v11274_v24  ;;  %557 = vmatprep.mubr.f32.mxu1 %v16597_v49  ;;  %v834_v36 = vsub.f32 %v16592_v8, %v16598_v41  ;;  %v11292_v45 = vsub.f32 %v11247_v10, %v15599_v1  ;;  %16602 = vst [vmem:[#allocation229_spill] sm:$0xff] %v11296_v63  ;;  %v11298_v41 = vand.u32 4294901760, %v123_v15  ;;  %3502 = vmatmul.mubr.f32.gmra.mrb[24].mxu0 %v11030_v32  ;;  %v16605_v1 = vld [vmem:[#allocation48_spill] sm:$0xff] }
  0x91   :  { %v841_v7 = vsub.f32 %v16593_v0, %v16599_v43  ;;  %16600 = vst [vmem:[#allocation227_spill] sm:$0xff] %v11285_v50  ;;  %16604 = vst [vmem:[#allocation231_spill] sm:$0xff] %v11305_v12  ;;  %v15612_v10 = vand.u32 4294901760, %v16605_v1  ;;  %v16606_v49 = vand.u32 4294901760, %v11111_v21  ;;  %3508 = vmatprep.mubr.f32.mxu0 %v11077_v16  ;;  %v16607_v46 = vand.u32 4294901760, %v11274_v24  ;;  %v125_v21 = vld [vmem:[%s15190_s0 + $0x340] sm:$0xff] }
  0x92   :  { %16603 = vst [vmem:[#allocation230_spill] sm:$0xff] %v11298_v41  ;;  %v835_v30 = vand.u32 4294901760, %v834_v36  ;;  %v601_v38 = vand.u32 4294901760, %v11292_v45  ;;  %v11318_v36 = vsub.f32 %v124_v9, %v11296_v63  ;;  %v16610_v34 = vand.u32 4294901760, %v11151_v29  ;;  %v129_v9 = vld [vmem:[%s15190_s0 + $0x360] sm:$0xff] }
  0x93   :  { %v842_v43 = vand.u32 4294901760, %v841_v7  ;;  %563 = vmatmul.mubr.f32.gmra.mrb[26].mxu1 %v16606_v49  ;;  %v11315_v11 = vsub.f32 %v11274_v24, %v16607_v46  ;;  %v11321_v7 = vsub.f32 %v123_v15, %v11298_v41  ;;  %v848_v45 = vsub.f32 %v16605_v1, %v15612_v10  ;;  %v16611_v46 = vld [vmem:[#allocation49_spill] sm:$0xff]  ;;  %v130_v15 = vld [vmem:[%s15190_s0 + $0x368] sm:$0xff]  ;;  %v16615_v41 = vld [vmem:[#allocation55_spill] sm:$0xff] }
  0x94   :  { %16608 = vst [vmem:[#allocation232_spill] sm:$0xff] %v11318_v36  ;;  %572 = vmatprep.mubr.f32.mxu1 %v16610_v34  ;;  %v11332_v24 = vand.u32 4294901760, %v126_v33  ;;  %v16613_v34 = vld [vmem:[#allocation51_spill] sm:$0xff]  ;;  %v16616_v5 = vand.u32 4294901760, %v16615_v41  ;;  %3511 = vmatmul.mubr.f32.gmra.mrb[26].mxu0 %v11098_v19  ;;  %v16618_v32 = vand.u32 4294901760, %v16611_v46 }
  0x95   :  { %16609 = vst [vmem:[#allocation233_spill] sm:$0xff] %v11321_v7  ;;  %v7921_v49 = vpack.c.bf16 %v842_v43, %v835_v30  ;;  %v607_v29 = vand.u32 4294901760, %v11315_v11  ;;  %v16614_v10 = vand.u32 4294901760, %v16613_v34  ;;  %v849_v16 = vand.u32 4294901760, %v848_v45  ;;  %3517 = vmatprep.mubr.f32.mxu0 %v11154_v20  ;;  %v16627_v34 = vld [vmem:[#allocation54_spill] sm:$0xff] }
  0x96   :  { %16612 = vst [vmem:[#allocation234_spill] sm:$0xff] %v11332_v24  ;;  %v855_v53 = vsub.f32 %v16611_v46, %v16618_v32  ;;  %v11354_v11 = vsub.f32 %v126_v33, %v11332_v24  ;;  %v11356_v30 = vand.u32 4294901760, %v125_v21  ;;  %v16621_v43 = vand.u32 4294901760, %v11164_v28  ;;  %v132_v28 = vld [vmem:[%s15190_s0 + $0x378] sm:$0xff]  ;;  %v16628_v24 = vld [vmem:[#allocation56_spill] sm:$0xff] }
  0x97   :  { %v11347_v63 = vpack.c.bf16 %v16616_v5, %v16614_v10  ;;  %7922 = vmatpush1.bf16.msra.mxu1 %v7921_v49  ;;  %v16622_v10 = vand.u32 4294901760, %v11318_v36  ;;  %v16623_v41 = vand.u32 4294901760, %v11321_v7  ;;  %v11369_v32 = vand.u32 4294901760, %v130_v15 }
  0x98   :  { %16619 = vst [vmem:[#allocation55_spill] sm:$0xff] %v11354_v11  ;;  %16620 = vst [vmem:[#allocation235_spill] sm:$0xff] %v11356_v30  ;;  %578 = vmatmul.mubr.f32.gmra.mrb[28].mxu1 %v16621_v43  ;;  %v11371_v33 = vand.u32 4294901760, %v129_v9  ;;  %7923 = vmatprep.subr.bf16.mxu1 %v16266_v4  ;;  %v856_v45 = vand.u32 4294901760, %v855_v53  ;;  %v11378_v43 = vsub.f32 %v125_v21, %v11356_v30  ;;  %v16631_v19 = vand.u32 4294901760, %v16628_v24 }
  0x99   :  { %16617 = vst [vmem:[#allocation51_spill] sm:$0xff] %v11347_v63  ;;  %v615_v5 = vsub.f32 %v11318_v36, %v16622_v10  ;;  %v11367_v49 = vsub.f32 %v11321_v7, %v16623_v41  ;;  %16624 = vst [vmem:[#allocation236_spill] sm:$0xff] %v11369_v32  ;;  %587 = vmatprep.mubr.f32.mxu1 %v586_v37  ;;  %v15635_v10 = vand.u32 4294901760, %v16627_v34  ;;  %v131_v7 = vld [vmem:[%s15190_s0 + $0x370] sm:$0xff]  ;;  %v136_v36 = vld [vmem:[%s15190_s0 + $0x398] sm:$0xff]  ;;  %8315 = vmatpush1.bf16.msra.mxu0 %v11347_v63 }
  0x9a   :  { %16625 = vst [vmem:[#allocation237_spill] sm:$0xff] %v11371_v33  ;;  %16626 = vst [vmem:[#allocation238_spill] sm:$0xff] %v11378_v43  ;;  %v11391_v53 = vsub.f32 %v130_v15, %v11369_v32  ;;  %v11394_v21 = vsub.f32 %v129_v9, %v11371_v33  ;;  %3520 = vmatmul.mubr.f32.gmra.mrb[28].mxu0 %v11181_v60  ;;  %v7924_v41 = vpack.c.bf16 %v856_v45, %v849_v16  ;;  %v16639_v9 = vld [vmem:[#allocation60_spill] sm:$0xff] }
  0x9b   :  { %v616_v20 = vand.u32 4294901760, %v615_v5  ;;  %v622_v37 = vand.u32 4294901760, %v11367_v49  ;;  %v862_v30 = vsub.f32 %v16627_v34, %v15635_v10  ;;  %v869_v5 = vsub.f32 %v16628_v24, %v16631_v19  ;;  %8316 = vmatprep.subr.bf16.mxu0 %v16266_v4  ;;  %3526 = vmatprep.mubr.f32.mxu0 %v11230_v57  ;;  %v135_v19 = vld [vmem:[%s15190_s0 + $0x390] sm:$0xff]  ;;  %v138_v60 = vld [vmem:[%s15190_s0 + $0x3a8] sm:$0xff] }
  0x9c   :  { %16629 = vst [vmem:[#allocation239_spill] sm:$0xff] %v11391_v53  ;;  %16630 = vst [vmem:[#allocation240_spill] sm:$0xff] %v11394_v21  ;;  %v11403_v49 = vand.u32 4294901760, %v132_v28  ;;  %v16633_v15 = vand.u32 4294901760, %v11243_v52  ;;  %v11411_v45 = vand.u32 4294901760, %v131_v7  ;;  %v11413_v10 = vand.u32 4294901760, %v136_v36  ;;  %7925 = vmatpush1.bf16.msra.mxu1 %v7924_v41 }
  0x9d   :  { %v863_v63 = vand.u32 4294901760, %v862_v30  ;;  %v870_v33 = vand.u32 4294901760, %v869_v5  ;;  %v16640_v57 = vand.u32 4294901760, %v16639_v9  ;;  %v16642_v6 = vand.u32 4294901760, %v11391_v53  ;;  %7926 = vmatprep.subr.bf16.mxu1 %v16266_v4  ;;  %v16647_v9 = vld [vmem:[#allocation62_spill] sm:$0xff] }
  0x9e   :  { %16632 = vst [vmem:[#allocation241_spill] sm:$0xff] %v11403_v49  ;;  %593 = vmatmul.mubr.f32.gmra.mrb[30].mxu1 %v16633_v15  ;;  %16634 = vst [vmem:[#allocation242_spill] sm:$0xff] %v11411_v45  ;;  %v11419_v52 = vsub.f32 %v132_v28, %v11403_v49  ;;  %v16637_v15 = vld [vmem:[#allocation59_spill] sm:$0xff]  ;;  %v16643_v30 = vand.u32 4294901760, %v11394_v21  ;;  %v11438_v28 = vsub.f32 %v131_v7, %v11411_v45  ;;  %3529 = vmatmul.mubr.f32.gmra.mrb[30].mxu0 %v11233_v54  ;;  %v142_v7 = vld [vmem:[%s15190_s0 + $0x3c8] sm:$0xff] }
  0x9f   :  { %16635 = vst [vmem:[#allocation243_spill] sm:$0xff] %v11413_v10  ;;  %602 = vmatprep.mubr.f32.mxu1 %v601_v38  ;;  %v16638_v32 = vand.u32 4294901760, %v16637_v15  ;;  %v630_v38 = vsub.f32 %v11391_v53, %v16642_v6  ;;  %v7927_v5 = vpack.c.bf16 %v870_v33, %v863_v63  ;;  %v11447_v6 = vand.u32 4294901760, %v135_v19  ;;  %3535 = vmatprep.mubr.f32.mxu0 %v11285_v50 }
  0xa0   :  { %16636 = vst [vmem:[#allocation244_spill] sm:$0xff] %v11419_v52  ;;  %v636_v41 = vsub.f32 %v11394_v21, %v16643_v30  ;;  %16644 = vst [vmem:[#allocation60_spill] sm:$0xff] %v11438_v28  ;;  %v15660_v15 = vand.u32 4294901760, %v16647_v9  ;;  %v16648_v30 = vld [vmem:[#allocation64_spill] sm:$0xff]  ;;  %v11459_v33 = vand.u32 4294901760, %v138_v60 }
  0xa1   :  { %v11425_v16 = vpack.c.bf16 %v16640_v57, %v16638_v32  ;;  %v11441_v57 = vsub.f32 %v136_v36, %v11413_v10  ;;  %v137_v32 = vld [vmem:[%s15190_s0 + $0x3a0] sm:$0xff]  ;;  %16646 = vst [vmem:[#allocation246_spill] sm:$0xff] %v11447_v6  ;;  %v631_v45 = vand.u32 4294901760, %v630_v38  ;;  %7928 = vmatpush1.bf16.msra.mxu1 %v7927_v5  ;;  %v11462_v21 = vsub.f32 %v135_v19, %v11447_v6 }
  0xa2   :  { %v141_v36 = vld [vmem:[%s15190_s0 + $0x3c0] sm:$0xff]  ;;  %608 = vmatmul.mubr.f32.gmra.mrb[32].mxu1 %v607_v29  ;;  %v637_v49 = vand.u32 4294901760, %v636_v41  ;;  %16649 = vst [vmem:[#allocation247_spill] sm:$0xff] %v11459_v33  ;;  %v876_v53 = vsub.f32 %v16647_v9, %v15660_v15  ;;  %v16651_v10 = vand.u32 4294901760, %v16648_v30  ;;  %v11470_v50 = vand.u32 4294901760, %v137_v32  ;;  %7929 = vmatprep.subr.bf16.mxu1 %v16266_v4 }
  0xa3   :  { %16641 = vst [vmem:[#allocation59_spill] sm:$0xff] %v11425_v16  ;;  %16645 = vst [vmem:[#allocation245_spill] sm:$0xff] %v11441_v57  ;;  %v15659_v63 = vand.u32 4294901760, %v11441_v57  ;;  %617 = vmatprep.mubr.f32.mxu1 %v616_v20  ;;  %8318 = vmatpush1.bf16.msra.mxu0 %v11425_v16  ;;  %v11478_v20 = vsub.f32 %v138_v60, %v11459_v33  ;;  %v11480_v19 = vand.u32 4294901760, %v142_v7  ;;  %v11482_v41 = vand.u32 4294901760, %v141_v36  ;;  %v16659_v6 = vld [vmem:[#allocation67_spill] sm:$0xff] }
  0xa4   :  { %16650 = vst [vmem:[#allocation248_spill] sm:$0xff] %v11462_v21  ;;  %v883_v29 = vsub.f32 %v16648_v30, %v16651_v10  ;;  %16652 = vst [vmem:[#allocation249_spill] sm:$0xff] %v11470_v50  ;;  %v144_v10 = vld [vmem:[%s15190_s0 + $0x3d8] sm:$0xff]  ;;  %3538 = vmatmul.mubr.f32.gmra.mrb[32].mxu0 %v11305_v12  ;;  %v15679_v5 = vand.u32 4294901760, %v11462_v21  ;;  %8319 = vmatprep.subr.bf16.mxu0 %v16266_v4 }
  0xa5   :  { %v645_v38 = vsub.f32 %v11441_v57, %v15659_v63  ;;  %16653 = vst [vmem:[#allocation250_spill] sm:$0xff] %v11478_v20  ;;  %16654 = vst [vmem:[#allocation251_spill] sm:$0xff] %v11480_v19  ;;  %v877_v63 = vand.u32 4294901760, %v876_v53  ;;  %v11490_v57 = vsub.f32 %v137_v32, %v11470_v50  ;;  %3544 = vmatprep.mubr.f32.mxu0 %v11354_v11  ;;  %v143_v53 = vld [vmem:[%s15190_s0 + $0x3d0] sm:$0xff]  ;;  %v11508_v50 = vand.u32 4294901760, %v144_v10 }
  0xa6   :  { %16655 = vst [vmem:[#allocation252_spill] sm:$0xff] %v11482_v41  ;;  %v884_v15 = vand.u32 4294901760, %v883_v29  ;;  %623 = vmatmul.mubr.f32.gmra.mrb[34].mxu1 %v622_v37  ;;  %v11495_v33 = vsub.f32 %v142_v7, %v11480_v19  ;;  %v11498_v16 = vsub.f32 %v141_v36, %v11482_v41  ;;  %v651_v37 = vsub.f32 %v11462_v21, %v15679_v5  ;;  %v16660_v29 = vld [vmem:[#allocation70_spill] sm:$0xff]  ;;  %v16663_v19 = vld [vmem:[#allocation65_spill] sm:$0xff]  ;;  %v16665_v5 = vld [vmem:[#allocation68_spill] sm:$0xff] }
  0xa7   :  { %16656 = vst [vmem:[#allocation253_spill] sm:$0xff] %v11490_v57  ;;  %v646_v60 = vand.u32 4294901760, %v645_v38  ;;  %632 = vmatprep.mubr.f32.mxu1 %v631_v45  ;;  %16661 = vst [vmem:[#allocation256_spill] sm:$0xff] %v11508_v50  ;;  %v148_v7 = vld [vmem:[%s15190_s0 + $0x3f8] sm:$0xff]  ;;  %v16662_v41 = vand.u32 4294901760, %v16659_v6  ;;  %v16664_v11 = vand.u32 4294901760, %v16663_v19 }
  0xa8   :  { %16657 = vst [vmem:[#allocation254_spill] sm:$0xff] %v11495_v33  ;;  %16658 = vst [vmem:[#allocation255_spill] sm:$0xff] %v11498_v16  ;;  %v7930_v32 = vpack.c.bf16 %v884_v15, %v877_v63  ;;  %v16666_v15 = vand.u32 4294901760, %v16665_v5  ;;  %v147_v38 = vld [vmem:[%s15190_s0 + $0x3f0] sm:$0xff]  ;;  %3547 = vmatmul.mubr.f32.gmra.mrb[34].mxu0 %v11378_v43  ;;  %v652_v21 = vand.u32 4294901760, %v651_v37  ;;  %v16668_v12 = vand.u32 4294901760, %v16660_v29 }
  0xa9   :  { %v890_v45 = vsub.f32 %v16659_v6, %v16662_v41  ;;  %v11532_v41 = vsub.f32 %v144_v10, %v11508_v50  ;;  %v11534_v19 = vand.u32 4294901760, %v143_v53  ;;  %3553 = vmatprep.mubr.f32.mxu0 %v11419_v52  ;;  %v11543_v43 = vand.u32 4294901760, %v148_v7 }
  0xaa   :  { %v11522_v63 = vpack.c.bf16 %v16666_v15, %v16664_v11  ;;  %7931 = vmatpush1.bf16.msra.mxu1 %v7930_v32  ;;  %v897_v36 = vsub.f32 %v16660_v29, %v16668_v12  ;;  %v16671_v11 = vand.u32 4294901760, %v11495_v33  ;;  %v16672_v15 = vand.u32 4294901760, %v11498_v16  ;;  %v150_v12 = vld [vmem:[%s15190_s0 + $0x408] sm:$0xff] }
  0xab   :  { %16669 = vst [vmem:[#allocation68_spill] sm:$0xff] %v11532_v41  ;;  %16670 = vst [vmem:[#allocation257_spill] sm:$0xff] %v11534_v19  ;;  %638 = vmatmul.mubr.f32.gmra.mrb[36].mxu1 %v637_v49  ;;  %v891_v32 = vand.u32 4294901760, %v890_v45  ;;  %7932 = vmatprep.subr.bf16.mxu1 %v16266_v4  ;;  %v11550_v10 = vsub.f32 %v143_v53, %v11534_v19  ;;  %v11552_v50 = vand.u32 4294901760, %v147_v38  ;;  %v149_v45 = vld [vmem:[%s15190_s0 + $0x400] sm:$0xff]  ;;  %v16678_v53 = vld [vmem:[#allocation78_spill] sm:$0xff] }
  0xac   :  { %16667 = vst [vmem:[#allocation65_spill] sm:$0xff] %v11522_v63  ;;  %v660_v5 = vsub.f32 %v11495_v33, %v16671_v11  ;;  %v666_v37 = vsub.f32 %v11498_v16, %v16672_v15  ;;  %16673 = vst [vmem:[#allocation258_spill] sm:$0xff] %v11543_v43  ;;  %647 = vmatprep.mubr.f32.mxu1 %v646_v60  ;;  %v898_v49 = vand.u32 4294901760, %v897_v36  ;;  %v16676_v11 = vld [vmem:[#allocation76_spill] sm:$0xff]  ;;  %8321 = vmatpush1.bf16.msra.mxu0 %v11522_v63 }
  0xad   :  { %16674 = vst [vmem:[#allocation259_spill] sm:$0xff] %v11550_v10  ;;  %16675 = vst [vmem:[#allocation260_spill] sm:$0xff] %v11552_v50  ;;  %v154_v15 = vld [vmem:[%s15190_s0 + $0x428] sm:$0xff]  ;;  %v11563_v36 = vsub.f32 %v148_v7, %v11543_v43  ;;  %v15702_v19 = vand.u32 4294901760, %v16678_v53  ;;  %3556 = vmatmul.mubr.f32.gmra.mrb[36].mxu0 %v11438_v28  ;;  %v11568_v52 = vsub.f32 %v147_v38, %v11552_v50  ;;  %v16680_v54 = vand.u32 4294901760, %v16676_v11  ;;  %v16685_v7 = vld [vmem:[#allocation71_spill] sm:$0xff] }
  0xae   :  { %v661_v16 = vand.u32 4294901760, %v660_v5  ;;  %v667_v60 = vand.u32 4294901760, %v666_v37  ;;  %v7933_v33 = vpack.c.bf16 %v898_v49, %v891_v32  ;;  %v11573_v47 = vand.u32 4294901760, %v150_v12  ;;  %8322 = vmatprep.subr.bf16.mxu0 %v16266_v4  ;;  %3562 = vmatprep.mubr.f32.mxu0 %v11478_v20  ;;  %v16687_v50 = vld [vmem:[#allocation72_spill] sm:$0xff]  ;;  %v156_v20 = vld [vmem:[%s15190_s0 + $0x438] sm:$0xff] }
  0xaf   :  { %16677 = vst [vmem:[#allocation261_spill] sm:$0xff] %v11563_v36  ;;  %16679 = vst [vmem:[#allocation262_spill] sm:$0xff] %v11568_v52  ;;  %v904_v22 = vsub.f32 %v16676_v11, %v16680_v54  ;;  %653 = vmatmul.mubr.f32.gmra.mrb[38].mxu1 %v652_v21  ;;  %v911_v5 = vsub.f32 %v16678_v53, %v15702_v19  ;;  %v11581_v37 = vand.u32 4294901760, %v149_v45  ;;  %v11583_v38 = vand.u32 4294901760, %v154_v15  ;;  %v153_v54 = vld [vmem:[%s15190_s0 + $0x420] sm:$0xff] }
  0xb0   :  { %16681 = vst [vmem:[#allocation263_spill] sm:$0xff] %v11573_v47  ;;  %662 = vmatprep.mubr.f32.mxu1 %v661_v16  ;;  %7934 = vmatpush1.bf16.msra.mxu1 %v7933_v33  ;;  %v15713_v21 = vand.u32 4294901760, %v11568_v52  ;;  %v11590_v49 = vsub.f32 %v150_v12, %v11573_v47  ;;  %v16686_v63 = vand.u32 4294901760, %v16685_v7  ;;  %v16688_v19 = vand.u32 4294901760, %v16687_v50  ;;  %v159_v47 = vld [vmem:[%s15190_s0 + $0x450] sm:$0xff] }
  0xb1   :  { %16682 = vst [vmem:[#allocation264_spill] sm:$0xff] %v11581_v37  ;;  %16683 = vst [vmem:[#allocation265_spill] sm:$0xff] %v11583_v38  ;;  %v905_v32 = vand.u32 4294901760, %v904_v22  ;;  %v16690_v28 = vand.u32 4294901760, %v11563_v36  ;;  %7935 = vmatprep.subr.bf16.mxu1 %v16266_v4  ;;  %v912_v22 = vand.u32 4294901760, %v911_v5  ;;  %v11606_v33 = vsub.f32 %v149_v45, %v11581_v37  ;;  %3565 = vmatmul.mubr.f32.gmra.mrb[38].mxu0 %v11490_v57  ;;  %v155_v45 = vld [vmem:[%s15190_s0 + $0x430] sm:$0xff] }
  0xb2   :  { %16684 = vst [vmem:[#allocation266_spill] sm:$0xff] %v11590_v49  ;;  %v11596_v43 = vpack.c.bf16 %v16688_v19, %v16686_v63  ;;  %v11609_v12 = vsub.f32 %v154_v15, %v11583_v38  ;;  %v681_v50 = vsub.f32 %v11568_v52, %v15713_v21  ;;  %v11615_v63 = vand.u32 4294901760, %v153_v54  ;;  %v16694_v19 = vld [vmem:[#allocation81_spill] sm:$0xff]  ;;  %v160_v15 = vld [vmem:[%s15190_s0 + $0x458] sm:$0xff]  ;;  %3571 = vmatprep.mubr.f32.mxu0 %v11532_v41 }
  0xb3   :  { %v675_v16 = vsub.f32 %v11563_v36, %v16690_v28  ;;  %16691 = vst [vmem:[#allocation72_spill] sm:$0xff] %v11606_v33  ;;  %v16695_v28 = vld [vmem:[#allocation85_spill] sm:$0xff]  ;;  %668 = vmatmul.mubr.f32.gmra.mrb[40].mxu1 %v667_v60  ;;  %v7936_v37 = vpack.c.bf16 %v912_v22, %v905_v32  ;;  %v11627_v52 = vand.u32 4294901760, %v156_v20  ;;  %v16698_v60 = vand.u32 4294901760, %v16694_v19  ;;  %v16711_v41 = vld [vmem:[#allocation82_spill] sm:$0xff] }
  0xb4   :  { %16689 = vst [vmem:[#allocation71_spill] sm:$0xff] %v11596_v43  ;;  %16692 = vst [vmem:[#allocation267_spill] sm:$0xff] %v11609_v12  ;;  %v15722_v21 = vand.u32 4294901760, %v11609_v12  ;;  %v682_v7 = vand.u32 4294901760, %v681_v50  ;;  %8324 = vmatpush1.bf16.msra.mxu0 %v11596_v43  ;;  %v11634_v36 = vsub.f32 %v153_v54, %v11615_v63  ;;  %v16699_v32 = vand.u32 4294901760, %v16695_v28 }
  0xb5   :  { %16693 = vst [vmem:[#allocation268_spill] sm:$0xff] %v11615_v63  ;;  %v676_v5 = vand.u32 4294901760, %v675_v16  ;;  %16696 = vst [vmem:[#allocation269_spill] sm:$0xff] %v11627_v52  ;;  %v918_v38 = vsub.f32 %v16694_v19, %v16698_v60  ;;  %7937 = vmatpush1.bf16.msra.mxu1 %v7936_v37  ;;  %v11646_v50 = vsub.f32 %v156_v20, %v11627_v52  ;;  %v11648_v43 = vand.u32 4294901760, %v155_v45  ;;  %v16706_v60 = vld [vmem:[#allocation88_spill] sm:$0xff] }
  0xb6   :  { %16697 = vst [vmem:[#allocation270_spill] sm:$0xff] %v11634_v36  ;;  %v925_v16 = vsub.f32 %v16695_v28, %v16699_v32  ;;  %v690_v22 = vsub.f32 %v11609_v12, %v15722_v21  ;;  %v11650_v54 = vand.u32 4294901760, %v160_v15  ;;  %3574 = vmatmul.mubr.f32.gmra.mrb[40].mxu0 %v11550_v10  ;;  %7938 = vmatprep.subr.bf16.mxu1 %v16266_v4  ;;  %v11655_v37 = vand.u32 4294901760, %v159_v47  ;;  %v162_v21 = vld [vmem:[%s15190_s0 + $0x468] sm:$0xff] }
  0xb7   :  { %677 = vmatprep.mubr.f32.mxu1 %v676_v5  ;;  %16700 = vst [vmem:[#allocation271_spill] sm:$0xff] %v11646_v50  ;;  %16701 = vst [vmem:[#allocation272_spill] sm:$0xff] %v11648_v43  ;;  %v919_v32 = vand.u32 4294901760, %v918_v38  ;;  %3580 = vmatprep.mubr.f32.mxu0 %v11590_v49  ;;  %v11662_v52 = vsub.f32 %v155_v45, %v11648_v43  ;;  %v15744_v63 = vand.u32 4294901760, %v16706_v60  ;;  %v161_v38 = vld [vmem:[%s15190_s0 + $0x460] sm:$0xff]  ;;  %v16709_v45 = vld [vmem:[#allocation89_spill] sm:$0xff] }
  0xb8   :  { %16702 = vst [vmem:[#allocation273_spill] sm:$0xff] %v11650_v54  ;;  %v926_v5 = vand.u32 4294901760, %v925_v16  ;;  %16703 = vst [vmem:[#allocation274_spill] sm:$0xff] %v11655_v37  ;;  %683 = vmatmul.mubr.f32.gmra.mrb[42].mxu1 %v682_v7  ;;  %v691_v20 = vand.u32 4294901760, %v690_v22  ;;  %v11665_v12 = vsub.f32 %v160_v15, %v11650_v54  ;;  %v16707_v16 = vand.u32 4294901760, %v11634_v36  ;;  %8325 = vmatprep.subr.bf16.mxu0 %v16266_v4 }
  0xb9   :  { %16704 = vst [vmem:[#allocation275_spill] sm:$0xff] %v11662_v52  ;;  %v11675_v49 = vsub.f32 %v159_v47, %v11655_v37  ;;  %v15743_v22 = vand.u32 4294901760, %v16709_v45  ;;  %v932_v43 = vsub.f32 %v16706_v60, %v15744_v63  ;;  %v11683_v54 = vand.u32 4294901760, %v162_v21 }
  0xba   :  { %16705 = vst [vmem:[#allocation276_spill] sm:$0xff] %v11665_v12  ;;  %v696_v10 = vsub.f32 %v11634_v36, %v16707_v16  ;;  %v7939_v7 = vpack.c.bf16 %v926_v5, %v919_v32  ;;  %692 = vmatprep.mubr.f32.mxu1 %v691_v20  ;;  %v16712_v57 = vand.u32 4294901760, %v16711_v41  ;;  %v16713_v16 = vld [vmem:[#allocation83_spill] sm:$0xff]  ;;  %3583 = vmatmul.mubr.f32.gmra.mrb[42].mxu0 %v11606_v33  ;;  %v11696_v36 = vand.u32 4294901760, %v161_v38 }
  0xbb   :  { %16708 = vst [vmem:[#allocation277_spill] sm:$0xff] %v11675_v49  ;;  %16710 = vst [vmem:[#allocation278_spill] sm:$0xff] %v11683_v54  ;;  %v16714_v32 = vand.u32 4294901760, %v16713_v16  ;;  %v15747_v20 = vand.u32 4294901760, %v11675_v49  ;;  %v939_v15 = vsub.f32 %v16709_v45, %v15743_v22  ;;  %3589 = vmatprep.mubr.f32.mxu0 %v11646_v50  ;;  %v16717_v41 = vand.u32 4294901760, %v11665_v12 }
  0xbc   :  { %v697_v47 = vand.u32 4294901760, %v696_v10  ;;  %7940 = vmatpush1.bf16.msra.mxu1 %v7939_v7  ;;  %16716 = vst [vmem:[#allocation83_spill] sm:$0xff] %v11696_v36  ;;  %v11704_v10 = vsub.f32 %v162_v21, %v11683_v54  ;;  %v16720_v21 = vld [vmem:[#allocation101_spill] sm:$0xff]  ;;  %v16721_v54 = vld [vmem:[#allocation6_spill] sm:$0xff] }
  0xbd   :  { %v11689_v5 = vpack.c.bf16 %v16714_v32, %v16712_v57  ;;  %v705_v16 = vsub.f32 %v11665_v12, %v16717_v41  ;;  %7941 = vmatprep.subr.bf16.mxu1 %v16266_v4  ;;  %v933_v57 = vand.u32 4294901760, %v932_v43  ;;  %v711_v7 = vsub.f32 %v11675_v49, %v15747_v20 }
  0xbe   :  { %16718 = vst [vmem:[#allocation279_spill] sm:$0xff] %v11704_v10  ;;  %698 = vmatmul.mubr.f32.gmra.mrb[44].mxu1 %v697_v47  ;;  %v940_v32 = vand.u32 4294901760, %v939_v15  ;;  %3592 = vmatmul.mubr.f32.gmra.mrb[44].mxu0 %v11662_v52  ;;  %v11713_v43 = vsub.f32 %v161_v38, %v11696_v36  ;;  %v15752_v47 = vand.u32 4294901760, %v16720_v21  ;;  %v15755_v20 = vand.u32 4294901760, %v16721_v54  ;;  %v16722_v15 = vld [vmem:[#allocation7_spill] sm:$0xff]  ;;  %v16729_v21 = vld [vmem:[#allocation12_spill] sm:$0xff] }
  0xbf   :  { %16715 = vst [vmem:[#allocation82_spill] sm:$0xff] %v11689_v5  ;;  %8327 = vmatpush1.bf16.msra.mxu0 %v11689_v5  ;;  %v706_v22 = vand.u32 4294901760, %v705_v16  ;;  %v712_v41 = vand.u32 4294901760, %v711_v7  ;;  %3598 = vmatprep.mubr.f32.mxu0 %v11704_v10  ;;  %v15754_v49 = vand.u32 4294901760, %v16722_v15  ;;  %v16723_v16 = vld [vmem:[#allocation91_spill] sm:$0xff]  ;;  %v16725_v7 = vld [vmem:[#allocation10_spill] sm:$0xff]  ;;  %v7945_v12 = vpack.c.bf16 %v9658_v18, %v9656_v17 }
  0xc0   :  { %8328 = vmatprep.subr.bf16.mxu0 %v16266_v4  ;;  %v7942_v63 = vpack.c.bf16 %v940_v32, %v933_v57  ;;  %16719 = vst [vmem:[#allocation280_spill] sm:$0xff] %v11713_v43  ;;  %v16724_v57 = vld [vmem:[#allocation9_spill] sm:$0xff]  ;;  %v15761_v32 = vand.u32 4294901760, %v16725_v7  ;;  %v16731_v54 = vld [vmem:[#allocation104_spill] sm:$0xff]  ;;  %v16734_v7 = vld [vmem:[#allocation14_spill] sm:$0xff] }
  0xc1   :  { %707 = vmatprep.mubr.f32.mxu1 %v706_v22  ;;  %v8329_v38 = vpack.c.bf16 %v15754_v49, %v15755_v20  ;;  %v15760_v22 = vand.u32 4294901760, %v10335_v39  ;;  %v7948_v49 = vpack.c.bf16 %v9687_v26, %v9685_v25  ;;  %v15769_v20 = vand.u32 4294901760, %v10387_v40  ;;  %v16743_v40 = vld [vmem:[#allocation120_spill] sm:$0xff] }
  0xc2   :  { %713 = vmatmul.mubr.f32.gmra.mrb[46].mxu1 %v712_v41  ;;  %3601 = vmatmul.mubr.f32.gmra.mrb[46].mxu0 %v11713_v43  ;;  %v16726_v41 = vld [vmem:[#allocation92_spill] sm:$0xff] }
  0xc3   :  { %7943 = vmatpush1.bf16.msra.mxu1 %v7942_v63  ;;  %943 = vmatprep.mubr.f32.mxu1 %v16723_v16  ;;  %v15762_v63 = vand.u32 4294901760, %v16724_v57  ;;  %v16727_v16 = vld [vmem:[#allocation94_spill] sm:$0xff]  ;;  %v16739_v57 = vand.u32 4294901760, %v10437_v3  ;;  %v16751_v3 = vld [vmem:[#allocation131_spill] sm:$0xff] }
  0xc4   :  { %7944 = vmatprep.subr.bf16.mxu1 %v16266_v4  ;;  %3705 = vmatprep.mubr.f32.mxu0 %v15752_v47  ;;  %v16728_v47 = vand.u32 4294901760, %v10312_v35  ;;  %v15771_v35 = vand.u32 4294901760, %v16729_v21  ;;  %v16742_v21 = vld [vmem:[#allocation20_spill] sm:$0xff] }
  0xc5   :  { %v8332_v15 = vpack.c.bf16 %v15761_v32, %v15762_v63  ;;  %v7951_v32 = vpack.c.bf16 %v9730_v44, %v9725_v42  ;;  %v16752_v63 = vld [vmem:[#allocation134_spill] sm:$0xff] }
  0xc6   :  { %945 = vmatmul.mubr.f32.vlgmr.msra.gmra.mrb[0].mxu1 %v16726_v41  ;;  %3709 = vmatmul.mubr.f32.vlgmr.msra.gmra.mrb[0].mxu0 %v16728_v47  ;;  %v16730_v47 = vld [vmem:[#allocation13_spill] sm:$0xff]  ;;  %v16906_v41 = vld [vmem:[#allocation268_spill] sm:$0xff] }
  0xc7   :  { %950 = vmatprep.mubr.f32.mxu1 %v16727_v16  ;;  %7946 = vmatpush1.bf16.msra.mxu1 %v7945_v12  ;;  %v15770_v16 = vand.u32 4294901760, %v16730_v47  ;;  %v16732_v12 = vld [vmem:[#allocation109_spill] sm:$0xff]  ;;  %v16741_v47 = vld [vmem:[#allocation19_spill] sm:$0xff] }
  0xc8   :  { %8330 = vmatpush1.bf16.msra.mxu0 %v8329_v38  ;;  %3716 = vmatprep.mubr.f32.mxu0 %v15760_v22  ;;  %v16733_v38 = vand.u32 4294901760, %v10360_v48  ;;  %v15778_v48 = vand.u32 4294901760, %v16734_v7  ;;  %v16736_v22 = vld [vmem:[#allocation112_spill] sm:$0xff] }
  0xc9   :  { %8331 = vmatprep.subr.bf16.mxu0 %v16266_v4  ;;  %7947 = vmatprep.subr.bf16.mxu1 %v16266_v4  ;;  %v8335_v39 = vpack.c.bf16 %v15770_v16, %v15771_v35  ;;  %v7954_v16 = vpack.c.bf16 %v9767_v56, %v9754_v51  ;;  %v16744_v35 = vld [vmem:[#allocation127_spill] sm:$0xff]  ;;  %v16750_v7 = vld [vmem:[#allocation28_spill] sm:$0xff] }
  0xca   :  { %952 = vmatmul.mubr.f32.gmra.mrb[2].mxu1 %v16731_v54  ;;  %3720 = vmatmul.mubr.f32.gmra.mrb[2].mxu0 %v16733_v38  ;;  %v16735_v38 = vld [vmem:[#allocation15_spill] sm:$0xff] }
  0xcb   :  { %957 = vmatprep.mubr.f32.mxu1 %v16732_v12  ;;  %7949 = vmatpush1.bf16.msra.mxu1 %v7948_v49  ;;  %v16737_v49 = vld [vmem:[#allocation119_spill] sm:$0xff] }
  0xcc   :  { %3727 = vmatprep.mubr.f32.mxu0 %v15769_v20  ;;  %8333 = vmatpush1.bf16.msra.mxu0 %v8332_v15  ;;  %v16738_v15 = vand.u32 4294901760, %v10413_v61  ;;  %v16740_v61 = vand.u32 4294901760, %v16735_v38  ;;  %v16746_v20 = vand.u32 4294901760, %v10497_v14  ;;  %v16749_v38 = vld [vmem:[#allocation27_spill] sm:$0xff]  ;;  %v16757_v14 = vld [vmem:[#allocation32_spill] sm:$0xff] }
  0xcd   :  { %8334 = vmatprep.subr.bf16.mxu0 %v16266_v4  ;;  %7950 = vmatprep.subr.bf16.mxu1 %v16266_v4 }
  0xce   :  { %959 = vmatmul.mubr.f32.gmra.mrb[4].mxu1 %v16736_v22  ;;  %3731 = vmatmul.mubr.f32.gmra.mrb[4].mxu0 %v16738_v15  ;;  %v8338_v15 = vpack.c.bf16 %v16740_v61, %v15778_v48  ;;  %v16745_v61 = vand.u32 4294901760, %v10450_v59  ;;  %v16748_v59 = vand.u32 4294901760, %v16742_v21  ;;  %v16758_v21 = vld [vmem:[#allocation33_spill] sm:$0xff]  ;;  %v16760_v48 = vld [vmem:[#allocation144_spill] sm:$0xff] }
  0xcf   :  { %964 = vmatprep.mubr.f32.mxu1 %v16737_v49  ;;  %7952 = vmatpush1.bf16.msra.mxu1 %v7951_v32  ;;  %v7957_v32 = vpack.c.bf16 %v16515_v27, %v16514_v13 }
  0xd0   :  { %3738 = vmatprep.mubr.f32.mxu0 %v16739_v57  ;;  %8336 = vmatpush1.bf16.msra.mxu0 %v8335_v39  ;;  %v16747_v39 = vand.u32 4294901760, %v16741_v47  ;;  %v16754_v57 = vand.u32 4294901760, %v10560_v55  ;;  %v16759_v47 = vld [vmem:[#allocation137_spill] sm:$0xff]  ;;  %v16767_v55 = vand.u32 4294901760, %v16757_v14 }
  0xd1   :  { %8337 = vmatprep.subr.bf16.mxu0 %v16266_v4  ;;  %7953 = vmatprep.subr.bf16.mxu1 %v16266_v4 }
  0xd2   :  { %966 = vmatmul.mubr.f32.gmra.mrb[6].mxu1 %v16743_v40  ;;  %3742 = vmatmul.mubr.f32.gmra.mrb[6].mxu0 %v16745_v61  ;;  %v8341_v61 = vpack.c.bf16 %v16748_v59, %v16747_v39  ;;  %v16753_v59 = vand.u32 4294901760, %v10510_v62  ;;  %v16756_v62 = vand.u32 4294901760, %v16750_v7  ;;  %v16765_v7 = vand.u32 4294901760, %v10617_v31 }
  0xd3   :  { %971 = vmatprep.mubr.f32.mxu1 %v16744_v35  ;;  %7955 = vmatpush1.bf16.msra.mxu1 %v7954_v16  ;;  %v7960_v16 = vpack.c.bf16 %v16535_v23, %v16534_v2  ;;  %v16781_v35 = vld [vmem:[#allocation47_spill] sm:$0xff] }
  0xd4   :  { %3749 = vmatprep.mubr.f32.mxu0 %v16746_v20  ;;  %8339 = vmatpush1.bf16.msra.mxu0 %v8338_v15  ;;  %v16755_v20 = vand.u32 4294901760, %v16749_v38  ;;  %v16764_v15 = vld [vmem:[#allocation29_spill] sm:$0xff]  ;;  %v16789_v40 = vand.u32 4294901760, %v16781_v35 }
  0xd5   :  { %8340 = vmatprep.subr.bf16.mxu0 %v16266_v4  ;;  %7956 = vmatprep.subr.bf16.mxu1 %v16266_v4  ;;  %v16783_v38 = vld [vmem:[#allocation157_spill] sm:$0xff] }
  0xd6   :  { %973 = vmatmul.mubr.f32.gmra.mrb[8].mxu1 %v16751_v3  ;;  %3753 = vmatmul.mubr.f32.gmra.mrb[8].mxu0 %v16753_v59  ;;  %v8344_v59 = vpack.c.bf16 %v16756_v62, %v16755_v20  ;;  %v16763_v20 = vld [vmem:[#allocation25_spill] sm:$0xff]  ;;  %v16771_v62 = vld [vmem:[#allocation148_spill] sm:$0xff] }
  0xd7   :  { %978 = vmatprep.mubr.f32.mxu1 %v16752_v63  ;;  %7958 = vmatpush1.bf16.msra.mxu1 %v7957_v32  ;;  %v7963_v39 = vpack.c.bf16 %v16764_v15, %v16763_v20  ;;  %v16766_v32 = vld [vmem:[#allocation163_spill] sm:$0xff]  ;;  %v16769_v63 = vld [vmem:[#allocation37_spill] sm:$0xff] }
  0xd8   :  { %3760 = vmatprep.mubr.f32.mxu0 %v16754_v57  ;;  %8342 = vmatpush1.bf16.msra.mxu0 %v8341_v61  ;;  %v16761_v57 = vand.u32 4294901760, %v16504_v58  ;;  %v16762_v61 = vld [vmem:[#allocation154_spill] sm:$0xff]  ;;  %v16777_v58 = vand.u32 4294901760, %v16766_v32  ;;  %v16778_v3 = vld [vmem:[#allocation169_spill] sm:$0xff]  ;;  %v16779_v31 = vand.u32 4294901760, %v16769_v63  ;;  %v16791_v63 = vld [vmem:[#allocation52_spill] sm:$0xff] }
  0xd9   :  { %8343 = vmatprep.subr.bf16.mxu0 %v16266_v4  ;;  %7959 = vmatprep.subr.bf16.mxu1 %v16266_v4  ;;  %v16798_v35 = vld [vmem:[#allocation57_spill] sm:$0xff] }
  0xda   :  { %980 = vmatmul.mubr.f32.gmra.mrb[10].mxu1 %v16759_v47  ;;  %3764 = vmatmul.mubr.f32.gmra.mrb[10].mxu0 %v16761_v57  ;;  %v16770_v57 = vld [vmem:[#allocation38_spill] sm:$0xff] }
  0xdb   :  { %985 = vmatprep.mubr.f32.mxu1 %v16760_v48  ;;  %7961 = vmatpush1.bf16.msra.mxu1 %v7960_v16  ;;  %v16768_v48 = vand.u32 4294901760, %v16758_v21  ;;  %v16772_v16 = vld [vmem:[#allocation152_spill] sm:$0xff]  ;;  %v16775_v21 = vld [vmem:[#allocation34_spill] sm:$0xff] }
  0xdc   :  { %3771 = vmatprep.mubr.f32.mxu0 %v16765_v7  ;;  %8345 = vmatpush1.bf16.msra.mxu0 %v8344_v59  ;;  %v16773_v7 = vand.u32 4294901760, %v16762_v61  ;;  %v16774_v59 = vld [vmem:[#allocation164_spill] sm:$0xff] }
  0xdd   :  { %v8347_v47 = vpack.c.bf16 %v16768_v48, %v16767_v55  ;;  %8346 = vmatprep.subr.bf16.mxu0 %v16266_v4  ;;  %7962 = vmatprep.subr.bf16.mxu1 %v16266_v4  ;;  %v16776_v48 = vld [vmem:[#allocation35_spill] sm:$0xff] }
  0xde   :  { %987 = vmatmul.mubr.f32.gmra.mrb[12].mxu1 %v16771_v62  ;;  %3775 = vmatmul.mubr.f32.gmra.mrb[12].mxu0 %v16773_v7  ;;  %v7966_v55 = vpack.c.bf16 %v16776_v48, %v16775_v21  ;;  %v16782_v7 = vld [vmem:[#allocation50_spill] sm:$0xff]  ;;  %v16961_v48 = vld [vmem:[#allocation143_spill] sm:$0xff]  ;;  %v16962_v21 = vld [vmem:[#allocation149_spill] sm:$0xff] }
  0xdf   :  { %992 = vmatprep.mubr.f32.mxu1 %v16772_v16  ;;  %7964 = vmatpush1.bf16.msra.mxu1 %v7963_v39  ;;  %v16780_v16 = vand.u32 4294901760, %v16770_v57  ;;  %v16784_v39 = vld [vmem:[#allocation160_spill] sm:$0xff]  ;;  %v16790_v32 = vand.u32 4294901760, %v16782_v7 }
  0xe0   :  { %3782 = vmatprep.mubr.f32.mxu0 %v16777_v58  ;;  %8348 = vmatpush1.bf16.msra.mxu0 %v8347_v47  ;;  %v16785_v58 = vand.u32 4294901760, %v16774_v59  ;;  %v16786_v47 = vld [vmem:[#allocation173_spill] sm:$0xff] }
  0xe1   :  { %v8350_v62 = vpack.c.bf16 %v16780_v16, %v16779_v31  ;;  %8349 = vmatprep.subr.bf16.mxu0 %v16266_v4  ;;  %7965 = vmatprep.subr.bf16.mxu1 %v16266_v4  ;;  %v15808_v14 = vand.u32 4294901760, %v16786_v47  ;;  %v16787_v31 = vand.u32 4294901760, %v16778_v3  ;;  %v16788_v16 = vld [vmem:[#allocation179_spill] sm:$0xff]  ;;  %v8353_v57 = vpack.c.bf16 %v16790_v32, %v16789_v40  ;;  %v16793_v59 = vld [vmem:[#allocation161_spill] sm:$0xff]  ;;  %v16797_v32 = vld [vmem:[#allocation186_spill] sm:$0xff] }
  0xe2   :  { %994 = vmatmul.mubr.f32.gmra.mrb[14].mxu1 %v16783_v38  ;;  %3786 = vmatmul.mubr.f32.gmra.mrb[14].mxu0 %v16785_v58  ;;  %v15810_v61 = vand.u32 4294901760, %v16788_v16  ;;  %v16792_v38 = vld [vmem:[#allocation53_spill] sm:$0xff]  ;;  %v16796_v40 = vpack.c.bf16 %v16593_v0, %v16592_v8  ;;  %v16800_v58 = vld [vmem:[#allocation172_spill] sm:$0xff]  ;;  %v16806_v3 = vld [vmem:[#allocation195_spill] sm:$0xff] }
  0xe3   :  { %999 = vmatprep.mubr.f32.mxu1 %v16784_v39  ;;  %7967 = vmatpush1.bf16.msra.mxu1 %v7966_v55  ;;  %v15812_v39 = vand.u32 4294901760, %v16791_v63  ;;  %v15811_v49 = vand.u32 4294901760, %v16792_v38  ;;  %v16794_v55 = vld [vmem:[#allocation171_spill] sm:$0xff]  ;;  %v16807_v38 = vand.u32 4294901760, %v16798_v35  ;;  %v16822_v47 = vld [vmem:[#allocation189_spill] sm:$0xff]  ;;  %v16956_v0 = vld [vmem:[#allocation140_spill] sm:$0xff] }
  0xe4   :  { %3793 = vmatprep.mubr.f32.mxu0 %v16787_v31  ;;  %8351 = vmatpush1.bf16.msra.mxu0 %v8350_v62  ;;  %v16795_v62 = vld [vmem:[#allocation180_spill] sm:$0xff]  ;;  %v16811_v31 = vld [vmem:[#allocation183_spill] sm:$0xff] }
  0xe5   :  { %8352 = vmatprep.subr.bf16.mxu0 %v16266_v4  ;;  %7968 = vmatprep.subr.bf16.mxu1 %v16266_v4  ;;  %v8356_v7 = vpack.c.bf16 %v15811_v49, %v15812_v39  ;;  %v16804_v49 = vpack.c.bf16 %v16611_v46, %v16605_v1  ;;  %v16805_v39 = vand.u32 4294901760, %v16797_v32  ;;  %v16950_v46 = vld [vmem:[#allocation23_spill] sm:$0xff]  ;;  %v16951_v1 = vld [vmem:[#allocation133_spill] sm:$0xff] }
  0xe6   :  { %1001 = vmatmul.mubr.f32.gmra.mrb[16].mxu1 %v16793_v59  ;;  %3797 = vmatmul.mubr.f32.gmra.mrb[16].mxu0 %v15808_v14  ;;  %v16799_v14 = vld [vmem:[#allocation58_spill] sm:$0xff]  ;;  %v16957_v8 = vld [vmem:[#allocation147_spill] sm:$0xff] }
  0xe7   :  { %1006 = vmatprep.mubr.f32.mxu1 %v16794_v55  ;;  %7970 = vmatpush1.bf16.msra.mxu1 %v16796_v40  ;;  %v16801_v40 = vld [vmem:[#allocation178_spill] sm:$0xff]  ;;  %v16808_v63 = vand.u32 4294901760, %v16799_v14 }
  0xe8   :  { %3804 = vmatprep.mubr.f32.mxu0 %v15810_v61  ;;  %8354 = vmatpush1.bf16.msra.mxu0 %v8353_v57  ;;  %v16802_v61 = vand.u32 4294901760, %v16795_v62  ;;  %v16803_v57 = vld [vmem:[#allocation190_spill] sm:$0xff] }
  0xe9   :  { %8355 = vmatprep.subr.bf16.mxu0 %v16266_v4  ;;  %7971 = vmatprep.subr.bf16.mxu1 %v16266_v4  ;;  %v8359_v16 = vpack.c.bf16 %v16808_v63, %v16807_v38  ;;  %v16815_v63 = vpack.c.bf16 %v16628_v24, %v16627_v34  ;;  %v16816_v38 = vand.u32 4294901760, %v16806_v3  ;;  %v16833_v62 = vld [vmem:[#allocation198_spill] sm:$0xff]  ;;  %v16948_v24 = vld [vmem:[#allocation135_spill] sm:$0xff] }
  0xea   :  { %1008 = vmatmul.mubr.f32.gmra.mrb[18].mxu1 %v16800_v58  ;;  %3808 = vmatmul.mubr.f32.gmra.mrb[18].mxu0 %v16802_v61  ;;  %v16810_v61 = vld [vmem:[#allocation73_spill] sm:$0xff]  ;;  %v16889_v59 = vld [vmem:[#allocation246_spill] sm:$0xff]  ;;  %v16949_v34 = vld [vmem:[#allocation139_spill] sm:$0xff] }
  0xeb   :  { %1013 = vmatprep.mubr.f32.mxu1 %v16801_v40  ;;  %7973 = vmatpush1.bf16.msra.mxu1 %v16804_v49  ;;  %v16809_v40 = vld [vmem:[#allocation69_spill] sm:$0xff]  ;;  %v16812_v49 = vld [vmem:[#allocation188_spill] sm:$0xff]  ;;  %v16819_v14 = vand.u32 4294901760, %v16810_v61 }
  0xec   :  { %3815 = vmatprep.mubr.f32.mxu0 %v16805_v39  ;;  %8357 = vmatpush1.bf16.msra.mxu0 %v8356_v7  ;;  %v16813_v39 = vand.u32 4294901760, %v16803_v57  ;;  %v16814_v7 = vld [vmem:[#allocation197_spill] sm:$0xff]  ;;  %v16818_v32 = vand.u32 4294901760, %v16809_v40  ;;  %v16844_v57 = vld [vmem:[#allocation204_spill] sm:$0xff] }
  0xed   :  { %8358 = vmatprep.subr.bf16.mxu0 %v16266_v4  ;;  %7974 = vmatprep.subr.bf16.mxu1 %v16266_v4  ;;  %v16817_v58 = vld [vmem:[#allocation201_spill] sm:$0xff] }
  0xee   :  { %1015 = vmatmul.mubr.f32.gmra.mrb[20].mxu1 %v16811_v31  ;;  %3819 = vmatmul.mubr.f32.gmra.mrb[20].mxu0 %v16813_v39  ;;  %v8362_v35 = vpack.c.bf16 %v16819_v14, %v16818_v32  ;;  %v16821_v39 = vld [vmem:[#allocation75_spill] sm:$0xff]  ;;  %v16826_v14 = vpack.c.bf16 %v16648_v30, %v16647_v9  ;;  %v16827_v32 = vand.u32 4294901760, %v16817_v58  ;;  %v16828_v31 = vld [vmem:[#allocation205_spill] sm:$0xff]  ;;  %v16945_v30 = vld [vmem:[#allocation142_spill] sm:$0xff] }
  0xef   :  { %1020 = vmatprep.mubr.f32.mxu1 %v16812_v49  ;;  %7976 = vmatpush1.bf16.msra.mxu1 %v16815_v63  ;;  %v16820_v49 = vld [vmem:[#allocation74_spill] sm:$0xff]  ;;  %v16823_v63 = vld [vmem:[#allocation196_spill] sm:$0xff]  ;;  %v16830_v40 = vand.u32 4294901760, %v16821_v39 }
  0xf0   :  { %3826 = vmatprep.mubr.f32.mxu0 %v16816_v38  ;;  %8360 = vmatpush1.bf16.msra.mxu0 %v8359_v16  ;;  %v16824_v38 = vand.u32 4294901760, %v16814_v7  ;;  %v16825_v16 = vld [vmem:[#allocation31_spill] sm:$0xff]  ;;  %v16829_v61 = vand.u32 4294901760, %v16820_v49  ;;  %v16855_v7 = vld [vmem:[#allocation208_spill] sm:$0xff] }
  0xf1   :  { %8361 = vmatprep.subr.bf16.mxu0 %v16266_v4  ;;  %7977 = vmatprep.subr.bf16.mxu1 %v16266_v4 }
  0xf2   :  { %1022 = vmatmul.mubr.f32.gmra.mrb[22].mxu1 %v16822_v47  ;;  %3830 = vmatmul.mubr.f32.gmra.mrb[22].mxu0 %v16824_v38  ;;  %v8365_v3 = vpack.c.bf16 %v16830_v40, %v16829_v61  ;;  %v16832_v38 = vld [vmem:[#allocation80_spill] sm:$0xff]  ;;  %v16837_v40 = vpack.c.bf16 %v16660_v29, %v16659_v6  ;;  %v16838_v61 = vand.u32 4294901760, %v16828_v31  ;;  %v16839_v47 = vld [vmem:[#allocation41_spill] sm:$0xff] }
  0xf3   :  { %1027 = vmatprep.mubr.f32.mxu1 %v16823_v63  ;;  %7979 = vmatpush1.bf16.msra.mxu1 %v16826_v14  ;;  %v16831_v63 = vld [vmem:[#allocation79_spill] sm:$0xff]  ;;  %v16834_v14 = vld [vmem:[#allocation202_spill] sm:$0xff]  ;;  %v16841_v49 = vand.u32 4294901760, %v16832_v38  ;;  %v16943_v29 = vld [vmem:[#allocation125_spill] sm:$0xff] }
  0xf4   :  { %3837 = vmatprep.mubr.f32.mxu0 %v16827_v32  ;;  %8363 = vmatpush1.bf16.msra.mxu0 %v8362_v35  ;;  %v16835_v32 = vand.u32 4294901760, %v16825_v16  ;;  %v16836_v35 = vld [vmem:[#allocation209_spill] sm:$0xff]  ;;  %v16840_v39 = vand.u32 4294901760, %v16831_v63  ;;  %v16944_v6 = vld [vmem:[#allocation132_spill] sm:$0xff] }
  0xf5   :  { %8364 = vmatprep.subr.bf16.mxu0 %v16266_v4  ;;  %7980 = vmatprep.subr.bf16.mxu1 %v16266_v4 }
  0xf6   :  { %1029 = vmatmul.mubr.f32.gmra.mrb[24].mxu1 %v16833_v62  ;;  %3841 = vmatmul.mubr.f32.gmra.mrb[24].mxu0 %v16835_v32  ;;  %v8368_v58 = vpack.c.bf16 %v16841_v49, %v16840_v39  ;;  %v16843_v32 = vld [vmem:[#allocation90_spill] sm:$0xff]  ;;  %v16848_v49 = vpack.c.bf16 %v16678_v53, %v16676_v11  ;;  %v16849_v39 = vand.u32 4294901760, %v16839_v47  ;;  %v16850_v62 = vld [vmem:[#allocation45_spill] sm:$0xff]  ;;  %v16938_v11 = vld [vmem:[#allocation124_spill] sm:$0xff] }
  0xf7   :  { %1034 = vmatprep.mubr.f32.mxu1 %v16834_v14  ;;  %7982 = vmatpush1.bf16.msra.mxu1 %v16837_v40  ;;  %v16842_v14 = vld [vmem:[#allocation87_spill] sm:$0xff]  ;;  %v16852_v38 = vand.u32 4294901760, %v16843_v32  ;;  %v16937_v53 = vld [vmem:[#allocation129_spill] sm:$0xff] }
  0xf8   :  { %3848 = vmatprep.mubr.f32.mxu0 %v16838_v61  ;;  %8366 = vmatpush1.bf16.msra.mxu0 %v8365_v3  ;;  %v16845_v40 = vld [vmem:[#allocation207_spill] sm:$0xff]  ;;  %v16846_v61 = vand.u32 4294901760, %v16836_v35  ;;  %v16847_v3 = vld [vmem:[#allocation216_spill] sm:$0xff]  ;;  %v16851_v31 = vand.u32 4294901760, %v16842_v14 }
  0xf9   :  { %8367 = vmatprep.subr.bf16.mxu0 %v16266_v4  ;;  %7983 = vmatprep.subr.bf16.mxu1 %v16266_v4 }
  0xfa   :  { %1036 = vmatmul.mubr.f32.gmra.mrb[26].mxu1 %v16844_v57  ;;  %3852 = vmatmul.mubr.f32.gmra.mrb[26].mxu0 %v16846_v61  ;;  %v8371_v63 = vpack.c.bf16 %v16852_v38, %v16851_v31  ;;  %v16854_v61 = vld [vmem:[#allocation99_spill] sm:$0xff]  ;;  %v16859_v31 = vpack.c.bf16 %v16695_v28, %v16694_v19  ;;  %v16860_v38 = vand.u32 4294901760, %v16850_v62  ;;  %v16874_v62 = vld [vmem:[#allocation236_spill] sm:$0xff]  ;;  %v16935_v28 = vld [vmem:[#allocation118_spill] sm:$0xff] }
  0xfb   :  { %1041 = vmatprep.mubr.f32.mxu1 %v16845_v40  ;;  %7985 = vmatpush1.bf16.msra.mxu1 %v16848_v49  ;;  %v16853_v40 = vld [vmem:[#allocation96_spill] sm:$0xff]  ;;  %v16856_v49 = vld [vmem:[#allocation214_spill] sm:$0xff]  ;;  %v16861_v57 = vld [vmem:[#allocation227_spill] sm:$0xff]  ;;  %v16863_v14 = vand.u32 4294901760, %v16854_v61 }
  0xfc   :  { %3859 = vmatprep.mubr.f32.mxu0 %v16849_v39  ;;  %8369 = vmatpush1.bf16.msra.mxu0 %v8368_v58  ;;  %v16857_v39 = vand.u32 4294901760, %v16847_v3  ;;  %v16858_v58 = vld [vmem:[#allocation222_spill] sm:$0xff]  ;;  %v15840_v35 = vand.u32 4294901760, %v16861_v57  ;;  %v16862_v32 = vand.u32 4294901760, %v16853_v40  ;;  %v16869_v61 = vld [vmem:[#allocation224_spill] sm:$0xff]  ;;  %v16870_v40 = vld [vmem:[#allocation229_spill] sm:$0xff] }
  0xfd   :  { %8370 = vmatprep.subr.bf16.mxu0 %v16266_v4  ;;  %7986 = vmatprep.subr.bf16.mxu1 %v16266_v4  ;;  %v15838_v16 = vand.u32 4294901760, %v16858_v58  ;;  %v16873_v58 = vld [vmem:[#allocation230_spill] sm:$0xff]  ;;  %v16878_v57 = vld [vmem:[#allocation60_spill] sm:$0xff]  ;;  %v16936_v19 = vld [vmem:[#allocation121_spill] sm:$0xff] }
  0xfe   :  { %1043 = vmatmul.mubr.f32.gmra.mrb[28].mxu1 %v16855_v7  ;;  %3863 = vmatmul.mubr.f32.gmra.mrb[28].mxu0 %v16857_v39  ;;  %v8374_v47 = vpack.c.bf16 %v16863_v14, %v16862_v32  ;;  %v16865_v39 = vld [vmem:[#allocation221_spill] sm:$0xff]  ;;  %v16868_v14 = vld [vmem:[#allocation55_spill] sm:$0xff] }
  0xff   :  { %1048 = vmatprep.mubr.f32.mxu1 %v16856_v49  ;;  %7988 = vmatpush1.bf16.msra.mxu1 %v16859_v31  ;;  %v16864_v49 = vld [vmem:[#allocation215_spill] sm:$0xff]  ;;  %v15847_v32 = vand.u32 4294901760, %v16868_v14 }
 0x100   :  { %3870 = vmatprep.mubr.f32.mxu0 %v16860_v38  ;;  %8372 = vmatpush1.bf16.msra.mxu0 %v8371_v63  ;;  %v16866_v31 = vld [vmem:[#allocation231_spill] sm:$0xff]  ;;  %v16867_v63 = vpack.c.bf16 %v16709_v45, %v16706_v60 }
 0x101   :  { %7989 = vmatprep.subr.bf16.mxu1 %v16266_v4  ;;  %8373 = vmatprep.subr.bf16.mxu0 %v16266_v4  ;;  %v15843_v38 = vand.u32 4294901760, %v16866_v31  ;;  %v12112_v7 = vld [vmem:[%s15191_s1 + $0x220] sm:$0xff] }
 0x102   :  { %1050 = vmatmul.mubr.f32.gmra.mrb[30].mxu1 %v16864_v49  ;;  %3874 = vmatmul.mubr.f32.gmra.mrb[30].mxu0 %v15838_v16  ;;  %v16871_v16 = vld [vmem:[#allocation238_spill] sm:$0xff]  ;;  %v16886_v49 = vld [vmem:[#allocation68_spill] sm:$0xff]  ;;  %v16932_v45 = vld [vmem:[#allocation11_spill] sm:$0xff] }
 0x103   :  { %1055 = vmatprep.mubr.f32.mxu1 %v16865_v39  ;;  %7991 = vmatpush1.bf16.msra.mxu1 %v16867_v63  ;;  %v12044_v63 = vld [vmem:[%s15191_s1 + $0x200] sm:$0xff]  ;;  %v16881_v39 = vld [vmem:[#allocation237_spill] sm:$0xff] }
 0x104   :  { %3881 = vmatprep.mubr.f32.mxu0 %v15840_v35  ;;  %8375 = vmatpush1.bf16.msra.mxu0 %v8374_v47  ;;  %v12049_v47 = vld [vmem:[%s15191_s1 + $0x208] sm:$0xff]  ;;  %v15848_v31 = vand.u32 4294901760, %v12044_v63 }
 0x105   :  { %8376 = vmatprep.subr.bf16.mxu0 %v16266_v4  ;;  %7992 = vmatprep.subr.bf16.mxu1 %v16266_v4  ;;  %v16872_v35 = vld [vmem:[#allocation244_spill] sm:$0xff] }
 0x106   :  { %1057 = vmatmul.mubr.f32.gmra.mrb[32].mxu1 %v16869_v61  ;;  %3885 = vmatmul.mubr.f32.gmra.mrb[32].mxu0 %v15843_v38  ;;  %v15849_v38 = vand.u32 4294901760, %v12049_v47  ;;  %v12061_v3 = vsub.f32 %v12044_v63, %v15848_v31  ;;  %v16879_v61 = vand.u32 4294901760, %v16872_v35  ;;  %v12078_v31 = vld [vmem:[%s15191_s1 + $0x210] sm:$0xff] }
 0x107   :  { %1062 = vmatprep.mubr.f32.mxu1 %v16870_v40  ;;  %3892 = vmatprep.mubr.f32.mxu0 %v15847_v32  ;;  %v16877_v32 = vand.u32 4294901760, %v16871_v16  ;;  %v15853_v40 = vand.u32 4294901760, %v12078_v31  ;;  %v16884_v35 = vld [vmem:[#allocation253_spill] sm:$0xff] }
 0x108   :  { %16875 = vst [vmem:[#allocation25_spill] sm:$0xff] %v12061_v3  ;;  %v12066_v14 = vsub.f32 %v12049_v47, %v15849_v38  ;;  %v12083_v38 = vld [vmem:[%s15191_s1 + $0x218] sm:$0xff]  ;;  %v15857_v16 = vand.u32 4294901760, %v16884_v35  ;;  %v15859_v35 = vand.u32 4294901760, %v12112_v7  ;;  %v16931_v3 = vld [vmem:[#allocation123_spill] sm:$0xff] }
 0x109   :  { %v12097_v55 = vsub.f32 %v12078_v31, %v15853_v40  ;;  %v12117_v40 = vld [vmem:[%s15191_s1 + $0x228] sm:$0xff] }
 0x10a   :  { %1064 = vmatmul.mubr.f32.gmra.mrb[34].mxu1 %v16873_v58  ;;  %16876 = vst [vmem:[#allocation29_spill] sm:$0xff] %v12066_v14  ;;  %3896 = vmatmul.mubr.f32.gmra.mrb[34].mxu0 %v16877_v32  ;;  %v16880_v58 = vld [vmem:[#allocation250_spill] sm:$0xff]  ;;  %v16882_v32 = vld [vmem:[#allocation243_spill] sm:$0xff]  ;;  %v12129_v22 = vsub.f32 %v12112_v7, %v15859_v35  ;;  %v12146_v35 = vld [vmem:[%s15191_s1 + $0x230] sm:$0xff] }
 0x10b   :  { %1069 = vmatprep.mubr.f32.mxu1 %v16874_v62  ;;  %3903 = vmatprep.mubr.f32.mxu0 %v16879_v61  ;;  %v15854_v61 = vand.u32 4294901760, %v12083_v38  ;;  %v16883_v62 = vand.u32 4294901760, %v16878_v57  ;;  %16887 = vst [vmem:[#allocation281_spill] sm:$0xff] %v12097_v55  ;;  %v16893_v57 = vld [vmem:[#allocation266_spill] sm:$0xff]  ;;  %v16930_v14 = vld [vmem:[#allocation115_spill] sm:$0xff] }
 0x10c   :  { %16896 = vst [vmem:[#allocation283_spill] sm:$0xff] %v12129_v22  ;;  %v16899_v12 = vand.u32 4294901760, %v16893_v57  ;;  %v15869_v57 = vand.u32 4294901760, %v11662_v52  ;;  %v16923_v22 = vld [vmem:[#allocation111_spill] sm:$0xff] }
 0x10e   :  { %1071 = vmatmul.mubr.f32.gmra.mrb[36].mxu1 %v16881_v39  ;;  %3907 = vmatmul.mubr.f32.gmra.mrb[36].mxu0 %v16883_v62  ;;  %v16885_v39 = vand.u32 4294901760, %v16880_v58  ;;  %v16890_v62 = vld [vmem:[#allocation251_spill] sm:$0xff]  ;;  %v16894_v58 = vld [vmem:[#allocation252_spill] sm:$0xff] }
 0x10f   :  { %1076 = vmatprep.mubr.f32.mxu1 %v16882_v32  ;;  %v12102_v32 = vsub.f32 %v12083_v38, %v15854_v61  ;;  %v16892_v61 = vand.u32 4294901760, %v16886_v49 }
 0x110   :  { %3914 = vmatprep.mubr.f32.mxu0 %v16885_v39  ;;  %v16891_v39 = vld [vmem:[#allocation259_spill] sm:$0xff] }
 0x111   :  { %16888 = vst [vmem:[#allocation282_spill] sm:$0xff] %v12102_v32  ;;  %v16924_v32 = vld [vmem:[#allocation8_spill] sm:$0xff] }
 0x112   :  { %1078 = vmatmul.mubr.f32.gmra.mrb[38].mxu1 %v16889_v59  ;;  %3918 = vmatmul.mubr.f32.gmra.mrb[38].mxu0 %v15857_v16  ;;  %v15860_v16 = vand.u32 4294901760, %v12117_v40  ;;  %v16895_v59 = vld [vmem:[#allocation258_spill] sm:$0xff] }
 0x113   :  { %1083 = vmatprep.mubr.f32.mxu1 %v16890_v62  ;;  %3925 = vmatprep.mubr.f32.mxu0 %v16892_v61  ;;  %v16898_v61 = vand.u32 4294901760, %v16891_v39  ;;  %v15863_v62 = vand.u32 4294901760, %v12146_v35  ;;  %v16903_v39 = vand.u32 4294901760, %v11646_v50 }
 0x114   :  { %v12134_v49 = vsub.f32 %v12117_v40, %v15860_v16  ;;  %v12151_v16 = vld [vmem:[%s15191_s1 + $0x238] sm:$0xff] }
 0x115   :  { %v12165_v54 = vsub.f32 %v12146_v35, %v15863_v62  ;;  %v12185_v62 = vld [vmem:[%s15191_s1 + $0x248] sm:$0xff] }
 0x116   :  { %1085 = vmatmul.mubr.f32.gmra.mrb[40].mxu1 %v16894_v58  ;;  %16897 = vst [vmem:[#allocation284_spill] sm:$0xff] %v12134_v49  ;;  %3929 = vmatmul.mubr.f32.gmra.mrb[40].mxu0 %v16898_v61  ;;  %v16900_v58 = vld [vmem:[#allocation260_spill] sm:$0xff]  ;;  %v16901_v61 = vld [vmem:[#allocation265_spill] sm:$0xff]  ;;  %v15877_v52 = vand.u32 4294901760, %v12185_v62 }
 0x117   :  { %1090 = vmatprep.mubr.f32.mxu1 %v16895_v59  ;;  %3936 = vmatprep.mubr.f32.mxu0 %v16899_v12  ;;  %v15864_v12 = vand.u32 4294901760, %v12151_v16  ;;  %v16902_v59 = vand.u32 4294901760, %v11606_v33  ;;  %16904 = vst [vmem:[#allocation285_spill] sm:$0xff] %v12165_v54  ;;  %v16922_v49 = vld [vmem:[#allocation108_spill] sm:$0xff] }
 0x118   :  { %v12201_v33 = vsub.f32 %v12185_v62, %v15877_v52  ;;  %v16916_v52 = vld [vmem:[#allocation5_spill] sm:$0xff] }
 0x11a   :  { %1092 = vmatmul.mubr.f32.gmra.mrb[42].mxu1 %v16900_v58  ;;  %3940 = vmatmul.mubr.f32.gmra.mrb[42].mxu0 %v16902_v59  ;;  %v16907_v59 = vld [vmem:[#allocation273_spill] sm:$0xff]  ;;  %v12180_v58 = vld [vmem:[%s15191_s1 + $0x240] sm:$0xff]  ;;  %16911 = vst [vmem:[#allocation287_spill] sm:$0xff] %v12201_v33 }
 0x11b   :  { %1097 = vmatprep.mubr.f32.mxu1 %v16901_v61  ;;  %3947 = vmatprep.mubr.f32.mxu0 %v16903_v39  ;;  %v12170_v61 = vsub.f32 %v12151_v16, %v15864_v12  ;;  %v16908_v12 = vand.u32 4294901760, %v11704_v10  ;;  %v15876_v50 = vand.u32 4294901760, %v12180_v58  ;;  %v16913_v10 = vld [vmem:[#allocation93_spill] sm:$0xff] }
 0x11c   :  { %v16917_v33 = vld [vmem:[#allocation97_spill] sm:$0xff] }
 0x11d   :  { %16905 = vst [vmem:[#allocation286_spill] sm:$0xff] %v12170_v61  ;;  %v12196_v39 = vsub.f32 %v12180_v58, %v15876_v50  ;;  %v12215_v50 = vld [vmem:[%s15191_s1 + $0x258] sm:$0xff]  ;;  %v16919_v61 = vld [vmem:[#allocation105_spill] sm:$0xff] }
 0x11e   :  { %1099 = vmatmul.mubr.f32.gmra.mrb[44].mxu1 %v16906_v41  ;;  %3951 = vmatmul.mubr.f32.gmra.mrb[44].mxu0 %v15869_v57  ;;  %v16909_v57 = vld [vmem:[#allocation95_spill] sm:$0xff]  ;;  %v16915_v41 = vld [vmem:[#allocation102_spill] sm:$0xff] }
 0x11f   :  { %1104 = vmatprep.mubr.f32.mxu1 %v16907_v59  ;;  %3958 = vmatprep.mubr.f32.mxu0 %v16908_v12  ;;  %16910 = vst [vmem:[#allocation95_spill] sm:$0xff] %v12196_v39  ;;  %v16912_v12 = vand.u32 4294901760, %v11713_v43  ;;  %v16914_v59 = vld [vmem:[#allocation100_spill] sm:$0xff]  ;;  %v15888_v43 = vand.u32 4294901760, %v12215_v50  ;;  %v16918_v39 = vld [vmem:[#allocation98_spill] sm:$0xff] }
 0x122   :  { %1106 = vmatmul.mubr.f32.gmra.mrb[46].mxu1 %v11655_v37  ;;  %3962 = vmatmul.mubr.f32.gmra.mrb[46].mxu0 %v16912_v12  ;;  %v12210_v37 = vld [vmem:[%s15191_s1 + $0x250] sm:$0xff] }
 0x123   :  { %1241 = vmatprep.mubr.f32.mxu1 %v16909_v57  ;;  %4128 = vmatprep.mubr.f32.mxu0 %v16913_v10  ;;  %v15887_v12 = vand.u32 4294901760, %v12210_v37 }
 0x125   :  { %v12228_v54 = vsub.f32 %v12210_v37, %v15887_v12  ;;  %v12244_v12 = vld [vmem:[%s15191_s1 + $0x260] sm:$0xff] }
 0x126   :  { %1244 = vmatmul.mubr.f32.vlgmr.msra.gmra.mrb[0].mxu1 %v16914_v59  ;;  %4130 = vmatmul.mubr.f32.vlgmr.msra.gmra.mrb[0].mxu0 %v16917_v33  ;;  %16926 = vst [vmem:[#allocation108_spill] sm:$0xff] %v12244_v12 }
 0x127   :  { %1250 = vmatprep.mubr.f32.mxu1 %v16915_v41  ;;  %7994 = vmatpush1.bf16.msra.mxu1 %v16916_v52  ;;  %16920 = vst [vmem:[#allocation100_spill] sm:$0xff] %v12228_v54  ;;  %v12233_v52 = vsub.f32 %v12215_v50, %v15888_v43  ;;  %v12249_v43 = vld [vmem:[%s15191_s1 + $0x268] sm:$0xff] }
 0x128   :  { %7995 = vmatprep.subr.bf16.mxu1 %v16266_v4  ;;  %8378 = vmatpush1.bf16.msra.mxu0 %v16918_v39  ;;  %v16925_v39 = vld [vmem:[#allocation106_spill] sm:$0xff]  ;;  %16927 = vst [vmem:[#allocation111_spill] sm:$0xff] %v12249_v43  ;;  %v16929_v54 = vld [vmem:[#allocation116_spill] sm:$0xff]  ;;  %v15901_v55 = vand.u32 4294901760, %v12249_v43 }
 0x129   :  { %4135 = vmatprep.mubr.f32.mxu0 %v16919_v61  ;;  %16921 = vst [vmem:[#allocation102_spill] sm:$0xff] %v12233_v52  ;;  %8379 = vmatprep.subr.bf16.mxu0 %v16266_v4  ;;  %v16928_v52 = vld [vmem:[#allocation114_spill] sm:$0xff] }
 0x12a   :  { %1253 = vmatmul.mubr.f32.gmra.mrb[2].mxu1 %v16922_v49  ;;  %4137 = vmatmul.mubr.f32.gmra.mrb[2].mxu0 %v16925_v39 }
 0x12b   :  { %1259 = vmatprep.mubr.f32.mxu1 %v16923_v22  ;;  %7997 = vmatpush1.bf16.msra.mxu1 %v16924_v32  ;;  %v15900_v32 = vand.u32 4294901760, %v12244_v12 }
 0x12c   :  { %7998 = vmatprep.subr.bf16.mxu1 %v16266_v4  ;;  %4142 = vmatprep.mubr.f32.mxu0 %v16928_v52 }
 0x12d   :  { %8381 = vmatpush1.bf16.msra.mxu0 %v16929_v54  ;;  %v12262_v60 = vsub.f32 %v12244_v12, %v15900_v32  ;;  %v12267_v54 = vsub.f32 %v12249_v43, %v15901_v55  ;;  %v12278_v32 = vld [vmem:[%s15191_s1 + $0x270] sm:$0xff]  ;;  %v12283_v55 = vld [vmem:[%s15191_s1 + $0x278] sm:$0xff]  ;;  %v16963_v43 = vld [vmem:[#allocation168_spill] sm:$0xff] }
 0x12e   :  { %1262 = vmatmul.mubr.f32.gmra.mrb[4].mxu1 %v16930_v14  ;;  %8382 = vmatprep.subr.bf16.mxu0 %v16266_v4  ;;  %16939 = vst [vmem:[#allocation124_spill] sm:$0xff] %v12278_v32  ;;  %16940 = vst [vmem:[#allocation288_spill] sm:$0xff] %v12283_v55  ;;  %v16964_v12 = vld [vmem:[#allocation151_spill] sm:$0xff] }
 0x12f   :  { %1268 = vmatprep.mubr.f32.mxu1 %v16931_v3  ;;  %8000 = vmatpush1.bf16.msra.mxu1 %v16932_v45  ;;  %16933 = vst [vmem:[#allocation115_spill] sm:$0xff] %v12262_v60  ;;  %16934 = vst [vmem:[#allocation123_spill] sm:$0xff] %v12267_v54  ;;  %v16941_v54 = vld [vmem:[#allocation130_spill] sm:$0xff]  ;;  %v16942_v60 = vld [vmem:[#allocation17_spill] sm:$0xff]  ;;  %v15913_v45 = vand.u32 4294901760, %v12283_v55 }
 0x130   :  { %4144 = vmatmul.mubr.f32.gmra.mrb[4].mxu0 %v16935_v28  ;;  %8001 = vmatprep.subr.bf16.mxu1 %v16266_v4 }
 0x131   :  { %4149 = vmatprep.mubr.f32.mxu0 %v16936_v19  ;;  %8384 = vmatpush1.bf16.msra.mxu0 %v16937_v53  ;;  %v15912_v53 = vand.u32 4294901760, %v12278_v32 }
 0x132   :  { %1271 = vmatmul.mubr.f32.gmra.mrb[6].mxu1 %v16938_v11  ;;  %8385 = vmatprep.subr.bf16.mxu0 %v16266_v4 }
 0x133   :  { %1277 = vmatprep.mubr.f32.mxu1 %v16941_v54  ;;  %8003 = vmatpush1.bf16.msra.mxu1 %v16942_v60  ;;  %v12296_v9 = vsub.f32 %v12278_v32, %v15912_v53  ;;  %v12301_v60 = vsub.f32 %v12283_v55, %v15913_v45  ;;  %v12312_v53 = vld [vmem:[%s15191_s1 + $0x280] sm:$0xff]  ;;  %v12317_v45 = vld [vmem:[%s15191_s1 + $0x288] sm:$0xff] }
 0x134   :  { %4151 = vmatmul.mubr.f32.gmra.mrb[6].mxu0 %v16943_v29  ;;  %8004 = vmatprep.subr.bf16.mxu1 %v16266_v4  ;;  %16952 = vst [vmem:[#allocation135_spill] sm:$0xff] %v12312_v53  ;;  %16953 = vst [vmem:[#allocation139_spill] sm:$0xff] %v12317_v45  ;;  %v16958_v55 = vld [vmem:[#allocation24_spill] sm:$0xff] }
 0x135   :  { %4156 = vmatprep.mubr.f32.mxu0 %v16944_v6  ;;  %8387 = vmatpush1.bf16.msra.mxu0 %v16945_v30  ;;  %16946 = vst [vmem:[#allocation130_spill] sm:$0xff] %v12296_v9  ;;  %16947 = vst [vmem:[#allocation289_spill] sm:$0xff] %v12301_v60  ;;  %v16954_v30 = vld [vmem:[#allocation141_spill] sm:$0xff]  ;;  %v16955_v60 = vld [vmem:[#allocation155_spill] sm:$0xff]  ;;  %v15923_v9 = vand.u32 4294901760, %v12317_v45 }
 0x136   :  { %1280 = vmatmul.mubr.f32.gmra.mrb[8].mxu1 %v16948_v24  ;;  %8388 = vmatprep.subr.bf16.mxu0 %v16266_v4 }
 0x137   :  { %1286 = vmatprep.mubr.f32.mxu1 %v16949_v34  ;;  %8006 = vmatpush1.bf16.msra.mxu1 %v16950_v46  ;;  %v15922_v46 = vand.u32 4294901760, %v12312_v53 }
 0x138   :  { %4158 = vmatmul.mubr.f32.gmra.mrb[8].mxu0 %v16951_v1  ;;  %8007 = vmatprep.subr.bf16.mxu1 %v16266_v4 }
 0x139   :  { %4163 = vmatprep.mubr.f32.mxu0 %v16954_v30  ;;  %8390 = vmatpush1.bf16.msra.mxu0 %v16955_v60  ;;  %v12330_v32 = vsub.f32 %v12312_v53, %v15922_v46  ;;  %v12335_v60 = vsub.f32 %v12317_v45, %v15923_v9  ;;  %v12346_v46 = vld [vmem:[%s15191_s1 + $0x290] sm:$0xff]  ;;  %v12351_v9 = vld [vmem:[%s15191_s1 + $0x298] sm:$0xff] }
 0x13a   :  { %1289 = vmatmul.mubr.f32.gmra.mrb[10].mxu1 %v16956_v0  ;;  %8391 = vmatprep.subr.bf16.mxu0 %v16266_v4  ;;  %16965 = vst [vmem:[#allocation290_spill] sm:$0xff] %v12346_v46  ;;  %16966 = vst [vmem:[#allocation291_spill] sm:$0xff] %v12351_v9  ;;  %v16969_v45 = vld [vmem:[#allocation150_spill] sm:$0xff] }
 0x13b   :  { %1295 = vmatprep.mubr.f32.mxu1 %v16957_v8  ;;  %8009 = vmatpush1.bf16.msra.mxu1 %v16958_v55  ;;  %16959 = vst [vmem:[#allocation140_spill] sm:$0xff] %v12330_v32  ;;  %16960 = vst [vmem:[#allocation147_spill] sm:$0xff] %v12335_v60  ;;  %v16967_v55 = vld [vmem:[#allocation156_spill] sm:$0xff]  ;;  %v15929_v32 = vand.u32 4294901760, %v12351_v9  ;;  %v16970_v53 = vld [vmem:[#allocation158_spill] sm:$0xff] }
 0x13c   :  { %4165 = vmatmul.mubr.f32.gmra.mrb[10].mxu0 %v16961_v48  ;;  %8010 = vmatprep.subr.bf16.mxu1 %v16266_v4  ;;  %v16968_v60 = vld [vmem:[#allocation36_spill] sm:$0xff]  ;;  %v16976_v48 = vld [vmem:[#allocation42_spill] sm:$0xff] }
 0x13d   :  { %4170 = vmatprep.mubr.f32.mxu0 %v16962_v21  ;;  %8393 = vmatpush1.bf16.msra.mxu0 %v16963_v43  ;;  %v15928_v43 = vand.u32 4294901760, %v12346_v46 }
 0x13e   :  { %1298 = vmatmul.mubr.f32.gmra.mrb[12].mxu1 %v16964_v12  ;;  %8394 = vmatprep.subr.bf16.mxu0 %v16266_v4  ;;  %v16971_v12 = vld [vmem:[#allocation181_spill] sm:$0xff] }
 0x13f   :  { %1304 = vmatprep.mubr.f32.mxu1 %v16967_v55  ;;  %8012 = vmatpush1.bf16.msra.mxu1 %v16968_v60  ;;  %v12364_v21 = vsub.f32 %v12346_v46, %v15928_v43  ;;  %v12369_v60 = vsub.f32 %v12351_v9, %v15929_v32  ;;  %v16974_v55 = vld [vmem:[#allocation162_spill] sm:$0xff]  ;;  %v12380_v43 = vld [vmem:[%s15191_s1 + $0x2a0] sm:$0xff]  ;;  %v12385_v32 = vld [vmem:[%s15191_s1 + $0x2a8] sm:$0xff] }
 0x140   :  { %4172 = vmatmul.mubr.f32.gmra.mrb[12].mxu0 %v16969_v45  ;;  %8013 = vmatprep.subr.bf16.mxu1 %v16266_v4  ;;  %v16975_v45 = vld [vmem:[#allocation165_spill] sm:$0xff]  ;;  %16978 = vst [vmem:[#allocation294_spill] sm:$0xff] %v12380_v43  ;;  %16979 = vst [vmem:[#allocation295_spill] sm:$0xff] %v12385_v32  ;;  %v16982_v9 = vld [vmem:[#allocation166_spill] sm:$0xff] }
 0x141   :  { %4177 = vmatprep.mubr.f32.mxu0 %v16970_v53  ;;  %8396 = vmatpush1.bf16.msra.mxu0 %v16971_v12  ;;  %16972 = vst [vmem:[#allocation292_spill] sm:$0xff] %v12364_v21  ;;  %16973 = vst [vmem:[#allocation293_spill] sm:$0xff] %v12369_v60  ;;  %v16977_v53 = vld [vmem:[#allocation159_spill] sm:$0xff]  ;;  %v16981_v60 = vld [vmem:[#allocation26_spill] sm:$0xff]  ;;  %v15935_v21 = vand.u32 4294901760, %v12385_v32 }
 0x142   :  { %1307 = vmatmul.mubr.f32.gmra.mrb[14].mxu1 %v16974_v55  ;;  %8397 = vmatprep.subr.bf16.mxu0 %v16266_v4  ;;  %v16980_v12 = vld [vmem:[#allocation167_spill] sm:$0xff]  ;;  %v16983_v46 = vld [vmem:[#allocation174_spill] sm:$0xff] }
 0x143   :  { %1313 = vmatprep.mubr.f32.mxu1 %v16975_v45  ;;  %8015 = vmatpush1.bf16.msra.mxu1 %v16976_v48  ;;  %v15934_v48 = vand.u32 4294901760, %v12380_v43  ;;  %v16989_v55 = vld [vmem:[#allocation30_spill] sm:$0xff] }
 0x144   :  { %4179 = vmatmul.mubr.f32.gmra.mrb[14].mxu0 %v16977_v53  ;;  %8016 = vmatprep.subr.bf16.mxu1 %v16266_v4  ;;  %v16984_v53 = vld [vmem:[#allocation46_spill] sm:$0xff] }
 0x145   :  { %4184 = vmatprep.mubr.f32.mxu0 %v16980_v12  ;;  %8399 = vmatpush1.bf16.msra.mxu0 %v16981_v60  ;;  %v12398_v45 = vsub.f32 %v12380_v43, %v15934_v48  ;;  %v12403_v60 = vsub.f32 %v12385_v32, %v15935_v21  ;;  %v16987_v12 = vld [vmem:[#allocation170_spill] sm:$0xff]  ;;  %v12414_v48 = vld [vmem:[%s15191_s1 + $0x2b0] sm:$0xff]  ;;  %v16996_v43 = vld [vmem:[#allocation184_spill] sm:$0xff] }
 0x146   :  { %1316 = vmatmul.mubr.f32.gmra.mrb[16].mxu1 %v16982_v9  ;;  %8400 = vmatprep.subr.bf16.mxu0 %v16266_v4  ;;  %v16988_v9 = vld [vmem:[#allocation176_spill] sm:$0xff]  ;;  %16991 = vst [vmem:[#allocation298_spill] sm:$0xff] %v12414_v48  ;;  %v12419_v21 = vld [vmem:[%s15191_s1 + $0x2b8] sm:$0xff]  ;;  %v16995_v32 = vld [vmem:[#allocation177_spill] sm:$0xff] }
 0x147   :  { %1322 = vmatprep.mubr.f32.mxu1 %v16983_v46  ;;  %8018 = vmatpush1.bf16.msra.mxu1 %v16984_v53  ;;  %16985 = vst [vmem:[#allocation296_spill] sm:$0xff] %v12398_v45  ;;  %16986 = vst [vmem:[#allocation297_spill] sm:$0xff] %v12403_v60  ;;  %v16990_v46 = vld [vmem:[#allocation175_spill] sm:$0xff]  ;;  %v16993_v53 = vld [vmem:[#allocation182_spill] sm:$0xff]  ;;  %v15941_v45 = vand.u32 4294901760, %v12419_v21 }
 0x148   :  { %4186 = vmatmul.mubr.f32.gmra.mrb[16].mxu0 %v16987_v12  ;;  %8019 = vmatprep.subr.bf16.mxu1 %v16266_v4  ;;  %16992 = vst [vmem:[#allocation299_spill] sm:$0xff] %v12419_v21  ;;  %v16994_v60 = vld [vmem:[#allocation61_spill] sm:$0xff]  ;;  %v17002_v12 = vld [vmem:[#allocation63_spill] sm:$0xff] }
 0x149   :  { %4191 = vmatprep.mubr.f32.mxu0 %v16988_v9  ;;  %8402 = vmatpush1.bf16.msra.mxu0 %v16989_v55  ;;  %v15940_v55 = vand.u32 4294901760, %v12414_v48 }
 0x14a   :  { %1325 = vmatmul.mubr.f32.gmra.mrb[18].mxu1 %v16990_v46  ;;  %8403 = vmatprep.subr.bf16.mxu0 %v16266_v4  ;;  %v16997_v46 = vld [vmem:[#allocation40_spill] sm:$0xff] }
 0x14b   :  { %1331 = vmatprep.mubr.f32.mxu1 %v16993_v53  ;;  %8021 = vmatpush1.bf16.msra.mxu1 %v16994_v60  ;;  %v12432_v9 = vsub.f32 %v12414_v48, %v15940_v55  ;;  %v12437_v60 = vsub.f32 %v12419_v21, %v15941_v45  ;;  %v17000_v53 = vld [vmem:[#allocation185_spill] sm:$0xff]  ;;  %v12448_v55 = vld [vmem:[%s15191_s1 + $0x2c0] sm:$0xff]  ;;  %v12453_v45 = vld [vmem:[%s15191_s1 + $0x2c8] sm:$0xff] }
 0x14c   :  { %4193 = vmatmul.mubr.f32.gmra.mrb[18].mxu0 %v16995_v32  ;;  %8022 = vmatprep.subr.bf16.mxu1 %v16266_v4  ;;  %v17001_v32 = vld [vmem:[#allocation191_spill] sm:$0xff]  ;;  %17004 = vst [vmem:[#allocation302_spill] sm:$0xff] %v12448_v55  ;;  %17005 = vst [vmem:[#allocation303_spill] sm:$0xff] %v12453_v45  ;;  %v17008_v21 = vld [vmem:[#allocation192_spill] sm:$0xff] }
 0x14d   :  { %4198 = vmatprep.mubr.f32.mxu0 %v16996_v43  ;;  %8405 = vmatpush1.bf16.msra.mxu0 %v16997_v46  ;;  %16998 = vst [vmem:[#allocation300_spill] sm:$0xff] %v12432_v9  ;;  %16999 = vst [vmem:[#allocation301_spill] sm:$0xff] %v12437_v60  ;;  %v17003_v43 = vld [vmem:[#allocation187_spill] sm:$0xff]  ;;  %v17006_v46 = vld [vmem:[#allocation193_spill] sm:$0xff]  ;;  %v15947_v9 = vand.u32 4294901760, %v12453_v45 }
 0x14e   :  { %1334 = vmatmul.mubr.f32.gmra.mrb[20].mxu1 %v17000_v53  ;;  %8406 = vmatprep.subr.bf16.mxu0 %v16266_v4  ;;  %v17007_v60 = vld [vmem:[#allocation44_spill] sm:$0xff]  ;;  %v17009_v48 = vld [vmem:[#allocation199_spill] sm:$0xff] }
 0x14f   :  { %1340 = vmatprep.mubr.f32.mxu1 %v17001_v32  ;;  %8024 = vmatpush1.bf16.msra.mxu1 %v17002_v12  ;;  %v15946_v12 = vand.u32 4294901760, %v12448_v55  ;;  %v17015_v53 = vld [vmem:[#allocation51_spill] sm:$0xff] }
 0x150   :  { %4200 = vmatmul.mubr.f32.gmra.mrb[20].mxu0 %v17003_v43  ;;  %8025 = vmatprep.subr.bf16.mxu1 %v16266_v4  ;;  %v17010_v43 = vld [vmem:[#allocation66_spill] sm:$0xff] }
 0x151   :  { %4205 = vmatprep.mubr.f32.mxu0 %v17006_v46  ;;  %8408 = vmatpush1.bf16.msra.mxu0 %v17007_v60  ;;  %v12466_v32 = vsub.f32 %v12448_v55, %v15946_v12  ;;  %v12471_v60 = vsub.f32 %v12453_v45, %v15947_v9  ;;  %v17013_v46 = vld [vmem:[#allocation194_spill] sm:$0xff]  ;;  %v12482_v12 = vld [vmem:[%s15191_s1 + $0x2d0] sm:$0xff]  ;;  %v17022_v55 = vld [vmem:[#allocation59_spill] sm:$0xff] }
 0x152   :  { %1343 = vmatmul.mubr.f32.gmra.mrb[22].mxu1 %v17008_v21  ;;  %8409 = vmatprep.subr.bf16.mxu0 %v16266_v4  ;;  %v17014_v21 = vld [vmem:[#allocation18_spill] sm:$0xff]  ;;  %v17021_v45 = vld [vmem:[#allocation21_spill] sm:$0xff] }
 0x153   :  { %1349 = vmatprep.mubr.f32.mxu1 %v17009_v48  ;;  %8027 = vmatpush1.bf16.msra.mxu1 %v17010_v43  ;;  %17011 = vst [vmem:[#allocation304_spill] sm:$0xff] %v12466_v32  ;;  %17012 = vst [vmem:[#allocation305_spill] sm:$0xff] %v12471_v60  ;;  %v17016_v48 = vld [vmem:[#allocation16_spill] sm:$0xff]  ;;  %v12487_v9 = vld [vmem:[%s15191_s1 + $0x2d8] sm:$0xff] }
 0x154   :  { %4207 = vmatmul.mubr.f32.gmra.mrb[22].mxu0 %v17013_v46  ;;  %8028 = vmatprep.subr.bf16.mxu1 %v16266_v4  ;;  %17017 = vst [vmem:[#allocation306_spill] sm:$0xff] %v12487_v9  ;;  %v17018_v43 = vld [vmem:[#allocation203_spill] sm:$0xff]  ;;  %v17019_v60 = vld [vmem:[#allocation77_spill] sm:$0xff]  ;;  %v15953_v32 = vand.u32 4294901760, %v12487_v9  ;;  %v17027_v46 = vld [vmem:[#allocation84_spill] sm:$0xff] }
 0x155   :  { %4212 = vmatprep.mubr.f32.mxu0 %v17014_v21  ;;  %8411 = vmatpush1.bf16.msra.mxu0 %v17015_v53  ;;  %v15952_v53 = vand.u32 4294901760, %v12482_v12 }
 0x156   :  { %1352 = vmatmul.mubr.f32.gmra.mrb[24].mxu1 %v17016_v48  ;;  %8412 = vmatprep.subr.bf16.mxu0 %v16266_v4  ;;  %v17020_v48 = vld [vmem:[#allocation200_spill] sm:$0xff] }
 0x157   :  { %1358 = vmatprep.mubr.f32.mxu1 %v17018_v43  ;;  %8030 = vmatpush1.bf16.msra.mxu1 %v17019_v60  ;;  %v12500_v21 = vsub.f32 %v12482_v12, %v15952_v53  ;;  %v12505_v60 = vsub.f32 %v12487_v9, %v15953_v32  ;;  %v17025_v43 = vld [vmem:[#allocation22_spill] sm:$0xff]  ;;  %v12516_v53 = vld [vmem:[%s15191_s1 + $0x2e0] sm:$0xff]  ;;  %v12521_v32 = vld [vmem:[%s15191_s1 + $0x2e8] sm:$0xff] }
 0x158   :  { %4214 = vmatmul.mubr.f32.gmra.mrb[24].mxu0 %v17020_v48  ;;  %8031 = vmatprep.subr.bf16.mxu1 %v16266_v4  ;;  %v17026_v48 = vld [vmem:[#allocation210_spill] sm:$0xff]  ;;  %17029 = vst [vmem:[#allocation309_spill] sm:$0xff] %v12516_v53  ;;  %17030 = vst [vmem:[#allocation310_spill] sm:$0xff] %v12521_v32 }
 0x159   :  { %4219 = vmatprep.mubr.f32.mxu0 %v17021_v45  ;;  %8414 = vmatpush1.bf16.msra.mxu0 %v17022_v55  ;;  %17023 = vst [vmem:[#allocation307_spill] sm:$0xff] %v12500_v21  ;;  %17024 = vst [vmem:[#allocation308_spill] sm:$0xff] %v12505_v60  ;;  %v17028_v45 = vld [vmem:[#allocation206_spill] sm:$0xff]  ;;  %v17031_v55 = vld [vmem:[#allocation212_spill] sm:$0xff]  ;;  %v15959_v21 = vand.u32 4294901760, %v12521_v32 }
 0x15a   :  { %1361 = vmatmul.mubr.f32.gmra.mrb[26].mxu1 %v17025_v43  ;;  %8415 = vmatprep.subr.bf16.mxu0 %v16266_v4  ;;  %v17032_v60 = vld [vmem:[#allocation65_spill] sm:$0xff]  ;;  %v17035_v43 = vld [vmem:[#allocation86_spill] sm:$0xff] }
 0x15b   :  { %1367 = vmatprep.mubr.f32.mxu1 %v17026_v48  ;;  %8033 = vmatpush1.bf16.msra.mxu1 %v17027_v46  ;;  %v15957_v46 = vand.u32 4294901760, %v12516_v53  ;;  %v17034_v48 = vld [vmem:[#allocation217_spill] sm:$0xff] }
 0x15c   :  { %4221 = vmatmul.mubr.f32.gmra.mrb[26].mxu0 %v17028_v45  ;;  %8034 = vmatprep.subr.bf16.mxu1 %v16266_v4  ;;  %v17033_v45 = vld [vmem:[#allocation211_spill] sm:$0xff] }
 0x15d   :  { %4226 = vmatprep.mubr.f32.mxu0 %v17031_v55  ;;  %8417 = vmatpush1.bf16.msra.mxu0 %v17032_v60  ;;  %v12534_v9 = vsub.f32 %v12516_v53, %v15957_v46  ;;  %v12539_v60 = vsub.f32 %v12521_v32, %v15959_v21  ;;  %v17038_v55 = vld [vmem:[#allocation213_spill] sm:$0xff]  ;;  %v17041_v46 = vld [vmem:[#allocation219_spill] sm:$0xff] }
 0x15e   :  { %1370 = vmatmul.mubr.f32.gmra.mrb[28].mxu1 %v17033_v45  ;;  %8418 = vmatprep.subr.bf16.mxu0 %v16266_v4  ;;  %v17044_v45 = vld [vmem:[#allocation223_spill] sm:$0xff] }
 0x15f   :  { %1376 = vmatprep.mubr.f32.mxu1 %v17034_v48  ;;  %8036 = vmatpush1.bf16.msra.mxu1 %v17035_v43  ;;  %17036 = vst [vmem:[#allocation311_spill] sm:$0xff] %v12534_v9  ;;  %17037 = vst [vmem:[#allocation312_spill] sm:$0xff] %v12539_v60  ;;  %v12546_v48 = vld [vmem:[%s15191_s1 + $0x2f0] sm:$0xff]  ;;  %v12551_v43 = vld [vmem:[%s15191_s1 + $0x2f8] sm:$0xff]  ;;  %s9556_s1 = scalar_lea.vmem %s7770_s26, 256 }
 0x160   :  { %4228 = vmatmul.mubr.f32.gmra.mrb[28].mxu0 %v17038_v55  ;;  %8037 = vmatprep.subr.bf16.mxu1 %v16266_v4  ;;  %17039 = vst [vmem:[#allocation313_spill] sm:$0xff] %v12546_v48  ;;  %17040 = vst [vmem:[#allocation314_spill] sm:$0xff] %v12551_v43  ;;  %v17042_v9 = vld [vmem:[#allocation71_spill] sm:$0xff]  ;;  %v15963_v21 = vand.u32 4294901760, %v12546_v48  ;;  %v15965_v60 = vand.u32 4294901760, %v12551_v43  ;;  %v17043_v55 = vld [vmem:[#allocation218_spill] sm:$0xff]  ;;  %p9557_p0 = scmp.ne.s32.totalorder %s7770_s26, %s9556_s1  ;;  %p9562_p2 = scmp.lt.s32.totalorder %s9556_s1, %s9556_s1 }
 0x161   :  { %4233 = vmatprep.mubr.f32.mxu0 %v17041_v46  ;;  %8420 = vmatpush1.bf16.msra.mxu0 %v17042_v9  ;;  %v17045_v32 = vld [vmem:[#allocation103_spill] sm:$0xff]  ;;  %v17048_v46 = vld [vmem:[#allocation220_spill] sm:$0xff] }
 0x162   :  { %1379 = vmatmul.mubr.f32.gmra.mrb[30].mxu1 %v17043_v55  ;;  %8421 = vmatprep.subr.bf16.mxu0 %v16266_v4  ;;  %v12564_v53 = vsub.f32 %v12546_v48, %v15963_v21  ;;  %v12569_v9 = vsub.f32 %v12551_v43, %v15965_v60  ;;  %v17049_v55 = vld [vmem:[#allocation225_spill] sm:$0xff]  ;;  %v17052_v21 = vld [vmem:[#allocation228_spill] sm:$0xff]  ;;  %v17061_v48 = vld [vmem:[#allocation247_spill] sm:$0xff]  ;;  %p9563_p3 = por %p9562_p2, %p9561_p1 }
 0x163   :  { %1385 = vmatprep.mubr.f32.mxu1 %v17044_v45  ;;  %8039 = vmatpush1.bf16.msra.mxu1 %v17045_v32  ;;  %v17050_v45 = vld [vmem:[#allocation226_spill] sm:$0xff]  ;;  %v17051_v32 = vld [vmem:[#allocation232_spill] sm:$0xff]  ;;  %v17054_v60 = vld [vmem:[#allocation233_spill] sm:$0xff] }
 0x164   :  { %17046 = vst [vmem:[#allocation315_spill] sm:$0xff] %v12564_v53  ;;  %17047 = vst [vmem:[#allocation316_spill] sm:$0xff] %v12569_v9  ;;  %4235 = vmatmul.mubr.f32.gmra.mrb[30].mxu0 %v17048_v46  ;;  %8040 = vmatprep.subr.bf16.mxu1 %v16266_v4  ;;  %v17053_v53 = vld [vmem:[#allocation234_spill] sm:$0xff]  ;;  %v17055_v9 = vld [vmem:[#allocation239_spill] sm:$0xff]  ;;  %p9564_p4 = pnand %p9563_p3, %p9557_p0 }
 0x165   :  { %4240 = vmatprep.mubr.f32.mxu0 %v17049_v55  ;;  %8423 = vmatpush1.bf16.msra.mxu0 %v11689_v5  ;;  %v17056_v46 = vld [vmem:[#allocation235_spill] sm:$0xff]  ;;  %v17057_v43 = vld [vmem:[#allocation241_spill] sm:$0xff]  ;;  %v17058_v55 = vld [vmem:[#allocation240_spill] sm:$0xff] }
 0x166   :  { %1388 = vmatmul.mubr.f32.gmra.mrb[32].mxu1 %v17050_v45  ;;  %8424 = vmatprep.subr.bf16.mxu0 %v16266_v4  ;;  %v17059_v5 = vld [vmem:[#allocation245_spill] sm:$0xff]  ;;  %v17060_v45 = vld [vmem:[#allocation242_spill] sm:$0xff] }
 0x167   :  { %1394 = vmatprep.mubr.f32.mxu1 %v17051_v32  ;;  %v17062_v32 = vld [vmem:[#allocation248_spill] sm:$0xff] }
 0x168   :  { %4242 = vmatmul.mubr.f32.gmra.mrb[32].mxu0 %v17052_v21  ;;  %v17063_v21 = vld [vmem:[#allocation254_spill] sm:$0xff] }
 0x169   :  { %4247 = vmatprep.mubr.f32.mxu0 %v17053_v53  ;;  %v17064_v53 = vld [vmem:[#allocation249_spill] sm:$0xff] }
 0x16a   :  { %1397 = vmatmul.mubr.f32.gmra.mrb[34].mxu1 %v17054_v60  ;;  %v17065_v60 = vld [vmem:[#allocation256_spill] sm:$0xff] }
 0x16b   :  { %1403 = vmatprep.mubr.f32.mxu1 %v17055_v9  ;;  %v17066_v9 = vld [vmem:[#allocation255_spill] sm:$0xff] }
 0x16c   :  { %4249 = vmatmul.mubr.f32.gmra.mrb[34].mxu0 %v17056_v46  ;;  %v17067_v46 = vld [vmem:[#allocation261_spill] sm:$0xff] }
 0x16d   :  { %4254 = vmatprep.mubr.f32.mxu0 %v17057_v43  ;;  %v17068_v43 = vld [vmem:[#allocation257_spill] sm:$0xff] }
 0x16e   :  { %1406 = vmatmul.mubr.f32.gmra.mrb[36].mxu1 %v17058_v55  ;;  %v17069_v55 = vld [vmem:[#allocation263_spill] sm:$0xff] }
 0x16f   :  { %1412 = vmatprep.mubr.f32.mxu1 %v17059_v5  ;;  %v17070_v5 = vld [vmem:[#allocation262_spill] sm:$0xff] }
 0x170   :  { %4256 = vmatmul.mubr.f32.gmra.mrb[36].mxu0 %v17060_v45  ;;  %v17071_v45 = vld [vmem:[#allocation267_spill] sm:$0xff] }
 0x171   :  { %4261 = vmatprep.mubr.f32.mxu0 %v17061_v48  ;;  %v17072_v48 = vld [vmem:[#allocation264_spill] sm:$0xff] }
 0x172   :  { %1415 = vmatmul.mubr.f32.gmra.mrb[38].mxu1 %v17062_v32  ;;  %v17073_v32 = vld [vmem:[#allocation269_spill] sm:$0xff] }
 0x173   :  { %1421 = vmatprep.mubr.f32.mxu1 %v17063_v21  ;;  %v17074_v21 = vld [vmem:[#allocation270_spill] sm:$0xff] }
 0x174   :  { %4263 = vmatmul.mubr.f32.gmra.mrb[38].mxu0 %v17064_v53  ;;  %v17075_v53 = vld [vmem:[#allocation276_spill] sm:$0xff] }
 0x175   :  { %4268 = vmatprep.mubr.f32.mxu0 %v17065_v60  ;;  %v17076_v60 = vld [vmem:[#allocation272_spill] sm:$0xff] }
 0x176   :  { %1424 = vmatmul.mubr.f32.gmra.mrb[40].mxu1 %v17066_v9  ;;  %v17077_v9 = vld [vmem:[#allocation278_spill] sm:$0xff] }
 0x177   :  { %1430 = vmatprep.mubr.f32.mxu1 %v17067_v46  ;;  %v17078_v46 = vld [vmem:[#allocation277_spill] sm:$0xff] }
 0x178   :  { %4270 = vmatmul.mubr.f32.gmra.mrb[40].mxu0 %v17068_v43 }
 0x179   :  { %4275 = vmatprep.mubr.f32.mxu0 %v17069_v55  ;;  %v17079_v55 = vand.u32 4294901760, %v16909_v57  ;;  %v17096_v57 = vand.u32 4294901760, %v12112_v7  ;;  %v17103_v7 = vand.u32 4294901760, %v12146_v35  ;;  %v17113_v35 = vand.u32 4294901760, %v16948_v24 }
 0x17a   :  { %1433 = vmatmul.mubr.f32.gmra.mrb[42].mxu1 %v17070_v5  ;;  %v17080_v5 = vand.u32 4294901760, %v9656_v17  ;;  %v17087_v17 = vand.u32 4294901760, %v9685_v25  ;;  %v17093_v25 = vand.u32 4294901760, %v16923_v22  ;;  %v17117_v24 = vand.u32 4294901760, %v12210_v37 }
 0x17b   :  { %1439 = vmatprep.mubr.f32.mxu1 %v17071_v45  ;;  %v17081_v45 = vand.u32 4294901760, %v9658_v18  ;;  %v17088_v18 = vand.u32 4294901760, %v9687_v26  ;;  %v17094_v26 = vand.u32 4294901760, %v9725_v42  ;;  %v17100_v42 = vand.u32 4294901760, %v16931_v3 }
 0x17c   :  { %4277 = vmatmul.mubr.f32.gmra.mrb[42].mxu0 %v17072_v48 }
 0x17d   :  { %4282 = vmatprep.mubr.f32.mxu0 %v17073_v32  ;;  %v8041_v48 = vpack.c.bf16 %v17081_v45, %v17080_v5  ;;  %v8044_v45 = vpack.c.bf16 %v17088_v18, %v17087_v17  ;;  %v17092_v5 = vand.u32 4294901760, %v16922_v49  ;;  %v17097_v49 = vand.u32 4294901760, %v12117_v40 }
 0x17e   :  { %1442 = vmatmul.mubr.f32.gmra.mrb[44].mxu1 %v17074_v21  ;;  %v17104_v40 = vand.u32 4294901760, %v12151_v16  ;;  %v17111_v16 = vand.u32 4294901760, %v12185_v62  ;;  %v17120_v62 = vand.u32 4294901760, %v16956_v0  ;;  %v17123_v18 = vand.u32 4294901760, %v16764_v15  ;;  %v17126_v0 = vld [vmem:[#allocation108_spill] sm:$0xff] }
 0x17f   :  { %1448 = vmatprep.mubr.f32.mxu1 %v17075_v53  ;;  %v17082_v53 = vand.u32 4294901760, %v12044_v63  ;;  %v12654_v22 = vpack.c.bf16 %v17097_v49, %v17096_v57  ;;  %v17127_v37 = vand.u32 4294901760, %v17126_v0  ;;  %v17133_v15 = vld [vmem:[#allocation156_spill] sm:$0xff]  ;;  %v17137_v57 = vld [vmem:[#allocation35_spill] sm:$0xff]  ;;  %v17163_v0 = vld [vmem:[#allocation174_spill] sm:$0xff] }
 0x180   :  { %4284 = vmatmul.mubr.f32.gmra.mrb[44].mxu0 %v17076_v60  ;;  %v17083_v60 = vand.u32 4294901760, %v12049_v47  ;;  %v12673_v3 = vpack.c.bf16 %v17104_v40, %v17103_v7  ;;  %v17109_v47 = vand.u32 4294901760, %v16515_v27  ;;  %v17115_v27 = vand.u32 4294901760, %v16534_v2  ;;  %v17143_v7 = vld [vmem:[#allocation288_spill] sm:$0xff] }
 0x181   :  { %4289 = vmatprep.mubr.f32.mxu0 %v17077_v9  ;;  %17098 = vst [vmem:[#allocation319_spill] sm:$0xff] %v12654_v22  ;;  %v17121_v2 = vand.u32 4294901760, %v16957_v8  ;;  %v17138_v49 = vand.u32 4294901760, %v17137_v57  ;;  %v17144_v40 = vand.u32 4294901760, %v17143_v7 }
 0x182   :  { %1451 = vmatmul.mubr.f32.gmra.mrb[46].mxu1 %v17078_v46  ;;  %v12617_v21 = vpack.c.bf16 %v17083_v60, %v17082_v53  ;;  %v17085_v46 = vand.u32 4294901760, %v16914_v59  ;;  %v17089_v53 = vand.u32 4294901760, %v12078_v31  ;;  %v17099_v31 = vand.u32 4294901760, %v16930_v14  ;;  %17105 = vst [vmem:[#allocation320_spill] sm:$0xff] %v12673_v3 }
 0x183   :  { %1555 = vmatprep.mubr.f32.mxu1 %v17079_v55  ;;  %v17086_v55 = vand.u32 4294901760, %v16915_v41  ;;  %v17095_v41 = vand.u32 4294901760, %v9730_v44  ;;  %v17101_v44 = vand.u32 4294901760, %v9754_v51  ;;  %v17106_v14 = vand.u32 4294901760, %v16938_v11 }
 0x184   :  { %4291 = vmatmul.mubr.f32.gmra.mrb[46].mxu0 %v11696_v36  ;;  %17084 = vst [vmem:[#allocation317_spill] sm:$0xff] %v12617_v21  ;;  %v17107_v51 = vand.u32 4294901760, %v16941_v54  ;;  %v17110_v11 = vand.u32 4294901760, %v12180_v58  ;;  %v17118_v58 = vand.u32 4294901760, %v12215_v50  ;;  %v17125_v50 = vld [vmem:[#allocation149_spill] sm:$0xff] }
 0x185   :  { %4393 = vmatprep.mubr.f32.mxu0 %v16913_v10 }
 0x186   :  { %1559 = vmatmul.mubr.f32.vlgmr.msra.gmra.mrb[0].mxu1 %v17085_v46  ;;  %v17090_v46 = vand.u32 4294901760, %v12083_v38  ;;  %v17102_v38 = vand.u32 4294901760, %v9767_v56  ;;  %v17108_v56 = vand.u32 4294901760, %v16514_v13  ;;  %v12692_v54 = vpack.c.bf16 %v17111_v16, %v17110_v11  ;;  %v17150_v11 = vld [vmem:[#allocation39_spill] sm:$0xff] }
 0x187   :  { %1566 = vmatprep.mubr.f32.mxu1 %v17086_v55  ;;  %8042 = vmatpush1.bf16.msra.mxu1 %v8041_v48  ;;  %v8047_v48 = vpack.c.bf16 %v17095_v41, %v17094_v26  ;;  %v17114_v13 = vand.u32 4294901760, %v16949_v34  ;;  %v17116_v55 = vand.u32 4294901760, %v16535_v23  ;;  %v12711_v34 = vpack.c.bf16 %v17118_v58, %v17117_v24  ;;  %v17135_v41 = vld [vmem:[#allocation34_spill] sm:$0xff]  ;;  %v17156_v24 = vld [vmem:[#allocation135_spill] sm:$0xff] }
 0x188   :  { %4395 = vmatmul.mubr.f32.vlgmr.msra.gmra.mrb[0].mxu0 %v16917_v33  ;;  %8043 = vmatprep.subr.bf16.mxu1 %v16266_v4  ;;  %v12635_v60 = vpack.c.bf16 %v17090_v46, %v17089_v53  ;;  %v8050_v63 = vpack.c.bf16 %v17102_v38, %v17101_v44  ;;  %v8053_v59 = vpack.c.bf16 %v17109_v47, %v17108_v56  ;;  %v17122_v23 = vand.u32 4294901760, %v16763_v20  ;;  %v17124_v53 = vld [vmem:[#allocation143_spill] sm:$0xff]  ;;  %v17140_v44 = vld [vmem:[#allocation158_spill] sm:$0xff]  ;;  %v17141_v38 = vld [vmem:[#allocation124_spill] sm:$0xff] }
 0x189   :  { %8426 = vmatpush1.bf16.msra.mxu0 %v12617_v21  ;;  %4400 = vmatprep.mubr.f32.mxu0 %v16919_v61  ;;  %17112 = vst [vmem:[#allocation321_spill] sm:$0xff] %v12692_v54  ;;  %v8056_v17 = vpack.c.bf16 %v17116_v55, %v17115_v27  ;;  %17119 = vst [vmem:[#allocation322_spill] sm:$0xff] %v12711_v34  ;;  %v17128_v46 = vld [vmem:[#allocation111_spill] sm:$0xff]  ;;  %v17134_v20 = vand.u32 4294901760, %v17133_v15  ;;  %v17148_v47 = vld [vmem:[#allocation165_spill] sm:$0xff]  ;;  %v17151_v16 = vand.u32 4294901760, %v17150_v11 }
 0x18a   :  { %17091 = vst [vmem:[#allocation318_spill] sm:$0xff] %v12635_v60  ;;  %1570 = vmatmul.mubr.f32.gmra.mrb[2].mxu1 %v17092_v5  ;;  %8427 = vmatprep.subr.bf16.mxu0 %v16266_v4  ;;  %v17129_v5 = vand.u32 4294901760, %v17128_v46  ;;  %v17154_v55 = vld [vmem:[#allocation159_spill] sm:$0xff]  ;;  %v17157_v58 = vand.u32 4294901760, %v17156_v24  ;;  %v17165_v46 = vld [vmem:[#allocation48_spill] sm:$0xff] }
 0x18b   :  { %1577 = vmatprep.mubr.f32.mxu1 %v17093_v25  ;;  %8045 = vmatpush1.bf16.msra.mxu1 %v8044_v45  ;;  %v8059_v45 = vpack.c.bf16 %v17123_v18, %v17122_v23  ;;  %v17131_v25 = vld [vmem:[#allocation151_spill] sm:$0xff]  ;;  %v17161_v18 = vld [vmem:[#allocation166_spill] sm:$0xff] }
 0x18c   :  { %4402 = vmatmul.mubr.f32.gmra.mrb[2].mxu0 %v16925_v39  ;;  %8046 = vmatprep.subr.bf16.mxu1 %v16266_v4  ;;  %v12730_v8 = vpack.c.bf16 %v17129_v5, %v17127_v37  ;;  %v17132_v26 = vand.u32 4294901760, %v17131_v25  ;;  %v17164_v37 = vand.u32 4294901760, %v17163_v0  ;;  %v17166_v5 = vand.u32 4294901760, %v17165_v46  ;;  %v17167_v25 = vld [vmem:[#allocation49_spill] sm:$0xff]  ;;  %v17193_v0 = vld [vmem:[#allocation191_spill] sm:$0xff]  ;;  %v17195_v46 = vld [vmem:[#allocation62_spill] sm:$0xff] }
 0x18d   :  { %4407 = vmatprep.mubr.f32.mxu0 %v16928_v52  ;;  %8429 = vmatpush1.bf16.msra.mxu0 %v12635_v60  ;;  %v17344_v33 = vld [vmem:[#allocation283_spill] sm:$0xff] }
 0x18e   :  { %1581 = vmatmul.mubr.f32.gmra.mrb[4].mxu1 %v17099_v31  ;;  %8430 = vmatprep.subr.bf16.mxu0 %v16266_v4  ;;  %17130 = vst [vmem:[#allocation108_spill] sm:$0xff] %v12730_v8  ;;  %v73_v21 = vld [vmem:[%s15190_s0 + $0x1a0] sm:$0xff] }
 0x18f   :  { %1588 = vmatprep.mubr.f32.mxu1 %v17100_v42  ;;  %8048 = vmatpush1.bf16.msra.mxu1 %v8047_v48  ;;  %v17136_v48 = vand.u32 4294901760, %v17135_v41  ;;  %v17139_v42 = vld [vmem:[#allocation150_spill] sm:$0xff]  ;;  %v17170_v41 = vld [vmem:[#allocation176_spill] sm:$0xff] }
 0x190   :  { %4409 = vmatmul.mubr.f32.gmra.mrb[4].mxu0 %v16935_v28  ;;  %8049 = vmatprep.subr.bf16.mxu1 %v16266_v4 }
 0x191   :  { %4414 = vmatprep.mubr.f32.mxu0 %v16936_v19  ;;  %8432 = vmatpush1.bf16.msra.mxu0 %v12654_v22  ;;  %v8062_v31 = vpack.c.bf16 %v17138_v49, %v17136_v48  ;;  %v17171_v48 = vld [vmem:[#allocation290_spill] sm:$0xff]  ;;  %v17173_v49 = vld [vmem:[#allocation291_spill] sm:$0xff]  ;;  %v17336_v19 = vld [vmem:[#allocation276_spill] sm:$0xff] }
 0x192   :  { %1592 = vmatmul.mubr.f32.gmra.mrb[6].mxu1 %v17106_v14  ;;  %8433 = vmatprep.subr.bf16.mxu0 %v16266_v4  ;;  %v17172_v57 = vand.u32 4294901760, %v17171_v48  ;;  %v17199_v48 = vld [vmem:[#allocation187_spill] sm:$0xff] }
 0x193   :  { %1599 = vmatprep.mubr.f32.mxu1 %v17107_v51  ;;  %8051 = vmatpush1.bf16.msra.mxu1 %v8050_v63  ;;  %v17142_v63 = vand.u32 4294901760, %v17141_v38  ;;  %v17146_v51 = vld [vmem:[#allocation162_spill] sm:$0xff] }
 0x194   :  { %4416 = vmatmul.mubr.f32.gmra.mrb[6].mxu0 %v16943_v29  ;;  %8052 = vmatprep.subr.bf16.mxu1 %v16266_v4  ;;  %v17147_v56 = vand.u32 4294901760, %v17146_v51 }
 0x195   :  { %4421 = vmatprep.mubr.f32.mxu0 %v16944_v6  ;;  %8435 = vmatpush1.bf16.msra.mxu0 %v12673_v3  ;;  %v12749_v14 = vpack.c.bf16 %v17144_v40, %v17142_v63  ;;  %v17176_v63 = vld [vmem:[#allocation175_spill] sm:$0xff]  ;;  %v17178_v40 = vld [vmem:[#allocation182_spill] sm:$0xff] }
 0x196   :  { %1603 = vmatmul.mubr.f32.gmra.mrb[8].mxu1 %v17113_v35  ;;  %8436 = vmatprep.subr.bf16.mxu0 %v16266_v4  ;;  %v17152_v35 = vld [vmem:[#allocation43_spill] sm:$0xff]  ;;  %v17177_v7 = vand.u32 4294901760, %v17176_v63  ;;  %v17179_v51 = vand.u32 4294901760, %v17178_v40 }
 0x197   :  { %1610 = vmatprep.mubr.f32.mxu1 %v17114_v13  ;;  %8054 = vmatpush1.bf16.msra.mxu1 %v8053_v59  ;;  %17145 = vst [vmem:[#allocation111_spill] sm:$0xff] %v12749_v14  ;;  %v17149_v59 = vand.u32 4294901760, %v17148_v47  ;;  %v17153_v13 = vand.u32 4294901760, %v17152_v35  ;;  %v17184_v35 = vld [vmem:[#allocation177_spill] sm:$0xff]  ;;  %v17203_v63 = vld [vmem:[#allocation299_spill] sm:$0xff] }
 0x198   :  { %4423 = vmatmul.mubr.f32.gmra.mrb[8].mxu0 %v16951_v1  ;;  %8055 = vmatprep.subr.bf16.mxu1 %v16266_v4 }
 0x199   :  { %4428 = vmatprep.mubr.f32.mxu0 %v16954_v30  ;;  %8438 = vmatpush1.bf16.msra.mxu0 %v12692_v54  ;;  %v8065_v27 = vpack.c.bf16 %v17153_v13, %v17151_v16  ;;  %v17185_v13 = vld [vmem:[#allocation184_spill] sm:$0xff] }
 0x19a   :  { %1614 = vmatmul.mubr.f32.gmra.mrb[10].mxu1 %v17120_v62  ;;  %8439 = vmatprep.subr.bf16.mxu0 %v16266_v4  ;;  %v17158_v62 = vld [vmem:[#allocation139_spill] sm:$0xff] }
 0x19b   :  { %1621 = vmatprep.mubr.f32.mxu1 %v17121_v2  ;;  %8057 = vmatpush1.bf16.msra.mxu1 %v8056_v17  ;;  %v17155_v17 = vld [vmem:[#allocation167_spill] sm:$0xff]  ;;  %v17159_v2 = vand.u32 4294901760, %v17158_v62 }
 0x19c   :  { %4430 = vmatmul.mubr.f32.gmra.mrb[10].mxu0 %v17124_v53  ;;  %8058 = vmatprep.subr.bf16.mxu1 %v16266_v4  ;;  %v17332_v53 = vld [vmem:[#allocation270_spill] sm:$0xff] }
 0x19d   :  { %4435 = vmatprep.mubr.f32.mxu0 %v17125_v50  ;;  %8441 = vmatpush1.bf16.msra.mxu0 %v12711_v34  ;;  %v12768_v23 = vpack.c.bf16 %v17159_v2, %v17157_v58  ;;  %v17188_v58 = vld [vmem:[#allocation295_spill] sm:$0xff]  ;;  %v17329_v50 = vld [vmem:[#allocation282_spill] sm:$0xff] }
 0x19e   :  { %1625 = vmatmul.mubr.f32.gmra.mrb[12].mxu1 %v17132_v26  ;;  %8442 = vmatprep.subr.bf16.mxu0 %v16266_v4  ;;  %v17168_v26 = vand.u32 4294901760, %v17167_v25  ;;  %v17189_v62 = vand.u32 4294901760, %v17188_v58  ;;  %v17197_v25 = vld [vmem:[#allocation64_spill] sm:$0xff] }
 0x19f   :  { %1632 = vmatprep.mubr.f32.mxu1 %v17134_v20  ;;  %8060 = vmatpush1.bf16.msra.mxu1 %v8059_v45  ;;  %17160 = vst [vmem:[#allocation151_spill] sm:$0xff] %v12768_v23  ;;  %v17162_v45 = vand.u32 4294901760, %v17161_v18  ;;  %v17169_v20 = vld [vmem:[#allocation170_spill] sm:$0xff]  ;;  %v17191_v18 = vld [vmem:[#allocation185_spill] sm:$0xff] }
 0x1a0   :  { %4437 = vmatmul.mubr.f32.gmra.mrb[12].mxu0 %v17139_v42  ;;  %8061 = vmatprep.subr.bf16.mxu1 %v16266_v4  ;;  %v8068_v15 = vpack.c.bf16 %v17168_v26, %v17166_v5  ;;  %v17196_v5 = vand.u32 4294901760, %v17195_v46  ;;  %v17198_v26 = vand.u32 4294901760, %v17197_v25  ;;  %v17221_v25 = vld [vmem:[#allocation16_spill] sm:$0xff]  ;;  %v17321_v42 = vld [vmem:[#allocation267_spill] sm:$0xff] }
 0x1a1   :  { %4442 = vmatprep.mubr.f32.mxu0 %v17140_v44  ;;  %8444 = vmatpush1.bf16.msra.mxu0 %v12730_v8  ;;  %v17327_v44 = vld [vmem:[#allocation264_spill] sm:$0xff] }
 0x1a2   :  { %1636 = vmatmul.mubr.f32.gmra.mrb[14].mxu1 %v17147_v56  ;;  %8445 = vmatprep.subr.bf16.mxu0 %v16266_v4  ;;  %v17180_v56 = vld [vmem:[#allocation54_spill] sm:$0xff] }
 0x1a3   :  { %1643 = vmatprep.mubr.f32.mxu1 %v17149_v59  ;;  %8063 = vmatpush1.bf16.msra.mxu1 %v8062_v31  ;;  %v17174_v31 = vand.u32 4294901760, %v17173_v49  ;;  %v17181_v47 = vand.u32 4294901760, %v17180_v56  ;;  %v17182_v59 = vld [vmem:[#allocation56_spill] sm:$0xff]  ;;  %v17201_v49 = vld [vmem:[#allocation298_spill] sm:$0xff] }
 0x1a4   :  { %4444 = vmatmul.mubr.f32.gmra.mrb[14].mxu0 %v17154_v55  ;;  %8064 = vmatprep.subr.bf16.mxu1 %v16266_v4  ;;  %v17183_v11 = vand.u32 4294901760, %v17182_v59 }
 0x1a5   :  { %4449 = vmatprep.mubr.f32.mxu0 %v17155_v17  ;;  %8447 = vmatpush1.bf16.msra.mxu0 %v12749_v14  ;;  %v12787_v38 = vpack.c.bf16 %v17174_v31, %v17172_v57  ;;  %v17200_v57 = vld [vmem:[#allocation193_spill] sm:$0xff]  ;;  %v17202_v31 = vand.u32 4294901760, %v17201_v49  ;;  %v17359_v14 = vld [vmem:[#allocation92_spill] sm:$0xff] }
 0x1a6   :  { %1647 = vmatmul.mubr.f32.gmra.mrb[16].mxu1 %v17162_v45  ;;  %8448 = vmatprep.subr.bf16.mxu0 %v16266_v4  ;;  %v8071_v16 = vpack.c.bf16 %v17183_v11, %v17181_v47  ;;  %v17192_v45 = vand.u32 4294901760, %v17191_v18  ;;  %v17208_v47 = vld [vmem:[#allocation199_spill] sm:$0xff]  ;;  %v17215_v18 = vld [vmem:[#allocation18_spill] sm:$0xff] }
 0x1a7   :  { %1654 = vmatprep.mubr.f32.mxu1 %v17164_v37  ;;  %8066 = vmatpush1.bf16.msra.mxu1 %v8065_v27  ;;  %17175 = vst [vmem:[#allocation156_spill] sm:$0xff] %v12787_v38  ;;  %v17186_v27 = vld [vmem:[#allocation294_spill] sm:$0xff]  ;;  %v17194_v37 = vand.u32 4294901760, %v17193_v0  ;;  %v17209_v59 = vand.u32 4294901760, %v17208_v47  ;;  %v17210_v11 = vld [vmem:[#allocation67_spill] sm:$0xff]  ;;  %v17229_v47 = vld [vmem:[#allocation200_spill] sm:$0xff] }
 0x1a8   :  { %4451 = vmatmul.mubr.f32.gmra.mrb[16].mxu0 %v17169_v20  ;;  %8067 = vmatprep.subr.bf16.mxu1 %v16266_v4  ;;  %v17187_v24 = vand.u32 4294901760, %v17186_v27  ;;  %v17212_v27 = vld [vmem:[#allocation70_spill] sm:$0xff] }
 0x1a9   :  { %4456 = vmatprep.mubr.f32.mxu0 %v17170_v41  ;;  %8450 = vmatpush1.bf16.msra.mxu0 %v12768_v23  ;;  %v17309_v41 = vld [vmem:[#allocation261_spill] sm:$0xff]  ;;  %v17358_v23 = vld [vmem:[#allocation286_spill] sm:$0xff] }
 0x1aa   :  { %1658 = vmatmul.mubr.f32.gmra.mrb[18].mxu1 %v17177_v7  ;;  %8451 = vmatprep.subr.bf16.mxu0 %v16266_v4  ;;  %v12806_v2 = vpack.c.bf16 %v17189_v62, %v17187_v24  ;;  %v17204_v7 = vand.u32 4294901760, %v17203_v63  ;;  %v17213_v24 = vand.u32 4294901760, %v17212_v27  ;;  %v17214_v62 = vld [vmem:[#allocation194_spill] sm:$0xff] }
 0x1ab   :  { %1665 = vmatprep.mubr.f32.mxu1 %v17179_v51  ;;  %8069 = vmatpush1.bf16.msra.mxu1 %v8068_v15  ;;  %v8074_v15 = vpack.c.bf16 %v17198_v26, %v17196_v5  ;;  %v17206_v51 = vld [vmem:[#allocation192_spill] sm:$0xff]  ;;  %v17222_v26 = vand.u32 4294901760, %v17221_v25 }
 0x1ac   :  { %4458 = vmatmul.mubr.f32.gmra.mrb[18].mxu0 %v17184_v35  ;;  %8070 = vmatprep.subr.bf16.mxu1 %v16266_v4  ;;  %17190 = vst [vmem:[#allocation34_spill] sm:$0xff] %v12806_v2  ;;  %v12825_v40 = vpack.c.bf16 %v17204_v7, %v17202_v31  ;;  %v17207_v56 = vand.u32 4294901760, %v17206_v51  ;;  %v17225_v31 = vld [vmem:[#allocation76_spill] sm:$0xff]  ;;  %v17227_v7 = vld [vmem:[#allocation78_spill] sm:$0xff] }
 0x1ad   :  { %4463 = vmatprep.mubr.f32.mxu0 %v17185_v13  ;;  %8453 = vmatpush1.bf16.msra.mxu0 %v12787_v38  ;;  %v17226_v63 = vand.u32 4294901760, %v17225_v31  ;;  %v17228_v51 = vand.u32 4294901760, %v17227_v7  ;;  %v17243_v31 = vld [vmem:[#allocation206_spill] sm:$0xff] }
 0x1ae   :  { %1669 = vmatmul.mubr.f32.gmra.mrb[20].mxu1 %v17192_v45  ;;  %8454 = vmatprep.subr.bf16.mxu0 %v16266_v4  ;;  %17205 = vst [vmem:[#allocation35_spill] sm:$0xff] %v12825_v40  ;;  %v17216_v45 = vld [vmem:[#allocation302_spill] sm:$0xff] }
 0x1af   :  { %1676 = vmatprep.mubr.f32.mxu1 %v17194_v37  ;;  %8072 = vmatpush1.bf16.msra.mxu1 %v8071_v16  ;;  %v17211_v16 = vand.u32 4294901760, %v17210_v11  ;;  %v17217_v0 = vand.u32 4294901760, %v17216_v45  ;;  %v17218_v37 = vld [vmem:[#allocation303_spill] sm:$0xff]  ;;  %v17231_v11 = vand.u32 4294901760, %v12482_v12  ;;  %v17244_v12 = vld [vmem:[#allocation212_spill] sm:$0xff]  ;;  %v17317_v13 = vld [vmem:[#allocation262_spill] sm:$0xff] }
 0x1b0   :  { %4465 = vmatmul.mubr.f32.gmra.mrb[20].mxu0 %v17199_v48  ;;  %8073 = vmatprep.subr.bf16.mxu1 %v16266_v4  ;;  %v17219_v46 = vand.u32 4294901760, %v17218_v37  ;;  %v17307_v48 = vld [vmem:[#allocation25_spill] sm:$0xff] }
 0x1b1   :  { %4470 = vmatprep.mubr.f32.mxu0 %v17200_v57  ;;  %8456 = vmatpush1.bf16.msra.mxu0 %v12806_v2  ;;  %v8077_v58 = vpack.c.bf16 %v17213_v24, %v17211_v16  ;;  %v17232_v16 = vld [vmem:[#allocation306_spill] sm:$0xff]  ;;  %v17318_v57 = vand.u32 4294901760, %v17317_v13  ;;  %v17320_v55 = vand.u32 4294901760, %v17307_v48 }
 0x1b2   :  { %1680 = vmatmul.mubr.f32.gmra.mrb[22].mxu1 %v17207_v56  ;;  %8457 = vmatprep.subr.bf16.mxu0 %v16266_v4  ;;  %v12844_v5 = vpack.c.bf16 %v17219_v46, %v17217_v0  ;;  %v8080_v56 = vpack.c.bf16 %v17228_v51, %v17226_v63  ;;  %v17233_v27 = vand.u32 4294901760, %v17232_v16  ;;  %v17237_v0 = vld [vmem:[#allocation210_spill] sm:$0xff]  ;;  %v17239_v46 = vld [vmem:[#allocation81_spill] sm:$0xff] }
 0x1b3   :  { %1687 = vmatprep.mubr.f32.mxu1 %v17209_v59  ;;  %8075 = vmatpush1.bf16.msra.mxu1 %v8074_v15  ;;  %v17223_v15 = vld [vmem:[#allocation203_spill] sm:$0xff]  ;;  %v17230_v59 = vld [vmem:[#allocation21_spill] sm:$0xff]  ;;  %v17238_v37 = vand.u32 4294901760, %v17237_v0  ;;  %v17240_v25 = vand.u32 4294901760, %v17239_v46  ;;  %v17247_v51 = vld [vmem:[#allocation310_spill] sm:$0xff] }
 0x1b4   :  { %4472 = vmatmul.mubr.f32.gmra.mrb[22].mxu0 %v17214_v62  ;;  %8076 = vmatprep.subr.bf16.mxu1 %v16266_v4  ;;  %17220 = vst [vmem:[#allocation124_spill] sm:$0xff] %v12844_v5  ;;  %v17224_v49 = vand.u32 4294901760, %v17223_v15  ;;  %v12863_v24 = vpack.c.bf16 %v17233_v27, %v17231_v11  ;;  %v17245_v63 = vld [vmem:[#allocation309_spill] sm:$0xff]  ;;  %v17248_v11 = vand.u32 4294901760, %v17247_v51  ;;  %v17254_v0 = vld [vmem:[#allocation88_spill] sm:$0xff] }
 0x1b5   :  { %4477 = vmatprep.mubr.f32.mxu0 %v17215_v18  ;;  %8459 = vmatpush1.bf16.msra.mxu0 %v12825_v40  ;;  %v17246_v7 = vand.u32 4294901760, %v17245_v63  ;;  %v17256_v46 = vld [vmem:[#allocation89_spill] sm:$0xff]  ;;  %v17259_v63 = vld [vmem:[#allocation219_spill] sm:$0xff]  ;;  %v44_v18 = vld [vmem:[%s15190_s0 + $0xb8] sm:$0xff] }
 0x1b6   :  { %1691 = vmatmul.mubr.f32.gmra.mrb[24].mxu1 %v17222_v26  ;;  %8460 = vmatprep.subr.bf16.mxu0 %v16266_v4  ;;  %17234 = vst [vmem:[#allocation288_spill] sm:$0xff] %v12863_v24  ;;  %v17241_v26 = vld [vmem:[#allocation85_spill] sm:$0xff] }
 0x1b7   :  { %1698 = vmatprep.mubr.f32.mxu1 %v17224_v49  ;;  %8078 = vmatpush1.bf16.msra.mxu1 %v8077_v58  ;;  %v17235_v58 = vld [vmem:[#allocation22_spill] sm:$0xff]  ;;  %v17242_v15 = vand.u32 4294901760, %v17241_v26  ;;  %v12882_v16 = vpack.c.bf16 %v17248_v11, %v17246_v7  ;;  %v17260_v7 = vld [vmem:[#allocation313_spill] sm:$0xff] }
 0x1b8   :  { %4479 = vmatmul.mubr.f32.gmra.mrb[24].mxu0 %v17229_v47  ;;  %8079 = vmatprep.subr.bf16.mxu1 %v16266_v4  ;;  %v17236_v45 = vand.u32 4294901760, %v17235_v58  ;;  %v17252_v58 = vld [vmem:[#allocation217_spill] sm:$0xff]  ;;  %v17261_v51 = vand.u32 4294901760, %v17260_v7  ;;  %v17262_v11 = vld [vmem:[#allocation314_spill] sm:$0xff] }
 0x1b9   :  { %4484 = vmatprep.mubr.f32.mxu0 %v17230_v59  ;;  %8462 = vmatpush1.bf16.msra.mxu0 %v12844_v5  ;;  %v8083_v49 = vpack.c.bf16 %v17242_v15, %v17240_v25  ;;  %17249 = vst [vmem:[#allocation162_spill] sm:$0xff] %v12882_v16  ;;  %v17257_v25 = vand.u32 4294901760, %v17256_v46  ;;  %v17258_v15 = vld [vmem:[#allocation213_spill] sm:$0xff] }
 0x1ba   :  { %1702 = vmatmul.mubr.f32.gmra.mrb[26].mxu1 %v17236_v45  ;;  %8463 = vmatprep.subr.bf16.mxu0 %v16266_v4  ;;  %v17253_v45 = vand.u32 4294901760, %v17252_v58  ;;  %v17270_v46 = vld [vmem:[#allocation225_spill] sm:$0xff] }
 0x1bb   :  { %1709 = vmatprep.mubr.f32.mxu1 %v17238_v37  ;;  %8081 = vmatpush1.bf16.msra.mxu1 %v8080_v56  ;;  %v17250_v56 = vld [vmem:[#allocation211_spill] sm:$0xff]  ;;  %v17255_v37 = vand.u32 4294901760, %v17254_v0 }
 0x1bc   :  { %4486 = vmatmul.mubr.f32.gmra.mrb[26].mxu0 %v17243_v31  ;;  %8082 = vmatprep.subr.bf16.mxu1 %v16266_v4  ;;  %v17251_v27 = vand.u32 4294901760, %v17250_v56  ;;  %v17263_v56 = vand.u32 4294901760, %v17262_v11 }
 0x1bd   :  { %4491 = vmatprep.mubr.f32.mxu0 %v17244_v12  ;;  %8465 = vmatpush1.bf16.msra.mxu0 %v12863_v24  ;;  %v8086_v26 = vpack.c.bf16 %v17257_v25, %v17255_v37  ;;  %v17269_v37 = vld [vmem:[#allocation220_spill] sm:$0xff]  ;;  %v17271_v25 = vld [vmem:[#allocation226_spill] sm:$0xff] }
 0x1be   :  { %1713 = vmatmul.mubr.f32.gmra.mrb[28].mxu1 %v17251_v27  ;;  %8466 = vmatprep.subr.bf16.mxu0 %v16266_v4  ;;  %v12901_v27 = vpack.c.bf16 %v17263_v56, %v17261_v51  ;;  %v17272_v7 = vand.u32 4294901760, %v17271_v25  ;;  %v17273_v51 = vld [vmem:[#allocation232_spill] sm:$0xff]  ;;  %v25_v25 = vld [vmem:[%s15190_s0 + $0x20] sm:$0xff] }
 0x1bf   :  { %1720 = vmatprep.mubr.f32.mxu1 %v17253_v45  ;;  %8084 = vmatpush1.bf16.msra.mxu1 %v8083_v49  ;;  %v17265_v49 = vld [vmem:[#allocation218_spill] sm:$0xff]  ;;  %v17267_v45 = vld [vmem:[#allocation223_spill] sm:$0xff]  ;;  %v17274_v11 = vand.u32 4294901760, %v17273_v51  ;;  %v17275_v56 = vld [vmem:[#allocation228_spill] sm:$0xff] }
 0x1c0   :  { %4493 = vmatmul.mubr.f32.gmra.mrb[28].mxu0 %v17258_v15  ;;  %8085 = vmatprep.subr.bf16.mxu1 %v16266_v4  ;;  %17264 = vst [vmem:[#allocation165_spill] sm:$0xff] %v12901_v27  ;;  %v17266_v58 = vand.u32 4294901760, %v17265_v49  ;;  %v17268_v0 = vand.u32 4294901760, %v17267_v45  ;;  %v17276_v49 = vld [vmem:[#allocation234_spill] sm:$0xff]  ;;  %v26_v45 = vld [vmem:[%s15190_s0 + $0x28] sm:$0xff]  ;;  %v17282_v51 = vld [vmem:[#allocation241_spill] sm:$0xff] }
 0x1c1   :  { %4498 = vmatprep.mubr.f32.mxu0 %v17259_v63  ;;  %8468 = vmatpush1.bf16.msra.mxu0 %v12882_v16  ;;  %v17346_v16 = vld [vmem:[#allocation277_spill] sm:$0xff] }
 0x1c2   :  { %1724 = vmatmul.mubr.f32.gmra.mrb[30].mxu1 %v17266_v58  ;;  %8469 = vmatprep.subr.bf16.mxu0 %v16266_v4  ;;  %v17347_v24 = vand.u32 4294901760, %v17346_v16 }
 0x1c3   :  { %1731 = vmatprep.mubr.f32.mxu1 %v17268_v0  ;;  %8087 = vmatpush1.bf16.msra.mxu1 %v8086_v26  ;;  %v17277_v26 = vld [vmem:[#allocation233_spill] sm:$0xff]  ;;  %v17279_v0 = vld [vmem:[#allocation239_spill] sm:$0xff] }
 0x1c4   :  { %4500 = vmatmul.mubr.f32.gmra.mrb[30].mxu0 %v17269_v37  ;;  %8088 = vmatprep.subr.bf16.mxu1 %v16266_v4  ;;  %v17278_v58 = vand.u32 4294901760, %v17277_v26 }
 0x1c5   :  { %4505 = vmatprep.mubr.f32.mxu0 %v17270_v46  ;;  %8471 = vmatpush1.bf16.msra.mxu0 %v12901_v27  ;;  %v17280_v46 = vand.u32 4294901760, %v17279_v0  ;;  %v32_v0 = vld [vmem:[%s15190_s0 + $0x58] sm:$0xff] }
 0x1c6   :  { %1735 = vmatmul.mubr.f32.gmra.mrb[32].mxu1 %v17272_v7  ;;  %8472 = vmatprep.subr.bf16.mxu0 %v16266_v4  ;;  %v17281_v7 = vld [vmem:[#allocation235_spill] sm:$0xff]  ;;  %v12953_v63 = vand.u32 4294901760, %v32_v0 }
 0x1c7   :  { %1742 = vmatprep.mubr.f32.mxu1 %v17274_v11  ;;  %v12931_v11 = vand.u32 4294901760, %v26_v45 }
 0x1c8   :  { %4507 = vmatmul.mubr.f32.gmra.mrb[32].mxu0 %v17275_v56  ;;  %v17287_v56 = vld [vmem:[#allocation245_spill] sm:$0xff]  ;;  %17292 = vst [vmem:[#allocation139_spill] sm:$0xff] %v12953_v63  ;;  %v12981_v62 = vsub.f32 %v32_v0, %v12953_v63  ;;  %v12996_v0 = vand.u32 4294901760, %v44_v18 }
 0x1c9   :  { %4512 = vmatprep.mubr.f32.mxu0 %v17276_v49  ;;  %17283 = vst [vmem:[#allocation39_spill] sm:$0xff] %v12931_v11  ;;  %v17284_v49 = vld [vmem:[#allocation240_spill] sm:$0xff]  ;;  %v17288_v37 = vand.u32 4294901760, %v17287_v56  ;;  %v37_v56 = vld [vmem:[%s15190_s0 + $0x80] sm:$0xff] }
 0x1ca   :  { %1746 = vmatmul.mubr.f32.gmra.mrb[34].mxu1 %v17278_v58  ;;  %v17285_v26 = vand.u32 4294901760, %v17284_v49  ;;  %v12935_v58 = vand.u32 4294901760, %v25_v25  ;;  %v17290_v49 = vld [vmem:[#allocation247_spill] sm:$0xff]  ;;  %v12970_v47 = vand.u32 4294901760, %v37_v56  ;;  %17303 = vst [vmem:[#allocation290_spill] sm:$0xff] %v12981_v62  ;;  %17312 = vst [vmem:[#allocation182_spill] sm:$0xff] %v12996_v0  ;;  %v13030_v13 = vsub.f32 %v44_v18, %v12996_v0 }
 0x1cb   :  { %1753 = vmatprep.mubr.f32.mxu1 %v17280_v46  ;;  %v31_v46 = vld [vmem:[%s15190_s0 + $0x50] sm:$0xff] }
 0x1cc   :  { %4514 = vmatmul.mubr.f32.gmra.mrb[34].mxu0 %v17281_v7  ;;  %17286 = vst [vmem:[#allocation43_spill] sm:$0xff] %v12935_v58  ;;  %v17289_v7 = vld [vmem:[#allocation242_spill] sm:$0xff]  ;;  %v12955_v15 = vand.u32 4294901760, %v31_v46  ;;  %v12963_v31 = vsub.f32 %v25_v25, %v12935_v58  ;;  %17301 = vst [vmem:[#allocation49_spill] sm:$0xff] %v12970_v47  ;;  %v17311_v25 = vld [vmem:[#allocation29_spill] sm:$0xff] }
 0x1cd   :  { %4519 = vmatprep.mubr.f32.mxu0 %v17282_v51  ;;  %v38_v51 = vld [vmem:[%s15190_s0 + $0x88] sm:$0xff]  ;;  %17324 = vst [vmem:[#allocation294_spill] sm:$0xff] %v13030_v13 }
 0x1ce   :  { %1757 = vmatmul.mubr.f32.gmra.mrb[36].mxu1 %v17285_v26  ;;  %v12951_v26 = vsub.f32 %v26_v45, %v12931_v11  ;;  %17293 = vst [vmem:[#allocation166_spill] sm:$0xff] %v12955_v15  ;;  %17296 = vst [vmem:[#allocation174_spill] sm:$0xff] %v12963_v31  ;;  %v17300_v45 = vld [vmem:[#allocation249_spill] sm:$0xff] }
 0x1cf   :  { %1764 = vmatprep.mubr.f32.mxu1 %v17288_v37  ;;  %v17294_v37 = vld [vmem:[#allocation248_spill] sm:$0xff] }
 0x1d0   :  { %4521 = vmatmul.mubr.f32.gmra.mrb[36].mxu0 %v17289_v7  ;;  %17291 = vst [vmem:[#allocation135_spill] sm:$0xff] %v12951_v26  ;;  %v17295_v12 = vand.u32 4294901760, %v17294_v37  ;;  %v12965_v7 = vand.u32 4294901760, %v38_v51  ;;  %v17302_v37 = vld [vmem:[#allocation256_spill] sm:$0xff] }
 0x1d1   :  { %4526 = vmatprep.mubr.f32.mxu0 %v17290_v49  ;;  %v17298_v49 = vld [vmem:[#allocation254_spill] sm:$0xff] }
 0x1d2   :  { %1768 = vmatmul.mubr.f32.gmra.mrb[38].mxu1 %v17295_v12  ;;  %17297 = vst [vmem:[#allocation48_spill] sm:$0xff] %v12965_v7  ;;  %v17299_v59 = vand.u32 4294901760, %v17298_v49  ;;  %v43_v12 = vld [vmem:[%s15190_s0 + $0xb0] sm:$0xff]  ;;  %v17305_v49 = vld [vmem:[#allocation255_spill] sm:$0xff]  ;;  %v12991_v35 = vsub.f32 %v38_v51, %v12965_v7 }
 0x1d3   :  { %v12998_v17 = vand.u32 4294901760, %v43_v12  ;;  %v17315_v51 = vld [vmem:[#allocation263_spill] sm:$0xff] }
 0x1d4   :  { %1775 = vmatprep.mubr.f32.mxu1 %v17299_v59  ;;  %4528 = vmatmul.mubr.f32.gmra.mrb[38].mxu0 %v17300_v45  ;;  %v12984_v59 = vsub.f32 %v31_v46, %v12955_v15  ;;  %v17306_v45 = vand.u32 4294901760, %v17305_v49  ;;  %17308 = vst [vmem:[#allocation175_spill] sm:$0xff] %v12991_v35  ;;  %v13002_v46 = vsub.f32 %v37_v56, %v12970_v47  ;;  %v17319_v56 = vand.u32 4294901760, %v12963_v31 }
 0x1d5   :  { %4533 = vmatprep.mubr.f32.mxu0 %v17302_v37  ;;  %v17310_v37 = vand.u32 4294901760, %v17309_v41  ;;  %17313 = vst [vmem:[#allocation54_spill] sm:$0xff] %v12998_v17  ;;  %v17316_v41 = vand.u32 4294901760, %v12951_v26  ;;  %v17323_v49 = vand.u32 4294901760, %v17311_v25 }
 0x1d6   :  { %17304 = vst [vmem:[#allocation291_spill] sm:$0xff] %v12984_v59  ;;  %1779 = vmatmul.mubr.f32.gmra.mrb[40].mxu1 %v17306_v45  ;;  %17314 = vst [vmem:[#allocation56_spill] sm:$0xff] %v13002_v46  ;;  %v50_v45 = vld [vmem:[%s15190_s0 + $0xe8] sm:$0xff]  ;;  %v17331_v1 = vand.u32 4294901760, %v12984_v59 }
 0x1d7   :  { %1786 = vmatprep.mubr.f32.mxu1 %v17310_v37  ;;  %v4660_v37 = vsub.f32 %v12951_v26, %v17316_v41  ;;  %v17322_v41 = vand.u32 4294901760, %v17321_v42  ;;  %v5029_v20 = vsub.f32 %v17311_v25, %v17323_v49  ;;  %v17328_v42 = vld [vmem:[#allocation281_spill] sm:$0xff]  ;;  %v17385_v26 = vld [vmem:[#allocation112_spill] sm:$0xff] }
 0x1d8   :  { %4535 = vmatmul.mubr.f32.gmra.mrb[40].mxu0 %v17068_v43  ;;  %v13018_v43 = vsub.f32 %v12963_v31, %v17319_v56  ;;  %v13035_v56 = vand.u32 4294901760, %v50_v45  ;;  %v13053_v6 = vsub.f32 %v12984_v59, %v17331_v1  ;;  %v17337_v1 = vand.u32 4294901760, %v17336_v19  ;;  %v17381_v59 = vld [vmem:[#allocation100_spill] sm:$0xff] }
 0x1d9   :  { %4540 = vmatprep.mubr.f32.mxu0 %v17315_v51  ;;  %v5022_v51 = vsub.f32 %v17307_v48, %v17320_v55  ;;  %v49_v55 = vld [vmem:[%s15190_s0 + $0xe0] sm:$0xff]  ;;  %v4661_v18 = vand.u32 4294901760, %v4660_v37  ;;  %v5030_v28 = vand.u32 4294901760, %v5029_v20  ;;  %v17340_v19 = vand.u32 4294901760, %v17328_v42 }
 0x1da   :  { %1790 = vmatmul.mubr.f32.gmra.mrb[42].mxu1 %v17318_v57  ;;  %v13033_v57 = vsub.f32 %v43_v12, %v12998_v17  ;;  %17326 = vst [vmem:[#allocation185_spill] sm:$0xff] %v13035_v56  ;;  %v17330_v12 = vand.u32 4294901760, %v12981_v62  ;;  %v4667_v49 = vand.u32 4294901760, %v13018_v43  ;;  %v13066_v29 = vand.u32 4294901760, %v49_v55  ;;  %v55_v43 = vld [vmem:[%s15190_s0 + $0x110] sm:$0xff] }
 0x1db   :  { %1797 = vmatprep.mubr.f32.mxu1 %v17322_v41  ;;  %v56_v41 = vld [vmem:[%s15190_s0 + $0x118] sm:$0xff]  ;;  %v5023_v37 = vand.u32 4294901760, %v5022_v51  ;;  %v5036_v20 = vsub.f32 %v17328_v42, %v17340_v19  ;;  %v17341_v51 = vand.u32 4294901760, %v17329_v50  ;;  %v17345_v19 = vld [vmem:[#allocation284_spill] sm:$0xff]  ;;  %v13106_v5 = vand.u32 4294901760, %v55_v43 }
 0x1dc   :  { %17325 = vst [vmem:[#allocation295_spill] sm:$0xff] %v13033_v57  ;;  %4542 = vmatmul.mubr.f32.gmra.mrb[42].mxu0 %v17327_v44  ;;  %v13048_v30 = vsub.f32 %v12981_v62, %v17330_v12  ;;  %v17333_v44 = vand.u32 4294901760, %v17332_v53  ;;  %17335 = vst [vmem:[#allocation191_spill] sm:$0xff] %v13066_v29  ;;  %v13073_v53 = vsub.f32 %v50_v45, %v13035_v56  ;;  %v17342_v45 = vand.u32 4294901760, %v13002_v46  ;;  %v17382_v62 = vld [vmem:[#allocation102_spill] sm:$0xff] }
 0x1dd   :  { %4547 = vmatprep.mubr.f32.mxu0 %v17073_v32  ;;  %v17334_v32 = vand.u32 4294901760, %v12991_v35  ;;  %v13093_v52 = vand.u32 4294901760, %v56_v41  ;;  %17349 = vst [vmem:[#allocation299_spill] sm:$0xff] %v13106_v5  ;;  %v17353_v16 = vand.u32 4294901760, %v13033_v57  ;;  %v5037_v27 = vand.u32 4294901760, %v5036_v20  ;;  %v17357_v20 = vld [vmem:[#allocation285_spill] sm:$0xff] }
 0x1de   :  { %1801 = vmatmul.mubr.f32.gmra.mrb[44].mxu1 %v17333_v44  ;;  %17338 = vst [vmem:[#allocation62_spill] sm:$0xff] %v13073_v53  ;;  %v17339_v44 = vld [vmem:[#allocation272_spill] sm:$0xff]  ;;  %v13091_v39 = vsub.f32 %v13002_v46, %v17342_v45  ;;  %v4676_v61 = vand.u32 4294901760, %v13048_v30  ;;  %v13104_v45 = vsub.f32 %v49_v55, %v13066_v29  ;;  %v8473_v30 = vpack.c.bf16 %v5030_v28, %v5023_v37 }
 0x1df   :  { %v13064_v12 = vsub.f32 %v12991_v35, %v17334_v32  ;;  %1808 = vmatprep.mubr.f32.mxu1 %v17337_v1  ;;  %v62_v32 = vld [vmem:[%s15190_s0 + $0x148] sm:$0xff]  ;;  %v5043_v1 = vsub.f32 %v17329_v50, %v17341_v51  ;;  %17343 = vst [vmem:[#allocation64_spill] sm:$0xff] %v13093_v52  ;;  %v61_v51 = vld [vmem:[%s15190_s0 + $0x140] sm:$0xff]  ;;  %v17355_v55 = vand.u32 4294901760, %v17344_v33  ;;  %v17356_v38 = vand.u32 4294901760, %v17345_v19 }
 0x1e0   :  { %4549 = vmatmul.mubr.f32.gmra.mrb[44].mxu0 %v17339_v44  ;;  %v4682_v44 = vand.u32 4294901760, %v13053_v6  ;;  %17348 = vst [vmem:[#allocation298_spill] sm:$0xff] %v13104_v45  ;;  %v13108_v40 = vand.u32 4294901760, %v62_v32  ;;  %v17352_v6 = vand.u32 4294901760, %v13030_v13  ;;  %v13144_v8 = vsub.f32 %v55_v43, %v13106_v5  ;;  %v17366_v43 = vld [vmem:[#allocation5_spill] sm:$0xff]  ;;  %v17371_v46 = vld [vmem:[#allocation104_spill] sm:$0xff] }
 0x1e1   :  { %4554 = vmatprep.mubr.f32.mxu0 %v17077_v9  ;;  %v17351_v9 = vld [vmem:[#allocation91_spill] sm:$0xff]  ;;  %v5044_v28 = vand.u32 4294901760, %v5043_v1  ;;  %v5050_v2 = vsub.f32 %v17344_v33, %v17355_v55  ;;  %v13149_v34 = vand.u32 4294901760, %v61_v51  ;;  %v17363_v55 = vld [vmem:[#allocation94_spill] sm:$0xff]  ;;  %v17364_v37 = vand.u32 4294901760, %v13073_v53  ;;  %v67_v1 = vld [vmem:[%s15190_s0 + $0x170] sm:$0xff] }
 0x1e2   :  { %1812 = vmatmul.mubr.f32.gmra.mrb[46].mxu1 %v17347_v24  ;;  %17350 = vst [vmem:[#allocation192_spill] sm:$0xff] %v13108_v40  ;;  %v13114_v10 = vsub.f32 %v13030_v13, %v17352_v6  ;;  %v13119_v24 = vsub.f32 %v13033_v57, %v17353_v16  ;;  %v13128_v6 = vsub.f32 %v56_v41, %v13093_v52  ;;  %v68_v16 = vld [vmem:[%s15190_s0 + $0x178] sm:$0xff]  ;;  %17360 = vst [vmem:[#allocation67_spill] sm:$0xff] %v13144_v8  ;;  %v17367_v57 = vld [vmem:[#allocation95_spill] sm:$0xff] }
 0x1e3   :  { %1978 = vmatprep.mubr.f32.mxu1 %v17351_v9  ;;  %17362 = vst [vmem:[#allocation302_spill] sm:$0xff] %v13149_v34  ;;  %v13157_v54 = vsub.f32 %v13073_v53, %v17364_v37  ;;  %v13159_v41 = vand.u32 4294901760, %v68_v16  ;;  %v17368_v13 = vld [vmem:[#allocation287_spill] sm:$0xff]  ;;  %v74_v37 = vld [vmem:[%s15190_s0 + $0x1a8] sm:$0xff]  ;;  %v17372_v22 = vand.u32 4294901760, %v13104_v45  ;;  %v13195_v60 = vand.u32 4294901760, %v67_v1 }
 0x1e4   :  { %4556 = vmatmul.mubr.f32.gmra.mrb[46].mxu0 %v11696_v36  ;;  %17354 = vst [vmem:[#allocation199_spill] sm:$0xff] %v13128_v6  ;;  %v5057_v36 = vsub.f32 %v17345_v19, %v17356_v38  ;;  %v17370_v38 = vand.u32 4294901760, %v17358_v23  ;;  %v13197_v35 = vand.u32 4294901760, %v74_v37 }
 0x1e5   :  { %4662 = vmatprep.mubr.f32.mxu0 %v4661_v18  ;;  %v13147_v18 = vsub.f32 %v62_v32, %v13108_v40  ;;  %17365 = vst [vmem:[#allocation303_spill] sm:$0xff] %v13159_v41  ;;  %v8476_v32 = vpack.c.bf16 %v5044_v28, %v5037_v27  ;;  %v17369_v28 = vand.u32 4294901760, %v17357_v20  ;;  %v13183_v53 = vsub.f32 %v13104_v45, %v17372_v22  ;;  %v17378_v22 = vld [vmem:[#allocation8_spill] sm:$0xff] }
 0x1e6   :  { %1980 = vmatmul.mubr.f32.vlgmr.msra.gmra.mrb[0].mxu1 %v17359_v14  ;;  %v5058_v27 = vand.u32 4294901760, %v5057_v36  ;;  %v5071_v3 = vsub.f32 %v17358_v23, %v17370_v38  ;;  %17376 = vst [vmem:[#allocation76_spill] sm:$0xff] %v13195_v60  ;;  %17377 = vst [vmem:[#allocation78_spill] sm:$0xff] %v13197_v35  ;;  %v17399_v40 = vld [vmem:[#allocation120_spill] sm:$0xff] }
 0x1e7   :  { %17361 = vst [vmem:[#allocation70_spill] sm:$0xff] %v13147_v18  ;;  %1985 = vmatprep.mubr.f32.mxu1 %v17363_v55  ;;  %8090 = vmatpush1.bf16.msra.mxu1 %v17366_v43  ;;  %v5064_v43 = vsub.f32 %v17357_v20, %v17369_v28  ;;  %v13193_v28 = vsub.f32 %v68_v16, %v13159_v41  ;;  %v4727_v16 = vand.u32 4294901760, %v13183_v53  ;;  %v17386_v41 = vand.u32 4294901760, %v13144_v8 }
 0x1e8   :  { %4668 = vmatmul.mubr.f32.vlgmr.msra.gmra.mrb[0].mxu0 %v4667_v49  ;;  %8091 = vmatprep.subr.bf16.mxu1 %v16266_v4  ;;  %v5051_v49 = vand.u32 4294901760, %v5050_v2  ;;  %v13188_v2 = vsub.f32 %v61_v51, %v13149_v34  ;;  %v17380_v51 = vand.u32 4294901760, %v17368_v13  ;;  %v5072_v38 = vand.u32 4294901760, %v5071_v3  ;;  %v86_v34 = vld [vmem:[%s15190_s0 + $0x208] sm:$0xff] }
 0x1e9   :  { %8474 = vmatpush1.bf16.msra.mxu0 %v8473_v30  ;;  %4677 = vmatprep.mubr.f32.mxu0 %v4676_v61  ;;  %v17374_v30 = vld [vmem:[#allocation109_spill] sm:$0xff]  ;;  %17375 = vst [vmem:[#allocation203_spill] sm:$0xff] %v13193_v28  ;;  %v17379_v61 = vand.u32 4294901760, %v17367_v57  ;;  %v13239_v53 = vsub.f32 %v74_v37, %v13197_v35  ;;  %v17393_v3 = vand.u32 4294901760, %v13091_v39  ;;  %v17394_v37 = vand.u32 4294901760, %v17381_v59 }
 0x1ea   :  { %1987 = vmatmul.mubr.f32.gmra.mrb[2].mxu1 %v17371_v46  ;;  %8475 = vmatprep.subr.bf16.mxu0 %v16266_v4  ;;  %17373 = vst [vmem:[#allocation16_spill] sm:$0xff] %v13188_v2  ;;  %v5085_v45 = vsub.f32 %v17368_v13, %v17380_v51  ;;  %v5065_v51 = vand.u32 4294901760, %v5064_v43  ;;  %v17388_v43 = vld [vmem:[#allocation119_spill] sm:$0xff]  ;;  %v17439_v13 = vld [vmem:[#allocation148_spill] sm:$0xff] }
 0x1eb   :  { %1992 = vmatprep.mubr.f32.mxu1 %v17374_v30  ;;  %8093 = vmatpush1.bf16.msra.mxu1 %v17378_v22  ;;  %v5078_v36 = vsub.f32 %v17367_v57, %v17379_v61  ;;  %v8479_v22 = vpack.c.bf16 %v5058_v27, %v5051_v49  ;;  %v17384_v61 = vand.u32 4294901760, %v13128_v6  ;;  %17390 = vst [vmem:[#allocation22_spill] sm:$0xff] %v13239_v53  ;;  %v17392_v27 = vld [vmem:[#allocation11_spill] sm:$0xff] }
 0x1ec   :  { %4683 = vmatmul.mubr.f32.gmra.mrb[2].mxu0 %v4682_v44  ;;  %8094 = vmatprep.subr.bf16.mxu1 %v16266_v4  ;;  %v17383_v44 = vand.u32 4294901760, %v13064_v12  ;;  %v13225_v12 = vsub.f32 %v13144_v8, %v17386_v41  ;;  %v80_v41 = vld [vmem:[%s15190_s0 + $0x1d8] sm:$0xff]  ;;  %v5092_v8 = vsub.f32 %v17381_v59, %v17394_v37  ;;  %v8482_v39 = vpack.c.bf16 %v5072_v38, %v5065_v51 }
 0x1ed   :  { %8477 = vmatpush1.bf16.msra.mxu0 %v8476_v32  ;;  %v13217_v31 = vsub.f32 %v13128_v6, %v17384_v61  ;;  %v17387_v32 = vand.u32 4294901760, %v13147_v18  ;;  %v13241_v61 = vand.u32 4294901760, %v73_v21  ;;  %v17395_v6 = vand.u32 4294901760, %v17382_v62 }
 0x1ee   :  { %4692 = vmatprep.mubr.f32.mxu0 %v17383_v44  ;;  %1994 = vmatmul.mubr.f32.gmra.mrb[4].mxu1 %v17385_v26  ;;  %v13236_v44 = vsub.f32 %v67_v1, %v13195_v60  ;;  %v5079_v1 = vand.u32 4294901760, %v5078_v36  ;;  %v17396_v60 = vand.u32 4294901760, %v13114_v10  ;;  %v4742_v37 = vand.u32 4294901760, %v13225_v12  ;;  %v85_v36 = vld [vmem:[%s15190_s0 + $0x200] sm:$0xff] }
 0x1ef   :  { %8478 = vmatprep.subr.bf16.mxu0 %v16266_v4  ;;  %v13230_v49 = vsub.f32 %v13147_v18, %v17387_v32  ;;  %1999 = vmatprep.mubr.f32.mxu1 %v17388_v43  ;;  %17391 = vst [vmem:[#allocation210_spill] sm:$0xff] %v13241_v61  ;;  %v79_v32 = vld [vmem:[%s15190_s0 + $0x1d0] sm:$0xff]  ;;  %v5086_v18 = vand.u32 4294901760, %v5085_v45  ;;  %v5099_v35 = vsub.f32 %v17382_v62, %v17395_v6  ;;  %v17398_v45 = vld [vmem:[#allocation123_spill] sm:$0xff]  ;;  %v13268_v5 = vand.u32 4294901760, %v80_v41 }
 0x1f0   :  { %17389 = vst [vmem:[#allocation306_spill] sm:$0xff] %v13236_v44  ;;  %8096 = vmatpush1.bf16.msra.mxu1 %v17392_v27  ;;  %4698 = vmatmul.mubr.f32.gmra.mrb[4].mxu0 %v17393_v3  ;;  %v4736_v27 = vand.u32 4294901760, %v13217_v31  ;;  %v17397_v3 = vld [vmem:[#allocation115_spill] sm:$0xff]  ;;  %v13270_v10 = vand.u32 4294901760, %v79_v32  ;;  %v17403_v31 = vand.u32 4294901760, %v13188_v2  ;;  %v17405_v62 = vld [vmem:[#allocation17_spill] sm:$0xff]  ;;  %v13295_v12 = vsub.f32 %v73_v21, %v13241_v61 }
 0x1f1   :  { %8097 = vmatprep.subr.bf16.mxu1 %v16266_v4  ;;  %4707 = vmatprep.mubr.f32.mxu0 %v17396_v60  ;;  %17400 = vst [vmem:[#allocation81_spill] sm:$0xff] %v13268_v5  ;;  %v17402_v60 = vld [vmem:[#allocation127_spill] sm:$0xff]  ;;  %v17408_v6 = vand.u32 4294901760, %v13157_v54  ;;  %v17409_v59 = vand.u32 4294901760, %v17397_v3  ;;  %v13311_v54 = vsub.f32 %v80_v41, %v13268_v5  ;;  %v17420_v41 = vand.u32 4294901760, %v13239_v53 }
 0x1f2   :  { %8480 = vmatpush1.bf16.msra.mxu0 %v8479_v22  ;;  %2001 = vmatmul.mubr.f32.gmra.mrb[6].mxu1 %v17399_v40  ;;  %17401 = vst [vmem:[#allocation85_spill] sm:$0xff] %v13270_v10  ;;  %v13276_v38 = vsub.f32 %v13188_v2, %v17403_v31  ;;  %v17404_v22 = vand.u32 4294901760, %v13193_v28  ;;  %v17406_v31 = vand.u32 4294901760, %v13119_v24  ;;  %v8485_v2 = vpack.c.bf16 %v5086_v18, %v5079_v1  ;;  %v17411_v18 = vld [vmem:[#allocation130_spill] sm:$0xff]  ;;  %v17413_v21 = vld [vmem:[#allocation131_spill] sm:$0xff] }
 0x1f3   :  { %8481 = vmatprep.subr.bf16.mxu0 %v16266_v4  ;;  %2006 = vmatprep.mubr.f32.mxu1 %v17402_v60  ;;  %17407 = vst [vmem:[#allocation309_spill] sm:$0xff] %v13295_v12  ;;  %v5106_v52 = vsub.f32 %v17397_v3, %v17409_v59  ;;  %17414 = vst [vmem:[#allocation310_spill] sm:$0xff] %v13311_v54  ;;  %v13318_v59 = vand.u32 4294901760, %v85_v36  ;;  %v17423_v3 = vld [vmem:[#allocation147_spill] sm:$0xff] }
 0x1f4   :  { %v13281_v51 = vsub.f32 %v13193_v28, %v17404_v22  ;;  %8099 = vmatpush1.bf16.msra.mxu1 %v17405_v62  ;;  %4713 = vmatmul.mubr.f32.gmra.mrb[6].mxu0 %v17406_v31  ;;  %v5093_v22 = vand.u32 4294901760, %v5092_v8  ;;  %v5100_v28 = vand.u32 4294901760, %v5099_v35  ;;  %v17410_v62 = vand.u32 4294901760, %v17398_v45  ;;  %v17412_v35 = vld [vmem:[#allocation289_spill] sm:$0xff]  ;;  %v17418_v31 = vld [vmem:[#allocation134_spill] sm:$0xff] }
 0x1f5   :  { %8100 = vmatprep.subr.bf16.mxu1 %v16266_v4  ;;  %4722 = vmatprep.mubr.f32.mxu0 %v17408_v6  ;;  %v13316_v6 = vand.u32 4294901760, %v86_v34  ;;  %17417 = vst [vmem:[#allocation88_spill] sm:$0xff] %v13318_v59  ;;  %v17419_v8 = vand.u32 4294901760, %v13236_v44 }
 0x1f6   :  { %8483 = vmatpush1.bf16.msra.mxu0 %v8482_v39  ;;  %v5113_v24 = vsub.f32 %v17398_v45, %v17410_v62  ;;  %2008 = vmatmul.mubr.f32.gmra.mrb[8].mxu1 %v17413_v21  ;;  %v13314_v39 = vsub.f32 %v79_v32, %v13270_v10  ;;  %v4757_v62 = vand.u32 4294901760, %v13276_v38  ;;  %v4766_v1 = vand.u32 4294901760, %v13281_v51  ;;  %v17421_v10 = vld [vmem:[#allocation23_spill] sm:$0xff]  ;;  %v92_v38 = vld [vmem:[%s15190_s0 + $0x238] sm:$0xff]  ;;  %v91_v51 = vld [vmem:[%s15190_s0 + $0x230] sm:$0xff] }
 0x1f7   :  { %8484 = vmatprep.subr.bf16.mxu0 %v16266_v4  ;;  %17416 = vst [vmem:[#allocation217_spill] sm:$0xff] %v13316_v6  ;;  %2013 = vmatprep.mubr.f32.mxu1 %v17418_v31  ;;  %v13326_v61 = vsub.f32 %v13236_v44, %v17419_v8  ;;  %v13331_v32 = vsub.f32 %v13239_v53, %v17420_v41  ;;  %v17422_v8 = vld [vmem:[#allocation140_spill] sm:$0xff]  ;;  %v17425_v41 = vand.u32 4294901760, %v17412_v35  ;;  %v17426_v53 = vld [vmem:[#allocation137_spill] sm:$0xff] }
 0x1f8   :  { %17415 = vst [vmem:[#allocation211_spill] sm:$0xff] %v13314_v39  ;;  %8102 = vmatpush1.bf16.msra.mxu1 %v17421_v10  ;;  %4728 = vmatmul.mubr.f32.gmra.mrb[8].mxu0 %v4727_v16  ;;  %v8488_v5 = vpack.c.bf16 %v5100_v28, %v5093_v22  ;;  %v5107_v16 = vand.u32 4294901760, %v5106_v52  ;;  %v5114_v28 = vand.u32 4294901760, %v5113_v24  ;;  %v17424_v10 = vand.u32 4294901760, %v17411_v18 }
 0x1f9   :  { %8103 = vmatprep.subr.bf16.mxu1 %v16266_v4  ;;  %4737 = vmatprep.mubr.f32.mxu0 %v4736_v27  ;;  %v5127_v45 = vsub.f32 %v17412_v35, %v17425_v41  ;;  %v13358_v52 = vsub.f32 %v85_v36, %v13318_v59  ;;  %v17429_v27 = vld [vmem:[#allocation144_spill] sm:$0xff]  ;;  %v4772_v24 = vand.u32 4294901760, %v13326_v61  ;;  %v13363_v41 = vand.u32 4294901760, %v92_v38  ;;  %v97_v36 = vld [vmem:[%s15190_s0 + $0x260] sm:$0xff]  ;;  %v17436_v59 = vld [vmem:[#allocation293_spill] sm:$0xff] }
 0x1fa   :  { %8486 = vmatpush1.bf16.msra.mxu0 %v8485_v2  ;;  %v5120_v22 = vsub.f32 %v17411_v18, %v17424_v10  ;;  %2015 = vmatmul.mubr.f32.gmra.mrb[10].mxu1 %v17426_v53  ;;  %v13355_v2 = vsub.f32 %v86_v34, %v13316_v6  ;;  %v4781_v10 = vand.u32 4294901760, %v13331_v32  ;;  %v13365_v35 = vand.u32 4294901760, %v91_v51  ;;  %v17432_v18 = vld [vmem:[#allocation24_spill] sm:$0xff] }
 0x1fb   :  { %8487 = vmatprep.subr.bf16.mxu0 %v16266_v4  ;;  %17428 = vst [vmem:[#allocation313_spill] sm:$0xff] %v13358_v52  ;;  %2020 = vmatprep.mubr.f32.mxu1 %v17429_v27  ;;  %17430 = vst [vmem:[#allocation314_spill] sm:$0xff] %v13363_v41  ;;  %v98_v34 = vld [vmem:[%s15190_s0 + $0x268] sm:$0xff]  ;;  %v17433_v44 = vand.u32 4294901760, %v17422_v8  ;;  %v17434_v32 = vand.u32 4294901760, %v17423_v3  ;;  %v17437_v27 = vand.u32 4294901760, %v13230_v49 }
 0x1fc   :  { %17427 = vst [vmem:[#allocation89_spill] sm:$0xff] %v13355_v2  ;;  %17431 = vst [vmem:[#allocation218_spill] sm:$0xff] %v13365_v35  ;;  %8105 = vmatpush1.bf16.msra.mxu1 %v17432_v18  ;;  %4743 = vmatmul.mubr.f32.gmra.mrb[10].mxu0 %v4742_v37  ;;  %v17435_v18 = vld [vmem:[#allocation292_spill] sm:$0xff]  ;;  %v17438_v53 = vand.u32 4294901760, %v13295_v12  ;;  %v5128_v21 = vand.u32 4294901760, %v5127_v45  ;;  %v17441_v6 = vand.u32 4294901760, %v13314_v39  ;;  %v13406_v45 = vsub.f32 %v92_v38, %v13363_v41 }
 0x1fd   :  { %v5134_v61 = vsub.f32 %v17422_v8, %v17433_v44  ;;  %v5141_v29 = vsub.f32 %v17423_v3, %v17434_v32  ;;  %8106 = vmatprep.subr.bf16.mxu1 %v16266_v4  ;;  %4752 = vmatprep.mubr.f32.mxu0 %v17437_v27  ;;  %v8491_v44 = vpack.c.bf16 %v5114_v28, %v5107_v16  ;;  %v5121_v8 = vand.u32 4294901760, %v5120_v22  ;;  %v17442_v16 = vld [vmem:[#allocation152_spill] sm:$0xff] }
 0x1fe   :  { %8489 = vmatpush1.bf16.msra.mxu0 %v8488_v5  ;;  %v13388_v31 = vsub.f32 %v13295_v12, %v17438_v53  ;;  %2022 = vmatmul.mubr.f32.gmra.mrb[12].mxu1 %v17439_v13  ;;  %v17440_v32 = vand.u32 4294901760, %v13311_v54  ;;  %v13399_v49 = vsub.f32 %v13314_v39, %v17441_v6  ;;  %17443 = vst [vmem:[#allocation223_spill] sm:$0xff] %v13406_v45  ;;  %v13411_v22 = vand.u32 4294901760, %v98_v34  ;;  %v104_v6 = vld [vmem:[%s15190_s0 + $0x298] sm:$0xff]  ;;  %v17450_v41 = vld [vmem:[#allocation296_spill] sm:$0xff]  ;;  %v17489_v13 = vld [vmem:[#allocation183_spill] sm:$0xff] }
 0x1ff   :  { %8490 = vmatprep.subr.bf16.mxu0 %v16266_v4  ;;  %2027 = vmatprep.mubr.f32.mxu1 %v17442_v16  ;;  %v13409_v28 = vsub.f32 %v91_v51, %v13365_v35  ;;  %v13413_v27 = vand.u32 4294901760, %v97_v36  ;;  %v5135_v53 = vand.u32 4294901760, %v5134_v61  ;;  %v5142_v5 = vand.u32 4294901760, %v5141_v29  ;;  %v17452_v29 = vld [vmem:[#allocation157_spill] sm:$0xff]  ;;  %v110_v61 = vld [vmem:[%s15190_s0 + $0x2c8] sm:$0xff] }
 0x200   :  { %v13394_v37 = vsub.f32 %v13311_v54, %v17440_v32  ;;  %17445 = vst [vmem:[#allocation232_spill] sm:$0xff] %v13411_v22  ;;  %v17447_v32 = vld [vmem:[#allocation36_spill] sm:$0xff]  ;;  %4758 = vmatmul.mubr.f32.gmra.mrb[12].mxu0 %v4757_v62  ;;  %v17448_v39 = vand.u32 4294901760, %v17435_v18  ;;  %v17449_v51 = vand.u32 4294901760, %v17436_v59  ;;  %v4787_v12 = vand.u32 4294901760, %v13388_v31  ;;  %v17451_v62 = vld [vmem:[#allocation297_spill] sm:$0xff] }
 0x201   :  { %17444 = vst [vmem:[#allocation226_spill] sm:$0xff] %v13409_v28  ;;  %17446 = vst [vmem:[#allocation233_spill] sm:$0xff] %v13413_v27  ;;  %8108 = vmatpush1.bf16.msra.mxu1 %v17447_v32  ;;  %4767 = vmatprep.mubr.f32.mxu0 %v4766_v1  ;;  %v8494_v35 = vpack.c.bf16 %v5128_v21, %v5121_v8  ;;  %v13438_v1 = vand.u32 4294901760, %v104_v6  ;;  %v17455_v21 = vld [vmem:[#allocation160_spill] sm:$0xff]  ;;  %v17456_v31 = vand.u32 4294901760, %v13358_v52  ;;  %v17458_v32 = vld [vmem:[#allocation42_spill] sm:$0xff] }
 0x202   :  { %v5148_v38 = vsub.f32 %v17435_v18, %v17448_v39  ;;  %v5155_v54 = vsub.f32 %v17436_v59, %v17449_v51  ;;  %8109 = vmatprep.subr.bf16.mxu1 %v16266_v4  ;;  %8492 = vmatpush1.bf16.msra.mxu0 %v8491_v44  ;;  %v4796_v3 = vand.u32 4294901760, %v13394_v37  ;;  %v4802_v39 = vand.u32 4294901760, %v13399_v49 }
 0x203   :  { %2029 = vmatmul.mubr.f32.gmra.mrb[14].mxu1 %v17452_v29  ;;  %v17453_v18 = vand.u32 4294901760, %v13355_v2  ;;  %8493 = vmatprep.subr.bf16.mxu0 %v16266_v4  ;;  %17454 = vst [vmem:[#allocation239_spill] sm:$0xff] %v13438_v1  ;;  %v13444_v8 = vsub.f32 %v13358_v52, %v17456_v31  ;;  %v13449_v49 = vsub.f32 %v98_v34, %v13411_v22  ;;  %v17460_v34 = vand.u32 4294901760, %v17450_v41 }
 0x204   :  { %2034 = vmatprep.mubr.f32.mxu1 %v17455_v21  ;;  %4773 = vmatmul.mubr.f32.gmra.mrb[14].mxu0 %v4772_v24  ;;  %v13459_v31 = vsub.f32 %v97_v36, %v13413_v27  ;;  %v8497_v37 = vpack.c.bf16 %v5142_v5, %v5135_v53  ;;  %v5149_v52 = vand.u32 4294901760, %v5148_v38  ;;  %v5156_v44 = vand.u32 4294901760, %v5155_v54  ;;  %v17463_v21 = vld [vmem:[#allocation301_spill] sm:$0xff]  ;;  %v17468_v53 = vld [vmem:[#allocation171_spill] sm:$0xff] }
 0x205   :  { %v13435_v51 = vsub.f32 %v13355_v2, %v17453_v18  ;;  %17457 = vst [vmem:[#allocation240_spill] sm:$0xff] %v13449_v49  ;;  %v103_v18 = vld [vmem:[%s15190_s0 + $0x290] sm:$0xff]  ;;  %8111 = vmatpush1.bf16.msra.mxu1 %v17458_v32  ;;  %4782 = vmatprep.mubr.f32.mxu0 %v4781_v10  ;;  %v5162_v2 = vsub.f32 %v17450_v41, %v17460_v34  ;;  %v17461_v22 = vand.u32 4294901760, %v17451_v62  ;;  %v17462_v32 = vld [vmem:[#allocation300_spill] sm:$0xff]  ;;  %v13478_v5 = vand.u32 4294901760, %v110_v61  ;;  %v109_v24 = vld [vmem:[%s15190_s0 + $0x2c0] sm:$0xff] }
 0x206   :  { %17459 = vst [vmem:[#allocation245_spill] sm:$0xff] %v13459_v31  ;;  %8112 = vmatprep.subr.bf16.mxu1 %v16266_v4  ;;  %8495 = vmatpush1.bf16.msra.mxu0 %v8494_v35  ;;  %v17464_v27 = vld [vmem:[#allocation161_spill] sm:$0xff]  ;;  %v13474_v35 = vsub.f32 %v104_v6, %v13438_v1  ;;  %v13476_v10 = vand.u32 4294901760, %v103_v18  ;;  %v17469_v38 = vand.u32 4294901760, %v13406_v45  ;;  %v17471_v1 = vld [vmem:[#allocation46_spill] sm:$0xff] }
 0x207   :  { %v5169_v59 = vsub.f32 %v17451_v62, %v17461_v22  ;;  %2036 = vmatmul.mubr.f32.gmra.mrb[16].mxu1 %v17464_v27  ;;  %v4811_v54 = vand.u32 4294901760, %v13435_v51  ;;  %8496 = vmatprep.subr.bf16.mxu0 %v16266_v4  ;;  %17467 = vst [vmem:[#allocation255_spill] sm:$0xff] %v13478_v5  ;;  %v4817_v22 = vand.u32 4294901760, %v13444_v8  ;;  %v17470_v51 = vand.u32 4294901760, %v13409_v28  ;;  %v17476_v8 = vld [vmem:[#allocation172_spill] sm:$0xff] }
 0x208   :  { %17465 = vst [vmem:[#allocation248_spill] sm:$0xff] %v13474_v35  ;;  %17466 = vst [vmem:[#allocation254_spill] sm:$0xff] %v13476_v10  ;;  %2041 = vmatprep.mubr.f32.mxu1 %v17468_v53  ;;  %v13485_v34 = vsub.f32 %v13406_v45, %v17469_v38  ;;  %4788 = vmatmul.mubr.f32.gmra.mrb[16].mxu0 %v4787_v12  ;;  %v8500_v62 = vpack.c.bf16 %v5156_v44, %v5149_v52  ;;  %v116_v38 = vld [vmem:[%s15190_s0 + $0x2f8] sm:$0xff]  ;;  %v17473_v45 = vld [vmem:[#allocation305_spill] sm:$0xff]  ;;  %v5163_v41 = vand.u32 4294901760, %v5162_v2 }
 0x209   :  { %v13490_v36 = vsub.f32 %v13409_v28, %v17470_v51  ;;  %8114 = vmatpush1.bf16.msra.mxu1 %v17471_v1  ;;  %v17472_v51 = vld [vmem:[#allocation304_spill] sm:$0xff]  ;;  %4797 = vmatprep.mubr.f32.mxu0 %v4796_v3  ;;  %v5170_v53 = vand.u32 4294901760, %v5169_v59  ;;  %v17474_v1 = vand.u32 4294901760, %v17462_v32  ;;  %v17475_v52 = vand.u32 4294901760, %v17463_v21  ;;  %v17480_v2 = vld [vmem:[#allocation178_spill] sm:$0xff] }
 0x20a   :  { %8115 = vmatprep.subr.bf16.mxu1 %v16266_v4  ;;  %8498 = vmatpush1.bf16.msra.mxu0 %v8497_v37  ;;  %v13513_v28 = vsub.f32 %v103_v18, %v13476_v10  ;;  %v13517_v3 = vsub.f32 %v110_v61, %v13478_v5  ;;  %v13519_v59 = vand.u32 4294901760, %v109_v24  ;;  %v4826_v37 = vand.u32 4294901760, %v13485_v34  ;;  %v17483_v18 = vld [vmem:[#allocation61_spill] sm:$0xff]  ;;  %v122_v5 = vld [vmem:[%s15190_s0 + $0x328] sm:$0xff] }
 0x20b   :  { %v5176_v12 = vsub.f32 %v17462_v32, %v17474_v1  ;;  %v5183_v44 = vsub.f32 %v17463_v21, %v17475_v52  ;;  %2043 = vmatmul.mubr.f32.gmra.mrb[18].mxu1 %v17476_v8  ;;  %8499 = vmatprep.subr.bf16.mxu0 %v16266_v4  ;;  %v4832_v1 = vand.u32 4294901760, %v13490_v36  ;;  %v17481_v52 = vand.u32 4294901760, %v13449_v49  ;;  %v115_v61 = vld [vmem:[%s15190_s0 + $0x2f0] sm:$0xff]  ;;  %v17487_v10 = vld [vmem:[#allocation308_spill] sm:$0xff] }
 0x20c   :  { %17477 = vst [vmem:[#allocation25_spill] sm:$0xff] %v13513_v28  ;;  %17478 = vst [vmem:[#allocation261_spill] sm:$0xff] %v13517_v3  ;;  %2048 = vmatprep.mubr.f32.mxu1 %v17480_v2  ;;  %v13527_v6 = vand.u32 4294901760, %v116_v38  ;;  %4803 = vmatmul.mubr.f32.gmra.mrb[18].mxu0 %v4802_v39  ;;  %v17484_v36 = vand.u32 4294901760, %v17472_v51  ;;  %v17488_v32 = vand.u32 4294901760, %v13459_v31  ;;  %v8503_v8 = vpack.c.bf16 %v5170_v53, %v5163_v41 }
 0x20d   :  { %17479 = vst [vmem:[#allocation29_spill] sm:$0xff] %v13519_v59  ;;  %v4840_v27 = vsub.f32 %v13449_v49, %v17481_v52  ;;  %8117 = vmatpush1.bf16.msra.mxu1 %v17483_v18  ;;  %v17485_v52 = vand.u32 4294901760, %v17473_v45  ;;  %v17486_v18 = vld [vmem:[#allocation307_spill] sm:$0xff]  ;;  %4812 = vmatprep.mubr.f32.mxu0 %v4811_v54  ;;  %v5177_v29 = vand.u32 4294901760, %v5176_v12  ;;  %v5184_v16 = vand.u32 4294901760, %v5183_v44 }
 0x20e   :  { %17482 = vst [vmem:[#allocation262_spill] sm:$0xff] %v13527_v6  ;;  %8118 = vmatprep.subr.bf16.mxu1 %v16266_v4  ;;  %v5190_v34 = vsub.f32 %v17472_v51, %v17484_v36  ;;  %v13548_v2 = vsub.f32 %v13459_v31, %v17488_v32  ;;  %8501 = vmatpush1.bf16.msra.mxu0 %v8500_v62  ;;  %v17490_v36 = vand.u32 4294901760, %v13474_v35  ;;  %v17492_v62 = vld [vmem:[#allocation188_spill] sm:$0xff]  ;;  %v13566_v53 = vand.u32 4294901760, %v115_v61  ;;  %v17496_v44 = vld [vmem:[#allocation63_spill] sm:$0xff]  ;;  %v17508_v31 = vld [vmem:[#allocation66_spill] sm:$0xff] }
 0x20f   :  { %v5197_v49 = vsub.f32 %v17473_v45, %v17485_v52  ;;  %2050 = vmatmul.mubr.f32.gmra.mrb[20].mxu1 %v17489_v13  ;;  %v13559_v21 = vsub.f32 %v109_v24, %v13519_v59  ;;  %8502 = vmatprep.subr.bf16.mxu0 %v16266_v4  ;;  %v4841_v41 = vand.u32 4294901760, %v4840_v27  ;;  %v13564_v32 = vsub.f32 %v116_v38, %v13527_v6  ;;  %v121_v24 = vld [vmem:[%s15190_s0 + $0x320] sm:$0xff]  ;;  %v17500_v6 = vld [vmem:[#allocation312_spill] sm:$0xff]  ;;  %v17501_v45 = vld [vmem:[#allocation189_spill] sm:$0xff] }
 0x210   :  { %v13554_v52 = vsub.f32 %v13474_v35, %v17490_v36  ;;  %2055 = vmatprep.mubr.f32.mxu1 %v17492_v62  ;;  %17494 = vst [vmem:[#allocation282_spill] sm:$0xff] %v13566_v53  ;;  %v13568_v12 = vand.u32 4294901760, %v122_v5  ;;  %4818 = vmatmul.mubr.f32.gmra.mrb[20].mxu0 %v4817_v22  ;;  %v5191_v36 = vand.u32 4294901760, %v5190_v34  ;;  %v17497_v27 = vand.u32 4294901760, %v17486_v18  ;;  %v128_v22 = vld [vmem:[%s15190_s0 + $0x358] sm:$0xff] }
 0x211   :  { %17491 = vst [vmem:[#allocation267_spill] sm:$0xff] %v13559_v21  ;;  %17493 = vst [vmem:[#allocation281_spill] sm:$0xff] %v13564_v32  ;;  %8120 = vmatpush1.bf16.msra.mxu1 %v17496_v44  ;;  %v5198_v54 = vand.u32 4294901760, %v5197_v49  ;;  %v17498_v39 = vand.u32 4294901760, %v17487_v10  ;;  %4827 = vmatprep.mubr.f32.mxu0 %v4826_v37  ;;  %v4847_v44 = vand.u32 4294901760, %v13548_v2  ;;  %v8506_v34 = vpack.c.bf16 %v5184_v16, %v5177_v29  ;;  %v17499_v49 = vld [vmem:[#allocation311_spill] sm:$0xff] }
 0x212   :  { %17495 = vst [vmem:[#allocation270_spill] sm:$0xff] %v13568_v12  ;;  %8121 = vmatprep.subr.bf16.mxu1 %v16266_v4  ;;  %v5204_v38 = vsub.f32 %v17486_v18, %v17497_v27  ;;  %8504 = vmatpush1.bf16.msra.mxu0 %v8503_v8  ;;  %v4856_v27 = vand.u32 4294901760, %v13554_v52  ;;  %v17502_v18 = vand.u32 4294901760, %v13513_v28  ;;  %v17503_v2 = vand.u32 4294901760, %v13517_v3  ;;  %v17504_v16 = vld [vmem:[#allocation196_spill] sm:$0xff]  ;;  %v17514_v29 = vld [vmem:[#allocation198_spill] sm:$0xff] }
 0x213   :  { %v5211_v35 = vsub.f32 %v17487_v10, %v17498_v39  ;;  %2057 = vmatmul.mubr.f32.gmra.mrb[22].mxu1 %v17501_v45  ;;  %8505 = vmatprep.subr.bf16.mxu0 %v16266_v4  ;;  %v13602_v59 = vsub.f32 %v115_v61, %v13566_v53  ;;  %v13605_v52 = vsub.f32 %v122_v5, %v13568_v12  ;;  %v127_v61 = vld [vmem:[%s15190_s0 + $0x350] sm:$0xff]  ;;  %v134_v5 = vld [vmem:[%s15190_s0 + $0x388] sm:$0xff]  ;;  %v17515_v10 = vand.u32 4294901760, %v13559_v21 }
 0x214   :  { %v4861_v37 = vsub.f32 %v13513_v28, %v17502_v18  ;;  %v13595_v8 = vsub.f32 %v13517_v3, %v17503_v2  ;;  %2062 = vmatprep.mubr.f32.mxu1 %v17504_v16  ;;  %v13607_v18 = vand.u32 4294901760, %v121_v24  ;;  %4833 = vmatmul.mubr.f32.gmra.mrb[22].mxu0 %v4832_v1  ;;  %v13610_v2 = vand.u32 4294901760, %v128_v22 }
 0x215   :  { %17505 = vst [vmem:[#allocation276_spill] sm:$0xff] %v13602_v59  ;;  %17506 = vst [vmem:[#allocation283_spill] sm:$0xff] %v13605_v52  ;;  %8123 = vmatpush1.bf16.msra.mxu1 %v17508_v31  ;;  %v8509_v39 = vpack.c.bf16 %v5198_v54, %v5191_v36  ;;  %v5205_v3 = vand.u32 4294901760, %v5204_v38  ;;  %v5212_v28 = vand.u32 4294901760, %v5211_v35  ;;  %4842 = vmatprep.mubr.f32.mxu0 %v4841_v41  ;;  %v17510_v31 = vand.u32 4294901760, %v17499_v49  ;;  %v17512_v38 = vld [vmem:[#allocation315_spill] sm:$0xff] }
 0x216   :  { %17507 = vst [vmem:[#allocation284_spill] sm:$0xff] %v13607_v18  ;;  %17509 = vst [vmem:[#allocation277_spill] sm:$0xff] %v13610_v2  ;;  %8124 = vmatprep.subr.bf16.mxu1 %v16266_v4  ;;  %8507 = vmatpush1.bf16.msra.mxu0 %v8506_v34  ;;  %v17511_v54 = vand.u32 4294901760, %v17500_v6  ;;  %v17513_v41 = vld [vmem:[#allocation316_spill] sm:$0xff]  ;;  %v4862_v12 = vand.u32 4294901760, %v4861_v37  ;;  %v4871_v53 = vand.u32 4294901760, %v13595_v8  ;;  %v4876_v51 = vsub.f32 %v13559_v21, %v17515_v10 }
 0x217   :  { %v5218_v1 = vsub.f32 %v17499_v49, %v17510_v31  ;;  %2064 = vmatmul.mubr.f32.gmra.mrb[24].mxu1 %v17514_v29  ;;  %8508 = vmatprep.subr.bf16.mxu0 %v16266_v4  ;;  %v17516_v31 = vld [vmem:[#allocation202_spill] sm:$0xff]  ;;  %v17517_v49 = vand.u32 4294901760, %v13564_v32  ;;  %v13640_v37 = vsub.f32 %v121_v24, %v13607_v18  ;;  %v17519_v8 = vld [vmem:[#allocation77_spill] sm:$0xff]  ;;  %v13644_v10 = vsub.f32 %v128_v22, %v13610_v2  ;;  %v17525_v18 = vld [vmem:[#allocation204_spill] sm:$0xff] }
 0x218   :  { %v5225_v36 = vsub.f32 %v17500_v6, %v17511_v54  ;;  %2069 = vmatprep.mubr.f32.mxu1 %v17516_v31  ;;  %4848 = vmatmul.mubr.f32.gmra.mrb[24].mxu0 %v4847_v44  ;;  %v13646_v21 = vand.u32 4294901760, %v127_v61  ;;  %v13648_v6 = vand.u32 4294901760, %v134_v5  ;;  %v8512_v35 = vpack.c.bf16 %v5212_v28, %v5205_v3  ;;  %v140_v24 = vld [vmem:[%s15190_s0 + $0x3b8] sm:$0xff]  ;;  %v17526_v3 = vld [vmem:[#allocation207_spill] sm:$0xff]  ;;  %v17530_v31 = vld [vmem:[#allocation84_spill] sm:$0xff] }
 0x219   :  { %v4885_v54 = vsub.f32 %v13564_v32, %v17517_v49  ;;  %17518 = vst [vmem:[#allocation91_spill] sm:$0xff] %v13640_v37  ;;  %8126 = vmatpush1.bf16.msra.mxu1 %v17519_v8  ;;  %17520 = vst [vmem:[#allocation285_spill] sm:$0xff] %v13644_v10  ;;  %v133_v49 = vld [vmem:[%s15190_s0 + $0x380] sm:$0xff]  ;;  %4857 = vmatprep.mubr.f32.mxu0 %v4856_v27  ;;  %v5219_v44 = vand.u32 4294901760, %v5218_v1  ;;  %v17523_v8 = vand.u32 4294901760, %v17512_v38  ;;  %v17524_v32 = vand.u32 4294901760, %v17513_v41 }
 0x21a   :  { %17521 = vst [vmem:[#allocation286_spill] sm:$0xff] %v13646_v21  ;;  %17522 = vst [vmem:[#allocation92_spill] sm:$0xff] %v13648_v6  ;;  %8127 = vmatprep.subr.bf16.mxu1 %v16266_v4  ;;  %8510 = vmatpush1.bf16.msra.mxu0 %v8509_v39  ;;  %v5226_v22 = vand.u32 4294901760, %v5225_v36  ;;  %v4877_v28 = vand.u32 4294901760, %v4876_v51  ;;  %v17527_v39 = vand.u32 4294901760, %v13602_v59  ;;  %v17528_v36 = vand.u32 4294901760, %v13605_v52 }
 0x21b   :  { %v5232_v34 = vsub.f32 %v17512_v38, %v17523_v8  ;;  %v5239_v2 = vsub.f32 %v17513_v41, %v17524_v32  ;;  %2071 = vmatmul.mubr.f32.gmra.mrb[26].mxu1 %v17525_v18  ;;  %8511 = vmatprep.subr.bf16.mxu0 %v16266_v4  ;;  %v4886_v27 = vand.u32 4294901760, %v4885_v54  ;;  %v13672_v38 = vand.u32 4294901760, %v133_v49  ;;  %v17534_v32 = vld [vmem:[#allocation208_spill] sm:$0xff] }
 0x21c   :  { %2076 = vmatprep.mubr.f32.mxu1 %v17526_v3  ;;  %v4891_v1 = vsub.f32 %v13602_v59, %v17527_v39  ;;  %v4900_v8 = vsub.f32 %v13605_v52, %v17528_v36  ;;  %4863 = vmatmul.mubr.f32.gmra.mrb[26].mxu0 %v4862_v12  ;;  %v13678_v41 = vsub.f32 %v127_v61, %v13646_v21  ;;  %v13680_v54 = vand.u32 4294901760, %v140_v24  ;;  %v139_v39 = vld [vmem:[%s15190_s0 + $0x3b0] sm:$0xff]  ;;  %v146_v61 = vld [vmem:[%s15190_s0 + $0x3e8] sm:$0xff]  ;;  %v17535_v52 = vld [vmem:[#allocation214_spill] sm:$0xff] }
 0x21d   :  { %17529 = vst [vmem:[#allocation94_spill] sm:$0xff] %v13672_v38  ;;  %8129 = vmatpush1.bf16.msra.mxu1 %v17530_v31  ;;  %4872 = vmatprep.mubr.f32.mxu0 %v4871_v53  ;;  %v13687_v36 = vsub.f32 %v134_v5, %v13648_v6  ;;  %v8515_v12 = vpack.c.bf16 %v5226_v22, %v5219_v44  ;;  %v5233_v31 = vand.u32 4294901760, %v5232_v34  ;;  %v5240_v51 = vand.u32 4294901760, %v5239_v2  ;;  %v17543_v22 = vld [vmem:[#allocation215_spill] sm:$0xff] }
 0x21e   :  { %17531 = vst [vmem:[#allocation5_spill] sm:$0xff] %v13678_v41  ;;  %17532 = vst [vmem:[#allocation95_spill] sm:$0xff] %v13680_v54  ;;  %8130 = vmatprep.subr.bf16.mxu1 %v16266_v4  ;;  %8513 = vmatpush1.bf16.msra.mxu0 %v8512_v35  ;;  %v4892_v59 = vand.u32 4294901760, %v4891_v1  ;;  %v13696_v53 = vsub.f32 %v133_v49, %v13672_v38  ;;  %v13698_v5 = vand.u32 4294901760, %v139_v39  ;;  %v17538_v35 = vld [vmem:[#allocation86_spill] sm:$0xff]  ;;  %v4901_v2 = vand.u32 4294901760, %v4900_v8 }
 0x21f   :  { %17533 = vst [vmem:[#allocation104_spill] sm:$0xff] %v13687_v36  ;;  %2078 = vmatmul.mubr.f32.gmra.mrb[28].mxu1 %v17534_v32  ;;  %8514 = vmatprep.subr.bf16.mxu0 %v16266_v4  ;;  %v17539_v34 = vand.u32 4294901760, %v13640_v37  ;;  %v13706_v6 = vsub.f32 %v140_v24, %v13680_v54  ;;  %v17541_v49 = vand.u32 4294901760, %v13644_v10  ;;  %v145_v8 = vld [vmem:[%s15190_s0 + $0x3e0] sm:$0xff]  ;;  %v152_v24 = vld [vmem:[%s15190_s0 + $0x418] sm:$0xff] }
 0x220   :  { %2083 = vmatprep.mubr.f32.mxu1 %v17535_v52  ;;  %17536 = vst [vmem:[#allocation109_spill] sm:$0xff] %v13696_v53  ;;  %17537 = vst [vmem:[#allocation8_spill] sm:$0xff] %v13698_v5  ;;  %4878 = vmatmul.mubr.f32.gmra.mrb[28].mxu0 %v4877_v28  ;;  %v13713_v28 = vand.u32 4294901760, %v146_v61  ;;  %v13733_v54 = vand.u32 4294901760, %v145_v8 }
 0x221   :  { %8132 = vmatpush1.bf16.msra.mxu1 %v17538_v35  ;;  %v4906_v44 = vsub.f32 %v13640_v37, %v17539_v34  ;;  %17540 = vst [vmem:[#allocation112_spill] sm:$0xff] %v13706_v6  ;;  %4887 = vmatprep.mubr.f32.mxu0 %v4886_v27  ;;  %v4915_v1 = vsub.f32 %v13644_v10, %v17541_v49  ;;  %v17544_v27 = vld [vmem:[#allocation221_spill] sm:$0xff]  ;;  %v17546_v10 = vld [vmem:[#allocation103_spill] sm:$0xff]  ;;  %v17549_v49 = vand.u32 4294901760, %v13687_v36 }
 0x222   :  { %8133 = vmatprep.subr.bf16.mxu1 %v16266_v4  ;;  %17542 = vst [vmem:[#allocation119_spill] sm:$0xff] %v13713_v28  ;;  %8516 = vmatpush1.bf16.msra.mxu0 %v8515_v12  ;;  %v8518_v34 = vpack.c.bf16 %v5240_v51, %v5233_v31  ;;  %v13726_v35 = vsub.f32 %v139_v39, %v13698_v5  ;;  %v17547_v51 = vand.u32 4294901760, %v13678_v41  ;;  %17548 = vst [vmem:[#allocation120_spill] sm:$0xff] %v13733_v54 }
 0x223   :  { %2085 = vmatmul.mubr.f32.gmra.mrb[30].mxu1 %v17543_v22  ;;  %8517 = vmatprep.subr.bf16.mxu0 %v16266_v4  ;;  %v4907_v12 = vand.u32 4294901760, %v4906_v44  ;;  %v4916_v38 = vand.u32 4294901760, %v4915_v1  ;;  %v4930_v39 = vsub.f32 %v13687_v36, %v17549_v49  ;;  %v151_v44 = vld [vmem:[%s15190_s0 + $0x410] sm:$0xff] }
 0x224   :  { %2090 = vmatprep.mubr.f32.mxu1 %v17544_v27  ;;  %17545 = vst [vmem:[#allocation11_spill] sm:$0xff] %v13726_v35  ;;  %4893 = vmatmul.mubr.f32.gmra.mrb[30].mxu0 %v4892_v59  ;;  %v4921_v31 = vsub.f32 %v13678_v41, %v17547_v51  ;;  %v13742_v59 = vand.u32 4294901760, %v152_v24  ;;  %v17552_v51 = vld [vmem:[#allocation224_spill] sm:$0xff]  ;;  %v17553_v1 = vld [vmem:[#allocation229_spill] sm:$0xff]  ;;  %v16186_v37 = vand.u32 4294901760, %v13726_v35  ;;  %v13763_v5 = vand.u32 4294901760, %v151_v44 }
 0x225   :  { %8135 = vmatpush1.bf16.msra.mxu1 %v17546_v10  ;;  %4902 = vmatprep.mubr.f32.mxu0 %v4901_v2  ;;  %v13740_v10 = vsub.f32 %v146_v61, %v13713_v28  ;;  %v158_v2 = vld [vmem:[%s15190_s0 + $0x448] sm:$0xff]  ;;  %v17554_v61 = vand.u32 4294901760, %v13696_v53  ;;  %v13761_v28 = vsub.f32 %v145_v8, %v13733_v54  ;;  %v4931_v21 = vand.u32 4294901760, %v4930_v39  ;;  %v164_v8 = vld [vmem:[%s15190_s0 + $0x478] sm:$0xff] }
 0x226   :  { %8136 = vmatprep.subr.bf16.mxu1 %v16266_v4  ;;  %17551 = vst [vmem:[#allocation17_spill] sm:$0xff] %v13742_v59  ;;  %8519 = vmatpush1.bf16.msra.mxu0 %v8518_v34  ;;  %v4922_v36 = vand.u32 4294901760, %v4921_v31  ;;  %v17555_v34 = vand.u32 4294901760, %v13706_v6  ;;  %17557 = vst [vmem:[#allocation24_spill] sm:$0xff] %v13763_v5  ;;  %v17560_v31 = vld [vmem:[#allocation230_spill] sm:$0xff] }
 0x227   :  { %17550 = vst [vmem:[#allocation127_spill] sm:$0xff] %v13740_v10  ;;  %2092 = vmatmul.mubr.f32.gmra.mrb[32].mxu1 %v17552_v51  ;;  %8520 = vmatprep.subr.bf16.mxu0 %v16266_v4  ;;  %v4936_v49 = vsub.f32 %v13696_v53, %v17554_v61  ;;  %17556 = vst [vmem:[#allocation23_spill] sm:$0xff] %v13761_v28  ;;  %v13767_v51 = vsub.f32 %v152_v24, %v13742_v59  ;;  %v13769_v61 = vand.u32 4294901760, %v158_v2 }
 0x228   :  { %2097 = vmatprep.mubr.f32.mxu1 %v17553_v1  ;;  %4908 = vmatmul.mubr.f32.gmra.mrb[32].mxu0 %v4907_v12  ;;  %v4945_v41 = vsub.f32 %v13706_v6, %v17555_v34  ;;  %v157_v12 = vld [vmem:[%s15190_s0 + $0x440] sm:$0xff]  ;;  %v17561_v34 = vld [vmem:[#allocation236_spill] sm:$0xff]  ;;  %v4951_v24 = vsub.f32 %v13726_v35, %v16186_v37  ;;  %v16195_v1 = vand.u32 4294901760, %v13761_v28  ;;  %v13784_v6 = vsub.f32 %v151_v44, %v13763_v5 }
 0x229   :  { %4917 = vmatprep.mubr.f32.mxu0 %v4916_v38  ;;  %17558 = vst [vmem:[#allocation36_spill] sm:$0xff] %v13767_v51  ;;  %17559 = vst [vmem:[#allocation42_spill] sm:$0xff] %v13769_v61  ;;  %v4937_v38 = vand.u32 4294901760, %v4936_v49  ;;  %v13786_v53 = vand.u32 4294901760, %v157_v12  ;;  %v17564_v59 = vand.u32 4294901760, %v13740_v10  ;;  %v13795_v37 = vand.u32 4294901760, %v164_v8 }
 0x22a   :  { %v4946_v39 = vand.u32 4294901760, %v4945_v41  ;;  %17562 = vst [vmem:[#allocation46_spill] sm:$0xff] %v13784_v6  ;;  %v163_v41 = vld [vmem:[%s15190_s0 + $0x470] sm:$0xff]  ;;  %v17568_v44 = vld [vmem:[#allocation243_spill] sm:$0xff]  ;;  %v16202_v49 = vand.u32 4294901760, %v13784_v6  ;;  %s9581_s0 = smov 119  }
 0x22b   :  { %2099 = vmatmul.mubr.f32.gmra.mrb[34].mxu1 %v17560_v31  ;;  %17563 = vst [vmem:[#allocation61_spill] sm:$0xff] %v13786_v53  ;;  %v4960_v54 = vsub.f32 %v13740_v10, %v17564_v59  ;;  %17566 = vst [vmem:[#allocation188_spill] sm:$0xff] %v13795_v37  ;;  %v4966_v59 = vsub.f32 %v13761_v28, %v16195_v1  ;;  %v13809_v10 = vand.u32 4294901760, %v163_v41  ;;  %v17572_v1 = vld [vmem:[#allocation251_spill] sm:$0xff] }
 0x22c   :  { %2104 = vmatprep.mubr.f32.mxu1 %v17561_v34  ;;  %4923 = vmatmul.mubr.f32.gmra.mrb[34].mxu0 %v4922_v36  ;;  %v13793_v34 = vsub.f32 %v158_v2, %v13769_v61  ;;  %v17567_v36 = vld [vmem:[#allocation237_spill] sm:$0xff]  ;;  %v13807_v2 = vsub.f32 %v157_v12, %v13786_v53  ;;  %v17570_v61 = vand.u32 4294901760, %v13767_v51 }
 0x22d   :  { %4932 = vmatprep.mubr.f32.mxu0 %v4931_v21  ;;  %v4952_v21 = vand.u32 4294901760, %v4951_v24  ;;  %17569 = vst [vmem:[#allocation63_spill] sm:$0xff] %v13809_v10  ;;  %v4961_v35 = vand.u32 4294901760, %v4960_v54  ;;  %v4967_v12 = vand.u32 4294901760, %v4966_v59  ;;  %v13825_v28 = vsub.f32 %v163_v41, %v13809_v10 }
 0x22e   :  { %17565 = vst [vmem:[#allocation183_spill] sm:$0xff] %v13793_v34  ;;  %v4975_v5 = vsub.f32 %v13767_v51, %v17570_v61  ;;  %v16203_v24 = vand.u32 4294901760, %v13793_v34  ;;  %v16208_v54 = vand.u32 4294901760, %v13807_v2 }
 0x22f   :  { %2106 = vmatmul.mubr.f32.gmra.mrb[36].mxu1 %v17567_v36  ;;  %v16210_v41 = vand.u32 4294901760, %v13825_v28 }
 0x230   :  { %2111 = vmatprep.mubr.f32.mxu1 %v17568_v44  ;;  %4938 = vmatmul.mubr.f32.gmra.mrb[36].mxu0 %v4937_v38  ;;  %v13816_v38 = vsub.f32 %v164_v8, %v13795_v37  ;;  %v17571_v44 = vld [vmem:[#allocation246_spill] sm:$0xff]  ;;  %v4976_v61 = vand.u32 4294901760, %v4975_v5  ;;  %v4990_v8 = vsub.f32 %v13793_v34, %v16203_v24  ;;  %v17573_v37 = vld [vmem:[#allocation252_spill] sm:$0xff]  ;;  %v17576_v34 = vld [vmem:[#allocation265_spill] sm:$0xff] }
 0x231   :  { %4947 = vmatprep.mubr.f32.mxu0 %v4946_v39  ;;  %v4981_v39 = vsub.f32 %v13784_v6, %v16202_v49  ;;  %v4996_v49 = vsub.f32 %v13807_v2, %v16208_v54  ;;  %v17575_v24 = vld [vmem:[#allocation260_spill] sm:$0xff] }
 0x232   :  { %v16209_v51 = vand.u32 4294901760, %v13816_v38  ;;  %v4991_v5 = vand.u32 4294901760, %v4990_v8  ;;  %v17577_v54 = vld [vmem:[#allocation268_spill] sm:$0xff] }
 0x233   :  { %2113 = vmatmul.mubr.f32.gmra.mrb[38].mxu1 %v17571_v44  ;;  %v4982_v59 = vand.u32 4294901760, %v4981_v39  ;;  %v4997_v6 = vand.u32 4294901760, %v4996_v49  ;;  %v8521_v49 = vpack.c.bf16 %v17311_v25, %v17307_v48 }
 0x234   :  { %2118 = vmatprep.mubr.f32.mxu1 %v17572_v1  ;;  %4953 = vmatmul.mubr.f32.gmra.mrb[38].mxu0 %v4952_v21  ;;  %v17574_v21 = vld [vmem:[#allocation258_spill] sm:$0xff] }
 0x235   :  { %4962 = vmatprep.mubr.f32.mxu0 %v4961_v35  ;;  %v5005_v35 = vsub.f32 %v13816_v38, %v16209_v51  ;;  %v17579_v51 = vld [vmem:[#allocation274_spill] sm:$0xff] }
 0x237   :  { %2120 = vmatmul.mubr.f32.gmra.mrb[40].mxu1 %v17573_v37  ;;  %v5006_v39 = vand.u32 4294901760, %v5005_v35  ;;  %v17587_v35 = vld [vmem:[#allocation155_spill] sm:$0xff] }
 0x238   :  { %2125 = vmatprep.mubr.f32.mxu1 %v17574_v21  ;;  %4968 = vmatmul.mubr.f32.gmra.mrb[40].mxu0 %v4967_v12  ;;  %v5011_v12 = vsub.f32 %v13825_v28, %v16210_v41 }
 0x239   :  { %4977 = vmatprep.mubr.f32.mxu0 %v4976_v61  ;;  %v17578_v61 = vld [vmem:[#allocation273_spill] sm:$0xff] }
 0x23a   :  { %v5012_v8 = vand.u32 4294901760, %v5011_v12  ;;  %v17589_v12 = vld [vmem:[#allocation64_spill] sm:$0xff] }
 0x23b   :  { %2127 = vmatmul.mubr.f32.gmra.mrb[42].mxu1 %v17575_v24 }
 0x23c   :  { %2132 = vmatprep.mubr.f32.mxu1 %v17576_v34  ;;  %4983 = vmatmul.mubr.f32.gmra.mrb[42].mxu0 %v4982_v59  ;;  %v17580_v59 = vld [vmem:[#allocation98_spill] sm:$0xff] }
 0x23d   :  { %4992 = vmatprep.mubr.f32.mxu0 %v4991_v5  ;;  %v17585_v5 = vld [vmem:[#allocation131_spill] sm:$0xff] }
 0x23f   :  { %2134 = vmatmul.mubr.f32.gmra.mrb[44].mxu1 %v17577_v54 }
 0x240   :  { %2139 = vmatprep.mubr.f32.mxu1 %v17578_v61  ;;  %4998 = vmatmul.mubr.f32.gmra.mrb[44].mxu0 %v4997_v6 }
 0x241   :  { %5007 = vmatprep.mubr.f32.mxu0 %v5006_v39  ;;  %v17590_v39 = vld [vmem:[#allocation100_spill] sm:$0xff] }
 0x243   :  { %2141 = vmatmul.mubr.f32.gmra.mrb[46].mxu1 %v17579_v51 }
 0x244   :  { %2243 = vmatprep.mubr.f32.mxu1 %v17351_v9  ;;  %5013 = vmatmul.mubr.f32.gmra.mrb[46].mxu0 %v5012_v8  ;;  %v8524_v9 = vpack.c.bf16 %v17329_v50, %v17328_v42  ;;  %v17591_v8 = vld [vmem:[#allocation102_spill] sm:$0xff] }
 0x245   :  { %5243 = vmatprep.mubr.f32.mxu0 %v12931_v11 }
 0x247   :  { %2245 = vmatmul.mubr.f32.vlgmr.msra.gmra.mrb[0].mxu1 %v17359_v14  ;;  %v17581_v14 = vld [vmem:[#allocation116_spill] sm:$0xff] }
 0x248   :  { %2250 = vmatprep.mubr.f32.mxu1 %v17363_v55  ;;  %8138 = vmatpush1.bf16.msra.mxu1 %v17580_v59  ;;  %v8527_v55 = vpack.c.bf16 %v17345_v19, %v17344_v33  ;;  %v17592_v59 = vld [vmem:[#allocation137_spill] sm:$0xff] }
 0x249   :  { %5245 = vmatmul.mubr.f32.vlgmr.msra.gmra.mrb[0].mxu0 %v12935_v58  ;;  %8139 = vmatprep.subr.bf16.mxu1 %v16266_v4 }
 0x24a   :  { %8522 = vmatpush1.bf16.msra.mxu0 %v8521_v49  ;;  %5250 = vmatprep.mubr.f32.mxu0 %v12953_v63  ;;  %v8536_v49 = vpack.c.bf16 %v17591_v8, %v17590_v39 }
 0x24b   :  { %2252 = vmatmul.mubr.f32.gmra.mrb[2].mxu1 %v17371_v46  ;;  %8523 = vmatprep.subr.bf16.mxu0 %v16266_v4  ;;  %v17582_v46 = vld [vmem:[#allocation129_spill] sm:$0xff] }
 0x24c   :  { %2257 = vmatprep.mubr.f32.mxu1 %v17374_v30  ;;  %8141 = vmatpush1.bf16.msra.mxu1 %v17581_v14  ;;  %v8530_v30 = vpack.c.bf16 %v17358_v23, %v17357_v20  ;;  %v17594_v14 = vld [vmem:[#allocation168_spill] sm:$0xff] }
 0x24d   :  { %5252 = vmatmul.mubr.f32.gmra.mrb[2].mxu0 %v12955_v15  ;;  %8142 = vmatprep.subr.bf16.mxu1 %v16266_v4  ;;  %v17620_v15 = vld [vmem:[#allocation172_spill] sm:$0xff] }
 0x24e   :  { %5257 = vmatprep.mubr.f32.mxu0 %v12965_v7  ;;  %8525 = vmatpush1.bf16.msra.mxu0 %v8524_v9  ;;  %v17593_v9 = vld [vmem:[#allocation144_spill] sm:$0xff]  ;;  %v17615_v7 = vld [vmem:[#allocation30_spill] sm:$0xff] }
 0x24f   :  { %2259 = vmatmul.mubr.f32.gmra.mrb[4].mxu1 %v17385_v26  ;;  %8526 = vmatprep.subr.bf16.mxu0 %v16266_v4  ;;  %v17583_v26 = vld [vmem:[#allocation142_spill] sm:$0xff] }
 0x250   :  { %2264 = vmatprep.mubr.f32.mxu1 %v17388_v43  ;;  %8144 = vmatpush1.bf16.msra.mxu1 %v17582_v46  ;;  %v17584_v43 = vld [vmem:[#allocation287_spill] sm:$0xff]  ;;  %v17596_v46 = vld [vmem:[#allocation192_spill] sm:$0xff] }
 0x251   :  { %5259 = vmatmul.mubr.f32.gmra.mrb[4].mxu0 %v12970_v47  ;;  %8145 = vmatprep.subr.bf16.mxu1 %v16266_v4  ;;  %v8533_v6 = vpack.c.bf16 %v17584_v43, %v17367_v57  ;;  %v17606_v47 = vld [vmem:[#allocation157_spill] sm:$0xff] }
 0x252   :  { %5264 = vmatprep.mubr.f32.mxu0 %v12996_v0  ;;  %8528 = vmatpush1.bf16.msra.mxu0 %v8527_v55  ;;  %v17595_v55 = vld [vmem:[#allocation299_spill] sm:$0xff] }
 0x253   :  { %2266 = vmatmul.mubr.f32.gmra.mrb[6].mxu1 %v17399_v40  ;;  %8529 = vmatprep.subr.bf16.mxu0 %v16266_v4  ;;  %v17586_v40 = vld [vmem:[#allocation134_spill] sm:$0xff]  ;;  %v17722_v0 = vld [vmem:[#allocation27_spill] sm:$0xff] }
 0x254   :  { %2271 = vmatprep.mubr.f32.mxu1 %v17402_v60  ;;  %8147 = vmatpush1.bf16.msra.mxu1 %v17583_v26  ;;  %v17588_v60 = vld [vmem:[#allocation191_spill] sm:$0xff] }
 0x255   :  { %5266 = vmatmul.mubr.f32.gmra.mrb[6].mxu0 %v12998_v17  ;;  %8148 = vmatprep.subr.bf16.mxu1 %v16266_v4  ;;  %v17598_v26 = vld [vmem:[#allocation123_spill] sm:$0xff] }
 0x256   :  { %5271 = vmatprep.mubr.f32.mxu0 %v13035_v56  ;;  %8531 = vmatpush1.bf16.msra.mxu0 %v8530_v30  ;;  %v17597_v30 = vld [vmem:[#allocation115_spill] sm:$0xff] }
 0x257   :  { %2273 = vmatmul.mubr.f32.gmra.mrb[8].mxu1 %v17585_v5  ;;  %8532 = vmatprep.subr.bf16.mxu0 %v16266_v4  ;;  %v17599_v5 = vld [vmem:[#allocation148_spill] sm:$0xff] }
 0x258   :  { %2278 = vmatprep.mubr.f32.mxu1 %v17586_v40  ;;  %8150 = vmatpush1.bf16.msra.mxu1 %v17587_v35  ;;  %v17600_v40 = vld [vmem:[#allocation152_spill] sm:$0xff]  ;;  %v17601_v35 = vld [vmem:[#allocation181_spill] sm:$0xff] }
 0x259   :  { %5273 = vmatmul.mubr.f32.gmra.mrb[8].mxu0 %v17588_v60  ;;  %8151 = vmatprep.subr.bf16.mxu1 %v16266_v4  ;;  %v17638_v60 = vld [vmem:[#allocation59_spill] sm:$0xff] }
 0x25a   :  { %5278 = vmatprep.mubr.f32.mxu0 %v17589_v12  ;;  %8534 = vmatpush1.bf16.msra.mxu0 %v8533_v6  ;;  %v8539_v6 = vpack.c.bf16 %v17598_v26, %v17597_v30  ;;  %v17622_v12 = vld [vmem:[#allocation40_spill] sm:$0xff] }
 0x25b   :  { %2280 = vmatmul.mubr.f32.gmra.mrb[10].mxu1 %v17592_v59  ;;  %8535 = vmatprep.subr.bf16.mxu0 %v16266_v4  ;;  %v17602_v59 = vld [vmem:[#allocation302_spill] sm:$0xff] }
 0x25c   :  { %2285 = vmatprep.mubr.f32.mxu1 %v17593_v9  ;;  %8153 = vmatpush1.bf16.msra.mxu1 %v17594_v14  ;;  %v17603_v9 = vld [vmem:[#allocation303_spill] sm:$0xff]  ;;  %v17604_v14 = vld [vmem:[#allocation130_spill] sm:$0xff] }
 0x25d   :  { %5280 = vmatmul.mubr.f32.gmra.mrb[10].mxu0 %v17595_v55  ;;  %8154 = vmatprep.subr.bf16.mxu1 %v16266_v4  ;;  %v17613_v55 = vld [vmem:[#allocation161_spill] sm:$0xff] }
 0x25e   :  { %5285 = vmatprep.mubr.f32.mxu0 %v17596_v46  ;;  %8537 = vmatpush1.bf16.msra.mxu0 %v8536_v49  ;;  %v17605_v49 = vld [vmem:[#allocation289_spill] sm:$0xff]  ;;  %v17608_v46 = vld [vmem:[#allocation26_spill] sm:$0xff] }
 0x25f   :  { %2287 = vmatmul.mubr.f32.gmra.mrb[12].mxu1 %v17599_v5  ;;  %8538 = vmatprep.subr.bf16.mxu0 %v16266_v4  ;;  %v8542_v41 = vpack.c.bf16 %v17605_v49, %v17604_v14  ;;  %v17607_v5 = vld [vmem:[#allocation160_spill] sm:$0xff]  ;;  %v17782_v49 = vld [vmem:[#allocation22_spill] sm:$0xff]  ;;  %v17786_v14 = vld [vmem:[#allocation195_spill] sm:$0xff] }
 0x260   :  { %2292 = vmatprep.mubr.f32.mxu1 %v17600_v40  ;;  %8156 = vmatpush1.bf16.msra.mxu1 %v17601_v35  ;;  %v17609_v40 = vld [vmem:[#allocation76_spill] sm:$0xff]  ;;  %v17610_v35 = vld [vmem:[#allocation78_spill] sm:$0xff] }
 0x261   :  { %5287 = vmatmul.mubr.f32.gmra.mrb[12].mxu0 %v17602_v59  ;;  %8157 = vmatprep.subr.bf16.mxu1 %v16266_v4 }
 0x262   :  { %5292 = vmatprep.mubr.f32.mxu0 %v17603_v9  ;;  %8540 = vmatpush1.bf16.msra.mxu0 %v8539_v6  ;;  %v17611_v9 = vld [vmem:[#allocation140_spill] sm:$0xff]  ;;  %v17612_v6 = vld [vmem:[#allocation147_spill] sm:$0xff] }
 0x263   :  { %2294 = vmatmul.mubr.f32.gmra.mrb[14].mxu1 %v17606_v47  ;;  %8541 = vmatprep.subr.bf16.mxu0 %v16266_v4  ;;  %v8545_v59 = vpack.c.bf16 %v17612_v6, %v17611_v9  ;;  %v17614_v47 = vld [vmem:[#allocation171_spill] sm:$0xff]  ;;  %v17779_v6 = vld [vmem:[#allocation186_spill] sm:$0xff] }
 0x264   :  { %2299 = vmatprep.mubr.f32.mxu1 %v17607_v5  ;;  %8159 = vmatpush1.bf16.msra.mxu1 %v17608_v46  ;;  %v17616_v5 = vld [vmem:[#allocation210_spill] sm:$0xff]  ;;  %v17617_v46 = vld [vmem:[#allocation81_spill] sm:$0xff]  ;;  %v17780_v9 = vand.u32 4294901760, %v17779_v6 }
 0x265   :  { %5294 = vmatmul.mubr.f32.gmra.mrb[14].mxu0 %v17609_v40  ;;  %8160 = vmatprep.subr.bf16.mxu1 %v16266_v4 }
 0x266   :  { %5299 = vmatprep.mubr.f32.mxu0 %v17610_v35  ;;  %8543 = vmatpush1.bf16.msra.mxu0 %v8542_v41  ;;  %v17618_v35 = vld [vmem:[#allocation292_spill] sm:$0xff]  ;;  %v17619_v41 = vld [vmem:[#allocation293_spill] sm:$0xff] }
 0x267   :  { %2301 = vmatmul.mubr.f32.gmra.mrb[16].mxu1 %v17613_v55  ;;  %8544 = vmatprep.subr.bf16.mxu0 %v16266_v4  ;;  %v8548_v40 = vpack.c.bf16 %v17619_v41, %v17618_v35  ;;  %v17621_v55 = vld [vmem:[#allocation178_spill] sm:$0xff] }
 0x268   :  { %2306 = vmatprep.mubr.f32.mxu1 %v17614_v47  ;;  %8162 = vmatpush1.bf16.msra.mxu1 %v17615_v7  ;;  %v17623_v47 = vld [vmem:[#allocation85_spill] sm:$0xff] }
 0x269   :  { %5301 = vmatmul.mubr.f32.gmra.mrb[16].mxu0 %v17616_v5  ;;  %8163 = vmatprep.subr.bf16.mxu1 %v16266_v4  ;;  %v17624_v7 = vld [vmem:[#allocation217_spill] sm:$0xff] }
 0x26a   :  { %5306 = vmatprep.mubr.f32.mxu0 %v17617_v46  ;;  %8546 = vmatpush1.bf16.msra.mxu0 %v8545_v59  ;;  %v17625_v46 = vld [vmem:[#allocation296_spill] sm:$0xff]  ;;  %v17626_v59 = vld [vmem:[#allocation297_spill] sm:$0xff] }
 0x26b   :  { %2308 = vmatmul.mubr.f32.gmra.mrb[18].mxu1 %v17620_v15  ;;  %8547 = vmatprep.subr.bf16.mxu0 %v16266_v4  ;;  %v8551_v5 = vpack.c.bf16 %v17626_v59, %v17625_v46  ;;  %v17627_v15 = vld [vmem:[#allocation44_spill] sm:$0xff]  ;;  %v17757_v46 = vld [vmem:[#allocation50_spill] sm:$0xff] }
 0x26c   :  { %2313 = vmatprep.mubr.f32.mxu1 %v17621_v55  ;;  %8165 = vmatpush1.bf16.msra.mxu1 %v17622_v12  ;;  %v17628_v55 = vld [vmem:[#allocation88_spill] sm:$0xff]  ;;  %v17629_v12 = vld [vmem:[#allocation314_spill] sm:$0xff] }
 0x26d   :  { %5308 = vmatmul.mubr.f32.gmra.mrb[18].mxu0 %v17623_v47  ;;  %8166 = vmatprep.subr.bf16.mxu1 %v16266_v4 }
 0x26e   :  { %5313 = vmatprep.mubr.f32.mxu0 %v17624_v7  ;;  %8549 = vmatpush1.bf16.msra.mxu0 %v8548_v40  ;;  %v17630_v7 = vld [vmem:[#allocation300_spill] sm:$0xff]  ;;  %v17631_v40 = vld [vmem:[#allocation301_spill] sm:$0xff] }
 0x26f   :  { %2315 = vmatmul.mubr.f32.gmra.mrb[20].mxu1 %v17489_v13  ;;  %8550 = vmatprep.subr.bf16.mxu0 %v16266_v4  ;;  %v8554_v47 = vpack.c.bf16 %v17631_v40, %v17630_v7  ;;  %v17632_v13 = vld [vmem:[#allocation51_spill] sm:$0xff] }
 0x270   :  { %2320 = vmatprep.mubr.f32.mxu1 %v17492_v62  ;;  %8168 = vmatpush1.bf16.msra.mxu1 %v17627_v15  ;;  %v17633_v62 = vld [vmem:[#allocation218_spill] sm:$0xff]  ;;  %v17634_v15 = vld [vmem:[#allocation232_spill] sm:$0xff] }
 0x271   :  { %5315 = vmatmul.mubr.f32.gmra.mrb[20].mxu0 %v17628_v55  ;;  %8169 = vmatprep.subr.bf16.mxu1 %v16266_v4 }
 0x272   :  { %5320 = vmatprep.mubr.f32.mxu0 %v17629_v12  ;;  %8552 = vmatpush1.bf16.msra.mxu0 %v8551_v5  ;;  %v17635_v12 = vld [vmem:[#allocation304_spill] sm:$0xff]  ;;  %v17636_v5 = vld [vmem:[#allocation305_spill] sm:$0xff] }
 0x273   :  { %2322 = vmatmul.mubr.f32.gmra.mrb[22].mxu1 %v17501_v45  ;;  %8553 = vmatprep.subr.bf16.mxu0 %v16266_v4  ;;  %v8557_v55 = vpack.c.bf16 %v17636_v5, %v17635_v12  ;;  %v17637_v45 = vld [vmem:[#allocation202_spill] sm:$0xff] }
 0x274   :  { %2327 = vmatprep.mubr.f32.mxu1 %v17504_v16  ;;  %8171 = vmatpush1.bf16.msra.mxu1 %v17632_v13  ;;  %v17639_v16 = vld [vmem:[#allocation233_spill] sm:$0xff]  ;;  %v17640_v13 = vld [vmem:[#allocation239_spill] sm:$0xff] }
 0x275   :  { %5322 = vmatmul.mubr.f32.gmra.mrb[22].mxu0 %v17633_v62  ;;  %8172 = vmatprep.subr.bf16.mxu1 %v16266_v4 }
 0x276   :  { %5327 = vmatprep.mubr.f32.mxu0 %v17634_v15  ;;  %8555 = vmatpush1.bf16.msra.mxu0 %v8554_v47  ;;  %v17641_v15 = vld [vmem:[#allocation307_spill] sm:$0xff]  ;;  %v17642_v47 = vld [vmem:[#allocation308_spill] sm:$0xff] }
 0x277   :  { %2329 = vmatmul.mubr.f32.gmra.mrb[24].mxu1 %v17514_v29  ;;  %8556 = vmatprep.subr.bf16.mxu0 %v16266_v4  ;;  %v8560_v62 = vpack.c.bf16 %v17642_v47, %v17641_v15  ;;  %v17643_v29 = vld [vmem:[#allocation65_spill] sm:$0xff] }
 0x278   :  { %2334 = vmatprep.mubr.f32.mxu1 %v17637_v45  ;;  %8174 = vmatpush1.bf16.msra.mxu1 %v17638_v60  ;;  %v17644_v45 = vld [vmem:[#allocation254_spill] sm:$0xff]  ;;  %v17645_v60 = vld [vmem:[#allocation255_spill] sm:$0xff]  ;;  %v17735_v15 = vld [vmem:[#allocation33_spill] sm:$0xff] }
 0x279   :  { %5329 = vmatmul.mubr.f32.gmra.mrb[24].mxu0 %v17639_v16  ;;  %8175 = vmatprep.subr.bf16.mxu1 %v16266_v4 }
 0x27a   :  { %5334 = vmatprep.mubr.f32.mxu0 %v17640_v13  ;;  %8558 = vmatpush1.bf16.msra.mxu0 %v8557_v55  ;;  %v17646_v13 = vld [vmem:[#allocation311_spill] sm:$0xff]  ;;  %v17647_v55 = vld [vmem:[#allocation312_spill] sm:$0xff] }
 0x27b   :  { %2336 = vmatmul.mubr.f32.gmra.mrb[26].mxu1 %v17525_v18  ;;  %8559 = vmatprep.subr.bf16.mxu0 %v16266_v4  ;;  %v8563_v16 = vpack.c.bf16 %v17647_v55, %v17646_v13  ;;  %v17648_v18 = vld [vmem:[#allocation71_spill] sm:$0xff]  ;;  %v17726_v13 = vld [vmem:[#allocation56_spill] sm:$0xff] }
 0x27c   :  { %2341 = vmatprep.mubr.f32.mxu1 %v17526_v3  ;;  %8177 = vmatpush1.bf16.msra.mxu1 %v17643_v29  ;;  %v17649_v3 = vld [vmem:[#allocation29_spill] sm:$0xff]  ;;  %v17650_v29 = vld [vmem:[#allocation262_spill] sm:$0xff] }
 0x27d   :  { %5336 = vmatmul.mubr.f32.gmra.mrb[26].mxu0 %v17644_v45  ;;  %8178 = vmatprep.subr.bf16.mxu1 %v16266_v4 }
 0x27e   :  { %5341 = vmatprep.mubr.f32.mxu0 %v17645_v60  ;;  %8561 = vmatpush1.bf16.msra.mxu0 %v8560_v62  ;;  %v17651_v60 = vld [vmem:[#allocation315_spill] sm:$0xff]  ;;  %v17652_v62 = vld [vmem:[#allocation316_spill] sm:$0xff] }
 0x27f   :  { %2343 = vmatmul.mubr.f32.gmra.mrb[28].mxu1 %v17534_v32  ;;  %8562 = vmatprep.subr.bf16.mxu0 %v16266_v4  ;;  %v8566_v45 = vpack.c.bf16 %v17652_v62, %v17651_v60  ;;  %v17653_v32 = vld [vmem:[#allocation82_spill] sm:$0xff]  ;;  %v17723_v62 = vand.u32 4294901760, %v17722_v0 }
 0x280   :  { %2348 = vmatprep.mubr.f32.mxu1 %v17535_v52  ;;  %8180 = vmatpush1.bf16.msra.mxu1 %v17648_v18  ;;  %v17654_v52 = vld [vmem:[#allocation282_spill] sm:$0xff] }
 0x281   :  { %5343 = vmatmul.mubr.f32.gmra.mrb[28].mxu0 %v17649_v3  ;;  %8181 = vmatprep.subr.bf16.mxu1 %v16266_v4  ;;  %v17655_v18 = vld [vmem:[#allocation270_spill] sm:$0xff]  ;;  %v17659_v3 = vld [vmem:[#allocation277_spill] sm:$0xff] }
 0x282   :  { %5348 = vmatprep.mubr.f32.mxu0 %v17650_v29  ;;  %8564 = vmatpush1.bf16.msra.mxu0 %v8563_v16  ;;  %v17656_v29 = vld [vmem:[#allocation224_spill] sm:$0xff]  ;;  %v17657_v16 = vld [vmem:[#allocation229_spill] sm:$0xff] }
 0x283   :  { %2350 = vmatmul.mubr.f32.gmra.mrb[30].mxu1 %v17543_v22  ;;  %8565 = vmatprep.subr.bf16.mxu0 %v16266_v4  ;;  %v17658_v22 = vld [vmem:[#allocation284_spill] sm:$0xff] }
 0x284   :  { %2355 = vmatprep.mubr.f32.mxu1 %v17544_v27  ;;  %8183 = vmatpush1.bf16.msra.mxu1 %v17653_v32  ;;  %v17660_v27 = vld [vmem:[#allocation236_spill] sm:$0xff]  ;;  %v17661_v32 = vld [vmem:[#allocation286_spill] sm:$0xff] }
 0x285   :  { %5350 = vmatmul.mubr.f32.gmra.mrb[30].mxu0 %v17654_v52  ;;  %8184 = vmatprep.subr.bf16.mxu1 %v16266_v4  ;;  %v17662_v52 = vld [vmem:[#allocation92_spill] sm:$0xff] }
 0x286   :  { %5355 = vmatprep.mubr.f32.mxu0 %v17655_v18  ;;  %8567 = vmatpush1.bf16.msra.mxu0 %v8566_v45  ;;  %v17663_v45 = vld [vmem:[#allocation243_spill] sm:$0xff] }
 0x287   :  { %2357 = vmatmul.mubr.f32.gmra.mrb[32].mxu1 %v17656_v29  ;;  %8568 = vmatprep.subr.bf16.mxu0 %v16266_v4  ;;  %v17664_v29 = vld [vmem:[#allocation94_spill] sm:$0xff]  ;;  %v17665_v18 = vld [vmem:[#allocation95_spill] sm:$0xff] }
 0x288   :  { %2362 = vmatprep.mubr.f32.mxu1 %v17657_v16  ;;  %v17666_v16 = vld [vmem:[#allocation8_spill] sm:$0xff] }
 0x289   :  { %5357 = vmatmul.mubr.f32.gmra.mrb[32].mxu0 %v17658_v22 }
 0x28a   :  { %5362 = vmatprep.mubr.f32.mxu0 %v17659_v3  ;;  %v17682_v3 = vld [vmem:[#allocation10_spill] sm:$0xff] }
 0x28b   :  { %2364 = vmatmul.mubr.f32.gmra.mrb[34].mxu1 %v17560_v31  ;;  %v17667_v31 = vld [vmem:[#allocation119_spill] sm:$0xff] }
 0x28c   :  { %2369 = vmatprep.mubr.f32.mxu1 %v17660_v27  ;;  %v17668_v27 = vld [vmem:[#allocation120_spill] sm:$0xff] }
 0x28d   :  { %5364 = vmatmul.mubr.f32.gmra.mrb[34].mxu0 %v17661_v32  ;;  %v17680_v32 = vld [vmem:[#allocation9_spill] sm:$0xff] }
 0x28e   :  { %5369 = vmatprep.mubr.f32.mxu0 %v17662_v52  ;;  %v17676_v52 = vld [vmem:[#allocation24_spill] sm:$0xff] }
 0x28f   :  { %2371 = vmatmul.mubr.f32.gmra.mrb[36].mxu1 %v17567_v36  ;;  %v17669_v36 = vld [vmem:[#allocation17_spill] sm:$0xff] }
 0x290   :  { %2376 = vmatprep.mubr.f32.mxu1 %v17663_v45  ;;  %v17670_v45 = vld [vmem:[#allocation101_spill] sm:$0xff] }
 0x291   :  { %5371 = vmatmul.mubr.f32.gmra.mrb[36].mxu0 %v17664_v29  ;;  %v17674_v29 = vld [vmem:[#allocation7_spill] sm:$0xff] }
 0x292   :  { %5376 = vmatprep.mubr.f32.mxu0 %v17665_v18  ;;  %v17672_v18 = vld [vmem:[#allocation6_spill] sm:$0xff] }
 0x293   :  { %2378 = vmatmul.mubr.f32.gmra.mrb[38].mxu1 %v17571_v44  ;;  %v17671_v44 = vand.u32 4294901760, %v17670_v45 }
 0x294   :  { %2383 = vmatprep.mubr.f32.mxu1 %v17572_v1 }
 0x295   :  { %5378 = vmatmul.mubr.f32.gmra.mrb[38].mxu0 %v17666_v16  ;;  %v2510_v1 = vsub.f32 %v17670_v45, %v17671_v44  ;;  %v17673_v16 = vand.u32 4294901760, %v17672_v18  ;;  %v17681_v45 = vand.u32 4294901760, %v17680_v32 }
 0x296   :  { %5383 = vmatprep.mubr.f32.mxu0 %v17667_v31 }
 0x297   :  { %2385 = vmatmul.mubr.f32.gmra.mrb[40].mxu1 %v17573_v37  ;;  %v2872_v31 = vsub.f32 %v17672_v18, %v17673_v16  ;;  %v17675_v37 = vand.u32 4294901760, %v17674_v29  ;;  %v2886_v44 = vsub.f32 %v17680_v32, %v17681_v45  ;;  %v17683_v18 = vand.u32 4294901760, %v17682_v3 }
 0x298   :  { %2390 = vmatprep.mubr.f32.mxu1 %v17574_v21 }
 0x299   :  { %5385 = vmatmul.mubr.f32.gmra.mrb[40].mxu0 %v17668_v27  ;;  %v2879_v21 = vsub.f32 %v17674_v29, %v17675_v37  ;;  %v17677_v27 = vld [vmem:[#allocation42_spill] sm:$0xff]  ;;  %v2893_v16 = vsub.f32 %v17682_v3, %v17683_v18  ;;  %v2511_v29 = vand.u32 4294901760, %v2510_v1  ;;  %v2873_v22 = vand.u32 4294901760, %v2872_v31  ;;  %v17689_v3 = vld [vmem:[#allocation117_spill] sm:$0xff] }
 0x29a   :  { %5390 = vmatprep.mubr.f32.mxu0 %v17669_v36  ;;  %v17678_v36 = vld [vmem:[#allocation107_spill] sm:$0xff]  ;;  %v17684_v37 = vld [vmem:[#allocation110_spill] sm:$0xff]  ;;  %v2887_v18 = vand.u32 4294901760, %v2886_v44 }
 0x29b   :  { %2392 = vmatmul.mubr.f32.gmra.mrb[42].mxu1 %v17575_v24  ;;  %v17679_v24 = vand.u32 4294901760, %v17678_v36  ;;  %v2880_v63 = vand.u32 4294901760, %v2879_v21  ;;  %v2894_v58 = vand.u32 4294901760, %v2893_v16  ;;  %v17691_v21 = vld [vmem:[#allocation12_spill] sm:$0xff]  ;;  %v17696_v44 = vld [vmem:[#allocation122_spill] sm:$0xff] }
 0x29c   :  { %2397 = vmatprep.mubr.f32.mxu1 %v17576_v34  ;;  %v17697_v16 = vand.u32 4294901760, %v17696_v44 }
 0x29d   :  { %5392 = vmatmul.mubr.f32.gmra.mrb[42].mxu0 %v17676_v52  ;;  %v2516_v34 = vsub.f32 %v17678_v36, %v17679_v24  ;;  %v17685_v52 = vand.u32 4294901760, %v17684_v37  ;;  %v17687_v36 = vld [vmem:[#allocation113_spill] sm:$0xff]  ;;  %v8185_v31 = vpack.c.bf16 %v2880_v63, %v2873_v22  ;;  %v17698_v63 = vld [vmem:[#allocation126_spill] sm:$0xff] }
 0x29e   :  { %5397 = vmatprep.mubr.f32.mxu0 %v17677_v27  ;;  %v17688_v24 = vand.u32 4294901760, %v17687_v36  ;;  %v17699_v22 = vand.u32 4294901760, %v17698_v63 }
 0x29f   :  { %2399 = vmatmul.mubr.f32.gmra.mrb[44].mxu1 %v17577_v54  ;;  %v2525_v27 = vsub.f32 %v17684_v37, %v17685_v52  ;;  %v17686_v54 = vld [vmem:[#allocation188_spill] sm:$0xff]  ;;  %v2517_v45 = vand.u32 4294901760, %v2516_v34  ;;  %v17692_v37 = vand.u32 4294901760, %v17691_v21 }
 0x2a0   :  { %2404 = vmatprep.mubr.f32.mxu1 %v17578_v61  ;;  %v2531_v32 = vsub.f32 %v17687_v36, %v17688_v24  ;;  %v17690_v61 = vand.u32 4294901760, %v17689_v3 }
 0x2a1   :  { %5399 = vmatmul.mubr.f32.gmra.mrb[44].mxu0 %v13786_v53  ;;  %v2526_v52 = vand.u32 4294901760, %v2525_v27  ;;  %v17693_v53 = vld [vmem:[#allocation13_spill] sm:$0xff]  ;;  %v2546_v27 = vsub.f32 %v17696_v44, %v17697_v16  ;;  %v17706_v16 = vld [vmem:[#allocation290_spill] sm:$0xff] }
 0x2a2   :  { %5404 = vmatprep.mubr.f32.mxu0 %v17686_v54  ;;  %v2540_v1 = vsub.f32 %v17689_v3, %v17690_v61  ;;  %v2900_v54 = vsub.f32 %v17691_v21, %v17692_v37  ;;  %v17694_v56 = vand.u32 4294901760, %v17693_v53  ;;  %v2532_v34 = vand.u32 4294901760, %v2531_v32  ;;  %v17702_v32 = vld [vmem:[#allocation15_spill] sm:$0xff]  ;;  %v17705_v44 = vld [vmem:[#allocation317_spill] sm:$0xff] }
 0x2a3   :  { %2406 = vmatmul.mubr.f32.gmra.mrb[46].mxu1 %v17579_v51  ;;  %v17695_v51 = vld [vmem:[#allocation135_spill] sm:$0xff]  ;;  %v8188_v3 = vpack.c.bf16 %v2894_v58, %v2887_v18  ;;  %v17707_v58 = vld [vmem:[#allocation128_spill] sm:$0xff] }
 0x2a4   :  { %2512 = vmatprep.mubr.f32.mxu1 %v2511_v29  ;;  %v2907_v36 = vsub.f32 %v17693_v53, %v17694_v56  ;;  %v2541_v24 = vand.u32 4294901760, %v2540_v1  ;;  %v2555_v29 = vsub.f32 %v17698_v63, %v17699_v22  ;;  %v2901_v61 = vand.u32 4294901760, %v2900_v54  ;;  %v17700_v53 = vld [vmem:[#allocation14_spill] sm:$0xff] }
 0x2a5   :  { %5406 = vmatmul.mubr.f32.gmra.mrb[46].mxu0 %v13809_v10  ;;  %v17701_v21 = vand.u32 4294901760, %v17700_v53  ;;  %v17704_v10 = vld [vmem:[#allocation174_spill] sm:$0xff]  ;;  %v17708_v18 = vand.u32 4294901760, %v17707_v58 }
 0x2a6   :  { %5541 = vmatprep.mubr.f32.mxu0 %v17695_v51  ;;  %v2908_v56 = vand.u32 4294901760, %v2907_v36  ;;  %v17709_v36 = vld [vmem:[#allocation19_spill] sm:$0xff] }
 0x2a7   :  { %2518 = vmatmul.mubr.f32.vlgmr.msra.gmra.mrb[0].mxu1 %v2517_v45  ;;  %v2914_v37 = vsub.f32 %v17700_v53, %v17701_v21  ;;  %v17703_v45 = vand.u32 4294901760, %v17702_v32  ;;  %v2561_v54 = vsub.f32 %v17707_v58, %v17708_v18  ;;  %v17710_v63 = vand.u32 4294901760, %v17709_v36  ;;  %v17711_v53 = vld [vmem:[#allocation20_spill] sm:$0xff]  ;;  %v17715_v18 = vld [vmem:[#allocation291_spill] sm:$0xff] }
 0x2a8   :  { %2527 = vmatprep.mubr.f32.mxu1 %v2526_v52  ;;  %8186 = vmatpush1.bf16.msra.mxu1 %v8185_v31  ;;  %v2547_v52 = vand.u32 4294901760, %v2546_v27  ;;  %v2556_v31 = vand.u32 4294901760, %v2555_v29  ;;  %v17712_v21 = vand.u32 4294901760, %v17711_v53  ;;  %v8191_v58 = vpack.c.bf16 %v2908_v56, %v2901_v61  ;;  %v17716_v29 = vld [vmem:[#allocation175_spill] sm:$0xff] }
 0x2a9   :  { %v2921_v1 = vsub.f32 %v17702_v32, %v17703_v45  ;;  %5544 = vmatmul.mubr.f32.vlgmr.msra.gmra.mrb[0].mxu0 %v17704_v10  ;;  %8187 = vmatprep.subr.bf16.mxu1 %v16266_v4  ;;  %v2928_v22 = vsub.f32 %v17709_v36, %v17710_v63  ;;  %v17713_v45 = vld [vmem:[#allocation136_spill] sm:$0xff]  ;;  %v17717_v36 = vld [vmem:[#allocation318_spill] sm:$0xff]  ;;  %v2562_v63 = vand.u32 4294901760, %v2561_v54  ;;  %v2942_v54 = vsub.f32 %v17722_v0, %v17723_v62  ;;  %v17731_v0 = vld [vmem:[#allocation153_spill] sm:$0xff] }
 0x2aa   :  { %8570 = vmatpush1.bf16.msra.mxu0 %v17705_v44  ;;  %5550 = vmatprep.mubr.f32.mxu0 %v17706_v16  ;;  %v2935_v32 = vsub.f32 %v17711_v53, %v17712_v21  ;;  %v17714_v17 = vand.u32 4294901760, %v17713_v45  ;;  %v17732_v62 = vand.u32 4294901760, %v17731_v0 }
 0x2ab   :  { %2533 = vmatmul.mubr.f32.gmra.mrb[2].mxu1 %v2532_v34  ;;  %8571 = vmatprep.subr.bf16.mxu0 %v16266_v4  ;;  %v2915_v34 = vand.u32 4294901760, %v2914_v37  ;;  %v2922_v27 = vand.u32 4294901760, %v2921_v1  ;;  %v2929_v37 = vand.u32 4294901760, %v2928_v22  ;;  %v17728_v22 = vld [vmem:[#allocation319_spill] sm:$0xff] }
 0x2ac   :  { %2542 = vmatprep.mubr.f32.mxu1 %v2541_v24  ;;  %v2570_v11 = vsub.f32 %v17713_v45, %v17714_v17  ;;  %8189 = vmatpush1.bf16.msra.mxu1 %v8188_v3  ;;  %v17718_v24 = vld [vmem:[#allocation138_spill] sm:$0xff]  ;;  %v17720_v3 = vld [vmem:[#allocation145_spill] sm:$0xff]  ;;  %v2936_v1 = vand.u32 4294901760, %v2935_v32 }
 0x2ad   :  { %5553 = vmatmul.mubr.f32.gmra.mrb[2].mxu0 %v17715_v18  ;;  %8190 = vmatprep.subr.bf16.mxu1 %v16266_v4  ;;  %v17719_v53 = vand.u32 4294901760, %v17718_v24  ;;  %v17721_v61 = vand.u32 4294901760, %v17720_v3  ;;  %v8194_v45 = vpack.c.bf16 %v2922_v27, %v2915_v34 }
 0x2ae   :  { %5559 = vmatprep.mubr.f32.mxu0 %v17716_v29  ;;  %8573 = vmatpush1.bf16.msra.mxu0 %v17717_v36  ;;  %v2571_v21 = vand.u32 4294901760, %v2570_v11  ;;  %v8197_v27 = vpack.c.bf16 %v2936_v1, %v2929_v37  ;;  %v17739_v37 = vld [vmem:[#allocation320_spill] sm:$0xff] }
 0x2af   :  { %2548 = vmatmul.mubr.f32.gmra.mrb[4].mxu1 %v2547_v52  ;;  %8574 = vmatprep.subr.bf16.mxu0 %v16266_v4  ;;  %v2576_v17 = vsub.f32 %v17718_v24, %v17719_v53  ;;  %v2585_v56 = vsub.f32 %v17720_v3, %v17721_v61  ;;  %v17724_v52 = vld [vmem:[#allocation28_spill] sm:$0xff]  ;;  %v17727_v24 = vld [vmem:[#allocation294_spill] sm:$0xff]  ;;  %v2943_v53 = vand.u32 4294901760, %v2942_v54  ;;  %v17742_v54 = vld [vmem:[#allocation37_spill] sm:$0xff] }
 0x2b0   :  { %2557 = vmatprep.mubr.f32.mxu1 %v2556_v31  ;;  %8192 = vmatpush1.bf16.msra.mxu1 %v8191_v58  ;;  %v17725_v60 = vand.u32 4294901760, %v17724_v52  ;;  %v17729_v31 = vld [vmem:[#allocation146_spill] sm:$0xff]  ;;  %v17733_v61 = vld [vmem:[#allocation32_spill] sm:$0xff] }
 0x2b1   :  { %5562 = vmatmul.mubr.f32.gmra.mrb[4].mxu0 %v17726_v13  ;;  %8193 = vmatprep.subr.bf16.mxu1 %v16266_v4  ;;  %v17730_v11 = vand.u32 4294901760, %v17729_v31  ;;  %v2577_v58 = vand.u32 4294901760, %v2576_v17  ;;  %v2586_v34 = vand.u32 4294901760, %v2585_v56  ;;  %v17737_v17 = vld [vmem:[#allocation295_spill] sm:$0xff]  ;;  %v17738_v56 = vld [vmem:[#allocation62_spill] sm:$0xff] }
 0x2b2   :  { %v2949_v55 = vsub.f32 %v17724_v52, %v17725_v60  ;;  %5568 = vmatprep.mubr.f32.mxu0 %v17727_v24  ;;  %8576 = vmatpush1.bf16.msra.mxu0 %v17728_v22  ;;  %v2600_v60 = vsub.f32 %v17731_v0, %v17732_v62  ;;  %v17734_v52 = vand.u32 4294901760, %v17733_v61  ;;  %v17743_v0 = vand.u32 4294901760, %v17742_v54  ;;  %v17744_v62 = vld [vmem:[#allocation38_spill] sm:$0xff] }
 0x2b3   :  { %v2591_v32 = vsub.f32 %v17729_v31, %v17730_v11  ;;  %2563 = vmatmul.mubr.f32.gmra.mrb[6].mxu1 %v2562_v63  ;;  %8577 = vmatprep.subr.bf16.mxu0 %v16266_v4  ;;  %v17736_v31 = vand.u32 4294901760, %v17735_v15 }
 0x2b4   :  { %2572 = vmatprep.mubr.f32.mxu1 %v2571_v21  ;;  %8195 = vmatpush1.bf16.msra.mxu1 %v8194_v45  ;;  %v2950_v3 = vand.u32 4294901760, %v2949_v55  ;;  %v2956_v47 = vsub.f32 %v17733_v61, %v17734_v52  ;;  %v2601_v1 = vand.u32 4294901760, %v2600_v60  ;;  %v17740_v55 = vld [vmem:[#allocation154_spill] sm:$0xff]  ;;  %v17745_v61 = vand.u32 4294901760, %v17744_v62 }
 0x2b5   :  { %v2963_v63 = vsub.f32 %v17735_v15, %v17736_v31  ;;  %5571 = vmatmul.mubr.f32.gmra.mrb[6].mxu0 %v17737_v17  ;;  %8196 = vmatprep.subr.bf16.mxu1 %v16266_v4  ;;  %v2592_v11 = vand.u32 4294901760, %v2591_v32  ;;  %v17741_v21 = vand.u32 4294901760, %v17740_v55  ;;  %v2970_v15 = vsub.f32 %v17742_v54, %v17743_v0  ;;  %v17746_v32 = vld [vmem:[#allocation163_spill] sm:$0xff]  ;;  %v17750_v54 = vld [vmem:[#allocation321_spill] sm:$0xff]  ;;  %v17751_v0 = vld [vmem:[#allocation164_spill] sm:$0xff] }
 0x2b6   :  { %5577 = vmatprep.mubr.f32.mxu0 %v17738_v56  ;;  %8579 = vmatpush1.bf16.msra.mxu0 %v17739_v37  ;;  %v2977_v52 = vsub.f32 %v17744_v62, %v17745_v61  ;;  %v17747_v31 = vand.u32 4294901760, %v17746_v32  ;;  %v8200_v60 = vpack.c.bf16 %v2950_v3, %v2943_v53  ;;  %v2957_v5 = vand.u32 4294901760, %v2956_v47  ;;  %v17753_v61 = vld [vmem:[#allocation169_spill] sm:$0xff] }
 0x2b7   :  { %2578 = vmatmul.mubr.f32.gmra.mrb[8].mxu1 %v2577_v58  ;;  %v2606_v45 = vsub.f32 %v17740_v55, %v17741_v21  ;;  %8580 = vmatprep.subr.bf16.mxu0 %v16266_v4  ;;  %v2964_v12 = vand.u32 4294901760, %v2963_v63  ;;  %v17748_v55 = vld [vmem:[#allocation298_spill] sm:$0xff]  ;;  %v17749_v21 = vld [vmem:[#allocation199_spill] sm:$0xff]  ;;  %v17752_v40 = vand.u32 4294901760, %v17751_v0  ;;  %v2971_v47 = vand.u32 4294901760, %v2970_v15 }
 0x2b8   :  { %2587 = vmatprep.mubr.f32.mxu1 %v2586_v34  ;;  %v2615_v58 = vsub.f32 %v17746_v32, %v17747_v31  ;;  %8198 = vmatpush1.bf16.msra.mxu1 %v8197_v27  ;;  %v17754_v32 = vand.u32 4294901760, %v17753_v61  ;;  %v2978_v53 = vand.u32 4294901760, %v2977_v52  ;;  %v17755_v31 = vld [vmem:[#allocation47_spill] sm:$0xff]  ;;  %v17761_v52 = vld [vmem:[#allocation322_spill] sm:$0xff] }
 0x2b9   :  { %5580 = vmatmul.mubr.f32.gmra.mrb[8].mxu0 %v17748_v55  ;;  %8199 = vmatprep.subr.bf16.mxu1 %v16266_v4  ;;  %v2621_v34 = vsub.f32 %v17751_v0, %v17752_v40  ;;  %v2607_v62 = vand.u32 4294901760, %v2606_v45  ;;  %v8203_v63 = vpack.c.bf16 %v2964_v12, %v2957_v5  ;;  %v17756_v7 = vand.u32 4294901760, %v17755_v31  ;;  %v17759_v45 = vld [vmem:[#allocation67_spill] sm:$0xff]  ;;  %v17760_v0 = vld [vmem:[#allocation70_spill] sm:$0xff]  ;;  %v17762_v12 = vld [vmem:[#allocation173_spill] sm:$0xff] }
 0x2ba   :  { %5586 = vmatprep.mubr.f32.mxu0 %v17749_v21  ;;  %8582 = vmatpush1.bf16.msra.mxu0 %v17750_v54  ;;  %v2630_v27 = vsub.f32 %v17753_v61, %v17754_v32  ;;  %v2616_v3 = vand.u32 4294901760, %v2615_v58  ;;  %v17758_v40 = vand.u32 4294901760, %v17757_v46  ;;  %v17763_v5 = vand.u32 4294901760, %v17762_v12 }
 0x2bb   :  { %2593 = vmatmul.mubr.f32.gmra.mrb[10].mxu1 %v2592_v11  ;;  %8583 = vmatprep.subr.bf16.mxu0 %v16266_v4  ;;  %v2984_v59 = vsub.f32 %v17755_v31, %v17756_v7  ;;  %v2622_v15 = vand.u32 4294901760, %v2621_v34  ;;  %v17764_v7 = vld [vmem:[#allocation179_spill] sm:$0xff]  ;;  %v17766_v34 = vld [vmem:[#allocation52_spill] sm:$0xff] }
 0x2bc   :  { %2602 = vmatprep.mubr.f32.mxu1 %v2601_v1  ;;  %8201 = vmatpush1.bf16.msra.mxu1 %v8200_v60  ;;  %v2991_v11 = vsub.f32 %v17757_v46, %v17758_v40  ;;  %v2631_v1 = vand.u32 4294901760, %v2630_v27  ;;  %v2636_v58 = vsub.f32 %v17762_v12, %v17763_v5  ;;  %v17765_v60 = vand.u32 4294901760, %v17764_v7  ;;  %v17768_v27 = vld [vmem:[#allocation53_spill] sm:$0xff]  ;;  %v17770_v12 = vld [vmem:[#allocation16_spill] sm:$0xff]  ;;  %v17771_v5 = vld [vmem:[#allocation203_spill] sm:$0xff] }
 0x2bd   :  { %5589 = vmatmul.mubr.f32.gmra.mrb[10].mxu0 %v17759_v45  ;;  %8202 = vmatprep.subr.bf16.mxu1 %v16266_v4  ;;  %v8206_v46 = vpack.c.bf16 %v2978_v53, %v2971_v47  ;;  %v2985_v32 = vand.u32 4294901760, %v2984_v59  ;;  %v17767_v40 = vand.u32 4294901760, %v17766_v34  ;;  %v17769_v41 = vand.u32 4294901760, %v17768_v27  ;;  %v17774_v59 = vld [vmem:[#allocation108_spill] sm:$0xff] }
 0x2be   :  { %5595 = vmatprep.mubr.f32.mxu0 %v17760_v0  ;;  %8585 = vmatpush1.bf16.msra.mxu0 %v17761_v52  ;;  %v2645_v61 = vsub.f32 %v17764_v7, %v17765_v60  ;;  %v2992_v31 = vand.u32 4294901760, %v2991_v11  ;;  %v17772_v7 = vld [vmem:[#allocation180_spill] sm:$0xff]  ;;  %v17775_v11 = vld [vmem:[#allocation57_spill] sm:$0xff] }
 0x2bf   :  { %2608 = vmatmul.mubr.f32.gmra.mrb[12].mxu1 %v2607_v62  ;;  %8586 = vmatprep.subr.bf16.mxu0 %v16266_v4  ;;  %v2998_v62 = vsub.f32 %v17766_v34, %v17767_v40  ;;  %v3005_v35 = vsub.f32 %v17768_v27, %v17769_v41  ;;  %v17773_v47 = vand.u32 4294901760, %v17772_v7  ;;  %v17776_v60 = vand.u32 4294901760, %v17775_v11  ;;  %v17777_v34 = vld [vmem:[#allocation58_spill] sm:$0xff] }
 0x2c0   :  { %2617 = vmatprep.mubr.f32.mxu1 %v2616_v3  ;;  %8204 = vmatpush1.bf16.msra.mxu1 %v8203_v63  ;;  %v2637_v3 = vand.u32 4294901760, %v2636_v58  ;;  %v2646_v63 = vand.u32 4294901760, %v2645_v61  ;;  %v17778_v40 = vand.u32 4294901760, %v17777_v34  ;;  %v17781_v61 = vld [vmem:[#allocation306_spill] sm:$0xff] }
 0x2c1   :  { %5598 = vmatmul.mubr.f32.gmra.mrb[12].mxu0 %v17770_v12  ;;  %8205 = vmatprep.subr.bf16.mxu1 %v16266_v4  ;;  %v2651_v53 = vsub.f32 %v17772_v7, %v17773_v47  ;;  %v3012_v41 = vsub.f32 %v17775_v11, %v17776_v60  ;;  %v2660_v7 = vsub.f32 %v17779_v6, %v17780_v9  ;;  %v3006_v58 = vand.u32 4294901760, %v3005_v35  ;;  %v17783_v60 = vld [vmem:[#allocation111_spill] sm:$0xff] }
 0x2c2   :  { %5604 = vmatprep.mubr.f32.mxu0 %v17771_v5  ;;  %8588 = vmatpush1.bf16.msra.mxu0 %v17774_v59  ;;  %v3019_v27 = vsub.f32 %v17777_v34, %v17778_v40  ;;  %v8209_v47 = vpack.c.bf16 %v2992_v31, %v2985_v32  ;;  %v17784_v34 = vld [vmem:[#allocation190_spill] sm:$0xff]  ;;  %v17787_v9 = vand.u32 4294901760, %v17786_v14 }
 0x2c3   :  { %2623 = vmatmul.mubr.f32.gmra.mrb[14].mxu1 %v2622_v15  ;;  %8589 = vmatprep.subr.bf16.mxu0 %v16266_v4  ;;  %v2999_v15 = vand.u32 4294901760, %v2998_v62  ;;  %v2652_v11 = vand.u32 4294901760, %v2651_v53  ;;  %v3013_v35 = vand.u32 4294901760, %v3012_v41  ;;  %v2661_v32 = vand.u32 4294901760, %v2660_v7  ;;  %v17788_v62 = vld [vmem:[#allocation69_spill] sm:$0xff]  ;;  %v17796_v7 = vld [vmem:[#allocation151_spill] sm:$0xff] }
 0x2c4   :  { %2632 = vmatprep.mubr.f32.mxu1 %v2631_v1  ;;  %8207 = vmatpush1.bf16.msra.mxu1 %v8206_v46  ;;  %v17785_v1 = vand.u32 4294901760, %v17784_v34  ;;  %v2675_v6 = vsub.f32 %v17786_v14, %v17787_v9  ;;  %v3020_v46 = vand.u32 4294901760, %v3019_v27  ;;  %v17789_v53 = vand.u32 4294901760, %v17788_v62  ;;  %v17793_v14 = vld [vmem:[#allocation310_spill] sm:$0xff]  ;;  %v17794_v41 = vld [vmem:[#allocation197_spill] sm:$0xff] }
 0x2c5   :  { %5607 = vmatmul.mubr.f32.gmra.mrb[14].mxu0 %v17781_v61  ;;  %8208 = vmatprep.subr.bf16.mxu1 %v16266_v4  ;;  %v8212_v31 = vpack.c.bf16 %v3006_v58, %v2999_v15  ;;  %v17795_v27 = vand.u32 4294901760, %v17794_v41  ;;  %v17797_v58 = vld [vmem:[#allocation201_spill] sm:$0xff] }
 0x2c6   :  { %5613 = vmatprep.mubr.f32.mxu0 %v17782_v49  ;;  %8591 = vmatpush1.bf16.msra.mxu0 %v17783_v60  ;;  %v2666_v40 = vsub.f32 %v17784_v34, %v17785_v1  ;;  %v17790_v49 = vld [vmem:[#allocation73_spill] sm:$0xff]  ;;  %v2676_v15 = vand.u32 4294901760, %v2675_v6  ;;  %v17798_v9 = vand.u32 4294901760, %v17797_v58 }
 0x2c7   :  { %2638 = vmatmul.mubr.f32.gmra.mrb[16].mxu1 %v2637_v3  ;;  %8592 = vmatprep.subr.bf16.mxu0 %v16266_v4  ;;  %v3026_v3 = vsub.f32 %v17788_v62, %v17789_v53  ;;  %v17791_v61 = vand.u32 4294901760, %v17790_v49  ;;  %v17792_v1 = vld [vmem:[#allocation309_spill] sm:$0xff] }
 0x2c8   :  { %2647 = vmatprep.mubr.f32.mxu1 %v2646_v63  ;;  %8210 = vmatpush1.bf16.msra.mxu1 %v8209_v47  ;;  %v2681_v63 = vsub.f32 %v17794_v41, %v17795_v27  ;;  %v2667_v47 = vand.u32 4294901760, %v2666_v40  ;;  %v2690_v62 = vsub.f32 %v17797_v58, %v17798_v9  ;;  %v17801_v27 = vld [vmem:[#allocation75_spill] sm:$0xff]  ;;  %v17804_v6 = vld [vmem:[#allocation89_spill] sm:$0xff] }
 0x2c9   :  { %v3033_v34 = vsub.f32 %v17790_v49, %v17791_v61  ;;  %5616 = vmatmul.mubr.f32.gmra.mrb[16].mxu0 %v17792_v1  ;;  %8211 = vmatprep.subr.bf16.mxu1 %v16266_v4  ;;  %v8215_v49 = vpack.c.bf16 %v3020_v46, %v3013_v35  ;;  %v3027_v61 = vand.u32 4294901760, %v3026_v3  ;;  %v17803_v40 = vld [vmem:[#allocation211_spill] sm:$0xff]  ;;  %v17805_v35 = vld [vmem:[#allocation156_spill] sm:$0xff] }
 0x2ca   :  { %5622 = vmatprep.mubr.f32.mxu0 %v17793_v14  ;;  %8594 = vmatpush1.bf16.msra.mxu0 %v17796_v7  ;;  %v17799_v14 = vld [vmem:[#allocation74_spill] sm:$0xff]  ;;  %v17802_v7 = vand.u32 4294901760, %v17801_v27  ;;  %v2682_v58 = vand.u32 4294901760, %v2681_v63  ;;  %v2691_v46 = vand.u32 4294901760, %v2690_v62  ;;  %v17812_v63 = vld [vmem:[#allocation205_spill] sm:$0xff] }
 0x2cb   :  { %2653 = vmatmul.mubr.f32.gmra.mrb[18].mxu1 %v2652_v11  ;;  %8595 = vmatprep.subr.bf16.mxu0 %v16266_v4  ;;  %v3034_v53 = vand.u32 4294901760, %v3033_v34  ;;  %v17800_v1 = vand.u32 4294901760, %v17799_v14  ;;  %v17808_v34 = vld [vmem:[#allocation79_spill] sm:$0xff] }
 0x2cc   :  { %2662 = vmatprep.mubr.f32.mxu1 %v2661_v32  ;;  %8213 = vmatpush1.bf16.msra.mxu1 %v8212_v31  ;;  %v3047_v11 = vsub.f32 %v17801_v27, %v17802_v7  ;;  %v17806_v32 = vld [vmem:[#allocation31_spill] sm:$0xff]  ;;  %v17810_v7 = vld [vmem:[#allocation80_spill] sm:$0xff] }
 0x2cd   :  { %v3040_v41 = vsub.f32 %v17799_v14, %v17800_v1  ;;  %5625 = vmatmul.mubr.f32.gmra.mrb[18].mxu0 %v17803_v40  ;;  %8214 = vmatprep.subr.bf16.mxu1 %v16266_v4  ;;  %v17807_v31 = vand.u32 4294901760, %v17806_v32  ;;  %v17809_v1 = vand.u32 4294901760, %v17808_v34  ;;  %v17811_v9 = vand.u32 4294901760, %v17810_v7 }
 0x2ce   :  { %5631 = vmatprep.mubr.f32.mxu0 %v17804_v6  ;;  %8597 = vmatpush1.bf16.msra.mxu0 %v17805_v35  ;;  %v17813_v6 = vand.u32 4294901760, %v17812_v63  ;;  %v8218_v62 = vpack.c.bf16 %v3034_v53, %v3027_v61  ;;  %v3048_v35 = vand.u32 4294901760, %v3047_v11 }
 0x2cf   :  { %2668 = vmatmul.mubr.f32.gmra.mrb[20].mxu1 %v2667_v47  ;;  %v2696_v3 = vsub.f32 %v17806_v32, %v17807_v31  ;;  %8598 = vmatprep.subr.bf16.mxu0 %v16266_v4  ;;  %v3054_v14 = vsub.f32 %v17808_v34, %v17809_v1  ;;  %v3061_v27 = vsub.f32 %v17810_v7, %v17811_v9  ;;  %v3041_v40 = vand.u32 4294901760, %v3040_v41  ;;  %v17814_v32 = vld [vmem:[#allocation313_spill] sm:$0xff]  ;;  %v17815_v31 = vld [vmem:[#allocation223_spill] sm:$0xff]  ;;  %v17818_v7 = vld [vmem:[#allocation34_spill] sm:$0xff] }
 0x2d0   :  { %2677 = vmatprep.mubr.f32.mxu1 %v2676_v15  ;;  %v2705_v47 = vsub.f32 %v17812_v63, %v17813_v6  ;;  %8216 = vmatpush1.bf16.msra.mxu1 %v8215_v49  ;;  %v17816_v34 = vld [vmem:[#allocation209_spill] sm:$0xff]  ;;  %v17821_v63 = vld [vmem:[#allocation87_spill] sm:$0xff] }
 0x2d1   :  { %5634 = vmatmul.mubr.f32.gmra.mrb[20].mxu0 %v17814_v32  ;;  %8217 = vmatprep.subr.bf16.mxu1 %v16266_v4  ;;  %v17817_v1 = vand.u32 4294901760, %v17816_v34  ;;  %v2697_v15 = vand.u32 4294901760, %v2696_v3  ;;  %v17819_v9 = vld [vmem:[#allocation41_spill] sm:$0xff]  ;;  %v3055_v61 = vand.u32 4294901760, %v3054_v14  ;;  %v3062_v53 = vand.u32 4294901760, %v3061_v27  ;;  %v17825_v3 = vld [vmem:[#allocation226_spill] sm:$0xff] }
 0x2d2   :  { %5640 = vmatprep.mubr.f32.mxu0 %v17815_v31  ;;  %8600 = vmatpush1.bf16.msra.mxu0 %v17818_v7  ;;  %v17820_v6 = vand.u32 4294901760, %v17819_v9  ;;  %v2706_v41 = vand.u32 4294901760, %v2705_v47  ;;  %v8221_v11 = vpack.c.bf16 %v3048_v35, %v3041_v40  ;;  %v17822_v31 = vand.u32 4294901760, %v17821_v63  ;;  %v17827_v27 = vld [vmem:[#allocation35_spill] sm:$0xff]  ;;  %v17828_v40 = vld [vmem:[#allocation216_spill] sm:$0xff] }
 0x2d3   :  { %v2711_v60 = vsub.f32 %v17816_v34, %v17817_v1  ;;  %2683 = vmatmul.mubr.f32.gmra.mrb[22].mxu1 %v2682_v58  ;;  %8601 = vmatprep.subr.bf16.mxu0 %v16266_v4  ;;  %v17823_v1 = vld [vmem:[#allocation90_spill] sm:$0xff]  ;;  %v17829_v35 = vand.u32 4294901760, %v17828_v40 }
 0x2d4   :  { %v2720_v49 = vsub.f32 %v17819_v9, %v17820_v6  ;;  %2692 = vmatprep.mubr.f32.mxu1 %v2691_v46  ;;  %8219 = vmatpush1.bf16.msra.mxu1 %v8218_v62  ;;  %v3068_v34 = vsub.f32 %v17821_v63, %v17822_v31  ;;  %v17824_v32 = vand.u32 4294901760, %v17823_v1  ;;  %v17826_v9 = vld [vmem:[#allocation240_spill] sm:$0xff]  ;;  %v17830_v62 = vld [vmem:[#allocation45_spill] sm:$0xff] }
 0x2d5   :  { %5643 = vmatmul.mubr.f32.gmra.mrb[22].mxu0 %v17825_v3  ;;  %8220 = vmatprep.subr.bf16.mxu1 %v16266_v4  ;;  %v2712_v14 = vand.u32 4294901760, %v2711_v60  ;;  %v2726_v47 = vsub.f32 %v17828_v40, %v17829_v35  ;;  %v17831_v31 = vand.u32 4294901760, %v17830_v62  ;;  %v17832_v60 = vld [vmem:[#allocation96_spill] sm:$0xff]  ;;  %v17836_v40 = vld [vmem:[#allocation245_spill] sm:$0xff] }
 0x2d6   :  { %v3075_v58 = vsub.f32 %v17823_v1, %v17824_v32  ;;  %5649 = vmatprep.mubr.f32.mxu0 %v17826_v9  ;;  %8603 = vmatpush1.bf16.msra.mxu0 %v17827_v27  ;;  %v2721_v46 = vand.u32 4294901760, %v2720_v49  ;;  %v8224_v32 = vpack.c.bf16 %v3062_v53, %v3055_v61  ;;  %v3069_v63 = vand.u32 4294901760, %v3068_v34  ;;  %v17834_v49 = vld [vmem:[#allocation99_spill] sm:$0xff]  ;;  %v17837_v35 = vld [vmem:[#allocation248_spill] sm:$0xff] }
 0x2d7   :  { %2698 = vmatmul.mubr.f32.gmra.mrb[24].mxu1 %v2697_v15  ;;  %v2735_v6 = vsub.f32 %v17830_v62, %v17831_v31  ;;  %8604 = vmatprep.subr.bf16.mxu0 %v16266_v4  ;;  %v17833_v9 = vand.u32 4294901760, %v17832_v60  ;;  %v17835_v3 = vand.u32 4294901760, %v17834_v49  ;;  %v17838_v62 = vld [vmem:[#allocation124_spill] sm:$0xff]  ;;  %v2727_v61 = vand.u32 4294901760, %v2726_v47 }
 0x2d8   :  { %2707 = vmatprep.mubr.f32.mxu1 %v2706_v41  ;;  %8222 = vmatpush1.bf16.msra.mxu1 %v8221_v11  ;;  %v3076_v1 = vand.u32 4294901760, %v3075_v58  ;;  %v17839_v41 = vld [vmem:[#allocation222_spill] sm:$0xff]  ;;  %v17841_v58 = vld [vmem:[#allocation227_spill] sm:$0xff]  ;;  %v17845_v47 = vld [vmem:[#allocation288_spill] sm:$0xff] }
 0x2d9   :  { %v3082_v15 = vsub.f32 %v17832_v60, %v17833_v9  ;;  %v3089_v27 = vsub.f32 %v17834_v49, %v17835_v3  ;;  %5652 = vmatmul.mubr.f32.gmra.mrb[24].mxu0 %v17836_v40  ;;  %8223 = vmatprep.subr.bf16.mxu1 %v16266_v4  ;;  %v2736_v53 = vand.u32 4294901760, %v2735_v6  ;;  %v17840_v11 = vand.u32 4294901760, %v17839_v41 }
 0x2da   :  { %5658 = vmatprep.mubr.f32.mxu0 %v17837_v35  ;;  %8606 = vmatpush1.bf16.msra.mxu0 %v17838_v62  ;;  %v17842_v3 = vand.u32 4294901760, %v17841_v58  ;;  %v8227_v31 = vpack.c.bf16 %v3076_v1, %v3069_v63  ;;  %v17843_v35 = vld [vmem:[#allocation25_spill] sm:$0xff]  ;;  %v17848_v63 = vld [vmem:[#allocation55_spill] sm:$0xff] }
 0x2db   :  { %2713 = vmatmul.mubr.f32.gmra.mrb[26].mxu1 %v2712_v14  ;;  %v2741_v34 = vsub.f32 %v17839_v41, %v17840_v11  ;;  %8607 = vmatprep.subr.bf16.mxu0 %v16266_v4  ;;  %v3083_v60 = vand.u32 4294901760, %v3082_v15  ;;  %v3090_v49 = vand.u32 4294901760, %v3089_v27  ;;  %v17844_v14 = vld [vmem:[#allocation261_spill] sm:$0xff]  ;;  %v17846_v41 = vld [vmem:[#allocation231_spill] sm:$0xff]  ;;  %v17849_v27 = vand.u32 4294901760, %v17848_v63 }
 0x2dc   :  { %2722 = vmatprep.mubr.f32.mxu1 %v2721_v46  ;;  %v2750_v9 = vsub.f32 %v17841_v58, %v17842_v3  ;;  %8225 = vmatpush1.bf16.msra.mxu1 %v8224_v32  ;;  %v17847_v46 = vand.u32 4294901760, %v17846_v41  ;;  %v17850_v58 = vld [vmem:[#allocation267_spill] sm:$0xff] }
 0x2dd   :  { %5661 = vmatmul.mubr.f32.gmra.mrb[26].mxu0 %v17843_v35  ;;  %8226 = vmatprep.subr.bf16.mxu1 %v16266_v4  ;;  %v2742_v6 = vand.u32 4294901760, %v2741_v34  ;;  %v2765_v1 = vsub.f32 %v17848_v63, %v17849_v27  ;;  %v8230_v15 = vpack.c.bf16 %v3090_v49, %v3083_v60  ;;  %v17852_v34 = vld [vmem:[#allocation162_spill] sm:$0xff]  ;;  %v17857_v63 = vld [vmem:[#allocation276_spill] sm:$0xff]  ;;  %v17858_v27 = vld [vmem:[#allocation283_spill] sm:$0xff] }
 0x2de   :  { %5667 = vmatprep.mubr.f32.mxu0 %v17844_v14  ;;  %8609 = vmatpush1.bf16.msra.mxu0 %v17845_v47  ;;  %v2756_v11 = vsub.f32 %v17846_v41, %v17847_v46  ;;  %v2751_v32 = vand.u32 4294901760, %v2750_v9  ;;  %v17853_v41 = vld [vmem:[#allocation238_spill] sm:$0xff] }
 0x2df   :  { %2728 = vmatmul.mubr.f32.gmra.mrb[28].mxu1 %v2727_v61  ;;  %8610 = vmatprep.subr.bf16.mxu0 %v16266_v4  ;;  %v17851_v61 = vld [vmem:[#allocation281_spill] sm:$0xff]  ;;  %v17854_v46 = vand.u32 4294901760, %v17853_v41  ;;  %v2766_v9 = vand.u32 4294901760, %v2765_v1 }
 0x2e0   :  { %2737 = vmatprep.mubr.f32.mxu1 %v2736_v53  ;;  %8228 = vmatpush1.bf16.msra.mxu1 %v8227_v31  ;;  %v2757_v3 = vand.u32 4294901760, %v2756_v11  ;;  %v17855_v31 = vld [vmem:[#allocation244_spill] sm:$0xff] }
 0x2e1   :  { %5670 = vmatmul.mubr.f32.gmra.mrb[28].mxu0 %v17850_v58  ;;  %8229 = vmatprep.subr.bf16.mxu1 %v16266_v4  ;;  %v2771_v53 = vsub.f32 %v17853_v41, %v17854_v46  ;;  %v17856_v60 = vand.u32 4294901760, %v17855_v31  ;;  %v17860_v41 = vld [vmem:[#allocation60_spill] sm:$0xff] }
 0x2e2   :  { %5676 = vmatprep.mubr.f32.mxu0 %v17851_v61  ;;  %8612 = vmatpush1.bf16.msra.mxu0 %v17852_v34  ;;  %v17861_v46 = vand.u32 4294901760, %v17860_v41  ;;  %v17865_v61 = vld [vmem:[#allocation285_spill] sm:$0xff]  ;;  %v17871_v34 = vld [vmem:[#allocation104_spill] sm:$0xff] }
 0x2e3   :  { %2743 = vmatmul.mubr.f32.gmra.mrb[30].mxu1 %v2742_v6  ;;  %8613 = vmatprep.subr.bf16.mxu0 %v16266_v4  ;;  %v2780_v49 = vsub.f32 %v17855_v31, %v17856_v60  ;;  %v17859_v6 = vld [vmem:[#allocation165_spill] sm:$0xff]  ;;  %v2772_v11 = vand.u32 4294901760, %v2771_v53  ;;  %v17862_v31 = vld [vmem:[#allocation250_spill] sm:$0xff] }
 0x2e4   :  { %2752 = vmatprep.mubr.f32.mxu1 %v2751_v32  ;;  %8231 = vmatpush1.bf16.msra.mxu1 %v8230_v15  ;;  %v2786_v32 = vsub.f32 %v17860_v41, %v17861_v46  ;;  %v17863_v15 = vand.u32 4294901760, %v17862_v31  ;;  %v17868_v46 = vld [vmem:[#allocation68_spill] sm:$0xff] }
 0x2e5   :  { %5679 = vmatmul.mubr.f32.gmra.mrb[30].mxu0 %v17857_v63  ;;  %8736 = vmatprep.subr.bf16.mxu1 %v16266_v4  ;;  %v2781_v1 = vand.u32 4294901760, %v2780_v49  ;;  %v17864_v63 = vld [vmem:[#allocation91_spill] sm:$0xff]  ;;  %v17869_v58 = vand.u32 4294901760, %v17868_v46  ;;  %v17870_v49 = vld [vmem:[#allocation5_spill] sm:$0xff] }
 0x2e6   :  { %5685 = vmatprep.mubr.f32.mxu0 %v17858_v27  ;;  %8615 = vmatpush1.bf16.msra.mxu0 %v17859_v6  ;;  %v2795_v60 = vsub.f32 %v17862_v31, %v17863_v15  ;;  %v2787_v27 = vand.u32 4294901760, %v2786_v32  ;;  %v17872_v15 = vld [vmem:[#allocation259_spill] sm:$0xff] }
 0x2e7   :  { %2758 = vmatmul.mubr.f32.gmra.mrb[32].mxu1 %v2757_v3  ;;  %8616 = vmatprep.subr.bf16.mxu0 %v16266_v4  ;;  %v17866_v3 = vld [vmem:[#allocation253_spill] sm:$0xff] }
 0x2e8   :  { %2767 = vmatprep.mubr.f32.mxu1 %v2766_v9  ;;  %v17867_v53 = vand.u32 4294901760, %v17866_v3  ;;  %v2796_v41 = vand.u32 4294901760, %v2795_v60  ;;  %v2810_v9 = vsub.f32 %v17868_v46, %v17869_v58  ;;  %v17876_v60 = vld [vmem:[#allocation109_spill] sm:$0xff]  ;;  %v17878_v46 = vld [vmem:[#allocation72_spill] sm:$0xff] }
 0x2e9   :  { %5688 = vmatmul.mubr.f32.gmra.mrb[32].mxu0 %v17864_v63  ;;  %v17874_v63 = vld [vmem:[#allocation266_spill] sm:$0xff] }
 0x2ea   :  { %5694 = vmatprep.mubr.f32.mxu0 %v17865_v61  ;;  %v2801_v6 = vsub.f32 %v17866_v3, %v17867_v53  ;;  %v17873_v61 = vand.u32 4294901760, %v17872_v15  ;;  %v2811_v32 = vand.u32 4294901760, %v2810_v9  ;;  %v17875_v3 = vand.u32 4294901760, %v17874_v63  ;;  %v17877_v53 = vld [vmem:[#allocation112_spill] sm:$0xff]  ;;  %v17882_v9 = vld [vmem:[#allocation11_spill] sm:$0xff] }
 0x2eb   :  { %2773 = vmatmul.mubr.f32.gmra.mrb[34].mxu1 %v2772_v11 }
 0x2ec   :  { %2782 = vmatprep.mubr.f32.mxu1 %v2781_v1  ;;  %v2802_v31 = vand.u32 4294901760, %v2801_v6  ;;  %v2816_v11 = vsub.f32 %v17872_v15, %v17873_v61  ;;  %v2825_v1 = vsub.f32 %v17874_v63, %v17875_v3  ;;  %v17883_v15 = vld [vmem:[#allocation127_spill] sm:$0xff] }
 0x2ed   :  { %5697 = vmatmul.mubr.f32.gmra.mrb[34].mxu0 %v17870_v49  ;;  %v17880_v49 = vld [vmem:[#allocation271_spill] sm:$0xff] }
 0x2ee   :  { %5703 = vmatprep.mubr.f32.mxu0 %v17871_v34  ;;  %v2817_v58 = vand.u32 4294901760, %v2816_v11  ;;  %v17879_v34 = vand.u32 4294901760, %v17878_v46  ;;  %v2826_v6 = vand.u32 4294901760, %v2825_v1  ;;  %v17881_v61 = vand.u32 4294901760, %v17880_v49  ;;  %v17884_v3 = vld [vmem:[#allocation275_spill] sm:$0xff] }
 0x2ef   :  { %2788 = vmatmul.mubr.f32.gmra.mrb[36].mxu1 %v2787_v27  ;;  %v17888_v1 = vld [vmem:[#allocation23_spill] sm:$0xff] }
 0x2f0   :  { %2797 = vmatprep.mubr.f32.mxu1 %v2796_v41  ;;  %v2831_v27 = vsub.f32 %v17878_v46, %v17879_v34  ;;  %v2840_v41 = vsub.f32 %v17880_v49, %v17881_v61  ;;  %v17889_v46 = vld [vmem:[#allocation36_spill] sm:$0xff] }
 0x2f1   :  { %5706 = vmatmul.mubr.f32.gmra.mrb[36].mxu0 %v17876_v60  ;;  %v17886_v60 = vld [vmem:[#allocation279_spill] sm:$0xff]  ;;  %v17890_v61 = vld [vmem:[#allocation280_spill] sm:$0xff] }
 0x2f2   :  { %5712 = vmatprep.mubr.f32.mxu0 %v17877_v53  ;;  %v2832_v63 = vand.u32 4294901760, %v2831_v27  ;;  %v17885_v53 = vand.u32 4294901760, %v17884_v3  ;;  %v2841_v11 = vand.u32 4294901760, %v2840_v41  ;;  %v17887_v34 = vand.u32 4294901760, %v17886_v60 }
 0x2f3   :  { %2803 = vmatmul.mubr.f32.gmra.mrb[38].mxu1 %v2802_v31  ;;  %v17895_v41 = vand.u32 4294901760, %v17695_v51  ;;  %v17901_v51 = vand.u32 4294901760, %v17706_v16  ;;  %v17907_v16 = vand.u32 4294901760, %v17716_v29  ;;  %v17913_v29 = vand.u32 4294901760, %v17727_v24 }
 0x2f4   :  { %2812 = vmatprep.mubr.f32.mxu1 %v2811_v32  ;;  %v2846_v31 = vsub.f32 %v17884_v3, %v17885_v53  ;;  %v2855_v32 = vsub.f32 %v17886_v60, %v17887_v34  ;;  %v17893_v53 = vld [vmem:[#allocation183_spill] sm:$0xff]  ;;  %v17894_v60 = vld [vmem:[#allocation93_spill] sm:$0xff]  ;;  %v17900_v34 = vand.u32 4294901760, %v17704_v10  ;;  %v17906_v10 = vand.u32 4294901760, %v17715_v18 }
 0x2f5   :  { %5715 = vmatmul.mubr.f32.gmra.mrb[38].mxu0 %v17882_v9  ;;  %v17892_v9 = vld [vmem:[#allocation46_spill] sm:$0xff]  ;;  %v17912_v18 = vand.u32 4294901760, %v17726_v13  ;;  %v17918_v13 = vand.u32 4294901760, %v17737_v17  ;;  %v17919_v24 = vand.u32 4294901760, %v17738_v56  ;;  %v17924_v17 = vand.u32 4294901760, %v17748_v55 }
 0x2f6   :  { %5721 = vmatprep.mubr.f32.mxu0 %v17883_v15  ;;  %v2847_v49 = vand.u32 4294901760, %v2846_v31  ;;  %v17891_v15 = vand.u32 4294901760, %v17890_v61  ;;  %v2856_v27 = vand.u32 4294901760, %v2855_v32  ;;  %v17898_v31 = vld [vmem:[#allocation97_spill] sm:$0xff]  ;;  %v17925_v56 = vand.u32 4294901760, %v17749_v21 }
 0x2f7   :  { %2818 = vmatmul.mubr.f32.gmra.mrb[40].mxu1 %v2817_v58  ;;  %v17930_v55 = vand.u32 4294901760, %v17759_v45  ;;  %v17931_v21 = vand.u32 4294901760, %v17760_v0  ;;  %v17936_v45 = vand.u32 4294901760, %v17770_v12  ;;  %v17937_v0 = vand.u32 4294901760, %v17771_v5  ;;  %v17945_v12 = vld [vmem:[#allocation306_spill] sm:$0xff] }
 0x2f8   :  { %2827 = vmatprep.mubr.f32.mxu1 %v2826_v6  ;;  %v2861_v58 = vsub.f32 %v17890_v61, %v17891_v15  ;;  %v17896_v15 = vand.u32 4294901760, %v17307_v48  ;;  %v17902_v48 = vand.u32 4294901760, %v17328_v42  ;;  %v17905_v61 = vld [vmem:[#allocation114_spill] sm:$0xff]  ;;  %v17909_v42 = vand.u32 4294901760, %v17345_v19 }
 0x2f9   :  { %5724 = vmatmul.mubr.f32.gmra.mrb[40].mxu0 %v17888_v1  ;;  %v17915_v19 = vand.u32 4294901760, %v17358_v23  ;;  %v17920_v23 = vand.u32 4294901760, %v17367_v57  ;;  %v17926_v57 = vand.u32 4294901760, %v17590_v39  ;;  %v17932_v39 = vand.u32 4294901760, %v17597_v30  ;;  %v17938_v30 = vld [vmem:[#allocation130_spill] sm:$0xff] }
 0x2fa   :  { %5730 = vmatprep.mubr.f32.mxu0 %v17889_v46  ;;  %v2862_v6 = vand.u32 4294901760, %v2861_v58  ;;  %v17947_v5 = vld [vmem:[#allocation22_spill] sm:$0xff] }
 0x2fb   :  { %2833 = vmatmul.mubr.f32.gmra.mrb[42].mxu1 %v2832_v63  ;;  %v17897_v63 = vand.u32 4294901760, %v17311_v25  ;;  %v17903_v25 = vand.u32 4294901760, %v17329_v50  ;;  %v17908_v50 = vand.u32 4294901760, %v17344_v33  ;;  %v17914_v33 = vand.u32 4294901760, %v17357_v20 }
 0x2fc   :  { %2842 = vmatprep.mubr.f32.mxu1 %v2841_v11  ;;  %v17899_v11 = vld [vmem:[#allocation105_spill] sm:$0xff]  ;;  %v17921_v20 = vand.u32 4294901760, %v17584_v43  ;;  %v17927_v43 = vand.u32 4294901760, %v17591_v8  ;;  %v17933_v8 = vand.u32 4294901760, %v17598_v26  ;;  %v17939_v26 = vand.u32 4294901760, %v17938_v30 }
 0x2fd   :  { %5733 = vmatmul.mubr.f32.gmra.mrb[42].mxu0 %v17892_v9  ;;  %v8617_v3 = vpack.c.bf16 %v17897_v63, %v17896_v15  ;;  %v8620_v32 = vpack.c.bf16 %v17903_v25, %v17902_v48  ;;  %v8623_v58 = vpack.c.bf16 %v17909_v42, %v17908_v50  ;;  %v17917_v15 = vld [vmem:[#allocation132_spill] sm:$0xff]  ;;  %v17934_v25 = vld [vmem:[#allocation150_spill] sm:$0xff]  ;;  %v17943_v50 = vld [vmem:[#allocation167_spill] sm:$0xff] }
 0x2fe   :  { %5739 = vmatprep.mubr.f32.mxu0 %v17893_v53  ;;  %v8629_v63 = vpack.c.bf16 %v17921_v20, %v17920_v23  ;;  %v8635_v48 = vpack.c.bf16 %v17933_v8, %v17932_v39  ;;  %v17944_v42 = vld [vmem:[#allocation111_spill] sm:$0xff]  ;;  %v17958_v23 = vld [vmem:[#allocation310_spill] sm:$0xff]  ;;  %v17971_v39 = vld [vmem:[#allocation296_spill] sm:$0xff] }
 0x2ff   :  { %2848 = vmatmul.mubr.f32.gmra.mrb[44].mxu1 %v2847_v49  ;;  %v17904_v49 = vld [vmem:[#allocation106_spill] sm:$0xff]  ;;  %v17959_v20 = vand.u32 4294901760, %v17958_v23  ;;  %v17972_v8 = vand.u32 4294901760, %v17971_v39  ;;  %v17977_v30 = vld [vmem:[#allocation313_spill] sm:$0xff]  ;;  %v18008_v39 = vand.u32 4294901760, %v17844_v14 }
 0x300   :  { %2857 = vmatprep.mubr.f32.mxu1 %v2856_v27  ;;  %v17910_v27 = vld [vmem:[#allocation118_spill] sm:$0xff]  ;;  %v18018_v14 = vld [vmem:[#allocation281_spill] sm:$0xff] }
 0x301   :  { %5742 = vmatmul.mubr.f32.gmra.mrb[44].mxu0 %v13807_v2 }
 0x302   :  { %5748 = vmatprep.mubr.f32.mxu0 %v13816_v38 }
 0x303   :  { %2863 = vmatmul.mubr.f32.gmra.mrb[46].mxu1 %v2862_v6  ;;  %v17911_v6 = vld [vmem:[#allocation121_spill] sm:$0xff] }
 0x304   :  { %3093 = vmatprep.mubr.f32.mxu1 %v17894_v60  ;;  %v8626_v60 = vpack.c.bf16 %v17915_v19, %v17914_v33 }
 0x305   :  { %5751 = vmatmul.mubr.f32.gmra.mrb[46].mxu0 %v13825_v28 }
 0x306   :  { %5855 = vmatprep.mubr.f32.mxu0 %v17895_v41  ;;  %v17916_v41 = vld [vmem:[#allocation125_spill] sm:$0xff] }
 0x307   :  { %3095 = vmatmul.mubr.f32.vlgmr.msra.gmra.mrb[0].mxu1 %v17898_v31  ;;  %v17923_v31 = vld [vmem:[#allocation141_spill] sm:$0xff] }
 0x308   :  { %3100 = vmatprep.mubr.f32.mxu1 %v17899_v11  ;;  %8752 = vmatpush1.bf16.msra.mxu1 %v17705_v44  ;;  %v8632_v11 = vpack.c.bf16 %v17927_v43, %v17926_v57  ;;  %v17964_v57 = vld [vmem:[#allocation177_spill] sm:$0xff]  ;;  %v17965_v43 = vld [vmem:[#allocation184_spill] sm:$0xff] }
 0x309   :  { %5859 = vmatmul.mubr.f32.vlgmr.msra.gmra.mrb[0].mxu0 %v17900_v34  ;;  %8737 = vmatprep.subr.bf16.mxu1 %v16266_v4  ;;  %v17928_v34 = vld [vmem:[#allocation143_spill] sm:$0xff] }
 0x30a   :  { %8618 = vmatpush1.bf16.msra.mxu0 %v8617_v3  ;;  %5866 = vmatprep.mubr.f32.mxu0 %v17901_v51  ;;  %v17922_v3 = vld [vmem:[#allocation133_spill] sm:$0xff] }
 0x30b   :  { %3102 = vmatmul.mubr.f32.gmra.mrb[2].mxu1 %v17904_v49  ;;  %8619 = vmatprep.subr.bf16.mxu0 %v16266_v4  ;;  %v17929_v51 = vld [vmem:[#allocation149_spill] sm:$0xff] }
 0x30c   :  { %3107 = vmatprep.mubr.f32.mxu1 %v17905_v61  ;;  %8753 = vmatpush1.bf16.msra.mxu1 %v17717_v36  ;;  %v17940_v49 = vld [vmem:[#allocation289_spill] sm:$0xff] }
 0x30d   :  { %5870 = vmatmul.mubr.f32.gmra.mrb[2].mxu0 %v17906_v10  ;;  %8738 = vmatprep.subr.bf16.mxu1 %v16266_v4  ;;  %v17941_v61 = vand.u32 4294901760, %v17940_v49  ;;  %v17979_v49 = vld [vmem:[#allocation223_spill] sm:$0xff] }
 0x30e   :  { %5877 = vmatprep.mubr.f32.mxu0 %v17907_v16  ;;  %8621 = vmatpush1.bf16.msra.mxu0 %v8620_v32  ;;  %v17935_v32 = vld [vmem:[#allocation158_spill] sm:$0xff]  ;;  %v17942_v16 = vld [vmem:[#allocation159_spill] sm:$0xff] }
 0x30f   :  { %3109 = vmatmul.mubr.f32.gmra.mrb[4].mxu1 %v17910_v27  ;;  %8622 = vmatprep.subr.bf16.mxu0 %v16266_v4  ;;  %v8638_v10 = vpack.c.bf16 %v17941_v61, %v17939_v26  ;;  %v17948_v27 = vand.u32 4294901760, %v17947_v5  ;;  %v17978_v26 = vand.u32 4294901760, %v17977_v30  ;;  %v17980_v61 = vand.u32 4294901760, %v17979_v49  ;;  %v17985_v5 = vld [vmem:[#allocation194_spill] sm:$0xff]  ;;  %v18014_v30 = vld [vmem:[#allocation219_spill] sm:$0xff] }
 0x310   :  { %3114 = vmatprep.mubr.f32.mxu1 %v17911_v6  ;;  %8754 = vmatpush1.bf16.msra.mxu1 %v17728_v22  ;;  %v17949_v6 = vld [vmem:[#allocation140_spill] sm:$0xff] }
 0x311   :  { %5881 = vmatmul.mubr.f32.gmra.mrb[4].mxu0 %v17912_v18  ;;  %8739 = vmatprep.subr.bf16.mxu1 %v16266_v4  ;;  %v17950_v18 = vand.u32 4294901760, %v17949_v6  ;;  %v17987_v6 = vld [vmem:[#allocation35_spill] sm:$0xff] }
 0x312   :  { %5888 = vmatprep.mubr.f32.mxu0 %v17913_v29  ;;  %8624 = vmatpush1.bf16.msra.mxu0 %v8623_v58  ;;  %v17946_v58 = vand.u32 4294901760, %v17945_v12  ;;  %v17951_v29 = vld [vmem:[#allocation147_spill] sm:$0xff] }
 0x313   :  { %3116 = vmatmul.mubr.f32.gmra.mrb[6].mxu1 %v17916_v41  ;;  %8625 = vmatprep.subr.bf16.mxu0 %v16266_v4  ;;  %v17952_v33 = vand.u32 4294901760, %v17951_v29  ;;  %v17954_v41 = vld [vmem:[#allocation176_spill] sm:$0xff] }
 0x314   :  { %3121 = vmatprep.mubr.f32.mxu1 %v17917_v15  ;;  %8755 = vmatpush1.bf16.msra.mxu1 %v17739_v37  ;;  %v17955_v15 = vld [vmem:[#allocation151_spill] sm:$0xff] }
 0x315   :  { %5892 = vmatmul.mubr.f32.gmra.mrb[6].mxu0 %v17918_v13  ;;  %8740 = vmatprep.subr.bf16.mxu1 %v16266_v4  ;;  %v8641_v19 = vpack.c.bf16 %v17952_v33, %v17950_v18  ;;  %v17956_v13 = vld [vmem:[#allocation309_spill] sm:$0xff]  ;;  %v17988_v18 = vld [vmem:[#allocation226_spill] sm:$0xff]  ;;  %v17990_v33 = vld [vmem:[#allocation240_spill] sm:$0xff] }
 0x316   :  { %5899 = vmatprep.mubr.f32.mxu0 %v17919_v24  ;;  %8627 = vmatpush1.bf16.msra.mxu0 %v8626_v60  ;;  %v17953_v60 = vld [vmem:[#allocation170_spill] sm:$0xff]  ;;  %v17957_v24 = vand.u32 4294901760, %v17956_v13  ;;  %v17989_v29 = vand.u32 4294901760, %v17988_v18  ;;  %v17994_v13 = vld [vmem:[#allocation305_spill] sm:$0xff] }
 0x317   :  { %3123 = vmatmul.mubr.f32.gmra.mrb[8].mxu1 %v17922_v3  ;;  %8628 = vmatprep.subr.bf16.mxu0 %v16266_v4  ;;  %v18026_v18 = vld [vmem:[#allocation165_spill] sm:$0xff] }
 0x318   :  { %3128 = vmatprep.mubr.f32.mxu1 %v17923_v31  ;;  %8756 = vmatpush1.bf16.msra.mxu1 %v17750_v54  ;;  %v17962_v31 = vld [vmem:[#allocation293_spill] sm:$0xff] }
 0x319   :  { %5903 = vmatmul.mubr.f32.gmra.mrb[8].mxu0 %v17924_v17  ;;  %8741 = vmatprep.subr.bf16.mxu1 %v16266_v4  ;;  %v17963_v17 = vand.u32 4294901760, %v17962_v31  ;;  %v17999_v31 = vld [vmem:[#allocation248_spill] sm:$0xff] }
 0x31a   :  { %5910 = vmatprep.mubr.f32.mxu0 %v17925_v56  ;;  %8630 = vmatpush1.bf16.msra.mxu0 %v8629_v63  ;;  %v17960_v63 = vld [vmem:[#allocation292_spill] sm:$0xff] }
 0x31b   :  { %3130 = vmatmul.mubr.f32.gmra.mrb[10].mxu1 %v17928_v34  ;;  %8631 = vmatprep.subr.bf16.mxu0 %v16266_v4  ;;  %v17961_v3 = vand.u32 4294901760, %v17960_v63  ;;  %v17967_v34 = vld [vmem:[#allocation211_spill] sm:$0xff]  ;;  %v17997_v63 = vld [vmem:[#allocation21_spill] sm:$0xff] }
 0x31c   :  { %3135 = vmatprep.mubr.f32.mxu1 %v17929_v51  ;;  %8757 = vmatpush1.bf16.msra.mxu1 %v17761_v52  ;;  %v17968_v51 = vand.u32 4294901760, %v17967_v34 }
 0x31d   :  { %5914 = vmatmul.mubr.f32.gmra.mrb[10].mxu0 %v17930_v55  ;;  %8742 = vmatprep.subr.bf16.mxu1 %v16266_v4  ;;  %v8644_v56 = vpack.c.bf16 %v17963_v17, %v17961_v3  ;;  %v17969_v55 = vld [vmem:[#allocation89_spill] sm:$0xff]  ;;  %v17998_v3 = vand.u32 4294901760, %v17836_v40  ;;  %v18000_v17 = vand.u32 4294901760, %v17999_v31  ;;  %v18007_v40 = vand.u32 4294901760, %v17843_v35  ;;  %v18016_v35 = vld [vmem:[#allocation267_spill] sm:$0xff] }
 0x31e   :  { %5921 = vmatprep.mubr.f32.mxu0 %v17931_v21  ;;  %8633 = vmatpush1.bf16.msra.mxu0 %v8632_v11  ;;  %v17966_v11 = vld [vmem:[#allocation156_spill] sm:$0xff]  ;;  %v17970_v21 = vand.u32 4294901760, %v17969_v55  ;;  %v18005_v55 = vld [vmem:[#allocation206_spill] sm:$0xff]  ;;  %v18017_v49 = vand.u32 4294901760, %v18016_v35  ;;  %v18038_v31 = vld [vmem:[#allocation241_spill] sm:$0xff] }
 0x31f   :  { %3137 = vmatmul.mubr.f32.gmra.mrb[12].mxu1 %v17934_v25  ;;  %8634 = vmatprep.subr.bf16.mxu0 %v16266_v4  ;;  %v18056_v35 = vld [vmem:[#allocation263_spill] sm:$0xff] }
 0x320   :  { %3142 = vmatprep.mubr.f32.mxu1 %v17935_v32  ;;  %8758 = vmatpush1.bf16.msra.mxu1 %v17774_v59 }
 0x321   :  { %5925 = vmatmul.mubr.f32.gmra.mrb[12].mxu0 %v17936_v45  ;;  %8743 = vmatprep.subr.bf16.mxu1 %v16266_v4  ;;  %v17975_v45 = vld [vmem:[#allocation187_spill] sm:$0xff] }
 0x322   :  { %5932 = vmatprep.mubr.f32.mxu0 %v17937_v0  ;;  %8636 = vmatpush1.bf16.msra.mxu0 %v8635_v48  ;;  %v17973_v48 = vld [vmem:[#allocation297_spill] sm:$0xff] }
 0x323   :  { %3144 = vmatmul.mubr.f32.gmra.mrb[14].mxu1 %v17942_v16  ;;  %8637 = vmatprep.subr.bf16.mxu0 %v16266_v4  ;;  %v17974_v25 = vand.u32 4294901760, %v17973_v48  ;;  %v17976_v0 = vld [vmem:[#allocation193_spill] sm:$0xff] }
 0x324   :  { %3149 = vmatprep.mubr.f32.mxu1 %v17943_v50  ;;  %8759 = vmatpush1.bf16.msra.mxu1 %v17944_v42  ;;  %v17983_v50 = vld [vmem:[#allocation301_spill] sm:$0xff] }
 0x325   :  { %5936 = vmatmul.mubr.f32.gmra.mrb[14].mxu0 %v17946_v58  ;;  %8744 = vmatprep.subr.bf16.mxu1 %v16266_v4  ;;  %v8647_v32 = vpack.c.bf16 %v17974_v25, %v17972_v8  ;;  %v17984_v12 = vand.u32 4294901760, %v17983_v50  ;;  %v18009_v8 = vld [vmem:[#allocation311_spill] sm:$0xff]  ;;  %v18011_v25 = vld [vmem:[#allocation312_spill] sm:$0xff] }
 0x326   :  { %5943 = vmatprep.mubr.f32.mxu0 %v17948_v27  ;;  %8639 = vmatpush1.bf16.msra.mxu0 %v8638_v10  ;;  %v17981_v10 = vld [vmem:[#allocation300_spill] sm:$0xff]  ;;  %v17986_v27 = vld [vmem:[#allocation18_spill] sm:$0xff]  ;;  %v18010_v48 = vand.u32 4294901760, %v18009_v8  ;;  %v18049_v8 = vld [vmem:[#allocation249_spill] sm:$0xff] }
 0x327   :  { %3151 = vmatmul.mubr.f32.gmra.mrb[16].mxu1 %v17953_v60  ;;  %8640 = vmatprep.subr.bf16.mxu0 %v16266_v4  ;;  %v17982_v16 = vand.u32 4294901760, %v17981_v10  ;;  %v17992_v60 = vld [vmem:[#allocation304_spill] sm:$0xff]  ;;  %v18020_v10 = vld [vmem:[#allocation315_spill] sm:$0xff] }
 0x328   :  { %3156 = vmatprep.mubr.f32.mxu1 %v17954_v41  ;;  %8760 = vmatpush1.bf16.msra.mxu1 %v17955_v15  ;;  %v17993_v41 = vand.u32 4294901760, %v17992_v60  ;;  %v18022_v50 = vld [vmem:[#allocation316_spill] sm:$0xff] }
 0x329   :  { %5947 = vmatmul.mubr.f32.gmra.mrb[16].mxu0 %v17957_v24  ;;  %8745 = vmatprep.subr.bf16.mxu1 %v16266_v4  ;;  %v8650_v58 = vpack.c.bf16 %v17984_v12, %v17982_v16  ;;  %v17995_v24 = vand.u32 4294901760, %v17994_v13  ;;  %v18021_v16 = vand.u32 4294901760, %v18020_v10  ;;  %v18023_v12 = vand.u32 4294901760, %v18022_v50  ;;  %v18032_v13 = vld [vmem:[#allocation234_spill] sm:$0xff]  ;;  %v18060_v10 = vld [vmem:[#allocation269_spill] sm:$0xff] }
 0x32a   :  { %5954 = vmatprep.mubr.f32.mxu0 %v17959_v20  ;;  %8642 = vmatpush1.bf16.msra.mxu0 %v8641_v19  ;;  %v17991_v19 = vand.u32 4294901760, %v17990_v33  ;;  %v17996_v20 = vld [vmem:[#allocation200_spill] sm:$0xff]  ;;  %v18062_v50 = vand.u32 4294901760, %v17893_v53  ;;  %v18071_v53 = vld [vmem:[#allocation54_spill] sm:$0xff] }
 0x32b   :  { %3158 = vmatmul.mubr.f32.gmra.mrb[18].mxu1 %v17964_v57  ;;  %8643 = vmatprep.subr.bf16.mxu0 %v16266_v4  ;;  %v8653_v23 = vpack.c.bf16 %v17995_v24, %v17993_v41  ;;  %v18031_v41 = vld [vmem:[#allocation228_spill] sm:$0xff]  ;;  %v18033_v24 = vld [vmem:[#allocation91_spill] sm:$0xff] }
 0x32c   :  { %3163 = vmatprep.mubr.f32.mxu1 %v17965_v43  ;;  %8761 = vmatpush1.bf16.msra.mxu1 %v17966_v11  ;;  %v18003_v43 = vld [vmem:[#allocation308_spill] sm:$0xff] }
 0x32d   :  { %5958 = vmatmul.mubr.f32.gmra.mrb[18].mxu0 %v17968_v51  ;;  %8746 = vmatprep.subr.bf16.mxu1 %v16266_v4  ;;  %v18004_v34 = vand.u32 4294901760, %v18003_v43 }
 0x32e   :  { %5965 = vmatprep.mubr.f32.mxu0 %v17970_v21  ;;  %8645 = vmatpush1.bf16.msra.mxu0 %v8644_v56  ;;  %v18001_v56 = vld [vmem:[#allocation307_spill] sm:$0xff]  ;;  %v18006_v21 = vld [vmem:[#allocation212_spill] sm:$0xff] }
 0x32f   :  { %3165 = vmatmul.mubr.f32.gmra.mrb[20].mxu1 %v17975_v45  ;;  %8646 = vmatprep.subr.bf16.mxu0 %v16266_v4  ;;  %v18002_v57 = vand.u32 4294901760, %v18001_v56 }
 0x330   :  { %3170 = vmatprep.mubr.f32.mxu1 %v17976_v0  ;;  %8762 = vmatpush1.bf16.msra.mxu1 %v17818_v7  ;;  %v18013_v0 = vld [vmem:[#allocation213_spill] sm:$0xff] }
 0x331   :  { %5969 = vmatmul.mubr.f32.gmra.mrb[20].mxu0 %v17978_v26  ;;  %8747 = vmatprep.subr.bf16.mxu1 %v16266_v4  ;;  %v8656_v51 = vpack.c.bf16 %v18004_v34, %v18002_v57  ;;  %v18015_v26 = vld [vmem:[#allocation162_spill] sm:$0xff]  ;;  %v18041_v57 = vld [vmem:[#allocation104_spill] sm:$0xff] }
 0x332   :  { %5976 = vmatprep.mubr.f32.mxu0 %v17980_v61  ;;  %8648 = vmatpush1.bf16.msra.mxu0 %v8647_v32  ;;  %v18012_v32 = vand.u32 4294901760, %v18011_v25  ;;  %v18019_v61 = vand.u32 4294901760, %v18018_v14  ;;  %v18042_v43 = vand.u32 4294901760, %v18041_v57  ;;  %v18043_v34 = vld [vmem:[#allocation242_spill] sm:$0xff]  ;;  %v18051_v25 = vld [vmem:[#allocation11_spill] sm:$0xff]  ;;  %v18058_v14 = vand.u32 4294901760, %v17889_v46 }
 0x333   :  { %3172 = vmatmul.mubr.f32.gmra.mrb[22].mxu1 %v17985_v5  ;;  %8649 = vmatprep.subr.bf16.mxu0 %v16266_v4  ;;  %v18024_v5 = vld [vmem:[#allocation220_spill] sm:$0xff]  ;;  %v18066_v46 = vand.u32 4294901760, %v13816_v38  ;;  %v18075_v38 = vld [vmem:[#allocation191_spill] sm:$0xff] }
 0x334   :  { %3177 = vmatprep.mubr.f32.mxu1 %v17986_v27  ;;  %8763 = vmatpush1.bf16.msra.mxu1 %v17987_v6  ;;  %v8659_v45 = vpack.c.bf16 %v18012_v32, %v18010_v48  ;;  %v18025_v27 = vld [vmem:[#allocation225_spill] sm:$0xff]  ;;  %v18050_v48 = vld [vmem:[#allocation256_spill] sm:$0xff]  ;;  %v18052_v32 = vand.u32 4294901760, %v18051_v25  ;;  %v18095_v57 = vld [vmem:[#allocation239_spill] sm:$0xff] }
 0x335   :  { %5980 = vmatmul.mubr.f32.gmra.mrb[22].mxu0 %v17989_v29  ;;  %8748 = vmatprep.subr.bf16.mxu1 %v16266_v4  ;;  %v18027_v29 = vld [vmem:[#allocation276_spill] sm:$0xff] }
 0x336   :  { %5987 = vmatprep.mubr.f32.mxu0 %v17991_v19  ;;  %8651 = vmatpush1.bf16.msra.mxu0 %v8650_v58  ;;  %v8662_v58 = vpack.c.bf16 %v18023_v12, %v18021_v16  ;;  %v18028_v33 = vand.u32 4294901760, %v18027_v29  ;;  %v18029_v19 = vld [vmem:[#allocation283_spill] sm:$0xff]  ;;  %v18061_v16 = vand.u32 4294901760, %v17892_v9  ;;  %v18063_v12 = vld [vmem:[#allocation272_spill] sm:$0xff]  ;;  %v18069_v9 = vand.u32 4294901760, %v13825_v28  ;;  %v18077_v28 = vld [vmem:[#allocation166_spill] sm:$0xff] }
 0x337   :  { %3179 = vmatmul.mubr.f32.gmra.mrb[24].mxu1 %v17996_v20  ;;  %8652 = vmatprep.subr.bf16.mxu0 %v16266_v4  ;;  %v18030_v60 = vand.u32 4294901760, %v18029_v19  ;;  %v18035_v20 = vld [vmem:[#allocation285_spill] sm:$0xff]  ;;  %v18070_v29 = vld [vmem:[#allocation39_spill] sm:$0xff]  ;;  %v18115_v25 = vld [vmem:[#allocation188_spill] sm:$0xff] }
 0x338   :  { %3184 = vmatprep.mubr.f32.mxu1 %v17997_v63  ;;  %8764 = vmatpush1.bf16.msra.mxu1 %v17838_v62  ;;  %v18036_v63 = vand.u32 4294901760, %v18035_v20  ;;  %v18073_v19 = vld [vmem:[#allocation43_spill] sm:$0xff] }
 0x339   :  { %5991 = vmatmul.mubr.f32.gmra.mrb[24].mxu0 %v17998_v3  ;;  %8749 = vmatprep.subr.bf16.mxu1 %v16266_v4  ;;  %v18037_v3 = vld [vmem:[#allocation235_spill] sm:$0xff] }
 0x33a   :  { %5998 = vmatprep.mubr.f32.mxu0 %v18000_v17  ;;  %8654 = vmatpush1.bf16.msra.mxu0 %v8653_v23  ;;  %v18034_v23 = vand.u32 4294901760, %v18033_v24  ;;  %v18039_v17 = vld [vmem:[#allocation5_spill] sm:$0xff]  ;;  %v18080_v24 = vld [vmem:[#allocation192_spill] sm:$0xff]  ;;  %v18083_v20 = vld [vmem:[#allocation303_spill] sm:$0xff] }
 0x33b   :  { %3186 = vmatmul.mubr.f32.gmra.mrb[26].mxu1 %v18005_v55  ;;  %8655 = vmatprep.subr.bf16.mxu0 %v16266_v4  ;;  %v18040_v56 = vand.u32 4294901760, %v18039_v17  ;;  %v18045_v55 = vld [vmem:[#allocation109_spill] sm:$0xff]  ;;  %v18091_v17 = vld [vmem:[#allocation314_spill] sm:$0xff] }
 0x33c   :  { %3191 = vmatprep.mubr.f32.mxu1 %v18006_v21  ;;  %8765 = vmatpush1.bf16.msra.mxu1 %v17845_v47  ;;  %v18046_v21 = vand.u32 4294901760, %v18045_v55  ;;  %v18103_v55 = vld [vmem:[#allocation277_spill] sm:$0xff] }
 0x33d   :  { %6002 = vmatmul.mubr.f32.gmra.mrb[26].mxu0 %v18007_v40  ;;  %8750 = vmatprep.subr.bf16.mxu1 %v16266_v4  ;;  %v18047_v40 = vld [vmem:[#allocation112_spill] sm:$0xff] }
 0x33e   :  { %6009 = vmatprep.mubr.f32.mxu0 %v18008_v39  ;;  %8657 = vmatpush1.bf16.msra.mxu0 %v8656_v51  ;;  %v18044_v51 = vld [vmem:[#allocation247_spill] sm:$0xff]  ;;  %v18048_v39 = vand.u32 4294901760, %v18047_v40 }
 0x33f   :  { %3193 = vmatmul.mubr.f32.gmra.mrb[28].mxu1 %v18013_v0  ;;  %8658 = vmatprep.subr.bf16.mxu0 %v16266_v4  ;;  %v18107_v40 = vld [vmem:[#allocation95_spill] sm:$0xff] }
 0x340   :  { %3198 = vmatprep.mubr.f32.mxu1 %v18014_v30  ;;  %8766 = vmatpush1.bf16.msra.mxu1 %v18015_v26  ;;  %v18055_v30 = vld [vmem:[#allocation257_spill] sm:$0xff] }
 0x341   :  { %6013 = vmatmul.mubr.f32.gmra.mrb[28].mxu0 %v18017_v49  ;;  %8751 = vmatprep.subr.bf16.mxu1 %v16266_v4  ;;  %v18057_v49 = vand.u32 4294901760, %v17888_v1  ;;  %v18065_v1 = vand.u32 4294901760, %v13807_v2  ;;  %v18074_v2 = vld [vmem:[#allocation139_spill] sm:$0xff] }
 0x342   :  { %6020 = vmatprep.mubr.f32.mxu0 %v18019_v61  ;;  %8660 = vmatpush1.bf16.msra.mxu0 %v8659_v45  ;;  %v18053_v45 = vld [vmem:[#allocation127_spill] sm:$0xff]  ;;  %v18059_v61 = vld [vmem:[#allocation264_spill] sm:$0xff] }
 0x343   :  { %3200 = vmatmul.mubr.f32.gmra.mrb[30].mxu1 %v18024_v5  ;;  %8661 = vmatprep.subr.bf16.mxu0 %v16266_v4  ;;  %v18054_v0 = vand.u32 4294901760, %v18053_v45  ;;  %v18067_v5 = vld [vmem:[#allocation83_spill] sm:$0xff] }
 0x344   :  { %3205 = vmatprep.mubr.f32.mxu1 %v18025_v27  ;;  %8767 = vmatpush1.bf16.msra.mxu1 %v18026_v18  ;;  %v18068_v27 = vld [vmem:[#allocation182_spill] sm:$0xff] }
 0x345   :  { %6024 = vmatmul.mubr.f32.gmra.mrb[30].mxu0 %v18028_v33  ;;  %v18072_v33 = vld [vmem:[#allocation185_spill] sm:$0xff] }
 0x346   :  { %6031 = vmatprep.mubr.f32.mxu0 %v18030_v60  ;;  %8663 = vmatpush1.bf16.msra.mxu0 %v8662_v58  ;;  %v18064_v58 = vld [vmem:[#allocation278_spill] sm:$0xff]  ;;  %v18076_v60 = vld [vmem:[#allocation64_spill] sm:$0xff] }
 0x347   :  { %3207 = vmatmul.mubr.f32.gmra.mrb[32].mxu1 %v18031_v41  ;;  %8664 = vmatprep.subr.bf16.mxu0 %v16266_v4  ;;  %v18078_v41 = vld [vmem:[#allocation48_spill] sm:$0xff] }
 0x348   :  { %3212 = vmatprep.mubr.f32.mxu1 %v18032_v13  ;;  %v18079_v13 = vld [vmem:[#allocation299_spill] sm:$0xff] }
 0x349   :  { %6035 = vmatmul.mubr.f32.gmra.mrb[32].mxu0 %v18034_v23  ;;  %v18082_v23 = vld [vmem:[#allocation302_spill] sm:$0xff] }
 0x34a   :  { %6042 = vmatprep.mubr.f32.mxu0 %v18036_v63  ;;  %v18085_v63 = vld [vmem:[#allocation78_spill] sm:$0xff] }
 0x34b   :  { %3214 = vmatmul.mubr.f32.gmra.mrb[34].mxu1 %v18037_v3  ;;  %v18087_v3 = vld [vmem:[#allocation81_spill] sm:$0xff] }
 0x34c   :  { %3219 = vmatprep.mubr.f32.mxu1 %v18038_v31  ;;  %v18089_v31 = vld [vmem:[#allocation217_spill] sm:$0xff] }
 0x34d   :  { %6046 = vmatmul.mubr.f32.gmra.mrb[34].mxu0 %v18040_v56  ;;  %v18093_v56 = vld [vmem:[#allocation232_spill] sm:$0xff] }
 0x34e   :  { %6053 = vmatprep.mubr.f32.mxu0 %v18042_v43  ;;  %v18097_v43 = vld [vmem:[#allocation255_spill] sm:$0xff] }
 0x34f   :  { %3221 = vmatmul.mubr.f32.gmra.mrb[36].mxu1 %v18043_v34  ;;  %v18099_v34 = vld [vmem:[#allocation262_spill] sm:$0xff] }
 0x350   :  { %3226 = vmatprep.mubr.f32.mxu1 %v18044_v51  ;;  %v18101_v51 = vld [vmem:[#allocation270_spill] sm:$0xff] }
 0x351   :  { %6057 = vmatmul.mubr.f32.gmra.mrb[36].mxu0 %v18046_v21  ;;  %v18105_v21 = vld [vmem:[#allocation92_spill] sm:$0xff] }
 0x352   :  { %6064 = vmatprep.mubr.f32.mxu0 %v18048_v39  ;;  %v18109_v39 = vld [vmem:[#allocation119_spill] sm:$0xff] }
 0x353   :  { %3228 = vmatmul.mubr.f32.gmra.mrb[38].mxu1 %v18049_v8  ;;  %v18111_v8 = vld [vmem:[#allocation17_spill] sm:$0xff] }
 0x354   :  { %3233 = vmatprep.mubr.f32.mxu1 %v18050_v48  ;;  %v18113_v48 = vld [vmem:[#allocation42_spill] sm:$0xff] }
 0x355   :  { %6068 = vmatmul.mubr.f32.gmra.mrb[38].mxu0 %v18052_v32  ;;  %v18116_v32 = vld [vmem:[#allocation63_spill] sm:$0xff] }
 0x356   :  { %6075 = vmatprep.mubr.f32.mxu0 %v18054_v0 }
 0x357   :  { %3235 = vmatmul.mubr.f32.gmra.mrb[40].mxu1 %v18055_v30 }
 0x358   :  { %3240 = vmatprep.mubr.f32.mxu1 %v18056_v35 }
 0x359   :  { %6079 = vmatmul.mubr.f32.gmra.mrb[40].mxu0 %v18057_v49 }
 0x35a   :  { %6086 = vmatprep.mubr.f32.mxu0 %v18058_v14 }
 0x35b   :  { %3242 = vmatmul.mubr.f32.gmra.mrb[42].mxu1 %v18059_v61 }
 0x35c   :  { %3247 = vmatprep.mubr.f32.mxu1 %v18060_v10 }
 0x35d   :  { %6090 = vmatmul.mubr.f32.gmra.mrb[42].mxu0 %v18061_v16 }
 0x35e   :  { %6097 = vmatprep.mubr.f32.mxu0 %v18062_v50 }
 0x35f   :  { %3249 = vmatmul.mubr.f32.gmra.mrb[44].mxu1 %v18063_v12 }
 0x360   :  { %3254 = vmatprep.mubr.f32.mxu1 %v18064_v58 }
 0x361   :  { %6101 = vmatmul.mubr.f32.gmra.mrb[44].mxu0 %v18065_v1 }
 0x362   :  { %6108 = vmatprep.mubr.f32.mxu0 %v18066_v46 }
 0x363   :  { %3256 = vmatmul.mubr.f32.gmra.mrb[46].mxu1 %v18067_v5 }
 0x364   :  { %6564 = vmatprep.mubr.f32.mxu1 %v18068_v27 }
 0x365   :  { %6112 = vmatmul.mubr.f32.gmra.mrb[46].mxu0 %v18069_v9 }
 0x366   :  { %6278 = vmatprep.mubr.f32.mxu0 %v18070_v29 }
 0x367   :  { %6566 = vmatmul.mubr.f32.vlgmr.msra.gmra.mrb[48].mxu1 %v18071_v53 }
 0x368   :  { %6571 = vmatprep.mubr.f32.mxu1 %v18072_v33 }
 0x369   :  { %6280 = vmatmul.mubr.f32.vlgmr.msra.gmra.mrb[0].mxu0 %v18073_v19 }
 0x36a   :  { %8666 = vmatpush1.bf16.msra.mxu0 %v17705_v44  ;;  %6285 = vmatprep.mubr.f32.mxu0 %v18074_v2  ;;  %v18081_v44 = vld [vmem:[#allocation49_spill] sm:$0xff] }
 0x36b   :  { %8667 = vmatprep.subr.bf16.mxu0 %v16266_v4  ;;  %6573 = vmatmul.mubr.f32.gmra.mrb[50].mxu1 %v18075_v38 }
 0x36c   :  { %6578 = vmatprep.mubr.f32.mxu1 %v18076_v60 }
 0x36d   :  { %6287 = vmatmul.mubr.f32.gmra.mrb[2].mxu0 %v18077_v28 }
 0x36e   :  { %6292 = vmatprep.mubr.f32.mxu0 %v18078_v41  ;;  %8669 = vmatpush1.bf16.msra.mxu0 %v17717_v36  ;;  %v18084_v36 = vld [vmem:[#allocation76_spill] sm:$0xff] }
 0x36f   :  { %8670 = vmatprep.subr.bf16.mxu0 %v16266_v4  ;;  %6580 = vmatmul.mubr.f32.gmra.mrb[52].mxu1 %v18079_v13 }
 0x370   :  { %6585 = vmatprep.mubr.f32.mxu1 %v18080_v24 }
 0x371   :  { %6294 = vmatmul.mubr.f32.gmra.mrb[4].mxu0 %v18081_v44 }
 0x372   :  { %6299 = vmatprep.mubr.f32.mxu0 %v18068_v27  ;;  %8672 = vmatpush1.bf16.msra.mxu0 %v17728_v22  ;;  %v18086_v22 = vld [vmem:[#allocation210_spill] sm:$0xff] }
 0x373   :  { %8673 = vmatprep.subr.bf16.mxu0 %v16266_v4  ;;  %6587 = vmatmul.mubr.f32.gmra.mrb[54].mxu1 %v18082_v23 }
 0x374   :  { %6592 = vmatprep.mubr.f32.mxu1 %v18083_v20 }
 0x375   :  { %6301 = vmatmul.mubr.f32.gmra.mrb[6].mxu0 %v18071_v53 }
 0x376   :  { %6306 = vmatprep.mubr.f32.mxu0 %v18072_v33  ;;  %8675 = vmatpush1.bf16.msra.mxu0 %v17739_v37  ;;  %v18088_v37 = vld [vmem:[#allocation85_spill] sm:$0xff] }
 0x377   :  { %8676 = vmatprep.subr.bf16.mxu0 %v16266_v4  ;;  %6594 = vmatmul.mubr.f32.gmra.mrb[56].mxu1 %v18084_v36 }
 0x378   :  { %6599 = vmatprep.mubr.f32.mxu1 %v18085_v63 }
 0x379   :  { %6308 = vmatmul.mubr.f32.gmra.mrb[8].mxu0 %v18075_v38 }
 0x37a   :  { %6313 = vmatprep.mubr.f32.mxu0 %v18076_v60  ;;  %8678 = vmatpush1.bf16.msra.mxu0 %v17750_v54  ;;  %v18090_v54 = vld [vmem:[#allocation88_spill] sm:$0xff] }
 0x37b   :  { %8679 = vmatprep.subr.bf16.mxu0 %v16266_v4  ;;  %6601 = vmatmul.mubr.f32.gmra.mrb[58].mxu1 %v18086_v22 }
 0x37c   :  { %6606 = vmatprep.mubr.f32.mxu1 %v18087_v3 }
 0x37d   :  { %6315 = vmatmul.mubr.f32.gmra.mrb[10].mxu0 %v18079_v13 }
 0x37e   :  { %6320 = vmatprep.mubr.f32.mxu0 %v18080_v24  ;;  %8681 = vmatpush1.bf16.msra.mxu0 %v17761_v52  ;;  %v18092_v52 = vld [vmem:[#allocation218_spill] sm:$0xff] }
 0x37f   :  { %8682 = vmatprep.subr.bf16.mxu0 %v16266_v4  ;;  %6608 = vmatmul.mubr.f32.gmra.mrb[60].mxu1 %v18088_v37 }
 0x380   :  { %6613 = vmatprep.mubr.f32.mxu1 %v18089_v31 }
 0x381   :  { %6322 = vmatmul.mubr.f32.gmra.mrb[12].mxu0 %v18082_v23 }
 0x382   :  { %6327 = vmatprep.mubr.f32.mxu0 %v18083_v20  ;;  %8684 = vmatpush1.bf16.msra.mxu0 %v17774_v59  ;;  %v18094_v59 = vld [vmem:[#allocation233_spill] sm:$0xff] }
 0x383   :  { %8685 = vmatprep.subr.bf16.mxu0 %v16266_v4  ;;  %6615 = vmatmul.mubr.f32.gmra.mrb[62].mxu1 %v18090_v54 }
 0x384   :  { %6620 = vmatprep.mubr.f32.mxu1 %v18091_v17 }
 0x385   :  { %6329 = vmatmul.mubr.f32.gmra.mrb[14].mxu0 %v18084_v36 }
 0x386   :  { %6334 = vmatprep.mubr.f32.mxu0 %v18085_v63  ;;  %8687 = vmatpush1.bf16.msra.mxu0 %v17944_v42  ;;  %v18096_v42 = vld [vmem:[#allocation254_spill] sm:$0xff] }
 0x387   :  { %6622 = vmatmul.mubr.f32.gmra.mrb[64].mxu1 %v18092_v52  ;;  %8688 = vmatprep.subr.bf16.mxu0 %v16266_v4 }
 0x388   :  { %6627 = vmatprep.mubr.f32.mxu1 %v18093_v56 }
 0x389   :  { %6336 = vmatmul.mubr.f32.gmra.mrb[16].mxu0 %v18086_v22 }
 0x38a   :  { %6341 = vmatprep.mubr.f32.mxu0 %v18087_v3  ;;  %8690 = vmatpush1.bf16.msra.mxu0 %v17955_v15  ;;  %v18098_v15 = vld [vmem:[#allocation29_spill] sm:$0xff] }
 0x38b   :  { %6629 = vmatmul.mubr.f32.gmra.mrb[66].mxu1 %v18094_v59  ;;  %8691 = vmatprep.subr.bf16.mxu0 %v16266_v4 }
 0x38c   :  { %6634 = vmatprep.mubr.f32.mxu1 %v18095_v57 }
 0x38d   :  { %6343 = vmatmul.mubr.f32.gmra.mrb[18].mxu0 %v18088_v37 }
 0x38e   :  { %6348 = vmatprep.mubr.f32.mxu0 %v18089_v31  ;;  %8693 = vmatpush1.bf16.msra.mxu0 %v17966_v11  ;;  %v18100_v11 = vld [vmem:[#allocation282_spill] sm:$0xff] }
 0x38f   :  { %6636 = vmatmul.mubr.f32.gmra.mrb[68].mxu1 %v18096_v42  ;;  %8694 = vmatprep.subr.bf16.mxu0 %v16266_v4 }
 0x390   :  { %6641 = vmatprep.mubr.f32.mxu1 %v18097_v43 }
 0x391   :  { %6350 = vmatmul.mubr.f32.gmra.mrb[20].mxu0 %v18090_v54 }
 0x392   :  { %6355 = vmatprep.mubr.f32.mxu0 %v18091_v17  ;;  %8696 = vmatpush1.bf16.msra.mxu0 %v17818_v7  ;;  %v18102_v7 = vld [vmem:[#allocation284_spill] sm:$0xff] }
 0x393   :  { %6643 = vmatmul.mubr.f32.gmra.mrb[70].mxu1 %v18098_v15  ;;  %8697 = vmatprep.subr.bf16.mxu0 %v16266_v4 }
 0x394   :  { %6648 = vmatprep.mubr.f32.mxu1 %v18099_v34 }
 0x395   :  { %6357 = vmatmul.mubr.f32.gmra.mrb[22].mxu0 %v18092_v52 }
 0x396   :  { %6362 = vmatprep.mubr.f32.mxu0 %v18093_v56  ;;  %8699 = vmatpush1.bf16.msra.mxu0 %v17987_v6  ;;  %v18104_v6 = vld [vmem:[#allocation286_spill] sm:$0xff] }
 0x397   :  { %6650 = vmatmul.mubr.f32.gmra.mrb[72].mxu1 %v18100_v11  ;;  %8700 = vmatprep.subr.bf16.mxu0 %v16266_v4 }
 0x398   :  { %6655 = vmatprep.mubr.f32.mxu1 %v18101_v51 }
 0x399   :  { %6364 = vmatmul.mubr.f32.gmra.mrb[24].mxu0 %v18094_v59 }
 0x39a   :  { %6369 = vmatprep.mubr.f32.mxu0 %v18095_v57  ;;  %8702 = vmatpush1.bf16.msra.mxu0 %v17838_v62  ;;  %v18106_v62 = vld [vmem:[#allocation94_spill] sm:$0xff] }
 0x39b   :  { %6657 = vmatmul.mubr.f32.gmra.mrb[74].mxu1 %v18102_v7  ;;  %8703 = vmatprep.subr.bf16.mxu0 %v16266_v4 }
 0x39c   :  { %6662 = vmatprep.mubr.f32.mxu1 %v18103_v55 }
 0x39d   :  { %6371 = vmatmul.mubr.f32.gmra.mrb[26].mxu0 %v18096_v42 }
 0x39e   :  { %6376 = vmatprep.mubr.f32.mxu0 %v18097_v43  ;;  %8705 = vmatpush1.bf16.msra.mxu0 %v17845_v47  ;;  %v18108_v47 = vld [vmem:[#allocation8_spill] sm:$0xff] }
 0x39f   :  { %6664 = vmatmul.mubr.f32.gmra.mrb[76].mxu1 %v18104_v6  ;;  %8706 = vmatprep.subr.bf16.mxu0 %v16266_v4 }
 0x3a0   :  { %6669 = vmatprep.mubr.f32.mxu1 %v18105_v21 }
 0x3a1   :  { %6378 = vmatmul.mubr.f32.gmra.mrb[28].mxu0 %v18098_v15 }
 0x3a2   :  { %6383 = vmatprep.mubr.f32.mxu0 %v18099_v34  ;;  %8708 = vmatpush1.bf16.msra.mxu0 %v18015_v26  ;;  %v18110_v26 = vld [vmem:[#allocation120_spill] sm:$0xff] }
 0x3a3   :  { %6671 = vmatmul.mubr.f32.gmra.mrb[78].mxu1 %v18106_v62  ;;  %8709 = vmatprep.subr.bf16.mxu0 %v16266_v4  ;;  %v18112_v4 = vld [vmem:[#allocation24_spill] sm:$0xff] }
 0x3a4   :  { %6676 = vmatprep.mubr.f32.mxu1 %v18107_v40 }
 0x3a5   :  { %6385 = vmatmul.mubr.f32.gmra.mrb[30].mxu0 %v18100_v11 }
 0x3a6   :  { %6390 = vmatprep.mubr.f32.mxu0 %v18101_v51  ;;  %8711 = vmatpush1.bf16.msra.mxu0 %v18026_v18  ;;  %v18114_v18 = vld [vmem:[#allocation61_spill] sm:$0xff] }
 0x3a7   :  { %6678 = vmatmul.mubr.f32.gmra.mrb[80].mxu1 %v18108_v47 }
 0x3a8   :  { %6683 = vmatprep.mubr.f32.mxu1 %v18109_v39 }
 0x3a9   :  { %6392 = vmatmul.mubr.f32.gmra.mrb[32].mxu0 %v18102_v7 }
 0x3aa   :  { %6397 = vmatprep.mubr.f32.mxu0 %v18103_v55 }
 0x3ab   :  { %6685 = vmatmul.mubr.f32.gmra.mrb[82].mxu1 %v18110_v26 }
 0x3ac   :  { %6690 = vmatprep.mubr.f32.mxu1 %v18111_v8 }
 0x3ad   :  { %6399 = vmatmul.mubr.f32.gmra.mrb[34].mxu0 %v18104_v6 }
 0x3ae   :  { %6404 = vmatprep.mubr.f32.mxu0 %v18105_v21 }
 0x3af   :  { %6692 = vmatmul.mubr.f32.gmra.mrb[84].mxu1 %v18112_v4 }
 0x3b0   :  { %6697 = vmatprep.mubr.f32.mxu1 %v18113_v48 }
 0x3b1   :  { %6406 = vmatmul.mubr.f32.gmra.mrb[36].mxu0 %v18106_v62 }
 0x3b2   :  { %6411 = vmatprep.mubr.f32.mxu0 %v18107_v40 }
 0x3b3   :  { %6699 = vmatmul.mubr.f32.gmra.mrb[86].mxu1 %v18114_v18 }
 0x3b4   :  { %6704 = vmatprep.mubr.f32.mxu1 %v18115_v25 }
 0x3b5   :  { %6413 = vmatmul.mubr.f32.gmra.mrb[38].mxu0 %v18108_v47 }
 0x3b6   :  { %6418 = vmatprep.mubr.f32.mxu0 %v18109_v39 }
 0x3b7   :  { %6706 = vmatmul.mubr.f32.gmra.mrb[88].mxu1 %v18116_v32 }
 0x3b9   :  { %6420 = vmatmul.mubr.f32.gmra.mrb[40].mxu0 %v18110_v26  ;;  %v6735_v26 = vlaneseq }
 0x3ba   :  { %6425 = vmatprep.mubr.f32.mxu0 %v18111_v8 }
 0x3bd   :  { %6427 = vmatmul.mubr.f32.gmra.mrb[42].mxu0 %v18112_v4 }
 0x3be   :  { %6432 = vmatprep.mubr.f32.mxu0 %v18113_v48 }
 0x3c1   :  { %6434 = vmatmul.mubr.f32.gmra.mrb[44].mxu0 %v18114_v18 }
 0x3c2   :  { %6439 = vmatprep.mubr.f32.mxu0 %v18115_v25 }
 0x3c5   :  { %6441 = vmatmul.mubr.f32.gmra.mrb[46].mxu0 %v18116_v32 }
 0x3c6   :  { %6543 = vmatprep.mubr.f32.mxu0 %v18070_v29 }
 0x3c9   :  { %6545 = vmatmul.mubr.f32.vlgmr.msra.gmra.mrb[0].mxu0 %v18073_v19 }
 0x3ca   :  { %6550 = vmatprep.mubr.f32.mxu0 %v18074_v2 }
 0x3cd   :  { %6552 = vmatmul.mubr.f32.gmra.mrb[2].mxu0 %v18077_v28 }
 0x3ce   :  { %6557 = vmatprep.mubr.f32.mxu0 %v18078_v41 }
 0x3d1   :  { %6559 = vmatmul.mubr.f32.gmra.mrb[4].mxu0 %v18081_v44 }
 0x3da   :  { %v14742_v45 = vpop.f32.mrb[0].mxu1 }
 0x3db   :  { %v3098_v0 = vpop.f32.mrb[1].mxu1 }
 0x3dc   :  { %v14788_v0 = vshrl.u32 %v6735_v26, 7 }
 0x3de   :  { %v14744_v30 = vpop.f32.mrb[2].mxu1  ;;  %vm6737_vm0 = vcmp.lt.s32.totalorder %v14788_v0, 7 }
 0x3df   :  { %v3105_v35 = vpop.f32.mrb[3].mxu1 }
 0x3e2   :  { %v14746_v49 = vpop.f32.mrb[4].mxu1 }
 0x3e3   :  { %v3112_v14 = vpop.f32.mrb[5].mxu1 }
 0x3e6   :  { %v3117_v61 = vpop.f32.mrb[6].mxu1 }
 0x3e7   :  { %v3119_v10 = vpop.f32.mrb[7].mxu1 }
 0x3ea   :  { %v3124_v16 = vpop.f32.mrb[8].mxu1 }
 0x3eb   :  { %v3126_v50 = vpop.f32.mrb[9].mxu1 }
 0x3ee   :  { %v14748_v12 = vpop.f32.mrb[10].mxu1 }
 0x3ef   :  { %v3133_v58 = vpop.f32.mrb[11].mxu1 }
 0x3f2   :  { %v14750_v1 = vpop.f32.mrb[12].mxu1 }
 0x3f3   :  { %v3140_v46 = vpop.f32.mrb[13].mxu1 }
 0x3f6   :  { %v14752_v5 = vpop.f32.mrb[14].mxu1 }
 0x3f7   :  { %v3147_v27 = vpop.f32.mrb[15].mxu1 }
 0x3fa   :  { %v14754_v9 = vpop.f32.mrb[16].mxu1 }
 0x3fb   :  { %v3154_v29 = vpop.f32.mrb[17].mxu1 }
 0x3fe   :  { %v14756_v53 = vpop.f32.mrb[18].mxu1 }
 0x3ff   :  { %v3161_v33 = vpop.f32.mrb[19].mxu1 }
 0x402   :  { %v14758_v19 = vpop.f32.mrb[20].mxu1 }
 0x403   :  { %v3168_v2 = vpop.f32.mrb[21].mxu1 }
 0x406   :  { %v14760_v38 = vpop.f32.mrb[22].mxu1 }
 0x407   :  { %v3175_v60 = vpop.f32.mrb[23].mxu1 }
 0x40a   :  { %v14762_v28 = vpop.f32.mrb[24].mxu1 }
 0x40b   :  { %v3182_v41 = vpop.f32.mrb[25].mxu1 }
 0x40e   :  { %v14764_v13 = vpop.f32.mrb[26].mxu1 }
 0x40f   :  { %v3189_v24 = vpop.f32.mrb[27].mxu1 }
 0x412   :  { %v14766_v44 = vpop.f32.mrb[28].mxu1 }
 0x413   :  { %v3196_v23 = vpop.f32.mrb[29].mxu1 }
 0x416   :  { %v14768_v20 = vpop.f32.mrb[30].mxu1 }
 0x417   :  { %v3203_v36 = vpop.f32.mrb[31].mxu1 }
 0x41a   :  { %v14770_v63 = vpop.f32.mrb[32].mxu1 }
 0x41b   :  { %v3210_v22 = vpop.f32.mrb[33].mxu1 }
 0x41e   :  { %v14772_v3 = vpop.f32.mrb[34].mxu1 }
 0x41f   :  { %v3217_v37 = vpop.f32.mrb[35].mxu1 }
 0x422   :  { %v14774_v31 = vpop.f32.mrb[36].mxu1 }
 0x423   :  { %v3224_v54 = vpop.f32.mrb[37].mxu1 }
 0x426   :  { %v14776_v17 = vpop.f32.mrb[38].mxu1 }
 0x427   :  { %v3231_v52 = vpop.f32.mrb[39].mxu1 }
 0x42a   :  { %v14778_v56 = vpop.f32.mrb[40].mxu1 }
 0x42b   :  { %v3238_v59 = vpop.f32.mrb[41].mxu1 }
 0x42e   :  { %v14780_v57 = vpop.f32.mrb[42].mxu1 }
 0x42f   :  { %v3245_v42 = vpop.f32.mrb[43].mxu1 }
 0x432   :  { %v14782_v43 = vpop.f32.mrb[44].mxu1 }
 0x433   :  { %v3252_v15 = vpop.f32.mrb[45].mxu1 }
 0x436   :  { %v14784_v34 = vpop.f32.mrb[46].mxu1 }
 0x437   :  { %v3259_v11 = vpop.f32.mrb[47].mxu1 }
 0x43a   :  { %v6567_v51 = vpop.f32.mrb[48].mxu1 }
 0x43b   :  { %v6569_v7 = vpop.f32.mrb[49].mxu1 }
 0x43e   :  { %v6574_v55 = vpop.f32.mrb[50].mxu1 }
 0x43f   :  { %v6576_v6 = vpop.f32.mrb[51].mxu1 }
 0x442   :  { %v6581_v21 = vpop.f32.mrb[52].mxu1 }
 0x443   :  { %v6583_v62 = vpop.f32.mrb[53].mxu1 }
 0x446   :  { %v6588_v40 = vpop.f32.mrb[54].mxu1 }
 0x447   :  { %v6590_v47 = vpop.f32.mrb[55].mxu1 }
 0x448   :  { %v6302_v39 = vpop.f32.mrb[6].mxu0 }
 0x449   :  { %v8771_v8 = vadd.f32 %v6302_v39, %v3117_v61  ;;  %v6304_v4 = vpop.f32.mrb[7].mxu0 }
 0x44a   :  { %v6595_v48 = vpop.f32.mrb[56].mxu1 }
 0x44b   :  { %v14786_v18 = vadd.f32 %v8771_v8, %v6567_v51  ;;  %v6597_v25 = vpop.f32.mrb[57].mxu1 }
 0x44c   :  { %v6309_v32 = vpop.f32.mrb[8].mxu0 }
 0x44d   :  { %v8773_v35 = vadd.f32 %v6309_v32, %v3124_v16  ;;  %v6311_v14 = vpop.f32.mrb[9].mxu0  ;;  %v6714_v27 = vrot.slane %v14786_v18, 1 }
 0x44e   :  { %v6602_v10 = vpop.f32.mrb[58].mxu1 }
 0x44f   :  { %v14790_v50 = vadd.f32 %v8773_v35, %v6574_v55  ;;  %v6604_v58 = vpop.f32.mrb[59].mxu1 }
 0x450   :  { %v6316_v46 = vpop.f32.mrb[10].mxu0 }
 0x451   :  { %v6715_v61 = vrot.slane %v14790_v50, 1  ;;  %v8775_v29 = vadd.f32 %v6316_v46, %v14748_v12  ;;  %v6318_v33 = vpop.f32.mrb[11].mxu0 }
 0x452   :  { %v6609_v2 = vpop.f32.mrb[60].mxu1 }
 0x453   :  { %v14796_v60 = vadd.f32 %v8775_v29, %v6581_v21  ;;  %v6757_v16 = vsel %vm6737_vm0, %v6714_v27, %v6715_v61  ;;  %v6611_v41 = vpop.f32.mrb[61].mxu1 }
 0x454   :  { %v6323_v24 = vpop.f32.mrb[12].mxu0  ;;  %6792 = vrot.lane.b32.xlu1 %v6757_v16, %s9581_s0 }
 0x455   :  { %v6716_v23 = vrot.slane %v14796_v60, 1  ;;  %v8777_v36 = vadd.f32 %v6323_v24, %v14750_v1  ;;  %v6325_v22 = vpop.f32.mrb[13].mxu0 }
 0x456   :  { %v6616_v12 = vpop.f32.mrb[62].mxu1 }
 0x457   :  { %v14805_v37 = vadd.f32 %v8777_v36, %v6588_v40  ;;  %v6756_v54 = vsel %vm6737_vm0, %v6715_v61, %v6716_v23  ;;  %v6618_v52 = vpop.f32.mrb[63].mxu1 }
 0x458   :  { %v6330_v59 = vpop.f32.mrb[14].mxu0  ;;  %6794 = vrot.lane.b32.xlu0 %v6756_v54, %s9581_s0 }
 0x459   :  { %v6717_v42 = vrot.slane %v14805_v37, 1  ;;  %v8779_v15 = vadd.f32 %v6330_v59, %v14752_v5  ;;  %v6332_v11 = vpop.f32.mrb[15].mxu0 }
 0x45a   :  { %v6623_v51 = vpop.f32.mrb[64].mxu1 }
 0x45b   :  { %v14812_v7 = vadd.f32 %v8779_v15, %v6595_v48  ;;  %v6755_v1 = vsel %vm6737_vm0, %v6716_v23, %v6717_v42  ;;  %v6625_v55 = vpop.f32.mrb[65].mxu1 }
 0x45c   :  { %v6337_v6 = vpop.f32.mrb[16].mxu0  ;;  %6796 = vrot.lane.b32.xlu1 %v6755_v1, %s9581_s0 }
 0x45d   :  { %v6718_v21 = vrot.slane %v14812_v7, 1  ;;  %v8781_v62 = vadd.f32 %v6337_v6, %v14754_v9  ;;  %v6339_v40 = vpop.f32.mrb[17].mxu0 }
 0x45e   :  { %v6630_v47 = vpop.f32.mrb[66].mxu1 }
 0x45f   :  { %v14819_v39 = vadd.f32 %v8781_v62, %v6602_v10  ;;  %v6754_v5 = vsel %vm6737_vm0, %v6717_v42, %v6718_v21  ;;  %v6632_v26 = vpop.f32.mrb[67].mxu1 }
 0x460   :  { %v6344_v8 = vpop.f32.mrb[18].mxu0  ;;  %6798 = vrot.lane.b32.xlu0 %v6754_v5, %s9581_s0 }
 0x461   :  { %v6719_v4 = vrot.slane %v14819_v39, 1  ;;  %v8783_v48 = vadd.f32 %v6344_v8, %v14756_v53  ;;  %v6346_v25 = vpop.f32.mrb[19].mxu0 }
 0x462   :  { %v6637_v32 = vpop.f32.mrb[68].mxu1 }
 0x463   :  { %v14826_v35 = vadd.f32 %v8783_v48, %v6609_v2  ;;  %v6753_v9 = vsel %vm6737_vm0, %v6718_v21, %v6719_v4  ;;  %v6639_v14 = vpop.f32.mrb[69].mxu1 }
 0x464   :  { %v6351_v10 = vpop.f32.mrb[20].mxu0  ;;  %6800 = vrot.lane.b32.xlu0 %v6753_v9, %s9581_s0 }
 0x465   :  { %v6720_v58 = vrot.slane %v14826_v35, 1  ;;  %v8785_v46 = vadd.f32 %v6351_v10, %v14758_v19  ;;  %v6353_v61 = vpop.f32.mrb[21].mxu0 }
 0x466   :  { %v6644_v29 = vpop.f32.mrb[70].mxu1 }
 0x467   :  { %v14833_v33 = vadd.f32 %v8785_v46, %v6616_v12  ;;  %v6752_v53 = vsel %vm6737_vm0, %v6719_v4, %v6720_v58  ;;  %v6646_v2 = vpop.f32.mrb[71].mxu1 }
 0x468   :  { %v6358_v16 = vpop.f32.mrb[22].mxu0  ;;  %6802 = vrot.lane.b32.xlu1 %v6752_v53, %s9581_s0 }
 0x469   :  { %v6721_v41 = vrot.slane %v14833_v33, 1  ;;  %v8787_v24 = vadd.f32 %v6358_v16, %v14760_v38  ;;  %v6360_v23 = vpop.f32.mrb[23].mxu0 }
 0x46a   :  { %v6651_v36 = vpop.f32.mrb[72].mxu1 }
 0x46b   :  { %v14840_v22 = vadd.f32 %v8787_v24, %v6623_v51  ;;  %v6751_v19 = vsel %vm6737_vm0, %v6720_v58, %v6721_v41  ;;  %v6653_v12 = vpop.f32.mrb[73].mxu1 }
 0x46c   :  { %v6365_v54 = vpop.f32.mrb[24].mxu0  ;;  %6804 = vrot.lane.b32.xlu0 %v6751_v19, %s9581_s0 }
 0x46d   :  { %v6722_v52 = vrot.slane %v14840_v22, 1  ;;  %v8789_v59 = vadd.f32 %v6365_v54, %v14762_v28  ;;  %v6367_v42 = vpop.f32.mrb[25].mxu0 }
 0x46e   :  { %v6658_v15 = vpop.f32.mrb[74].mxu1 }
 0x46f   :  { %v14847_v11 = vadd.f32 %v8789_v59, %v6630_v47  ;;  %v6750_v38 = vsel %vm6737_vm0, %v6721_v41, %v6722_v52  ;;  %v6660_v51 = vpop.f32.mrb[75].mxu1 }
 0x470   :  { %v6372_v1 = vpop.f32.mrb[26].mxu0  ;;  %6806 = vrot.lane.b32.xlu0 %v6750_v38, %s9581_s0 }
 0x471   :  { %v8791_v55 = vadd.f32 %v6372_v1, %v14764_v13  ;;  %v6374_v6 = vpop.f32.mrb[27].mxu0  ;;  %v6723_v47 = vrot.slane %v14847_v11, 1 }
 0x472   :  { %v6665_v21 = vpop.f32.mrb[76].mxu1 }
 0x473   :  { %v14855_v62 = vadd.f32 %v8791_v55, %v6637_v32  ;;  %v6667_v28 = vpop.f32.mrb[77].mxu1 }
 0x474   :  { %v6379_v40 = vpop.f32.mrb[28].mxu0 }
 0x475   :  { %v6724_v5 = vrot.slane %v14855_v62, 1  ;;  %v8793_v26 = vadd.f32 %v6379_v40, %v14766_v44  ;;  %v6381_v8 = vpop.f32.mrb[29].mxu0 }
 0x476   :  { %v6672_v4 = vpop.f32.mrb[78].mxu1 }
 0x477   :  { %v14860_v48 = vadd.f32 %v8793_v26, %v6644_v29  ;;  %v6748_v13 = vsel %vm6737_vm0, %v6723_v47, %v6724_v5  ;;  %v6674_v25 = vpop.f32.mrb[79].mxu1 }
 0x478   :  { %v6386_v32 = vpop.f32.mrb[30].mxu0  ;;  %6810 = vrot.lane.b32.xlu0 %v6748_v13, %s9581_s0 }
 0x479   :  { %v6725_v9 = vrot.slane %v14860_v48, 1  ;;  %v8795_v14 = vadd.f32 %v6386_v32, %v14768_v20  ;;  %v6388_v10 = vpop.f32.mrb[31].mxu0 }
 0x47a   :  { %v6679_v58 = vpop.f32.mrb[80].mxu1 }
 0x47b   :  { %v14869_v44 = vadd.f32 %v8795_v14, %v6651_v36  ;;  %v6747_v46 = vsel %vm6737_vm0, %v6724_v5, %v6725_v9  ;;  %v6681_v61 = vpop.f32.mrb[81].mxu1  ;;  %v7207_v14 = vld [vmem:[%s15193_s3 + $0x8] sm:$0x1] }
 0x47c   :  { %v6393_v29 = vpop.f32.mrb[32].mxu0  ;;  %6812 = vrot.lane.b32.xlu1 %v6747_v46, %s9581_s0  ;;  %v7258_v46 = vsel %vm7256_vm1, %v7207_v14, 0 }
 0x47d   :  { %v6726_v53 = vrot.slane %v14869_v44, 1  ;;  %v8797_v2 = vadd.f32 %v6393_v29, %v14770_v63  ;;  %v6395_v16 = vpop.f32.mrb[33].mxu0  ;;  %v7264_v29 = vand.u32 4294901760, %v7258_v46 }
 0x47e   :  { %v6686_v41 = vpop.f32.mrb[82].mxu1 }
 0x47f   :  { %v14876_v24 = vadd.f32 %v8797_v2, %v6658_v15  ;;  %v6746_v20 = vsel %vm6737_vm0, %v6725_v9, %v6726_v53  ;;  %v6688_v23 = vpop.f32.mrb[83].mxu1  ;;  %v7206_v9 = vld [vmem:[%s15193_s3] sm:$0xff] }
 0x480   :  { %v6400_v36 = vpop.f32.mrb[34].mxu0  ;;  %6814 = vrot.lane.b32.xlu1 %v6746_v20, %s9581_s0  ;;  %v7261_v61 = vand.u32 4294901760, %v7206_v9 }
 0x481   :  { %v6727_v19 = vrot.slane %v14876_v24, 1  ;;  %v8799_v12 = vadd.f32 %v6400_v36, %v14772_v3  ;;  %v6402_v54 = vpop.f32.mrb[35].mxu0 }
 0x482   :  { %v6693_v59 = vpop.f32.mrb[84].mxu1  ;;  %v14915_v20 = vpack.c.bf16 %v7264_v29, %v7261_v61 }
 0x483   :  { %v14883_v42 = vadd.f32 %v8799_v12, %v6665_v21  ;;  %v6745_v63 = vsel %vm6737_vm0, %v6726_v53, %v6727_v19  ;;  %v6695_v15 = vpop.f32.mrb[85].mxu1 }
 0x484   :  { %v6407_v38 = vpop.f32.mrb[36].mxu0  ;;  %6816 = vrot.lane.b32.xlu0 %v6745_v63, %s9581_s0  ;;  %8713 = vmatprep.subr.bf16.mxu1 %v14915_v20 }
 0x485   :  { %v6728_v51 = vrot.slane %v14883_v42, 1  ;;  %v8801_v1 = vadd.f32 %v6407_v38, %v14774_v31  ;;  %v6409_v55 = vpop.f32.mrb[37].mxu0  ;;  %8715 = vmatpush3.bf16.msra.mxu1 %v14915_v20 }
 0x486   :  { %v6700_v6 = vpop.f32.mrb[86].mxu1 }
 0x487   :  { %v14890_v28 = vadd.f32 %v8801_v1, %v6672_v4  ;;  %v6744_v3 = vsel %vm6737_vm0, %v6727_v19, %v6728_v51  ;;  %v6702_v21 = vpop.f32.mrb[87].mxu1 }
 0x488   :  { %v6414_v40 = vpop.f32.mrb[38].mxu0  ;;  %6818 = vrot.lane.b32.xlu1 %v6744_v3, %s9581_s0 }
 0x489   :  { %v6729_v5 = vrot.slane %v14890_v28, 1  ;;  %v8803_v26 = vadd.f32 %v6414_v40, %v14776_v17  ;;  %v6416_v8 = vpop.f32.mrb[39].mxu0 }
 0x48a   :  { %v6707_v13 = vpop.f32.mrb[88].mxu1 }
 0x48b   :  { %v14897_v25 = vadd.f32 %v8803_v26, %v6679_v58  ;;  %v6743_v31 = vsel %vm6737_vm0, %v6728_v51, %v6729_v5  ;;  %v6709_v4 = vpop.f32.mrb[89].mxu1 }
 0x48c   :  { %v6421_v32 = vpop.f32.mrb[40].mxu0  ;;  %6820 = vrot.lane.b32.xlu1 %v6743_v31, %s9581_s0 }
 0x48d   :  { %v6730_v17 = vrot.slane %v14897_v25, 1  ;;  %v8805_v10 = vadd.f32 %v6421_v32, %v14778_v56  ;;  %v6423_v58 = vpop.f32.mrb[41].mxu0 }
 0x48f   :  { %v14910_v53 = vadd.f32 %v8805_v10, %v6686_v41  ;;  %v6742_v2 = vsel %vm6737_vm0, %v6729_v5, %v6730_v17  ;;  %v6749_v10 = vsel %vm6737_vm0, %v6722_v52, %v6723_v47 }
 0x490   :  { %v6428_v16 = vpop.f32.mrb[42].mxu0  ;;  %6822 = vrot.lane.b32.xlu0 %v6742_v2, %s9581_s0  ;;  %v7349_v2 = vsub.f32 %v7206_v9, %v7261_v61  ;;  %v14988_v61 = vld [vmem:[%s15192_s2] ss:$0 sm:$0xff] }
 0x491   :  { %v6731_v23 = vrot.slane %v14910_v53, 1  ;;  %v8807_v36 = vadd.f32 %v6428_v16, %v14780_v57  ;;  %v6430_v19 = vpop.f32.mrb[43].mxu0  ;;  %v7356_v16 = vsub.f32 %v7258_v46, %v7264_v29 }
 0x493   :  { %v14920_v56 = vadd.f32 %v8807_v36, %v6693_v59  ;;  %v6741_v41 = vsel %vm6737_vm0, %v6730_v17, %v6731_v23  ;;  %v7357_v36 = vand.u32 4294901760, %v7356_v16 }
 0x494   :  { %v6435_v12 = vpop.f32.mrb[44].mxu0  ;;  %6824 = vrot.lane.b32.xlu1 %v6741_v41, %s9581_s0 }
 0x495   :  { %v6732_v54 = vrot.slane %v14920_v56, 1  ;;  %v8809_v63 = vadd.f32 %v6435_v12, %v14782_v43  ;;  %v6437_v15 = vpop.f32.mrb[45].mxu0  ;;  %v7358_v52 = vsub.f32 %v7356_v16, %v7357_v36 }
 0x497   :  { %v14928_v38 = vadd.f32 %v8809_v63, %v6700_v6  ;;  %v6740_v57 = vsel %vm6737_vm0, %v6731_v23, %v6732_v54  ;;  %v7350_v23 = vand.u32 4294901760, %v7349_v2  ;;  %v7359_v41 = vand.u32 4294901760, %v7358_v52 }
 0x498   :  { %v6442_v59 = vpop.f32.mrb[46].mxu0  ;;  %6826 = vrot.lane.b32.xlu1 %v6740_v57, %s9581_s0 }
 0x499   :  { %v8811_v51 = vadd.f32 %v6442_v59, %v14784_v34  ;;  %v6444_v1 = vpop.f32.mrb[47].mxu0  ;;  %v7351_v19 = vsub.f32 %v7349_v2, %v7350_v23  ;;  %v14982_v59 = vpack.c.bf16 %v7357_v36, %v7350_v23 }
 0x49b   :  { %v14934_v55 = vadd.f32 %v8811_v51, %v6707_v13  ;;  %v7352_v47 = vand.u32 4294901760, %v7351_v19 }
 0x49c   :  { %v6546_v3 = vpop.f32.mrb[0].mxu0 }
 0x49d   :  { %v14937_v21 = vadd.f32 %v6546_v3, %v14742_v45  ;;  %v6548_v40 = vpop.f32.mrb[1].mxu0  ;;  %v14977_v12 = vpack.c.bf16 %v7359_v41, %v7352_v47 }
 0x49f   :  { %v6711_v26 = vrot.slane %v14937_v21, 1  ;;  %8717 = vmatprep.subr.bf16.mxu1 %v14977_v12 }
 0x4a0   :  { %v6553_v43 = vpop.f32.mrb[2].mxu0 }
 0x4a1   :  { %v14940_v6 = vadd.f32 %v6553_v43, %v14744_v30  ;;  %v6555_v5 = vpop.f32.mrb[3].mxu0  ;;  %v6733_v30 = vrot.slane %v14928_v38, 1 }
 0x4a3   :  { %v6712_v8 = vrot.slane %v14940_v6, 1  ;;  %v6739_v17 = vsel %vm6737_vm0, %v6732_v54, %v6733_v30  ;;  %v14980_v54 = vpack.c.bf16 %v7356_v16, %v7349_v2 }
 0x4a4   :  { %v6560_v31 = vpop.f32.mrb[4].mxu0 }
 0x4a5   :  { %v14945_v34 = vadd.f32 %v6560_v31, %v14746_v49  ;;  %v6562_v13 = vpop.f32.mrb[5].mxu0  ;;  %v6760_v4 = vsel %vm6737_vm0, %v6711_v26, %v6712_v8  ;;  %v6734_v49 = vrot.slane %v14934_v55, 1  ;;  %v14997_v31 = vadd.s32 8, %v14788_v0 }
 0x4a6   :  { %6786 = vrot.lane.b32.xlu0 %v6760_v4, %s9581_s0 }
 0x4a7   :  { %v6713_v45 = vrot.slane %v14945_v34, 1  ;;  %v6761_v58 = vsel %vm6737_vm0, %v6734_v49, %v6711_v26  ;;  %vm6995_vm2 = vcmp.eq.s32.totalorder %v14997_v31, 11 }
 0x4a9   :  { %v6759_v32 = vsel %vm6737_vm0, %v6712_v8, %v6713_v45  ;;  %v6758_v14 = vsel %vm6737_vm0, %v6713_v45, %v6714_v27  ;;  %v6738_v27 = vsel %vm6737_vm0, %v6733_v30, %v6734_v49 }
 0x4aa   :  { %6788 = vrot.lane.b32.xlu0 %v6759_v32, %s9581_s0  ;;  %6790 = vrot.lane.b32.xlu1 %v6758_v14, %s9581_s0 }
 0x4ae   :  { %6828 = vrot.lane.b32.xlu0 %v6739_v17, %s9581_s0  ;;  %6808 = vrot.lane.b32.xlu1 %v6749_v10, %s9581_s0 }
 0x4b2   :  { %6830 = vrot.lane.b32.xlu0 %v6738_v27, %s9581_s0  ;;  %6832 = vrot.lane.b32.xlu1 %v6761_v58, %s9581_s0 }
 0x4c6   :  { %v6793_v15 = vpop.permute.xlu1 %6792 }
 0x4c7   :  { %v6861_v9 = vadd.f32 %v14786_v18, %v6793_v15 }
 0x4c9   :  { %v6892_v1 = vadd.f32 %v14988_v61, %v6861_v9 }
 0x4ca   :  { %v6795_v63 = vpop.permute.xlu0 %6794 }
 0x4cb   :  { %v6862_v3 = vadd.f32 %v14790_v50, %v6795_v63  ;;  %v6916_v18 = vmax.f32 %v6892_v1, 0.0 }
 0x4cd   :  { %v6893_v8 = vadd.f32 %v14988_v61, %v6862_v3  ;;  %v6964_v45 = vcombine.high %v6916_v18, %v6916_v18 }
 0x4ce   :  { %v6797_v46 = vpop.permute.xlu1 %6796 }
 0x4cf   :  { %v6863_v51 = vadd.f32 %v14796_v60, %v6797_v46  ;;  %v6917_v30 = vmax.f32 %v6893_v8, 0.0  ;;  %v6998_v0 = vcombine.low %v6916_v18, %v6964_v45 }
 0x4d1   :  { %v6894_v43 = vadd.f32 %v14988_v61, %v6863_v51  ;;  %v6965_v10 = vcombine.high %v6917_v30, %v6917_v30  ;;  %v7033_v2 = vsel %vm6995_vm2, 0.0, %v6917_v30  ;;  %v7080_v47 = vsel %vm7060_vm3, %v6998_v0, -inf }
 0x4d2   :  { %v6799_v57 = vpop.permute.xlu0 %6798  ;;  %v7081_v41 = vsel %vm7062_vm4, %v7033_v2, -inf }
 0x4d3   :  { %v6864_v5 = vadd.f32 %v14805_v37, %v6799_v57  ;;  %v6918_v13 = vmax.f32 %v6894_v43, 0.0  ;;  %v7082_v1 = vmax.f32 %v7080_v47, %v7081_v41 }
 0x4d5   :  { %v6895_v4 = vadd.f32 %v14988_v61, %v6864_v5  ;;  %v6966_v49 = vcombine.high %v6918_v13, %v6918_v13  ;;  %v7083_v30 = vrot.slane %v7082_v1, 4 }
 0x4d6   :  { %v6801_v29 = vpop.permute.xlu0 %6800 }
 0x4d7   :  { %v6865_v50 = vadd.f32 %v14812_v7, %v6801_v29  ;;  %v6919_v17 = vmax.f32 %v6895_v4, 0.0  ;;  %v7035_v36 = vsel %vm6995_vm2, 0.0, %v6966_v49 }
 0x4d8   :  { %v7090_v29 = vsel %vm7062_vm4, %v7035_v36, -inf }
 0x4d9   :  { %v6896_v27 = vadd.f32 %v14988_v61, %v6865_v50  ;;  %v6967_v19 = vcombine.high %v6919_v17, %v6919_v17 }
 0x4da   :  { %v6803_v26 = vpop.permute.xlu1 %6802 }
 0x4db   :  { %v6866_v14 = vadd.f32 %v14819_v39, %v6803_v26  ;;  %v6920_v63 = vmax.f32 %v6896_v27, 0.0  ;;  %v7000_v3 = vcombine.low %v6919_v17, %v6967_v19 }
 0x4dd   :  { %v6897_v7 = vadd.f32 %v14988_v61, %v6866_v14  ;;  %v6968_v4 = vcombine.high %v6920_v63, %v6920_v63  ;;  %v7098_v50 = vsel %vm7060_vm3, %v7000_v3, -inf }
 0x4de   :  { %v6805_v40 = vpop.permute.xlu0 %6804 }
 0x4df   :  { %v6867_v37 = vadd.f32 %v14826_v35, %v6805_v40  ;;  %v6999_v35 = vcombine.low %v6965_v10, %v6918_v13  ;;  %v6921_v15 = vmax.f32 %v6897_v7, 0.0 }
 0x4e1   :  { %v6898_v39 = vadd.f32 %v14988_v61, %v6867_v37  ;;  %v7089_v46 = vsel %vm7060_vm3, %v6999_v35, -inf  ;;  %v6969_v18 = vcombine.high %v6921_v15, %v6921_v15  ;;  %v7001_v49 = vcombine.low %v6968_v4, %v6921_v15 }
 0x4e2   :  { %v6807_v32 = vpop.permute.xlu0 %6806  ;;  %v7091_v26 = vmax.f32 %v7089_v46, %v7090_v29 }
 0x4e3   :  { %v6868_v23 = vadd.f32 %v14833_v33, %v6807_v32  ;;  %v6922_v57 = vmax.f32 %v6898_v39, 0.0  ;;  %v7039_v17 = vsel %vm6995_vm2, 0.0, %v6969_v18  ;;  %v7084_v39 = vmax.f32 %v7082_v1, %v7083_v30 }
 0x4e4   :  { %v7107_v35 = vsel %vm7060_vm3, %v7001_v49, -inf }
 0x4e5   :  { %v6899_v33 = vadd.f32 %v14988_v61, %v6868_v23  ;;  %v6970_v8 = vcombine.high %v6922_v57, %v6922_v57  ;;  %v7108_v23 = vsel %vm7062_vm4, %v7039_v17, -inf  ;;  %v7085_v46 = vrot.slane %v7084_v39, 2 }
 0x4e6   :  { %v7109_v29 = vmax.f32 %v7107_v35, %v7108_v23 }
 0x4e7   :  { %v15024_v45 = vmax.f32 %v6899_v33, 0.0 }
 0x4e8   :  { %v7110_v30 = vrot.slane %v7109_v29, 4 }
 0x4e9   :  { %v7041_v27 = vsel %vm6995_vm2, 0.0, %v15024_v45 }
 0x4ea   :  { %v6811_v58 = vpop.permute.xlu0 %6810  ;;  %v7117_v41 = vsel %vm7062_vm4, %v7041_v27, -inf }
 0x4eb   :  { %v6870_v52 = vadd.f32 %v14847_v11, %v6811_v58  ;;  %v7037_v11 = vsel %vm6995_vm2, 0.0, %v6920_v63 }
 0x4ec   :  { %v7099_v32 = vsel %vm7062_vm4, %v7037_v11, -inf }
 0x4ed   :  { %v6901_v40 = vadd.f32 %v14988_v61, %v6870_v52  ;;  %v7100_v10 = vmax.f32 %v7098_v50, %v7099_v32 }
 0x4ee   :  { %v6813_v60 = vpop.permute.xlu1 %6812 }
 0x4ef   :  { %v6871_v43 = vadd.f32 %v14855_v62, %v6813_v60  ;;  %v6925_v14 = vmax.f32 %v6901_v40, 0.0  ;;  %v7092_v60 = vrot.slane %v7091_v26, 4 }
 0x4f1   :  { %v6902_v62 = vadd.f32 %v14988_v61, %v6871_v43 }
 0x4f2   :  { %v6815_v16 = vpop.permute.xlu1 %6814 }
 0x4f3   :  { %v6872_v5 = vadd.f32 %v14860_v48, %v6815_v16  ;;  %v6973_v16 = vcombine.high %v6925_v14, %v6925_v14  ;;  %v6926_v36 = vmax.f32 %v6902_v62, 0.0 }
 0x4f5   :  { %v6903_v48 = vadd.f32 %v14988_v61, %v6872_v5  ;;  %v7004_v33 = vcombine.low %v6925_v14, %v6973_v16  ;;  %v7045_v1 = vsel %vm6995_vm2, 0.0, %v6926_v36  ;;  %v6974_v43 = vcombine.high %v6926_v36, %v6926_v36 }
 0x4f6   :  { %v6817_v51 = vpop.permute.xlu0 %6816  ;;  %v7135_v32 = vsel %vm7062_vm4, %v7045_v1, -inf  ;;  %v7111_v16 = vmax.f32 %v7109_v29, %v7110_v30 }
 0x4f7   :  { %v6873_v13 = vadd.f32 %v14869_v44, %v6817_v51  ;;  %v7002_v44 = vcombine.low %v6922_v57, %v6970_v8  ;;  %v6927_v19 = vmax.f32 %v6903_v48, 0.0  ;;  %v7101_v57 = vrot.slane %v7100_v10, 4 }
 0x4f8   :  { %v7134_v50 = vsel %vm7060_vm3, %v7004_v33, -inf  ;;  %v7086_v48 = vmax.f32 %v7084_v39, %v7085_v46 }
 0x4f9   :  { %v6904_v0 = vadd.f32 %v14988_v61, %v6873_v13  ;;  %v7116_v47 = vsel %vm7060_vm3, %v7002_v44, -inf  ;;  %v6975_v3 = vcombine.high %v6927_v19, %v6927_v19  ;;  %v7102_v8 = vmax.f32 %v7100_v10, %v7101_v57 }
 0x4fa   :  { %v6819_v9 = vpop.permute.xlu1 %6818  ;;  %v7118_v51 = vmax.f32 %v7116_v47, %v7117_v41  ;;  %v7005_v14 = vcombine.low %v6974_v43, %v6927_v19  ;;  %v7136_v44 = vmax.f32 %v7134_v50, %v7135_v32 }
 0x4fb   :  { %v6874_v58 = vadd.f32 %v14876_v24, %v6819_v9  ;;  %v6928_v63 = vmax.f32 %v6904_v0, 0.0  ;;  %v7093_v24 = vmax.f32 %v7091_v26, %v7092_v60  ;;  %v7103_v27 = vrot.slane %v7102_v8, 2 }
 0x4fc   :  { %v7137_v41 = vrot.slane %v7136_v44, 4 }
 0x4fd   :  { %v6976_v5 = vcombine.high %v6928_v63, %v6928_v63  ;;  %v7094_v18 = vrot.slane %v7093_v24, 2 }
 0x4fe   :  { %v6821_v37 = vpop.permute.xlu1 %6820 }
 0x4ff   :  { %v6875_v2 = vadd.f32 %v14883_v42, %v6821_v37  ;;  %v6905_v42 = vadd.f32 %v14988_v61, %v6874_v58  ;;  %v7119_v37 = vrot.slane %v7118_v51, 4  ;;  %v7095_v17 = vmax.f32 %v7093_v24, %v7094_v18 }
 0x500   :  { %v7143_v58 = vsel %vm7060_vm3, %v7005_v14, -inf  ;;  %v7087_v24 = vrot.slane %v7086_v48, 1 }
 0x501   :  { %v6906_v9 = vadd.f32 %v14988_v61, %v6875_v2  ;;  %v6929_v13 = vmax.f32 %v6905_v42, 0.0  ;;  %v7120_v35 = vmax.f32 %v7118_v51, %v7119_v37  ;;  %v7096_v57 = vrot.slane %v7095_v17, 1 }
 0x502   :  { %v6823_v7 = vpop.permute.xlu0 %6822  ;;  %v7104_v42 = vmax.f32 %v7102_v8, %v7103_v27  ;;  %v15068_v18 = vmax.f32 %v7086_v48, %v7087_v24 }
 0x503   :  { %v6876_v15 = vadd.f32 %v14890_v28, %v6823_v7  ;;  %v6930_v4 = vmax.f32 %v6906_v9, 0.0  ;;  %v7049_v0 = vsel %vm6995_vm2, 0.0, %v6929_v13  ;;  %v6977_v7 = vcombine.high %v6929_v13, %v6929_v13 }
 0x504   :  { %v7153_v19 = vsel %vm7062_vm4, %v7049_v0, -inf  ;;  %v7112_v9 = vrot.slane %v7111_v16, 2  ;;  %v7121_v51 = vrot.slane %v7120_v35, 2  ;;  %v15070_v8 = vmax.f32 %v7095_v17, %v7096_v57 }
 0x505   :  { %v6907_v28 = vadd.f32 %v14988_v61, %v6876_v15  ;;  %v6978_v10 = vcombine.high %v6930_v4, %v6930_v4  ;;  %v6971_v13 = vcombine.high %v15024_v45, %v15024_v45  ;;  %v7105_v30 = vrot.slane %v7104_v42, 1 }
 0x506   :  { %v6825_v52 = vpop.permute.xlu1 %6824  ;;  %v15077_v37 = vmax.f32 %v7111_v16, %v7112_v9  ;;  %v15082_v48 = vmax.f32 %v7120_v35, %v7121_v51 }
 0x507   :  { %v6877_v40 = vadd.f32 %v14897_v25, %v6825_v52  ;;  %v7047_v25 = vsel %vm6995_vm2, 0.0, %v6975_v3  ;;  %v6931_v60 = vmax.f32 %v6907_v28, 0.0  ;;  %v7007_v52 = vcombine.low %v6977_v7, %v6930_v4 }
 0x508   :  { %v7144_v2 = vsel %vm7062_vm4, %v7047_v25, -inf  ;;  %v7051_v15 = vsel %vm6995_vm2, 0.0, %v6978_v10 }
 0x509   :  { %v6908_v49 = vadd.f32 %v14988_v61, %v6877_v40  ;;  %v6979_v47 = vcombine.high %v6931_v60, %v6931_v60  ;;  %v7161_v1 = vsel %vm7060_vm3, %v7007_v52, -inf  ;;  %v7162_v3 = vsel %vm7062_vm4, %v7051_v15, -inf }
 0x50a   :  { %v6827_v11 = vpop.permute.xlu1 %6826  ;;  %v7163_v32 = vmax.f32 %v7161_v1, %v7162_v3  ;;  %v7123_v52 = vrot.slane %v15082_v48, 1 }
 0x50b   :  { %v6878_v26 = vadd.f32 %v14910_v53, %v6827_v11  ;;  %v7006_v53 = vcombine.low %v6928_v63, %v6976_v5  ;;  %v6932_v23 = vmax.f32 %v6908_v49, 0.0  ;;  %v7145_v63 = vmax.f32 %v7143_v58, %v7144_v2 }
 0x50c   :  { %v7008_v40 = vcombine.low %v6931_v60, %v6979_v47  ;;  %v7138_v11 = vmax.f32 %v7136_v44, %v7137_v41  ;;  %v15090_v2 = vmax.f32 %v7104_v42, %v7105_v30  ;;  %v7164_v16 = vrot.slane %v7163_v32, 4 }
 0x50d   :  { %v6909_v62 = vadd.f32 %v14988_v61, %v6878_v26  ;;  %v7152_v39 = vsel %vm7060_vm3, %v7006_v53, -inf  ;;  %v6980_v29 = vcombine.high %v6932_v23, %v6932_v23  ;;  %v7146_v43 = vrot.slane %v7145_v63, 4 }
 0x50e   :  { %v7154_v46 = vmax.f32 %v7152_v39, %v7153_v19  ;;  %v7053_v5 = vsel %vm6995_vm2, 0.0, %v6932_v23  ;;  %v7170_v25 = vsel %vm7060_vm3, %v7008_v40, -inf  ;;  %v7139_v53 = vrot.slane %v7138_v11, 2 }
 0x50f   :  { %v6933_v36 = vmax.f32 %v6909_v62, 0.0  ;;  %v7171_v49 = vsel %vm7062_vm4, %v7053_v5, -inf  ;;  %v15084_v60 = vmax.f32 %v7145_v63, %v7146_v43  ;;  %v7114_v23 = vrot.slane %v15077_v37, 1 }
 0x510   :  { %v7155_v50 = vrot.slane %v7154_v46, 4  ;;  %v7172_v35 = vmax.f32 %v7170_v25, %v7171_v49  ;;  %v15098_v47 = vmax.f32 %v7138_v11, %v7139_v53 }
 0x511   :  { %v6981_v33 = vcombine.high %v6933_v36, %v6933_v36  ;;  %v7009_v28 = vcombine.low %v6980_v29, %v6933_v36 }
 0x512   :  { %v15092_v7 = vmax.f32 %v7154_v46, %v7155_v50  ;;  %v15103_v46 = vmax.f32 %v7163_v32, %v7164_v16  ;;  %v7173_v29 = vrot.slane %v7172_v35, 4  ;;  %v7141_v31 = vrot.slane %v15098_v47, 1 }
 0x513   :  { %v7055_v14 = vsel %vm6995_vm2, 0.0, %v6981_v33 }
 0x514   :  { %v7180_v0 = vsel %vm7062_vm4, %v7055_v14, -inf  ;;  %v7157_v9 = vrot.slane %v15092_v7, 2 }
 0x518   :  { %v6787_v26 = vpop.permute.xlu0 %6786 }
 0x519   :  { %v6858_v4 = vadd.f32 %v14937_v21, %v6787_v26  ;;  %v7179_v21 = vsel %vm7060_vm3, %v7009_v28, -inf }
 0x51b   :  { %v6889_v62 = vadd.f32 %v14988_v61, %v6858_v4 }
 0x51c   :  { %v6789_v17 = vpop.permute.xlu0 %6788  ;;  %v6791_v44 = vpop.permute.xlu1 %6790 }
 0x51d   :  { %v6913_v10 = vmax.f32 %v6889_v62, 0.0  ;;  %v6859_v27 = vadd.f32 %v14940_v6, %v6789_v17  ;;  %v6860_v58 = vadd.f32 %v14945_v34, %v6791_v44  ;;  %v7148_v6 = vrot.slane %v15084_v60, 2 }
 0x51e   :  { %v7181_v34 = vmax.f32 %v7179_v21, %v7180_v0  ;;  %v7174_v62 = vmax.f32 %v7172_v35, %v7173_v29 }
 0x51f   :  { %v6961_v36 = vcombine.high %v6913_v10, %v6913_v10  ;;  %v6890_v39 = vadd.f32 %v14988_v61, %v6859_v27  ;;  %v6891_v19 = vadd.f32 %v14988_v61, %v6860_v58 }
 0x520   :  { %v6829_v41 = vpop.permute.xlu0 %6828  ;;  %v6809_v63 = vpop.permute.xlu1 %6808  ;;  %v7182_v11 = vrot.slane %v7181_v34, 4 }
 0x521   :  { %v6996_v15 = vcombine.low %v6913_v10, %v6961_v36  ;;  %v6914_v24 = vmax.f32 %v6890_v39, 0.0  ;;  %v6915_v57 = vmax.f32 %v6891_v19, 0.0  ;;  %v6879_v42 = vadd.f32 %v14920_v56, %v6829_v41 }
 0x522   :  { %v6869_v33 = vadd.f32 %v14840_v22, %v6809_v63 }
 0x523   :  { %v7061_v51 = vsel %vm7060_vm3, %v6996_v15, -inf  ;;  %v6962_v1 = vcombine.high %v6914_v24, %v6914_v24  ;;  %v7029_v3 = vsel %vm6995_vm2, 0.0, %v6914_v24  ;;  %v6963_v40 = vcombine.high %v6915_v57, %v6915_v57 }
 0x524   :  { %v7063_v43 = vsel %vm7062_vm4, %v7029_v3, -inf  ;;  %v6910_v5 = vadd.f32 %v14988_v61, %v6879_v42  ;;  %v6900_v56 = vadd.f32 %v14988_v61, %v6869_v33  ;;  %v6831_v28 = vpop.permute.xlu0 %6830  ;;  %v6833_v26 = vpop.permute.xlu1 %6832 }
 0x525   :  { %v7064_v4 = vmax.f32 %v7061_v51, %v7063_v43  ;;  %v6997_v30 = vcombine.low %v6962_v1, %v6915_v57  ;;  %v7031_v22 = vsel %vm6995_vm2, 0.0, %v6963_v40  ;;  %v6880_v50 = vadd.f32 %v14928_v38, %v6831_v28 }
 0x526   :  { %v7072_v32 = vsel %vm7062_vm4, %v7031_v22, -inf  ;;  %v6934_v14 = vmax.f32 %v6910_v5, 0.0  ;;  %v6924_v25 = vmax.f32 %v6900_v56, 0.0  ;;  %v6881_v49 = vadd.f32 %v14934_v55, %v6833_v26 }
 0x527   :  { %v7065_v53 = vrot.slane %v7064_v4, 4  ;;  %v7071_v21 = vsel %vm7060_vm3, %v6997_v30, -inf  ;;  %v6911_v17 = vadd.f32 %v14988_v61, %v6880_v50  ;;  %v7183_v38 = vmax.f32 %v7181_v34, %v7182_v11 }
 0x528   :  { %v7073_v44 = vmax.f32 %v7071_v21, %v7072_v32  ;;  %v6982_v0 = vcombine.high %v6934_v14, %v6934_v14  ;;  %v6972_v10 = vcombine.high %v6924_v25, %v6924_v25  ;;  %v7003_v27 = vcombine.low %v6971_v13, %v6924_v25 }
 0x529   :  { %v7066_v58 = vmax.f32 %v7064_v4, %v7065_v53  ;;  %v6935_v16 = vmax.f32 %v6911_v17, 0.0  ;;  %v6912_v36 = vadd.f32 %v14988_v61, %v6881_v49  ;;  %v7166_v57 = vrot.slane %v15103_v46, 2 }
 0x52a   :  { %v7074_v39 = vrot.slane %v7073_v44, 4  ;;  %v7010_v55 = vcombine.low %v6934_v14, %v6982_v0  ;;  %v7043_v35 = vsel %vm6995_vm2, 0.0, %v6972_v10  ;;  %v7125_v19 = vsel %vm7060_vm3, %v7003_v27, -inf }
 0x52b   :  { %v7067_v41 = vrot.slane %v7066_v58, 2  ;;  %v7126_v63 = vsel %vm7062_vm4, %v7043_v35, -inf  ;;  %v6983_v15 = vcombine.high %v6935_v16, %v6935_v16  ;;  %v7057_v45 = vsel %vm6995_vm2, 0.0, %v6935_v16 }
 0x52c   :  { %v7075_v13 = vmax.f32 %v7073_v44, %v7074_v39  ;;  %v7188_v34 = vsel %vm7060_vm3, %v7010_v55, -inf  ;;  %v7127_v24 = vmax.f32 %v7125_v19, %v7126_v63  ;;  %v7189_v61 = vsel %vm7062_vm4, %v7057_v45, -inf }
 0x52d   :  { %v7068_v42 = vmax.f32 %v7066_v58, %v7067_v41  ;;  %v7190_v29 = vmax.f32 %v7188_v34, %v7189_v61  ;;  %v6936_v33 = vmax.f32 %v6912_v36, 0.0  ;;  %v7149_v51 = vmax.f32 %v15084_v60, %v7148_v6 }
 0x52e   :  { %v7175_v1 = vrot.slane %v7174_v62, 2  ;;  %v7076_v3 = vrot.slane %v7075_v13, 2  ;;  %v7128_v40 = vrot.slane %v7127_v24, 4  ;;  %v7184_v11 = vrot.slane %v7183_v38, 2 }
 0x52f   :  { %v7191_v43 = vrot.slane %v7190_v29, 4  ;;  %v6984_v5 = vcombine.high %v6936_v33, %v6936_v33  ;;  %v7011_v56 = vcombine.low %v6983_v15, %v6936_v33  ;;  %v7158_v28 = vmax.f32 %v15092_v7, %v7157_v9 }
 0x530   :  { %v7069_v26 = vrot.slane %v7068_v42, 1  ;;  %v7077_v4 = vmax.f32 %v7075_v13, %v7076_v3  ;;  %v7129_v30 = vmax.f32 %v7127_v24, %v7128_v40  ;;  %v7167_v22 = vmax.f32 %v15103_v46, %v7166_v57 }
 0x531   :  { %v7192_v50 = vmax.f32 %v7190_v29, %v7191_v43  ;;  %v7059_v60 = vsel %vm6995_vm2, 0.0, %v6984_v5  ;;  %v7197_v6 = vsel %vm7060_vm3, %v7011_v56, -inf  ;;  %v7176_v32 = vmax.f32 %v7174_v62, %v7175_v1 }
 0x532   :  { %v7078_v14 = vrot.slane %v7077_v4, 1  ;;  %v7130_v25 = vrot.slane %v7129_v30, 2  ;;  %v7198_v7 = vsel %vm7062_vm4, %v7059_v60, -inf  ;;  %v7150_v9 = vrot.slane %v7149_v51, 1 }
 0x533   :  { %v7185_v49 = vmax.f32 %v7183_v38, %v7184_v11  ;;  %v7193_v53 = vrot.slane %v7192_v50, 2  ;;  %v7199_v21 = vmax.f32 %v7197_v6, %v7198_v7  ;;  %v7159_v17 = vrot.slane %v7158_v28, 1 }
 0x534   :  { %v7070_v44 = vmax.f32 %v7068_v42, %v7069_v26  ;;  %v7079_v46 = vmax.f32 %v7077_v4, %v7078_v14  ;;  %v7131_v0 = vmax.f32 %v7129_v30, %v7130_v25  ;;  %v7168_v10 = vrot.slane %v7167_v22, 1 }
 0x535   :  { %v7194_v27 = vmax.f32 %v7192_v50, %v7193_v53  ;;  %v7200_v58 = vrot.slane %v7199_v21, 4  ;;  %v7115_v62 = vmax.f32 %v15077_v37, %v7114_v23  ;;  %v7177_v16 = vrot.slane %v7176_v32, 1 }
 0x536   :  { %v7232_v36 = vsel %vm7231_vm5, %v7079_v46, %v7070_v44  ;;  %v7132_v39 = vrot.slane %v7131_v0, 1  ;;  %v7151_v38 = vmax.f32 %v7149_v51, %v7150_v9  ;;  %v7186_v55 = vrot.slane %v7185_v49, 1 }
 0x537   :  { %v7234_v35 = vsel %vm7233_vm6, %v15068_v18, %v7232_v36  ;;  %v7201_v19 = vmax.f32 %v7199_v21, %v7200_v58  ;;  %v7124_v41 = vmax.f32 %v15082_v48, %v7123_v52  ;;  %v7160_v63 = vmax.f32 %v7158_v28, %v7159_v17 }
 0x538   :  { %v7195_v15 = vrot.slane %v7194_v27, 1  ;;  %v7236_v45 = vsel %vm7235_vm7, %v15070_v8, %v7234_v35  ;;  %v7142_v37 = vmax.f32 %v15098_v47, %v7141_v31  ;;  %v7169_v23 = vmax.f32 %v7167_v22, %v7168_v10 }
 0x539   :  { %v7202_v13 = vrot.slane %v7201_v19, 2  ;;  %v7238_v34 = vsel %vm7237_vm8, %v15090_v2, %v7236_v45  ;;  %v7178_v24 = vmax.f32 %v7176_v32, %v7177_v16  ;;  %v7133_v61 = vmax.f32 %v7131_v0, %v7132_v39 }
 0x53a   :  { %v7240_v18 = vsel %vm7239_vm10, %v7115_v62, %v7238_v34  ;;  %v7245_v57 = vsel %vm7231_vm5, %v7151_v38, %v7142_v37  ;;  %v7187_v42 = vmax.f32 %v7185_v49, %v7186_v55  ;;  %v7196_v8 = vmax.f32 %v7194_v27, %v7195_v15 }
 0x53b   :  { %v7203_v48 = vmax.f32 %v7201_v19, %v7202_v13  ;;  %v7242_v52 = vsel %vm7241_vm9, %v7124_v41, %v7240_v18  ;;  %v7246_v29 = vsel %vm7233_vm6, %v7160_v63, %v7245_v57 }
 0x53c   :  { %v7244_v47 = vsel %vm7243_vm11, %v7133_v61, %v7242_v52  ;;  %v7247_v33 = vsel %vm7235_vm7, %v7169_v23, %v7246_v29 }
 0x53d   :  { %v7204_v51 = vrot.slane %v7203_v48, 1  ;;  %v7252_v2 = vsel %vm7060_vm3, %v7244_v47, 0  ;;  %v7248_v1 = vsel %vm7237_vm8, %v7178_v24, %v7247_v33 }
 0x53e   :  { %v7327_v3 = vand.u32 4294901760, %v7252_v2  ;;  %v7249_v11 = vsel %vm7239_vm10, %v7187_v42, %v7248_v1 }
 0x53f   :  { %v7205_v40 = vmax.f32 %v7203_v48, %v7204_v51  ;;  %v7250_v43 = vsel %vm7241_vm9, %v7196_v8, %v7249_v11 }
 0x540   :  { %v7328_v5 = vsub.f32 %v7252_v2, %v7327_v3 }
 0x541   :  { %v7251_v56 = vsel %vm7243_vm11, %v7205_v40, %v7250_v43 }
 0x542   :  { %v7254_v28 = vsel %vm7060_vm3, %v7251_v56, 0  ;;  %v7329_v26 = vand.u32 4294901760, %v7328_v5 }
 0x543   :  { %v7337_v4 = vand.u32 4294901760, %v7254_v28 }
 0x544   :  { %v7330_v30 = vsub.f32 %v7328_v5, %v7329_v26 }
 0x545   :  { %v7338_v22 = vsub.f32 %v7254_v28, %v7337_v4 }
 0x546   :  { %v7331_v50 = vand.u32 4294901760, %v7330_v30 }
 0x547   :  { %v7339_v60 = vand.u32 4294901760, %v7338_v22 }
 0x548   :  { %7810 = vmatprep.mubr.f32.mxu1 %v7331_v50 }
 0x549   :  { %v7340_v6 = vsub.f32 %v7338_v22, %v7339_v60 }
 0x54b   :  { %v7341_v32 = vand.u32 4294901760, %v7340_v6 }
 0x54d   :  { %7811 = vmatmul.mubr.f32.vlgmr.msra.gmra.mrb[90].mxu1 %v7341_v32 }
 0x54e   :  { %8719 = vmatpush3.bf16.msra.mxu1 %v14977_v12  ;;  %7817 = vmatprep.mubr.f32.mxu1 %v7327_v3  ;;  %v7781_v12 = vld [vmem:[%s15194_s4] ss:$0 sm:$0xff] }
 0x54f   :  { %8721 = vmatprep.subr.bf16.mxu1 %v14980_v54 }
 0x555   :  { %7818 = vmatmul.mubr.f32.vlgmr.msra.gmra.mrb[90].mxu1 %v7337_v4 }
 0x556   :  { %8723 = vmatpush3.bf16.msra.mxu1 %v14980_v54  ;;  %7824 = vmatprep.mubr.f32.mxu1 %v7328_v5 }
 0x557   :  { %8725 = vmatprep.subr.bf16.mxu1 %v14915_v20 }
 0x55d   :  { %7825 = vmatmul.mubr.f32.vlgmr.msra.gmra.mrb[90].mxu1 %v7338_v22 }
 0x55e   :  { %8727 = vmatpush3.bf16.msra.mxu1 %v14915_v20  ;;  %7831 = vmatprep.mubr.f32.mxu1 %v7329_v26 }
 0x55f   :  { %8729 = vmatprep.subr.bf16.mxu1 %v14982_v59 }
 0x565   :  { %7832 = vmatmul.mubr.f32.vlgmr.msra.gmra.mrb[90].mxu1 %v7339_v60 }
 0x566   :  { %8731 = vmatpush3.bf16.msra.mxu1 %v14982_v59  ;;  %7838 = vmatprep.mubr.f32.mxu1 %v7327_v3 }
 0x567   :  { %8733 = vmatprep.subr.bf16.mxu1 %v14915_v20 }
 0x56d   :  { %7839 = vmatmul.mubr.f32.vlgmr.msra.gmra.mrb[90].mxu1 %v7337_v4 }
 0x56e   :  { %8735 = vmatpush3.bf16.msra.mxu1 %v14915_v20  ;;  %7845 = vmatprep.mubr.f32.mxu1 %v7327_v3 }
 0x575   :  { %7846 = vmatmul.mubr.f32.vlgmr.msra.gmra.mrb[90].mxu1 %v7337_v4 }
 0x648   :  { %v7847_v54 = vpop.f32.mrb[90].mxu1 }
 0x649   :  { %v8813_v14 = vadd.f32 %v7847_v54, %v7781_v12  ;;  %v7752_v25 = vpop.f32.mrb[91].mxu1 }
 0x64a   :  { %v8814_v7 = vadd.f32 %v7781_v12, %v7752_v25 }
 0x64b   :  { %7763 = vst [vmem:[#allocation2 + $0x8] sm:$0xff] %v8813_v14 }
 0x64c   :  { %7762 = vst [vmem:[#allocation2] sm:$0xff] %v8814_v7 }
 0x64d   :  { %9567 = shalt.err (!%p9564_p4)
}
 0x64e   :  { %s9568_s4 = scalar_lea.hbm %s15195_s5, 256 }
 0x64f   :  { %p9569_p5 = scmp.ne.s32.totalorder %s15195_s5, %s9568_s4  ;;  %p9572_p6 = scmp.lt.u32.totalorder %s9568_s4, %s15195_s5 }
 0x651   :  { %p9574_p7 = pnand %p9572_p6, %p9569_p5 }
 0x653   :  { %9577 = shalt.err (!%p9574_p7)
}
 0x654   :  { %s9583_s8 = smov 128   ;;  %s9584_s9 = smov 8  }
 0x655   :  { %7775 = dma.vmem_to_hbm [thread:$0]  %s7770_s26, 256, %s15195_s5, [#allocation3], %s9583_s8, %s9583_s8, %s9584_s9  }
 0x656   :  { %9578 = dma.done.wait [#allocation3], 256  }
 0x657   :  { %9579 = vsyncadd [#allocation3], 4294967040 }
 0x658   :  { %7779 = vsyncpa [#allocation3], 1 }

</bundles_post_ra>
